<compile_context>
chip_gen: v6e
topology: v6e:2x2x1
jax: 0.10.0
libtpu: 0.0.40
codegen_flags: <defaults>
</compile_context>

<pallas_src>
import functools
import math

import jax
import jax.numpy as jnp
from jax import lax
from jax.experimental import pallas as pl
from jax.experimental.pallas import tpu as pltpu


def _round_up(x, m):
    return (x + m - 1) // m * m


# ----------------------- resident-weight grouped linear -----------------------
def _linear_kernel(*refs, has_bias):
    if has_bias:
        x_ref, w_ref, b_ref, o_ref = refs
    else:
        x_ref, w_ref, o_ref = refs
        b_ref = None
    # bf16 operands, f32 accumulation on the MXU.
    r = jnp.dot(x_ref[...], w_ref[0], preferred_element_type=jnp.float32)
    if b_ref is not None:
        r = r + b_ref[0].astype(jnp.float32)
    o_ref[0] = r.astype(o_ref.dtype)


def pallas_grouped_linear(x2d, w3, b3=None, out_dtype=None):
    """x2d: (M, K); w3: (G, K, Nout); b3: (G, 1, Nout) or None -> (G, M, Nout).

    M must be a multiple of 128 (wrapper pads tokens).  The full per-group
    weight is kept VMEM-resident (ViT-sized C <= 1024: a bf16 (1024,1024)
    block is 2 MiB), its block index is constant across the M axis so Pallas
    DMAs it once per group instead of re-streaming it per M tile.
    """
    M, K = x2d.shape
    G, K2, Nout = w3.shape
    assert K == K2 and M % 128 == 0
    out_dtype = out_dtype or x2d.dtype
    tm = 256 if M % 256 == 0 else 128
    # TODO(synk): add a K/N tiling fallback for dims where the weight block
    # (plus double buffering) would not fit the per-step VMEM budget.

    in_specs = [
        pl.BlockSpec((tm, K), lambda g, i: (i, 0)),
        pl.BlockSpec((1, K, Nout), lambda g, i: (g, 0, 0)),   # resident per group
    ]
    inputs = [x2d, w3]
    if b3 is not None:
        in_specs.append(pl.BlockSpec((1, 1, Nout), lambda g, i: (g, 0, 0)))
        inputs.append(b3)

    return pl.pallas_call(
        functools.partial(_linear_kernel, has_bias=b3 is not None),
        out_shape=jax.ShapeDtypeStruct((G, M, Nout), out_dtype),
        grid=(G, M // tm),                      # M innermost: weight stays put
        in_specs=in_specs,
        out_specs=pl.BlockSpec((1, tm, Nout), lambda g, i: (g, i, 0)),
        compiler_params=pltpu.CompilerParams(
            dimension_semantics=("parallel", "parallel"),
            vmem_limit_bytes=48 * 1024 * 1024),  # within v7x's 64 MiB physical
    )(*inputs)


# --------------------------- attention (SDPA) kernel --------------------------
def _heads_per_group(num_heads, head_dim):
    """Smallest divisor g of num_heads with g*head_dim a 128-lane multiple
    (lane-dense q/k/v/out blocks); fall back to all heads (full-C block)."""
    for g in range(1, num_heads + 1):
        if num_heads % g == 0 and (g * head_dim) % 128 == 0:
            return g
    return num_heads


def _attn_kernel(q_ref, k_ref, v_ref, o_ref, *, heads_per_group, head_dim,
                 n_valid, n_keys):
    q = q_ref[0, 0]          # (tq, gC)     bf16; softmax scale folded into W_q
    k = k_ref[0, 0]          # (n_keys, gC) bf16
    v = v_ref[0, 0]          # (n_keys, gC) bf16

    if n_valid != n_keys:    # static: only when the wrapper padded the sequence
        key_bias = jnp.where(
            lax.broadcasted_iota(jnp.int32, (1, n_keys), 1) < n_valid,
            jnp.float32(0.0), jnp.float32(-1e30))
    else:
        key_bias = None

    outs = []
    # heads_per_group is 1-2 for realistic head_dim >= 64 (128-lane groups), so
    # this tiny static unroll keeps live ranges bounded (no vreg spills).
    for h in range(heads_per_group):
        lo = h * head_dim
        qh = q[:, lo:lo + head_dim]
        kh = k[:, lo:lo + head_dim]
        vh = v[:, lo:lo + head_dim]
        # NT contraction over head_dim (no explicit k transpose); bf16 in, f32 acc.
        s = lax.dot_general(qh, kh, (((1,), (1,)), ((), ())),
                            preferred_element_type=jnp.float32)     # (tq, n_keys)
        if key_bias is not None:
            s = s + key_bias                                        # mask pad keys
        m = jnp.max(s, axis=-1, keepdims=True)                      # f32 softmax
        p = jnp.exp(s - m)
        l = jnp.sum(p, axis=-1, keepdims=True)
        oh = jnp.dot(p.astype(vh.dtype), vh,
                     preferred_element_type=jnp.float32)            # (tq, dh)
        # normalize AFTER the PV matmul: (tq, dh) muls instead of (tq, n_keys)
        outs.append(oh * pl.reciprocal(l, approx=True))             # EUP slot
    o = outs[0] if len(outs) == 1 else jnp.concatenate(outs, axis=-1)
    o_ref[0] = o.astype(o_ref.dtype)         # single lane-dense (tq, gC) store


def pallas_sdpa(qkv, num_heads, n_valid):
    """qkv: (3, B, Npad, C) bf16 -> (B, Npad, C) bf16 (default SDPA scale folded
    into the qkv weights).  Grid over (batch, head-groups, query tiles)."""
    _, B, npad, C = qkv.shape
    assert C % num_heads == 0
    dh = C // num_heads
    hpg = _heads_per_group(num_heads, dh)
    hg = num_heads // hpg
    gC = hpg * dh
    tq = 256 if npad % 256 == 0 else 128

    kernel = functools.partial(_attn_kernel, heads_per_group=hpg, head_dim=dh,
                               n_valid=n_valid, n_keys=npad)
    return pl.pallas_call(
        kernel,
        out_shape=jax.ShapeDtypeStruct((B, npad, C), qkv.dtype),
        grid=(B, hg, npad // tq),
        in_specs=[
            pl.BlockSpec((1, 1, tq, gC), lambda b, h, qi: (0, b, qi, h)),   # q tile
            pl.BlockSpec((1, 1, npad, gC), lambda b, h, qi: (1, b, 0, h)),  # k slab
            pl.BlockSpec((1, 1, npad, gC), lambda b, h, qi: (2, b, 0, h)),  # v slab
        ],
        out_specs=pl.BlockSpec((1, tq, gC), lambda b, h, qi: (b, qi, h)),
        compiler_params=pltpu.CompilerParams(
            dimension_semantics=("parallel", "parallel", "parallel"),
            vmem_limit_bytes=48 * 1024 * 1024),
    )(qkv, qkv, qkv)


# ------------------------------ full forward ----------------------------------
def attention_forward(x, act_scaling_factor, params, num_heads):
    """Mirrors Attention.forward(x, act_scaling_factor)."""
    del act_scaling_factor  # consumed only by the (identity-modelled) quantizers
    B, N, C = x.shape

    # Pad tokens once: clean (8,128) layouts, lane-dense score rows, MXU-sized
    # M tiles.  Padded rows are zero (qkv_bias=False -> zero q/k/v rows) and
    # padded key columns are masked inside the SDPA kernel.
    npad = _round_up(N, 128)
    if npad != N:
        x = jnp.pad(x, ((0, 0), (0, npad - N), (0, 0)))
    x2d = x.reshape(B * npad, C).astype(jnp.bfloat16)

    # Fused qkv projection (Quantized_Linear, qkv_bias=False) -> (3, B*npad, C)
    qkv = pallas_grouped_linear(x2d, params["w_qkv3"], None, jnp.bfloat16)
    qkv = qkv.reshape(3, B, npad, C)                   # contiguous, free

    # F.scaled_dot_product_attention + head merge; output lane-dense (B, npad, C)
    o = pallas_sdpa(qkv, num_heads, n_valid=N)

    # qact2: QuantAct -> identity pass-through here.
    # proj projection (Quantized_Linear, bias=True); final output in f32.
    out = pallas_grouped_linear(o.reshape(B * npad, C), params["w_proj3"],
                                params["b_proj3"], jnp.float32)
    return out[0].reshape(B, npad, C)[:, :N, :]


# ------------------------------ params ----------------------------------------
def init_params(key, dim):
    k1, k2, k3 = jax.random.split(key, 3)
    # raw weights in (in_features, out_features) layout (pre-transposed vs torch);
    # qkv output-feature order is [q | k | v], each C wide.
    w_qkv = 0.02 * jax.random.normal(k1, (dim, 3 * dim), jnp.float32)
    w_proj = 0.02 * jax.random.normal(k2, (dim, dim), jnp.float32)
    b_proj = 0.02 * jax.random.normal(k3, (dim,), jnp.float32)
    return {"w_qkv": w_qkv, "w_proj": w_proj, "b_proj": b_proj}


def prepare_params(raw, num_heads):
    """One-time weight re-layout: q/k/v stacked on a lead axis, bf16 cast, and
    the SDPA softmax scale (1/sqrt(head_dim)) folded into the q columns."""
    dim = raw["w_proj"].shape[0]
    scale = (dim // num_heads) ** (-0.5)
    w_qkv = raw["w_qkv"].astype(jnp.float32).at[:, :dim].multiply(scale)
    return {
        "w_qkv3": w_qkv.reshape(dim, 3, dim).transpose(1, 0, 2)
                       .astype(jnp.bfloat16),                        # (3, C, C)
        "w_proj3": raw["w_proj"][None].astype(jnp.bfloat16),          # (1, C, C)
        "b_proj3": raw["b_proj"].reshape(1, 1, dim).astype(jnp.float32),  # (1,1,C) f32
    }


if __name__ == "__main__":
    B, N, C = 2, 8, 32
    num_heads = 8

    key = jax.random.PRNGKey(0)
    kx, kp = jax.random.split(key)
    x = jax.random.normal(kx, (B, N, C), jnp.float32)
    act_scaling_factor = jnp.float32(1.0)

    raw = init_params(kp, C)
    params = prepare_params(raw, num_heads)

    fwd = jax.jit(functools.partial(attention_forward, num_heads=num_heads))
    out = jax.block_until_ready(fwd(x, act_scaling_factor, params))
    assert out.shape == (B, N, C), out.shape

    # pure-JAX f32 reference (mirrors the PyTorch forward)
    def ref(x):
        dh = C // num_heads
        qkv = x.reshape(B * N, C) @ raw["w_qkv"]
        qkv = qkv.reshape(B, N, 3, num_heads, dh).transpose(2, 0, 3, 1, 4)
        q, k, v = qkv[0], qkv[1], qkv[2]
        s = jnp.einsum("bhqd,bhkd->bhqk", q, k) / math.sqrt(dh)
        p = jax.nn.softmax(s, axis=-1)
        o = jnp.einsum("bhqk,bhkd->bhqd", p, v).transpose(0, 2, 1, 3)
        o = o.reshape(B * N, C)
        return (o @ raw["w_proj"] + raw["b_proj"]).reshape(B, N, C)

    ref_out = ref(x)
    # tolerance covers bf16 MXU operands + approximate EUP reciprocal in softmax
    err = float(jnp.max(jnp.abs(out - ref_out)))
    assert jnp.allclose(out, ref_out, atol=1e-2, rtol=5e-2), err

    print("KERNEL_OK")
</pallas_src>

<mosaic_0001>
module attributes {stable_mosaic.version = 11 : i64} {
  func.func @_linear_kernel(%arg0: i32, %arg1: i32, %arg2: memref<256x32xbf16, #tpu.memory_space<vmem>>, %arg3: memref<1x32x32xbf16, #tpu.memory_space<vmem>>, %arg4: memref<1x256x32xbf16, #tpu.memory_space<vmem>>) attributes {dimension_semantics = [#tpu.dimension_semantics<parallel>, #tpu.dimension_semantics<parallel>], iteration_bounds = array<i64: 3, 1>, scalar_prefetch = 0 : i64, scratch_operands = 0 : i64, tpu.core_type = #tpu.core_type<tc>, window_params = [{transform_indices = @transform_0, window_bounds = array<i64: 256, 32>}, {transform_indices = @transform_1, window_bounds = array<i64: 1, 32, 32>}, {transform_indices = @transform_2, window_bounds = array<i64: 1, 256, 32>}]} {
    %c0 = arith.constant 0 : index
    %c0_0 = arith.constant 0 : index
    %0 = vector.load %arg2[%c0, %c0_0] : memref<256x32xbf16, #tpu.memory_space<vmem>>, vector<256x32xbf16>
    %c0_1 = arith.constant 0 : index
    %c0_2 = arith.constant 0 : index
    %c0_3 = arith.constant 0 : index
    %1 = vector.load %arg3[%c0_1, %c0_2, %c0_3] : memref<1x32x32xbf16, #tpu.memory_space<vmem>>, vector<1x32x32xbf16>
    %2 = vector.shape_cast %1 : vector<1x32x32xbf16> to vector<32x32xbf16>
    %cst = arith.constant dense<0.000000e+00> : vector<256x32xf32>
    %3 = tpu.matmul %0, %2, %cst {dimension_numbers = #tpu.dot_dimension_numbers<[1], [0], [0], [1], [0, 0, 1, 1], [], []>} : vector<256x32xbf16>, vector<32x32xbf16>, vector<256x32xf32> -> vector<256x32xf32>
    %4 = arith.truncf %3 : vector<256x32xf32> to vector<256x32xbf16>
    %c0_4 = arith.constant 0 : index
    %c0_5 = arith.constant 0 : index
    %c0_6 = arith.constant 0 : index
    %5 = vector.load %arg4[%c0_4, %c0_5, %c0_6] : memref<1x256x32xbf16, #tpu.memory_space<vmem>>, vector<1x256x32xbf16>
    %6 = vector.shape_cast %5 : vector<1x256x32xbf16> to vector<256x32xbf16>
    %7 = vector.shape_cast %4 : vector<256x32xbf16> to vector<1x256x32xbf16>
    tpu.vector_store %arg4[%c0_4, %c0_5, %c0_6], %7 {strides = array<i32>} : memref<1x256x32xbf16, #tpu.memory_space<vmem>>, vector<1x256x32xbf16>,
    return
  }
  func.func @transform_0(%arg0: i32, %arg1: i32) -> (i32, i32) {
    %c0_i32 = arith.constant 0 : i32
    %c0_i32_0 = arith.constant 0 : i32
    return %arg1, %c0_i32 : i32, i32
  }
  func.func @transform_1(%arg0: i32, %arg1: i32) -> (i32, i32, i32) {
    %c0_i32 = arith.constant 0 : i32
    %c0_i32_0 = arith.constant 0 : i32
    %c0_i32_1 = arith.constant 0 : i32
    return %arg0, %c0_i32, %c0_i32_0 : i32, i32, i32
  }
  func.func @transform_2(%arg0: i32, %arg1: i32) -> (i32, i32, i32) {
    %c0_i32 = arith.constant 0 : i32
    %c0_i32_0 = arith.constant 0 : i32
    return %arg0, %arg1, %c0_i32 : i32, i32, i32
  }
}

module attributes {stable_mosaic.version = 11 : i64} {
  func.func @_attn_kernel(%arg0: i32, %arg1: i32, %arg2: i32, %arg3: memref<1x1x128x32xbf16, #tpu.memory_space<vmem>>, %arg4: memref<1x1x128x32xbf16, #tpu.memory_space<vmem>>, %arg5: memref<1x1x128x32xbf16, #tpu.memory_space<vmem>>, %arg6: memref<1x128x32xbf16, #tpu.memory_space<vmem>>) attributes {dimension_semantics = [#tpu.dimension_semantics<parallel>, #tpu.dimension_semantics<parallel>, #tpu.dimension_semantics<parallel>], iteration_bounds = array<i64: 2, 1, 1>, scalar_prefetch = 0 : i64, scratch_operands = 0 : i64, tpu.core_type = #tpu.core_type<tc>, window_params = [{transform_indices = @transform_0, window_bounds = array<i64: 1, 1, 128, 32>}, {transform_indices = @transform_1, window_bounds = array<i64: 1, 1, 128, 32>}, {transform_indices = @transform_2, window_bounds = array<i64: 1, 1, 128, 32>}, {transform_indices = @transform_3, window_bounds = array<i64: 1, 128, 32>}]} {
    %c0 = arith.constant 0 : index
    %c0_0 = arith.constant 0 : index
    %c0_1 = arith.constant 0 : index
    %c0_2 = arith.constant 0 : index
    %0 = vector.load %arg3[%c0, %c0_0, %c0_1, %c0_2] : memref<1x1x128x32xbf16, #tpu.memory_space<vmem>>, vector<1x1x128x32xbf16>
    %1 = vector.shape_cast %0 : vector<1x1x128x32xbf16> to vector<128x32xbf16>
    %c0_3 = arith.constant 0 : index
    %c0_4 = arith.constant 0 : index
    %c0_5 = arith.constant 0 : index
    %c0_6 = arith.constant 0 : index
    %2 = vector.load %arg4[%c0_3, %c0_4, %c0_5, %c0_6] : memref<1x1x128x32xbf16, #tpu.memory_space<vmem>>, vector<1x1x128x32xbf16>
    %3 = vector.shape_cast %2 : vector<1x1x128x32xbf16> to vector<128x32xbf16>
    %c0_7 = arith.constant 0 : index
    %c0_8 = arith.constant 0 : index
    %c0_9 = arith.constant 0 : index
    %c0_10 = arith.constant 0 : index
    %4 = vector.load %arg5[%c0_7, %c0_8, %c0_9, %c0_10] : memref<1x1x128x32xbf16, #tpu.memory_space<vmem>>, vector<1x1x128x32xbf16>
    %5 = vector.shape_cast %4 : vector<1x1x128x32xbf16> to vector<128x32xbf16>
    %6 = tpu.iota {dimensions = array<i32: 1>} : vector<1x128xi32>
    %c8_i32 = arith.constant 8 : i32
    %7 = vector.broadcast %c8_i32 : i32 to vector<1x128xi32>
    %8 = arith.cmpi slt, %6, %7 : vector<1x128xi32>
    %cst = arith.constant 0.000000e+00 : f32
    %cst_11 = arith.constant -1.000000e+30 : f32
    %9 = vector.broadcast %cst : f32 to vector<1x128xf32>
    %10 = vector.broadcast %cst_11 : f32 to vector<1x128xf32>
    %11 = arith.select %8, %9, %10 : vector<1x128xi1>, vector<1x128xf32>
    %12 = vector.extract_strided_slice %1 {offsets = [0, 0], sizes = [128, 4], strides = [1, 1]} : vector<128x32xbf16> to vector<128x4xbf16>
    %13 = vector.extract_strided_slice %3 {offsets = [0, 0], sizes = [128, 4], strides = [1, 1]} : vector<128x32xbf16> to vector<128x4xbf16>
    %14 = vector.extract_strided_slice %5 {offsets = [0, 0], sizes = [128, 4], strides = [1, 1]} : vector<128x32xbf16> to vector<128x4xbf16>
    %cst_12 = arith.constant dense<0.000000e+00> : vector<128x128xf32>
    %15 = tpu.matmul %12, %13, %cst_12 {dimension_numbers = #tpu.dot_dimension_numbers<[1], [1], [0], [0], [0, 0, 1, 0], [], []>} : vector<128x4xbf16>, vector<128x4xbf16>, vector<128x128xf32> -> vector<128x128xf32>
    %16 = vector.broadcast %11 : vector<1x128xf32> to vector<128x128xf32>
    %17 = arith.addf %15, %16 : vector<128x128xf32>
    %cst_13 = arith.constant dense<0xFF800000> : vector<128xf32>
    %18 = vector.multi_reduction <maximumf>, %17, %cst_13 [1] : vector<128x128xf32> to vector<128xf32>
    %19 = vector.shape_cast %18 : vector<128xf32> to vector<128x1xf32>
    %20 = vector.broadcast %19 : vector<128x1xf32> to vector<128x128xf32>
    %21 = arith.subf %17, %20 : vector<128x128xf32>
    %22 = math.exp %21 : vector<128x128xf32>
    %cst_14 = arith.constant dense<0.000000e+00> : vector<128xf32>
    %23 = vector.multi_reduction <add>, %22, %cst_14 [1] : vector<128x128xf32> to vector<128xf32>
    %24 = vector.shape_cast %23 : vector<128xf32> to vector<128x1xf32>
    %25 = arith.truncf %22 : vector<128x128xf32> to vector<128x128xbf16>
    %cst_15 = arith.constant dense<0.000000e+00> : vector<128x4xf32>
    %26 = tpu.matmul %25, %14, %cst_15 {dimension_numbers = #tpu.dot_dimension_numbers<[1], [0], [0], [1], [0, 0, 1, 1], [], []>} : vector<128x128xbf16>, vector<128x4xbf16>, vector<128x4xf32> -> vector<128x4xf32>
    %27 = tpu.reciprocal %24 {approx = true} : vector<128x1xf32> -> vector<128x1xf32>
    %28 = vector.broadcast %27 : vector<128x1xf32> to vector<128x4xf32>
    %29 = arith.mulf %26, %28 : vector<128x4xf32>
    %30 = vector.extract_strided_slice %1 {offsets = [0, 4], sizes = [128, 4], strides = [1, 1]} : vector<128x32xbf16> to vector<128x4xbf16>
    %31 = vector.extract_strided_slice %3 {offsets = [0, 4], sizes = [128, 4], strides = [1, 1]} : vector<128x32xbf16> to vector<128x4xbf16>
    %32 = vector.extract_strided_slice %5 {offsets = [0, 4], sizes = [128, 4], strides = [1, 1]} : vector<128x32xbf16> to vector<128x4xbf16>
    %cst_16 = arith.constant dense<0.000000e+00> : vector<128x128xf32>
    %33 = tpu.matmul %30, %31, %cst_16 {dimension_numbers = #tpu.dot_dimension_numbers<[1], [1], [0], [0], [0, 0, 1, 0], [], []>} : vector<128x4xbf16>, vector<128x4xbf16>, vector<128x128xf32> -> vector<128x128xf32>
    %34 = vector.broadcast %11 : vector<1x128xf32> to vector<128x128xf32>
    %35 = arith.addf %33, %34 : vector<128x128xf32>
    %cst_17 = arith.constant dense<0xFF800000> : vector<128xf32>
    %36 = vector.multi_reduction <maximumf>, %35, %cst_17 [1] : vector<128x128xf32> to vector<128xf32>
    %37 = vector.shape_cast %36 : vector<128xf32> to vector<128x1xf32>
    %38 = vector.broadcast %37 : vector<128x1xf32> to vector<128x128xf32>
    %39 = arith.subf %35, %38 : vector<128x128xf32>
    %40 = math.exp %39 : vector<128x128xf32>
    %cst_18 = arith.constant dense<0.000000e+00> : vector<128xf32>
    %41 = vector.multi_reduction <add>, %40, %cst_18 [1] : vector<128x128xf32> to vector<128xf32>
    %42 = vector.shape_cast %41 : vector<128xf32> to vector<128x1xf32>
    %43 = arith.truncf %40 : vector<128x128xf32> to vector<128x128xbf16>
    %cst_19 = arith.constant dense<0.000000e+00> : vector<128x4xf32>
    %44 = tpu.matmul %43, %32, %cst_19 {dimension_numbers = #tpu.dot_dimension_numbers<[1], [0], [0], [1], [0, 0, 1, 1], [], []>} : vector<128x128xbf16>, vector<128x4xbf16>, vector<128x4xf32> -> vector<128x4xf32>
    %45 = tpu.reciprocal %42 {approx = true} : vector<128x1xf32> -> vector<128x1xf32>
    %46 = vector.broadcast %45 : vector<128x1xf32> to vector<128x4xf32>
    %47 = arith.mulf %44, %46 : vector<128x4xf32>
    %48 = vector.extract_strided_slice %1 {offsets = [0, 8], sizes = [128, 4], strides = [1, 1]} : vector<128x32xbf16> to vector<128x4xbf16>
    %49 = vector.extract_strided_slice %3 {offsets = [0, 8], sizes = [128, 4], strides = [1, 1]} : vector<128x32xbf16> to vector<128x4xbf16>
    %50 = vector.extract_strided_slice %5 {offsets = [0, 8], sizes = [128, 4], strides = [1, 1]} : vector<128x32xbf16> to vector<128x4xbf16>
    %cst_20 = arith.constant dense<0.000000e+00> : vector<128x128xf32>
    %51 = tpu.matmul %48, %49, %cst_20 {dimension_numbers = #tpu.dot_dimension_numbers<[1], [1], [0], [0], [0, 0, 1, 0], [], []>} : vector<128x4xbf16>, vector<128x4xbf16>, vector<128x128xf32> -> vector<128x128xf32>
    %52 = vector.broadcast %11 : vector<1x128xf32> to vector<128x128xf32>
    %53 = arith.addf %51, %52 : vector<128x128xf32>
    %cst_21 = arith.constant dense<0xFF800000> : vector<128xf32>
    %54 = vector.multi_reduction <maximumf>, %53, %cst_21 [1] : vector<128x128xf32> to vector<128xf32>
    %55 = vector.shape_cast %54 : vector<128xf32> to vector<128x1xf32>
    %56 = vector.broadcast %55 : vector<128x1xf32> to vector<128x128xf32>
    %57 = arith.subf %53, %56 : vector<128x128xf32>
    %58 = math.exp %57 : vector<128x128xf32>
    %cst_22 = arith.constant dense<0.000000e+00> : vector<128xf32>
    %59 = vector.multi_reduction <add>, %58, %cst_22 [1] : vector<128x128xf32> to vector<128xf32>
    %60 = vector.shape_cast %59 : vector<128xf32> to vector<128x1xf32>
    %61 = arith.truncf %58 : vector<128x128xf32> to vector<128x128xbf16>
    %cst_23 = arith.constant dense<0.000000e+00> : vector<128x4xf32>
    %62 = tpu.matmul %61, %50, %cst_23 {dimension_numbers = #tpu.dot_dimension_numbers<[1], [0], [0], [1], [0, 0, 1, 1], [], []>} : vector<128x128xbf16>, vector<128x4xbf16>, vector<128x4xf32> -> vector<128x4xf32>
    %63 = tpu.reciprocal %60 {approx = true} : vector<128x1xf32> -> vector<128x1xf32>
    %64 = vector.broadcast %63 : vector<128x1xf32> to vector<128x4xf32>
    %65 = arith.mulf %62, %64 : vector<128x4xf32>
    %66 = vector.extract_strided_slice %1 {offsets = [0, 12], sizes = [128, 4], strides = [1, 1]} : vector<128x32xbf16> to vector<128x4xbf16>
    %67 = vector.extract_strided_slice %3 {offsets = [0, 12], sizes = [128, 4], strides = [1, 1]} : vector<128x32xbf16> to vector<128x4xbf16>
    %68 = vector.extract_strided_slice %5 {offsets = [0, 12], sizes = [128, 4], strides = [1, 1]} : vector<128x32xbf16> to vector<128x4xbf16>
    %cst_24 = arith.constant dense<0.000000e+00> : vector<128x128xf32>
    %69 = tpu.matmul %66, %67, %cst_24 {dimension_numbers = #tpu.dot_dimension_numbers<[1], [1], [0], [0], [0, 0, 1, 0], [], []>} : vector<128x4xbf16>, vector<128x4xbf16>, vector<128x128xf32> -> vector<128x128xf32>
    %70 = vector.broadcast %11 : vector<1x128xf32> to vector<128x128xf32>
    %71 = arith.addf %69, %70 : vector<128x128xf32>
    %cst_25 = arith.constant dense<0xFF800000> : vector<128xf32>
    %72 = vector.multi_reduction <maximumf>, %71, %cst_25 [1] : vector<128x128xf32> to vector<128xf32>
    %73 = vector.shape_cast %72 : vector<128xf32> to vector<128x1xf32>
    %74 = vector.broadcast %73 : vector<128x1xf32> to vector<128x128xf32>
    %75 = arith.subf %71, %74 : vector<128x128xf32>
    %76 = math.exp %75 : vector<128x128xf32>
    %cst_26 = arith.constant dense<0.000000e+00> : vector<128xf32>
    %77 = vector.multi_reduction <add>, %76, %cst_26 [1] : vector<128x128xf32> to vector<128xf32>
    %78 = vector.shape_cast %77 : vector<128xf32> to vector<128x1xf32>
    %79 = arith.truncf %76 : vector<128x128xf32> to vector<128x128xbf16>
    %cst_27 = arith.constant dense<0.000000e+00> : vector<128x4xf32>
    %80 = tpu.matmul %79, %68, %cst_27 {dimension_numbers = #tpu.dot_dimension_numbers<[1], [0], [0], [1], [0, 0, 1, 1], [], []>} : vector<128x128xbf16>, vector<128x4xbf16>, vector<128x4xf32> -> vector<128x4xf32>
    %81 = tpu.reciprocal %78 {approx = true} : vector<128x1xf32> -> vector<128x1xf32>
    %82 = vector.broadcast %81 : vector<128x1xf32> to vector<128x4xf32>
    %83 = arith.mulf %80, %82 : vector<128x4xf32>
    %84 = vector.extract_strided_slice %1 {offsets = [0, 16], sizes = [128, 4], strides = [1, 1]} : vector<128x32xbf16> to vector<128x4xbf16>
    %85 = vector.extract_strided_slice %3 {offsets = [0, 16], sizes = [128, 4], strides = [1, 1]} : vector<128x32xbf16> to vector<128x4xbf16>
    %86 = vector.extract_strided_slice %5 {offsets = [0, 16], sizes = [128, 4], strides = [1, 1]} : vector<128x32xbf16> to vector<128x4xbf16>
    %cst_28 = arith.constant dense<0.000000e+00> : vector<128x128xf32>
    %87 = tpu.matmul %84, %85, %cst_28 {dimension_numbers = #tpu.dot_dimension_numbers<[1], [1], [0], [0], [0, 0, 1, 0], [], []>} : vector<128x4xbf16>, vector<128x4xbf16>, vector<128x128xf32> -> vector<128x128xf32>
    %88 = vector.broadcast %11 : vector<1x128xf32> to vector<128x128xf32>
    %89 = arith.addf %87, %88 : vector<128x128xf32>
    %cst_29 = arith.constant dense<0xFF800000> : vector<128xf32>
    %90 = vector.multi_reduction <maximumf>, %89, %cst_29 [1] : vector<128x128xf32> to vector<128xf32>
    %91 = vector.shape_cast %90 : vector<128xf32> to vector<128x1xf32>
    %92 = vector.broadcast %91 : vector<128x1xf32> to vector<128x128xf32>
    %93 = arith.subf %89, %92 : vector<128x128xf32>
    %94 = math.exp %93 : vector<128x128xf32>
    %cst_30 = arith.constant dense<0.000000e+00> : vector<128xf32>
    %95 = vector.multi_reduction <add>, %94, %cst_30 [1] : vector<128x128xf32> to vector<128xf32>
    %96 = vector.shape_cast %95 : vector<128xf32> to vector<128x1xf32>
    %97 = arith.truncf %94 : vector<128x128xf32> to vector<128x128xbf16>
    %cst_31 = arith.constant dense<0.000000e+00> : vector<128x4xf32>
    %98 = tpu.matmul %97, %86, %cst_31 {dimension_numbers = #tpu.dot_dimension_numbers<[1], [0], [0], [1], [0, 0, 1, 1], [], []>} : vector<128x128xbf16>, vector<128x4xbf16>, vector<128x4xf32> -> vector<128x4xf32>
    %99 = tpu.reciprocal %96 {approx = true} : vector<128x1xf32> -> vector<128x1xf32>
    %100 = vector.broadcast %99 : vector<128x1xf32> to vector<128x4xf32>
    %101 = arith.mulf %98, %100 : vector<128x4xf32>
    %102 = vector.extract_strided_slice %1 {offsets = [0, 20], sizes = [128, 4], strides = [1, 1]} : vector<128x32xbf16> to vector<128x4xbf16>
    %103 = vector.extract_strided_slice %3 {offsets = [0, 20], sizes = [128, 4], strides = [1, 1]} : vector<128x32xbf16> to vector<128x4xbf16>
    %104 = vector.extract_strided_slice %5 {offsets = [0, 20], sizes = [128, 4], strides = [1, 1]} : vector<128x32xbf16> to vector<128x4xbf16>
    %cst_32 = arith.constant dense<0.000000e+00> : vector<128x128xf32>
    %105 = tpu.matmul %102, %103, %cst_32 {dimension_numbers = #tpu.dot_dimension_numbers<[1], [1], [0], [0], [0, 0, 1, 0], [], []>} : vector<128x4xbf16>, vector<128x4xbf16>, vector<128x128xf32> -> vector<128x128xf32>
    %106 = vector.broadcast %11 : vector<1x128xf32> to vector<128x128xf32>
    %107 = arith.addf %105, %106 : vector<128x128xf32>
    %cst_33 = arith.constant dense<0xFF800000> : vector<128xf32>
    %108 = vector.multi_reduction <maximumf>, %107, %cst_33 [1] : vector<128x128xf32> to vector<128xf32>
    %109 = vector.shape_cast %108 : vector<128xf32> to vector<128x1xf32>
    %110 = vector.broadcast %109 : vector<128x1xf32> to vector<128x128xf32>
    %111 = arith.subf %107, %110 : vector<128x128xf32>
    %112 = math.exp %111 : vector<128x128xf32>
    %cst_34 = arith.constant dense<0.000000e+00> : vector<128xf32>
    %113 = vector.multi_reduction <add>, %112, %cst_34 [1] : vector<128x128xf32> to vector<128xf32>
    %114 = vector.shape_cast %113 : vector<128xf32> to vector<128x1xf32>
    %115 = arith.truncf %112 : vector<128x128xf32> to vector<128x128xbf16>
    %cst_35 = arith.constant dense<0.000000e+00> : vector<128x4xf32>
    %116 = tpu.matmul %115, %104, %cst_35 {dimension_numbers = #tpu.dot_dimension_numbers<[1], [0], [0], [1], [0, 0, 1, 1], [], []>} : vector<128x128xbf16>, vector<128x4xbf16>, vector<128x4xf32> -> vector<128x4xf32>
    %117 = tpu.reciprocal %114 {approx = true} : vector<128x1xf32> -> vector<128x1xf32>
    %118 = vector.broadcast %117 : vector<128x1xf32> to vector<128x4xf32>
    %119 = arith.mulf %116, %118 : vector<128x4xf32>
    %120 = vector.extract_strided_slice %1 {offsets = [0, 24], sizes = [128, 4], strides = [1, 1]} : vector<128x32xbf16> to vector<128x4xbf16>
    %121 = vector.extract_strided_slice %3 {offsets = [0, 24], sizes = [128, 4], strides = [1, 1]} : vector<128x32xbf16> to vector<128x4xbf16>
    %122 = vector.extract_strided_slice %5 {offsets = [0, 24], sizes = [128, 4], strides = [1, 1]} : vector<128x32xbf16> to vector<128x4xbf16>
    %cst_36 = arith.constant dense<0.000000e+00> : vector<128x128xf32>
    %123 = tpu.matmul %120, %121, %cst_36 {dimension_numbers = #tpu.dot_dimension_numbers<[1], [1], [0], [0], [0, 0, 1, 0], [], []>} : vector<128x4xbf16>, vector<128x4xbf16>, vector<128x128xf32> -> vector<128x128xf32>
    %124 = vector.broadcast %11 : vector<1x128xf32> to vector<128x128xf32>
    %125 = arith.addf %123, %124 : vector<128x128xf32>
    %cst_37 = arith.constant dense<0xFF800000> : vector<128xf32>
    %126 = vector.multi_reduction <maximumf>, %125, %cst_37 [1] : vector<128x128xf32> to vector<128xf32>
    %127 = vector.shape_cast %126 : vector<128xf32> to vector<128x1xf32>
    %128 = vector.broadcast %127 : vector<128x1xf32> to vector<128x128xf32>
    %129 = arith.subf %125, %128 : vector<128x128xf32>
    %130 = math.exp %129 : vector<128x128xf32>
    %cst_38 = arith.constant dense<0.000000e+00> : vector<128xf32>
    %131 = vector.multi_reduction <add>, %130, %cst_38 [1] : vector<128x128xf32> to vector<128xf32>
    %132 = vector.shape_cast %131 : vector<128xf32> to vector<128x1xf32>
    %133 = arith.truncf %130 : vector<128x128xf32> to vector<128x128xbf16>
    %cst_39 = arith.constant dense<0.000000e+00> : vector<128x4xf32>
    %134 = tpu.matmul %133, %122, %cst_39 {dimension_numbers = #tpu.dot_dimension_numbers<[1], [0], [0], [1], [0, 0, 1, 1], [], []>} : vector<128x128xbf16>, vector<128x4xbf16>, vector<128x4xf32> -> vector<128x4xf32>
    %135 = tpu.reciprocal %132 {approx = true} : vector<128x1xf32> -> vector<128x1xf32>
    %136 = vector.broadcast %135 : vector<128x1xf32> to vector<128x4xf32>
    %137 = arith.mulf %134, %136 : vector<128x4xf32>
    %138 = vector.extract_strided_slice %1 {offsets = [0, 28], sizes = [128, 4], strides = [1, 1]} : vector<128x32xbf16> to vector<128x4xbf16>
    %139 = vector.extract_strided_slice %3 {offsets = [0, 28], sizes = [128, 4], strides = [1, 1]} : vector<128x32xbf16> to vector<128x4xbf16>
    %140 = vector.extract_strided_slice %5 {offsets = [0, 28], sizes = [128, 4], strides = [1, 1]} : vector<128x32xbf16> to vector<128x4xbf16>
    %cst_40 = arith.constant dense<0.000000e+00> : vector<128x128xf32>
    %141 = tpu.matmul %138, %139, %cst_40 {dimension_numbers = #tpu.dot_dimension_numbers<[1], [1], [0], [0], [0, 0, 1, 0], [], []>} : vector<128x4xbf16>, vector<128x4xbf16>, vector<128x128xf32> -> vector<128x128xf32>
    %142 = vector.broadcast %11 : vector<1x128xf32> to vector<128x128xf32>
    %143 = arith.addf %141, %142 : vector<128x128xf32>
    %cst_41 = arith.constant dense<0xFF800000> : vector<128xf32>
    %144 = vector.multi_reduction <maximumf>, %143, %cst_41 [1] : vector<128x128xf32> to vector<128xf32>
    %145 = vector.shape_cast %144 : vector<128xf32> to vector<128x1xf32>
    %146 = vector.broadcast %145 : vector<128x1xf32> to vector<128x128xf32>
    %147 = arith.subf %143, %146 : vector<128x128xf32>
    %148 = math.exp %147 : vector<128x128xf32>
    %cst_42 = arith.constant dense<0.000000e+00> : vector<128xf32>
    %149 = vector.multi_reduction <add>, %148, %cst_42 [1] : vector<128x128xf32> to vector<128xf32>
    %150 = vector.shape_cast %149 : vector<128xf32> to vector<128x1xf32>
    %151 = arith.truncf %148 : vector<128x128xf32> to vector<128x128xbf16>
    %cst_43 = arith.constant dense<0.000000e+00> : vector<128x4xf32>
    %152 = tpu.matmul %151, %140, %cst_43 {dimension_numbers = #tpu.dot_dimension_numbers<[1], [0], [0], [1], [0, 0, 1, 1], [], []>} : vector<128x128xbf16>, vector<128x4xbf16>, vector<128x4xf32> -> vector<128x4xf32>
    %153 = tpu.reciprocal %150 {approx = true} : vector<128x1xf32> -> vector<128x1xf32>
    %154 = vector.broadcast %153 : vector<128x1xf32> to vector<128x4xf32>
    %155 = arith.mulf %152, %154 : vector<128x4xf32>
    %156 = tpu.concatenate %29, %47, %65, %83, %101, %119, %137, %155 in 1 : vector<128x4xf32>, vector<128x4xf32>, vector<128x4xf32>, vector<128x4xf32>, vector<128x4xf32>, vector<128x4xf32>, vector<128x4xf32>, vector<128x4xf32> -> vector<128x32xf32>
    %157 = arith.truncf %156 : vector<128x32xf32> to vector<128x32xbf16>
    %c0_44 = arith.constant 0 : index
    %c0_45 = arith.constant 0 : index
    %c0_46 = arith.constant 0 : index
    %158 = vector.load %arg6[%c0_44, %c0_45, %c0_46] : memref<1x128x32xbf16, #tpu.memory_space<vmem>>, vector<1x128x32xbf16>
    %159 = vector.shape_cast %158 : vector<1x128x32xbf16> to vector<128x32xbf16>
    %160 = vector.shape_cast %157 : vector<128x32xbf16> to vector<1x128x32xbf16>
    tpu.vector_store %arg6[%c0_44, %c0_45, %c0_46], %160 {strides = array<i32>} : memref<1x128x32xbf16, #tpu.memory_space<vmem>>, vector<1x128x32xbf16>,
    return
  }
  func.func @transform_0(%arg0: i32, %arg1: i32, %arg2: i32) -> (i32, i32, i32, i32) {
    %c0_i32 = arith.constant 0 : i32
    %c0_i32_0 = arith.constant 0 : i32
    return %c0_i32, %arg0, %arg2, %arg1 : i32, i32, i32, i32
  }
  func.func @transform_1(%arg0: i32, %arg1: i32, %arg2: i32) -> (i32, i32, i32, i32) {
    %c1_i32 = arith.constant 1 : i32
    %c0_i32 = arith.constant 0 : i32
    %c0_i32_0 = arith.constant 0 : i32
    return %c1_i32, %arg0, %c0_i32, %arg1 : i32, i32, i32, i32
  }
  func.func @transform_2(%arg0: i32, %arg1: i32, %arg2: i32) -> (i32, i32, i32, i32) {
    %c2_i32 = arith.constant 2 : i32
    %c0_i32 = arith.constant 0 : i32
    %c0_i32_0 = arith.constant 0 : i32
    return %c2_i32, %arg0, %c0_i32, %arg1 : i32, i32, i32, i32
  }
  func.func @transform_3(%arg0: i32, %arg1: i32, %arg2: i32) -> (i32, i32, i32) {
    %c0_i32 = arith.constant 0 : i32
    return %arg0, %arg2, %arg1 : i32, i32, i32
  }
}

module attributes {stable_mosaic.version = 11 : i64} {
  func.func @_linear_kernel(%arg0: i32, %arg1: i32, %arg2: memref<256x32xbf16, #tpu.memory_space<vmem>>, %arg3: memref<1x32x32xbf16, #tpu.memory_space<vmem>>, %arg4: memref<1x1x32xf32, #tpu.memory_space<vmem>>, %arg5: memref<1x256x32xf32, #tpu.memory_space<vmem>>) attributes {dimension_semantics = [#tpu.dimension_semantics<parallel>, #tpu.dimension_semantics<parallel>], iteration_bounds = array<i64: 1, 1>, scalar_prefetch = 0 : i64, scratch_operands = 0 : i64, tpu.core_type = #tpu.core_type<tc>, window_params = [{transform_indices = @transform_0, window_bounds = array<i64: 256, 32>}, {transform_indices = @transform_1, window_bounds = array<i64: 1, 32, 32>}, {transform_indices = @transform_2, window_bounds = array<i64: 1, 1, 32>}, {transform_indices = @transform_3, window_bounds = array<i64: 1, 256, 32>}]} {
    %c0 = arith.constant 0 : index
    %c0_0 = arith.constant 0 : index
    %0 = vector.load %arg2[%c0, %c0_0] : memref<256x32xbf16, #tpu.memory_space<vmem>>, vector<256x32xbf16>
    %c0_1 = arith.constant 0 : index
    %c0_2 = arith.constant 0 : index
    %c0_3 = arith.constant 0 : index
    %1 = vector.load %arg3[%c0_1, %c0_2, %c0_3] : memref<1x32x32xbf16, #tpu.memory_space<vmem>>, vector<1x32x32xbf16>
    %2 = vector.shape_cast %1 : vector<1x32x32xbf16> to vector<32x32xbf16>
    %cst = arith.constant dense<0.000000e+00> : vector<256x32xf32>
    %3 = tpu.matmul %0, %2, %cst {dimension_numbers = #tpu.dot_dimension_numbers<[1], [0], [0], [1], [0, 0, 1, 1], [], []>} : vector<256x32xbf16>, vector<32x32xbf16>, vector<256x32xf32> -> vector<256x32xf32>
    %c0_4 = arith.constant 0 : index
    %c0_5 = arith.constant 0 : index
    %c0_6 = arith.constant 0 : index
    %4 = vector.load %arg4[%c0_4, %c0_5, %c0_6] : memref<1x1x32xf32, #tpu.memory_space<vmem>>, vector<1x1x32xf32>
    %5 = vector.shape_cast %4 : vector<1x1x32xf32> to vector<1x32xf32>
    %6 = vector.broadcast %5 : vector<1x32xf32> to vector<256x32xf32>
    %7 = arith.addf %3, %6 : vector<256x32xf32>
    %c0_7 = arith.constant 0 : index
    %c0_8 = arith.constant 0 : index
    %c0_9 = arith.constant 0 : index
    %8 = vector.load %arg5[%c0_7, %c0_8, %c0_9] : memref<1x256x32xf32, #tpu.memory_space<vmem>>, vector<1x256x32xf32>
    %9 = vector.shape_cast %8 : vector<1x256x32xf32> to vector<256x32xf32>
    %10 = vector.shape_cast %7 : vector<256x32xf32> to vector<1x256x32xf32>
    tpu.vector_store %arg5[%c0_7, %c0_8, %c0_9], %10 {strides = array<i32>} : memref<1x256x32xf32, #tpu.memory_space<vmem>>, vector<1x256x32xf32>,
    return
  }
  func.func @transform_0(%arg0: i32, %arg1: i32) -> (i32, i32) {
    %c0_i32 = arith.constant 0 : i32
    %c0_i32_0 = arith.constant 0 : i32
    return %arg1, %c0_i32 : i32, i32
  }
  func.func @transform_1(%arg0: i32, %arg1: i32) -> (i32, i32, i32) {
    %c0_i32 = arith.constant 0 : i32
    %c0_i32_0 = arith.constant 0 : i32
    %c0_i32_1 = arith.constant 0 : i32
    return %arg0, %c0_i32, %c0_i32_0 : i32, i32, i32
  }
  func.func @transform_2(%arg0: i32, %arg1: i32) -> (i32, i32, i32) {
    %c0_i32 = arith.constant 0 : i32
    %c0_i32_0 = arith.constant 0 : i32
    %c0_i32_1 = arith.constant 0 : i32
    return %arg0, %c0_i32, %c0_i32_0 : i32, i32, i32
  }
  func.func @transform_3(%arg0: i32, %arg1: i32) -> (i32, i32, i32) {
    %c0_i32 = arith.constant 0 : i32
    %c0_i32_0 = arith.constant 0 : i32
    return %arg0, %arg1, %c0_i32 : i32, i32, i32
  }
}

</mosaic_0001>

<bundles_post_ra>
// kernel: attention_forward.5
= control target key start
LH: loop header
LB: loop body
LE: loop exit
PB: predicated region body
PF: predicated region fallthrough
CT: control target
= control target key end

     0   :  { %vm150_vm0 = vcmask 261120   ;;  %s762_s1 = inlined_call_operand.vmem [shape: bf16[1,32,32], index: 1, kind: input, shape index: {}]   ;;  %s763_s0 = inlined_call_operand.vmem [shape: bf16[256,32], index: 0, kind: input, shape index: {}]   ;;  %s764_s2 = inlined_call_operand.vmem [shape: f32[1,1,32], index: 2, kind: input, shape index: {}]   ;;  %s765_s3 = inlined_call_operand.vmem [shape: f32[1,256,32], index: 3, kind: output, shape index: {}]  }
   0x1   :  { %v489_v0 = vld [vmem:[%s762_s1 + $0x8] sm:$0xff]   ;;  %v490_v1 = vld [vmem:[%s762_s1] sm:$0xff]   ;;  %v495_v6 = vld [vmem:[%s763_s0 + $0x10] sm:$0xff]  }
   0x2   :  { %449 = vmatprep.subr.bf16.mxu0 %v489_v0  ;;  %485 = vmatprep.subr.bf16.mxu1 %v489_v0  ;;  %v491_v2 = vld [vmem:[%s763_s0] sm:$0xff]   ;;  %v493_v4 = vld [vmem:[%s763_s0 + $0x8] sm:$0xff]   ;;  %v496_v7 = vld [vmem:[%s763_s0 + $0x50] sm:$0xff]  }
   0x3   :  { %450 = vmatpush3.bf16.msra.mxu0 %v489_v0  ;;  %487 = vmatpush3.bf16.msra.mxu1 %v489_v0  ;;  %v492_v3 = vld [vmem:[%s763_s0 + $0x40] sm:$0xff]   ;;  %v494_v5 = vld [vmem:[%s763_s0 + $0x48] sm:$0xff]   ;;  %v497_v8 = vld [vmem:[%s763_s0 + $0x18] sm:$0xff]  }
   0x4   :  { %451 = vmatprep.subr.bf16.mxu0 %v490_v1  ;;  %486 = vmatprep.subr.bf16.mxu1 %v490_v1  ;;  %v498_v9 = vld [vmem:[%s763_s0 + $0x58] sm:$0xff]   ;;  %v499_v10 = vld [vmem:[%s763_s0 + $0x20] sm:$0xff]   ;;  %v501_v12 = vld [vmem:[%s763_s0 + $0x28] sm:$0xff]  }
   0x5   :  { %453 = vmatprep.mubr.msk.bf16.mxu0 %vm150_vm0, %v491_v2  ;;  %469 = vmatprep.mubr.msk.bf16.mxu1 %vm150_vm0, %v492_v3  ;;  %v500_v11 = vld [vmem:[%s763_s0 + $0x60] sm:$0xff]   ;;  %v502_v13 = vld [vmem:[%s763_s0 + $0x68] sm:$0xff]   ;;  %v503_v14 = vld [vmem:[%s763_s0 + $0x30] sm:$0xff]  }
   0x6   :  { %v504_v15 = vld [vmem:[%s763_s0 + $0x70] sm:$0xff]   ;;  %v505_v16 = vld [vmem:[%s763_s0 + $0x38] sm:$0xff]   ;;  %v600_v18 = vld [vmem:[%s764_s2] ss:$0 sm:$0xff] }
   0x7   :  { %452 = vmatpush3.bf16.msra.mxu0 %v490_v1  ;;  %488 = vmatpush3.bf16.msra.mxu1 %v490_v1  ;;  %v506_v17 = vld [vmem:[%s763_s0 + $0x78] sm:$0xff]  }
   0xa   :  { %454 = vmatmul.mubr.msk.bf16.vlgmr.msra.gmra.mxu0 %vm150_vm0, %v493_v4  ;;  %470 = vmatmul.mubr.msk.bf16.vlgmr.msra.gmra.mxu1 %vm150_vm0, %v494_v5 }
   0xb   :  { %457 = vmatprep.mubr.msk.bf16.mxu0 %vm150_vm0, %v495_v6  ;;  %473 = vmatprep.mubr.msk.bf16.mxu1 %vm150_vm0, %v496_v7 }
  0x12   :  { %458 = vmatmul.mubr.msk.bf16.gmra.mxu0 %vm150_vm0, %v497_v8  ;;  %474 = vmatmul.mubr.msk.bf16.gmra.mxu1 %vm150_vm0, %v498_v9 }
  0x13   :  { %461 = vmatprep.mubr.msk.bf16.mxu0 %vm150_vm0, %v499_v10  ;;  %477 = vmatprep.mubr.msk.bf16.mxu1 %vm150_vm0, %v500_v11 }
  0x1a   :  { %462 = vmatmul.mubr.msk.bf16.gmra.mxu0 %vm150_vm0, %v501_v12  ;;  %478 = vmatmul.mubr.msk.bf16.gmra.mxu1 %vm150_vm0, %v502_v13 }
  0x1b   :  { %465 = vmatprep.mubr.msk.bf16.mxu0 %vm150_vm0, %v503_v14  ;;  %481 = vmatprep.mubr.msk.bf16.mxu1 %vm150_vm0, %v504_v15 }
  0x22   :  { %466 = vmatmul.mubr.msk.bf16.gmra.mxu0 %vm150_vm0, %v505_v16  ;;  %482 = vmatmul.mubr.msk.bf16.gmra.mxu1 %vm150_vm0, %v506_v17 }
  0xca   :  { %v455_v19 = vpop.f32.mrf.mxu0  ;;  %v471_v20 = vpop.f32.mrf.mxu1 }
  0xcb   :  { %v242_v21 = vadd.f32 %v455_v19, %v600_v18  ;;  %v306_v22 = vadd.f32 %v471_v20, %v600_v18 }
  0xcc   :  { %v233_v23 = vpop.f32.mrf.mxu0  ;;  %v297_v24 = vpop.f32.mrf.mxu1 }
  0xcd   :  { %362 = vst.msk [vmem:[%s765_s3 + $0x10] sm:$0xff] %vm150_vm0, %v242_v21  ;;  %378 = vst.msk [vmem:[%s765_s3 + $0x90] sm:$0xff] %vm150_vm0, %v306_v22  ;;  %v234_v25 = vadd.f32 %v600_v18, %v233_v23  ;;  %v298_v26 = vadd.f32 %v600_v18, %v297_v24 }
  0xce   :  { %v456_v27 = vpop.f32.mrf.mxu0  ;;  %v472_v28 = vpop.f32.mrf.mxu1 }
  0xcf   :  { %360 = vst.msk [vmem:[%s765_s3] sm:$0xff] %vm150_vm0, %v234_v25  ;;  %376 = vst.msk [vmem:[%s765_s3 + $0x80] sm:$0xff] %vm150_vm0, %v298_v26  ;;  %v245_v29 = vadd.f32 %v456_v27, %v600_v18  ;;  %v309_v30 = vadd.f32 %v472_v28, %v600_v18 }
  0xd0   :  { %v236_v31 = vpop.f32.mrf.mxu0  ;;  %v300_v32 = vpop.f32.mrf.mxu1 }
  0xd1   :  { %363 = vst.msk [vmem:[%s765_s3 + $0x18] sm:$0xff] %vm150_vm0, %v245_v29  ;;  %379 = vst.msk [vmem:[%s765_s3 + $0x98] sm:$0xff] %vm150_vm0, %v309_v30  ;;  %v237_v33 = vadd.f32 %v600_v18, %v236_v31  ;;  %v301_v34 = vadd.f32 %v600_v18, %v300_v32 }
  0xd2   :  { %v459_v35 = vpop.f32.mrf.mxu0  ;;  %v475_v36 = vpop.f32.mrf.mxu1 }
  0xd3   :  { %361 = vst.msk [vmem:[%s765_s3 + $0x8] sm:$0xff] %vm150_vm0, %v237_v33  ;;  %377 = vst.msk [vmem:[%s765_s3 + $0x88] sm:$0xff] %vm150_vm0, %v301_v34  ;;  %v258_v37 = vadd.f32 %v459_v35, %v600_v18  ;;  %v322_v38 = vadd.f32 %v475_v36, %v600_v18 }
  0xd4   :  { %v249_v39 = vpop.f32.mrf.mxu0  ;;  %v313_v40 = vpop.f32.mrf.mxu1 }
  0xd5   :  { %366 = vst.msk [vmem:[%s765_s3 + $0x30] sm:$0xff] %vm150_vm0, %v258_v37  ;;  %382 = vst.msk [vmem:[%s765_s3 + $0xb0] sm:$0xff] %vm150_vm0, %v322_v38  ;;  %v250_v41 = vadd.f32 %v600_v18, %v249_v39  ;;  %v314_v42 = vadd.f32 %v600_v18, %v313_v40 }
  0xd6   :  { %v460_v43 = vpop.f32.mrf.mxu0  ;;  %v476_v44 = vpop.f32.mrf.mxu1 }
  0xd7   :  { %364 = vst.msk [vmem:[%s765_s3 + $0x20] sm:$0xff] %vm150_vm0, %v250_v41  ;;  %380 = vst.msk [vmem:[%s765_s3 + $0xa0] sm:$0xff] %vm150_vm0, %v314_v42  ;;  %v261_v45 = vadd.f32 %v460_v43, %v600_v18  ;;  %v325_v46 = vadd.f32 %v476_v44, %v600_v18 }
  0xd8   :  { %v252_v47 = vpop.f32.mrf.mxu0  ;;  %v316_v48 = vpop.f32.mrf.mxu1 }
  0xd9   :  { %367 = vst.msk [vmem:[%s765_s3 + $0x38] sm:$0xff] %vm150_vm0, %v261_v45  ;;  %383 = vst.msk [vmem:[%s765_s3 + $0xb8] sm:$0xff] %vm150_vm0, %v325_v46  ;;  %v253_v49 = vadd.f32 %v600_v18, %v252_v47  ;;  %v317_v50 = vadd.f32 %v600_v18, %v316_v48 }
  0xda   :  { %v463_v51 = vpop.f32.mrf.mxu0  ;;  %v479_v52 = vpop.f32.mrf.mxu1 }
  0xdb   :  { %365 = vst.msk [vmem:[%s765_s3 + $0x28] sm:$0xff] %vm150_vm0, %v253_v49  ;;  %381 = vst.msk [vmem:[%s765_s3 + $0xa8] sm:$0xff] %vm150_vm0, %v317_v50  ;;  %v274_v53 = vadd.f32 %v463_v51, %v600_v18  ;;  %v338_v54 = vadd.f32 %v479_v52, %v600_v18 }
  0xdc   :  { %v265_v55 = vpop.f32.mrf.mxu0  ;;  %v329_v56 = vpop.f32.mrf.mxu1 }
  0xdd   :  { %370 = vst.msk [vmem:[%s765_s3 + $0x50] sm:$0xff] %vm150_vm0, %v274_v53  ;;  %386 = vst.msk [vmem:[%s765_s3 + $0xd0] sm:$0xff] %vm150_vm0, %v338_v54  ;;  %v266_v57 = vadd.f32 %v600_v18, %v265_v55  ;;  %v330_v58 = vadd.f32 %v600_v18, %v329_v56 }
  0xde   :  { %v464_v59 = vpop.f32.mrf.mxu0  ;;  %v480_v60 = vpop.f32.mrf.mxu1 }
  0xdf   :  { %368 = vst.msk [vmem:[%s765_s3 + $0x40] sm:$0xff] %vm150_vm0, %v266_v57  ;;  %384 = vst.msk [vmem:[%s765_s3 + $0xc0] sm:$0xff] %vm150_vm0, %v330_v58  ;;  %v277_v61 = vadd.f32 %v464_v59, %v600_v18  ;;  %v341_v62 = vadd.f32 %v480_v60, %v600_v18 }
  0xe0   :  { %v268_v63 = vpop.f32.mrf.mxu0  ;;  %v332_v0 = vpop.f32.mrf.mxu1 }
  0xe1   :  { %371 = vst.msk [vmem:[%s765_s3 + $0x58] sm:$0xff] %vm150_vm0, %v277_v61  ;;  %387 = vst.msk [vmem:[%s765_s3 + $0xd8] sm:$0xff] %vm150_vm0, %v341_v62  ;;  %v269_v1 = vadd.f32 %v600_v18, %v268_v63  ;;  %v333_v2 = vadd.f32 %v600_v18, %v332_v0 }
  0xe2   :  { %v467_v3 = vpop.f32.mrf.mxu0  ;;  %v483_v4 = vpop.f32.mrf.mxu1 }
  0xe3   :  { %369 = vst.msk [vmem:[%s765_s3 + $0x48] sm:$0xff] %vm150_vm0, %v269_v1  ;;  %385 = vst.msk [vmem:[%s765_s3 + $0xc8] sm:$0xff] %vm150_vm0, %v333_v2  ;;  %v290_v5 = vadd.f32 %v467_v3, %v600_v18  ;;  %v354_v6 = vadd.f32 %v483_v4, %v600_v18 }
  0xe4   :  { %v281_v7 = vpop.f32.mrf.mxu0  ;;  %v345_v8 = vpop.f32.mrf.mxu1 }
  0xe5   :  { %374 = vst.msk [vmem:[%s765_s3 + $0x70] sm:$0xff] %vm150_vm0, %v290_v5  ;;  %390 = vst.msk [vmem:[%s765_s3 + $0xf0] sm:$0xff] %vm150_vm0, %v354_v6  ;;  %v282_v9 = vadd.f32 %v600_v18, %v281_v7  ;;  %v346_v10 = vadd.f32 %v600_v18, %v345_v8 }
  0xe6   :  { %v468_v11 = vpop.f32.mrf.mxu0  ;;  %v484_v12 = vpop.f32.mrf.mxu1 }
  0xe7   :  { %372 = vst.msk [vmem:[%s765_s3 + $0x60] sm:$0xff] %vm150_vm0, %v282_v9  ;;  %388 = vst.msk [vmem:[%s765_s3 + $0xe0] sm:$0xff] %vm150_vm0, %v346_v10  ;;  %v293_v13 = vadd.f32 %v468_v11, %v600_v18  ;;  %v357_v14 = vadd.f32 %v484_v12, %v600_v18 }
  0xe8   :  { %v284_v15 = vpop.f32.mrf.mxu0  ;;  %v348_v16 = vpop.f32.mrf.mxu1 }
  0xe9   :  { %375 = vst.msk [vmem:[%s765_s3 + $0x78] sm:$0xff] %vm150_vm0, %v293_v13  ;;  %391 = vst.msk [vmem:[%s765_s3 + $0xf8] sm:$0xff] %vm150_vm0, %v357_v14  ;;  %v285_v17 = vadd.f32 %v600_v18, %v284_v15  ;;  %v349_v19 = vadd.f32 %v600_v18, %v348_v16 }
  0xeb   :  { %373 = vst.msk [vmem:[%s765_s3 + $0x68] sm:$0xff] %vm150_vm0, %v285_v17  ;;  %389 = vst.msk [vmem:[%s765_s3 + $0xe8] sm:$0xff] %vm150_vm0, %v349_v19 }

// kernel: attention_forward.3
= control target key start
LH: loop header
LB: loop body
LE: loop exit
PB: predicated region body
PF: predicated region fallthrough
CT: control target
= control target key end

     0   :  { %s1036_s9 = smov 0   ;;  %s1038_s10 = smov 0   ;;  %s1203_s0 = inlined_call_operand.vmem [shape: bf16[256,32], index: 0, kind: input, shape index: {}]   ;;  %s1204_s1 = inlined_call_operand.vmem [shape: bf16[3,32,32], index: 1, kind: input, shape index: {}]   ;;  %s1205_s2 = inlined_call_operand.vmem [shape: bf16[3,256,32], index: 2, kind: output, shape index: {}]  }
   0x1   :  { %s1040_s11 = smov 0  }
   0x2 LB: > { %s24_s12 = sadd.s32 1, %s1015_s10  ;;  %p790_p0 = scmp.ge.s32.totalorder %s1019_s11, 1  ;;  %s1019_s11 = sphi %s1040_s11, %s12_s11   ;;  %s1015_s10 = sphi %s1038_s10, %s1207_s10   ;;  %s1011_s9 = sphi %s1036_s9, %s1206_s9  }
   0x3   : > { %p26_p1 = scmp.ge.s32.totalorder %s24_s12, 3  ;;  %p137_p2 = scmp.lt.s32.totalorder %s1019_s11, 4 }
   0x5   : > { %s1209_s12 = smov (%p26_p1, %s24_s12), 0  ;;  %p138_p3 = pnand %p790_p0, %p137_p2 }
   0x6   : > { %p174_p4 = scmp.lt.s32.totalorder (!%p138_p3), %s1011_s9, 2 }
   0x7   : > { %141 = sbr.rel (%p138_p3) target bundleno = 250 (0xfa), region = 28 }
   0xc   : > { %v981_v0 = vld [vmem:[%s1203_s0] sm:$0xff]   ;;  %vm318_vm0 = vcmask 261120   ;;  %s1211_s9 = smov (!%p174_p4, %s1011_s9), 2  ;;  %v983_v4 = vld [vmem:[%s1203_s0 + $0x8] sm:$0xff]   ;;  %v985_v6 = vld [vmem:[%s1203_s0 + $0x10] sm:$0xff]   ;;  %vm656_vm1 = vcmask 257024  }
   0xd   : > { %v982_v1 = vld [vmem:[%s1203_s0 + $0x40] sm:$0xff]   ;;  %919 = vmatprep.mubr.msk.bf16.mxu0 %vm318_vm0, %v981_v0  ;;  %s863_s17 = sshll.u32 %s1211_s9, 4  ;;  %v984_v5 = vld [vmem:[%s1203_s0 + $0x48] sm:$0xff]   ;;  %v986_v7 = vld [vmem:[%s1203_s0 + $0x50] sm:$0xff]   ;;  %s864_s25 = sshll.u32 %s1211_s9, 7 }
   0xe   : > { %935 = vmatprep.mubr.msk.bf16.mxu1 %vm318_vm0, %v982_v1  ;;  %s178_s20 = scalar_lea.vmem %s1204_s1, %s863_s17  ;;  %v987_v8 = vld [vmem:[%s1203_s0 + $0x18] sm:$0xff]   ;;  %v989_v10 = vld [vmem:[%s1203_s0 + $0x20] sm:$0xff]   ;;  %v991_v12 = vld [vmem:[%s1203_s0 + $0x28] sm:$0xff]   ;;  %s1128_s28 = scalar_lea.vmem %s1205_s2, %s864_s25 }
   0xf   : > { %v979_v2 = vld [vmem:[%s178_s20 + $0x8] sm:$0xff]   ;;  %v980_v3 = vld [vmem:[%s178_s20] sm:$0xff]   ;;  %v988_v9 = vld [vmem:[%s1203_s0 + $0x58] sm:$0xff]  }
  0x10   : > { %915 = vmatprep.subr.bf16.mxu0 %v979_v2  ;;  %951 = vmatprep.subr.bf16.mxu1 %v979_v2  ;;  %v990_v11 = vld [vmem:[%s1203_s0 + $0x60] sm:$0xff]   ;;  %v992_v13 = vld [vmem:[%s1203_s0 + $0x68] sm:$0xff]   ;;  %v993_v14 = vld [vmem:[%s1203_s0 + $0x30] sm:$0xff]  }
  0x11   : > { %916 = vmatpush3.bf16.msra.mxu0 %v979_v2  ;;  %953 = vmatpush3.bf16.msra.mxu1 %v979_v2  ;;  %v994_v15 = vld [vmem:[%s1203_s0 + $0x70] sm:$0xff]   ;;  %v995_v16 = vld [vmem:[%s1203_s0 + $0x38] sm:$0xff]  }
  0x12   : > { %917 = vmatprep.subr.bf16.mxu0 %v980_v3  ;;  %952 = vmatprep.subr.bf16.mxu1 %v980_v3  ;;  %v996_v17 = vld [vmem:[%s1203_s0 + $0x78] sm:$0xff]  }
  0x15   : > { %918 = vmatpush3.bf16.msra.mxu0 %v980_v3  ;;  %954 = vmatpush3.bf16.msra.mxu1 %v980_v3 }
  0x18   : > { %920 = vmatmul.mubr.msk.bf16.vlgmr.msra.gmra.mxu0 %vm318_vm0, %v983_v4  ;;  %936 = vmatmul.mubr.msk.bf16.vlgmr.msra.gmra.mxu1 %vm318_vm0, %v984_v5 }
  0x19   : > { %923 = vmatprep.mubr.msk.bf16.mxu0 %vm318_vm0, %v985_v6  ;;  %939 = vmatprep.mubr.msk.bf16.mxu1 %vm318_vm0, %v986_v7 }
  0x20   : > { %924 = vmatmul.mubr.msk.bf16.gmra.mxu0 %vm318_vm0, %v987_v8  ;;  %940 = vmatmul.mubr.msk.bf16.gmra.mxu1 %vm318_vm0, %v988_v9 }
  0x21   : > { %927 = vmatprep.mubr.msk.bf16.mxu0 %vm318_vm0, %v989_v10  ;;  %943 = vmatprep.mubr.msk.bf16.mxu1 %vm318_vm0, %v990_v11 }
  0x28   : > { %928 = vmatmul.mubr.msk.bf16.gmra.mxu0 %vm318_vm0, %v991_v12  ;;  %944 = vmatmul.mubr.msk.bf16.gmra.mxu1 %vm318_vm0, %v992_v13 }
  0x29   : > { %931 = vmatprep.mubr.msk.bf16.mxu0 %vm318_vm0, %v993_v14  ;;  %947 = vmatprep.mubr.msk.bf16.mxu1 %vm318_vm0, %v994_v15 }
  0x30   : > { %932 = vmatmul.mubr.msk.bf16.gmra.mxu0 %vm318_vm0, %v995_v16  ;;  %948 = vmatmul.mubr.msk.bf16.gmra.mxu1 %vm318_vm0, %v996_v17 }
  0xd8   : > { %v921_v18 = vpop.f32.mrf.mxu0  ;;  %v937_v19 = vpop.f32.mrf.mxu1 }
  0xd9   : > { %v867_v20 = vpack.c.bf16 %v921_v18, %v921_v18  ;;  %v883_v21 = vpack.c.bf16 %v937_v19, %v937_v19 }
  0xda   : > { %v401_v22 = vpop.f32.mrf.mxu0  ;;  %v465_v23 = vpop.f32.mrf.mxu1 }
  0xdb   : > { %659 = vst.msk [vmem:[%s1128_s28 + $0x8] sm:$0xf] %vm656_vm1, %v867_v20  ;;  %675 = vst.msk [vmem:[%s1128_s28 + $0x48] sm:$0xf] %vm656_vm1, %v883_v21  ;;  %v865_v24 = vpack.c.bf16 %v401_v22, %v401_v22  ;;  %v881_v25 = vpack.c.bf16 %v465_v23, %v465_v23 }
  0xdc   : > { %v922_v26 = vpop.f32.mrf.mxu0  ;;  %v938_v27 = vpop.f32.mrf.mxu1 }
  0xdd   : > { %657 = vst.msk [vmem:[%s1128_s28] sm:$0xf] %vm656_vm1, %v865_v24  ;;  %673 = vst.msk [vmem:[%s1128_s28 + $0x40] sm:$0xf] %vm656_vm1, %v881_v25  ;;  %v868_v28 = vpack.c.bf16 %v922_v26, %v922_v26  ;;  %v884_v29 = vpack.c.bf16 %v938_v27, %v938_v27 }
  0xde   : > { %v404_v30 = vpop.f32.mrf.mxu0  ;;  %v468_v31 = vpop.f32.mrf.mxu1 }
  0xdf   : > { %660 = vst.msk [vmem:[%s1128_s28 + $0xc] sm:$0xf] %vm656_vm1, %v868_v28  ;;  %676 = vst.msk [vmem:[%s1128_s28 + $0x4c] sm:$0xf] %vm656_vm1, %v884_v29  ;;  %v866_v32 = vpack.c.bf16 %v404_v30, %v404_v30  ;;  %v882_v33 = vpack.c.bf16 %v468_v31, %v468_v31 }
  0xe0   : > { %v925_v34 = vpop.f32.mrf.mxu0  ;;  %v941_v35 = vpop.f32.mrf.mxu1 }
  0xe1   : > { %658 = vst.msk [vmem:[%s1128_s28 + $0x4] sm:$0xf] %vm656_vm1, %v866_v32  ;;  %674 = vst.msk [vmem:[%s1128_s28 + $0x44] sm:$0xf] %vm656_vm1, %v882_v33  ;;  %v871_v36 = vpack.c.bf16 %v925_v34, %v925_v34  ;;  %v887_v37 = vpack.c.bf16 %v941_v35, %v941_v35 }
  0xe2   : > { %v417_v38 = vpop.f32.mrf.mxu0  ;;  %v481_v39 = vpop.f32.mrf.mxu1 }
  0xe3   : > { %663 = vst.msk [vmem:[%s1128_s28 + $0x18] sm:$0xf] %vm656_vm1, %v871_v36  ;;  %679 = vst.msk [vmem:[%s1128_s28 + $0x58] sm:$0xf] %vm656_vm1, %v887_v37  ;;  %v869_v40 = vpack.c.bf16 %v417_v38, %v417_v38  ;;  %v885_v41 = vpack.c.bf16 %v481_v39, %v481_v39 }
  0xe4   : > { %v926_v42 = vpop.f32.mrf.mxu0  ;;  %v942_v43 = vpop.f32.mrf.mxu1 }
  0xe5   : > { %661 = vst.msk [vmem:[%s1128_s28 + $0x10] sm:$0xf] %vm656_vm1, %v869_v40  ;;  %677 = vst.msk [vmem:[%s1128_s28 + $0x50] sm:$0xf] %vm656_vm1, %v885_v41  ;;  %v872_v44 = vpack.c.bf16 %v926_v42, %v926_v42  ;;  %v888_v45 = vpack.c.bf16 %v942_v43, %v942_v43 }
  0xe6   : > { %v420_v46 = vpop.f32.mrf.mxu0  ;;  %v484_v47 = vpop.f32.mrf.mxu1 }
  0xe7   : > { %664 = vst.msk [vmem:[%s1128_s28 + $0x1c] sm:$0xf] %vm656_vm1, %v872_v44  ;;  %680 = vst.msk [vmem:[%s1128_s28 + $0x5c] sm:$0xf] %vm656_vm1, %v888_v45  ;;  %v870_v48 = vpack.c.bf16 %v420_v46, %v420_v46  ;;  %v886_v49 = vpack.c.bf16 %v484_v47, %v484_v47 }
  0xe8   : > { %v929_v50 = vpop.f32.mrf.mxu0  ;;  %v945_v51 = vpop.f32.mrf.mxu1 }
  0xe9   : > { %662 = vst.msk [vmem:[%s1128_s28 + $0x14] sm:$0xf] %vm656_vm1, %v870_v48  ;;  %678 = vst.msk [vmem:[%s1128_s28 + $0x54] sm:$0xf] %vm656_vm1, %v886_v49  ;;  %v875_v52 = vpack.c.bf16 %v929_v50, %v929_v50  ;;  %v891_v53 = vpack.c.bf16 %v945_v51, %v945_v51 }
  0xea   : > { %v433_v54 = vpop.f32.mrf.mxu0  ;;  %v497_v55 = vpop.f32.mrf.mxu1 }
  0xeb   : > { %667 = vst.msk [vmem:[%s1128_s28 + $0x28] sm:$0xf] %vm656_vm1, %v875_v52  ;;  %683 = vst.msk [vmem:[%s1128_s28 + $0x68] sm:$0xf] %vm656_vm1, %v891_v53  ;;  %v873_v56 = vpack.c.bf16 %v433_v54, %v433_v54  ;;  %v889_v57 = vpack.c.bf16 %v497_v55, %v497_v55 }
  0xec   : > { %v930_v58 = vpop.f32.mrf.mxu0  ;;  %v946_v59 = vpop.f32.mrf.mxu1 }
  0xed   : > { %665 = vst.msk [vmem:[%s1128_s28 + $0x20] sm:$0xf] %vm656_vm1, %v873_v56  ;;  %681 = vst.msk [vmem:[%s1128_s28 + $0x60] sm:$0xf] %vm656_vm1, %v889_v57  ;;  %v876_v60 = vpack.c.bf16 %v930_v58, %v930_v58  ;;  %v892_v61 = vpack.c.bf16 %v946_v59, %v946_v59 }
  0xee   : > { %v436_v62 = vpop.f32.mrf.mxu0  ;;  %v500_v63 = vpop.f32.mrf.mxu1 }
  0xef   : > { %668 = vst.msk [vmem:[%s1128_s28 + $0x2c] sm:$0xf] %vm656_vm1, %v876_v60  ;;  %684 = vst.msk [vmem:[%s1128_s28 + $0x6c] sm:$0xf] %vm656_vm1, %v892_v61  ;;  %v874_v0 = vpack.c.bf16 %v436_v62, %v436_v62  ;;  %v890_v1 = vpack.c.bf16 %v500_v63, %v500_v63 }
  0xf0   : > { %v933_v2 = vpop.f32.mrf.mxu0  ;;  %v949_v3 = vpop.f32.mrf.mxu1 }
  0xf1   : > { %666 = vst.msk [vmem:[%s1128_s28 + $0x24] sm:$0xf] %vm656_vm1, %v874_v0  ;;  %682 = vst.msk [vmem:[%s1128_s28 + $0x64] sm:$0xf] %vm656_vm1, %v890_v1  ;;  %v879_v4 = vpack.c.bf16 %v933_v2, %v933_v2  ;;  %v895_v5 = vpack.c.bf16 %v949_v3, %v949_v3 }
  0xf2   : > { %v449_v6 = vpop.f32.mrf.mxu0  ;;  %v513_v7 = vpop.f32.mrf.mxu1 }
  0xf3   : > { %671 = vst.msk [vmem:[%s1128_s28 + $0x38] sm:$0xf] %vm656_vm1, %v879_v4  ;;  %687 = vst.msk [vmem:[%s1128_s28 + $0x78] sm:$0xf] %vm656_vm1, %v895_v5  ;;  %v877_v8 = vpack.c.bf16 %v449_v6, %v449_v6  ;;  %v893_v9 = vpack.c.bf16 %v513_v7, %v513_v7 }
  0xf4   : > { %v934_v10 = vpop.f32.mrf.mxu0  ;;  %v950_v11 = vpop.f32.mrf.mxu1 }
  0xf5   : > { %669 = vst.msk [vmem:[%s1128_s28 + $0x30] sm:$0xf] %vm656_vm1, %v877_v8  ;;  %685 = vst.msk [vmem:[%s1128_s28 + $0x70] sm:$0xf] %vm656_vm1, %v893_v9  ;;  %v880_v12 = vpack.c.bf16 %v934_v10, %v934_v10  ;;  %v896_v13 = vpack.c.bf16 %v950_v11, %v950_v11 }
  0xf6   : > { %v452_v14 = vpop.f32.mrf.mxu0  ;;  %v516_v15 = vpop.f32.mrf.mxu1 }
  0xf7   : > { %672 = vst.msk [vmem:[%s1128_s28 + $0x3c] sm:$0xf] %vm656_vm1, %v880_v12  ;;  %688 = vst.msk [vmem:[%s1128_s28 + $0x7c] sm:$0xf] %vm656_vm1, %v896_v13  ;;  %v878_v16 = vpack.c.bf16 %v452_v14, %v452_v14  ;;  %v894_v17 = vpack.c.bf16 %v516_v15, %v516_v15 }
  0xf9   : > { %670 = vst.msk [vmem:[%s1128_s28 + $0x34] sm:$0xf] %vm656_vm1, %v878_v16  ;;  %686 = vst.msk [vmem:[%s1128_s28 + $0x74] sm:$0xf] %vm656_vm1, %v894_v17 }
  0xfa PF: > { %s12_s11 = sadd.s32 1, %s1019_s11   ;;  %s1206_s9 = smov %s1015_s10 }
  0xfb   : > { %p9_p5 = scmp.ge.s32.totalorder %s12_s11, 5   ;;  %s1207_s10 = smov %s1209_s12 }
  0xfd   :  { %11 = sbr.rel (!%p9_p5) target bundleno = 2 (0x2), region = 61 }

// kernel: attention_forward.4
= control target key start
LH: loop header
LB: loop body
LE: loop exit
PB: predicated region body
PF: predicated region fallthrough
CT: control target
= control target key end

     0   :  { %s6807_s12 = smov 0   ;;  %s6809_s13 = smov 0   ;;  %s10089_s0 = inlined_call_operand.vmem [shape: bf16[3,2,128,32], index: 0, kind: input, shape index: {}, may-alias: {0,1,2}]   ;;  %s10090_s1 = inlined_call_operand.vmem [shape: bf16[3,2,128,32], index: 1, kind: input, shape index: {}, may-alias: {0,1,2}]   ;;  %s10091_s2 = inlined_call_operand.vmem [shape: bf16[3,2,128,32], index: 2, kind: input, shape index: {}, may-alias: {0,1,2}]   ;;  %s10092_s3 = inlined_call_operand.vmem [shape: bf16[2,128,32], index: 3, kind: output, shape index: {}]  }
   0x1   :  { %s6811_s14 = smov 0  }
   0x2 LB: > { %s32_s15 = sadd.s32 1, %s6766_s13  ;;  %p4826_p0 = scmp.ge.s32.totalorder %s6770_s14, 1  ;;  %s6770_s14 = sphi %s6811_s14, %s13_s14   ;;  %s6766_s13 = sphi %s6809_s13, %s10580_s13   ;;  %s6762_s12 = sphi %s6807_s12, %s10579_s12  }
   0x3   : > { %p34_p1 = scmp.ge.s32.totalorder %s32_s15, 2  ;;  %p204_p2 = scmp.lt.s32.totalorder %s6770_s14, 3 }
   0x5   : > { %s10582_s15 = smov (%p34_p1, %s32_s15), 0  ;;  %p205_p3 = pnand %p4826_p0, %p204_p2 }
   0x7   : > { %208 = sbr.rel (%p205_p3) target bundleno = 3921 (0xf51), region = 32 }
   0xc   : > { %p261_p4 = scmp.lt.s32.totalorder %s6762_s12, 1  ;;  %vm437_vm0 = vcmask 31744   ;;  %s6772_s20 = smov 124   ;;  %v353_v33 = vlaneseq  ;;  %v6773_v35 = vmov -1e+30   ;;  %vm4494_vm2 = vcmask 64512  }
   0xd   : > { %s6774_s27 = smov 120   ;;  %s6775_s28 = smov 116   ;;  %vm4511_vm3 = vcmask 97280   ;;  %vm4528_vm4 = vcmask 130048   ;;  %vm4545_vm5 = vcmask 162816   ;;  %vm4562_vm6 = vcmask 195584  }
   0xe   : > { %s10584_s12 = smov (!%p261_p4, %s6762_s12), 1  ;;  %v354_v34 = vand.u32 127, %v353_v33  ;;  %s6776_s29 = smov 112   ;;  %vm4579_vm7 = vcmask 228352   ;;  %vm4660_vm8 = vcmask 257024  }
   0xf   : > { %s6825_s16 = sshll.u32 %s10584_s12, 6  ;;  %s6777_s30 = smov 108  }
  0x10   : > { %s6831_s19 = scalar_lea.vmem %s10090_s1, %s6825_s16  ;;  %s6856_s23 = scalar_lea.vmem %s10089_s0, %s6825_s16  ;;  %vm355_vm1 = vcmp.lt.s32.totalorder %v354_v34, 8 }
  0x11   : > { %v6834_v0 = vld [vmem:[%s6831_s19 + $0xb8] sm:$0xff]   ;;  %v6837_v1 = vld [vmem:[%s6831_s19 + $0xb0] sm:$0xff]   ;;  %v6850_v3 = vld [vmem:[%s6831_s19 + $0xa8] sm:$0xff]   ;;  %s6945_s26 = scalar_lea.vmem %s10091_s2, %s6825_s16  ;;  %v6991_v36 = vsel %vm355_vm1, 0.0, %v6773_v35  ;;  %s6778_s4 = smov 104  }
  0x12   : > { %5761 = vmatprep.subr.msk.bf16.mxu0 %vm437_vm0, %v6834_v0  ;;  %v484_v2 = vsel %vm437_vm0, %v6834_v0, 0  ;;  %910 = vrot.lane.b32.xlu0 %v6834_v0, %s6772_s20  ;;  %v481_v4 = vsel %vm437_vm0, %v6837_v1, 0  ;;  %v6863_v5 = vld [vmem:[%s6856_s23] sm:$0xff]   ;;  %v478_v6 = vsel %vm437_vm0, %v6850_v3, 0  ;;  %v6879_v9 = vld [vmem:[%s6831_s19 + $0x98] sm:$0xff]   ;;  %v6886_v11 = vld [vmem:[%s6831_s19 + $0x90] sm:$0xff]  }
  0x13   : > { %5250 = vmatpush3.bf16.xpose.msra.mxu0 %v484_v2  ;;  %908 = vrot.lane.b32.xlu1 %v6837_v1, %s6772_s20  ;;  %v6872_v7 = vld [vmem:[%s6831_s19 + $0xa0] sm:$0xff]   ;;  %v472_v10 = vsel %vm437_vm0, %v6879_v9, 0  ;;  %v469_v12 = vsel %vm437_vm0, %v6886_v11, 0  ;;  %v6893_v13 = vld [vmem:[%s6831_s19 + $0x88] sm:$0xff]   ;;  %v6910_v18 = vld [vmem:[%s6856_s23 + $0x10] sm:$0xff]   ;;  %10178 = vst [vmem:[#allocation2_spill] sm:$0xff] %v6991_v36 }
  0x14   : > { %5762 = vmatprep.subr.msk.bf16.mxu0 %vm437_vm0, %v6837_v1  ;;  %5265 = vmatprep.mubr.msk.bf16.mxu0 %vm437_vm0, %v6863_v5  ;;  %v475_v8 = vsel %vm437_vm0, %v6872_v7, 0  ;;  %v466_v14 = vsel %vm437_vm0, %v6893_v13, 0  ;;  %v6900_v15 = vld [vmem:[%s6831_s19 + $0x80] sm:$0xff]   ;;  %v6907_v17 = vld [vmem:[%s6856_s23 + $0x8] sm:$0xff]   ;;  %v6917_v19 = vld [vmem:[%s6856_s23 + $0x18] sm:$0xff]   ;;  %s6779_s5 = smov 100  }
  0x15   : > { %v463_v16 = vsel %vm437_vm0, %v6900_v15, 0  ;;  %v6920_v20 = vld [vmem:[%s6856_s23 + $0x20] sm:$0xff]   ;;  %v6927_v21 = vld [vmem:[%s6856_s23 + $0x28] sm:$0xff]   ;;  %v6930_v22 = vld [vmem:[%s6856_s23 + $0x30] sm:$0xff]   ;;  %s6780_s6 = smov 4   ;;  %s6781_s7 = smov 8  }
  0x16   : > { %906 = vrot.lane.b32.xlu0 %v6850_v3, %s6772_s20  ;;  %v6937_v23 = vld [vmem:[%s6856_s23 + $0x38] sm:$0xff]   ;;  %v6951_v25 = vld [vmem:[%s6945_s26 + $0x130] sm:$0xff]   ;;  %v6958_v26 = vld [vmem:[%s6945_s26 + $0x128] sm:$0xff]   ;;  %s6782_s8 = smov 12   ;;  %s6783_s9 = smov 16  }
  0x17   : > { %v6948_v24 = vld [vmem:[%s6945_s26 + $0x138] sm:$0xff]   ;;  %v6963_v27 = vld [vmem:[%s6945_s26 + $0x120] sm:$0xff]   ;;  %v6971_v29 = vld [vmem:[%s6945_s26 + $0x110] sm:$0xff]   ;;  %s6784_s10 = smov 20   ;;  %s6785_s11 = smov 24  }
  0x18   : > { %5281 = vmatprep.subr.bf16.mxu1 %v6948_v24  ;;  %v6968_v28 = vld [vmem:[%s6945_s26 + $0x118] sm:$0xff]   ;;  %v6977_v30 = vld [vmem:[%s6945_s26 + $0x108] sm:$0xff]   ;;  %v6982_v31 = vld [vmem:[%s6945_s26 + $0x100] sm:$0xff]   ;;  %s6786_s12 = smov 28  }
  0x19   : > { %5282 = vmatpush3.bf16.msra.mxu1 %v6948_v24 }
  0x1a   : > { %5283 = vmatprep.subr.bf16.mxu1 %v6951_v25 }
  0x1b   : > { %5252 = vmatpush3.bf16.xpose.msra.mxu0 %v481_v4 }
  0x1c   : > { %5763 = vmatprep.subr.msk.bf16.mxu0 %vm437_vm0, %v6850_v3 }
  0x1d   : > { %5284 = vmatpush3.bf16.msra.mxu1 %v6951_v25 }
  0x1e   : > { %5285 = vmatprep.subr.bf16.mxu1 %v6958_v26 }
  0x21   : > { %5286 = vmatpush3.bf16.msra.mxu1 %v6958_v26 }
  0x22   : > { %5287 = vmatprep.subr.bf16.mxu1 %v6963_v27 }
  0x23   : > { %5254 = vmatpush3.bf16.xpose.msra.mxu0 %v478_v6 }
  0x24   : > { %5764 = vmatprep.subr.msk.bf16.mxu0 %vm437_vm0, %v6872_v7 }
  0x25   : > { %5288 = vmatpush3.bf16.msra.mxu1 %v6963_v27 }
  0x26   : > { %5289 = vmatprep.subr.bf16.mxu1 %v6968_v28 }
  0x29   : > { %5290 = vmatpush3.bf16.msra.mxu1 %v6968_v28 }
  0x2a   : > { %5291 = vmatprep.subr.bf16.mxu1 %v6971_v29 }
  0x2b   : > { %5256 = vmatpush3.bf16.xpose.msra.mxu0 %v475_v8 }
  0x2c   : > { %5765 = vmatprep.subr.msk.bf16.mxu0 %vm437_vm0, %v6879_v9 }
  0x2d   : > { %5292 = vmatpush3.bf16.msra.mxu1 %v6971_v29 }
  0x2e   : > { %5293 = vmatprep.subr.bf16.mxu1 %v6977_v30 }
  0x31   : > { %5294 = vmatpush3.bf16.msra.mxu1 %v6977_v30 }
  0x32   : > { %5295 = vmatprep.subr.bf16.mxu1 %v6982_v31 }
  0x33   : > { %5258 = vmatpush3.bf16.xpose.msra.mxu0 %v472_v10 }
  0x34   : > { %5766 = vmatprep.subr.msk.bf16.mxu0 %vm437_vm0, %v6886_v11 }
  0x35   : > { %5296 = vmatpush3.bf16.msra.mxu1 %v6982_v31 }
  0x3b   : > { %5260 = vmatpush3.bf16.xpose.msra.mxu0 %v469_v12 }
  0x3c   : > { %5767 = vmatprep.subr.msk.bf16.mxu0 %vm437_vm0, %v6893_v13 }
  0x43   : > { %5262 = vmatpush3.bf16.xpose.msra.mxu0 %v466_v14 }
  0x44   : > { %5768 = vmatprep.subr.msk.bf16.mxu0 %vm437_vm0, %v6900_v15 }
  0x4b   : > { %5264 = vmatpush3.bf16.xpose.msra.mxu0 %v463_v16 }
  0x52   : > { %5266 = vmatmul.mubr.msk.bf16.vlgmr.msra.gmra.mxu0 %vm437_vm0, %v6907_v17 }
  0x53   : > { %5269 = vmatprep.mubr.msk.bf16.mxu0 %vm437_vm0, %v6910_v18 }
  0x5a   : > { %5270 = vmatmul.mubr.msk.bf16.gmra.mxu0 %vm437_vm0, %v6917_v19 }
  0x5b   : > { %5273 = vmatprep.mubr.msk.bf16.mxu0 %vm437_vm0, %v6920_v20 }
  0x62   : > { %5274 = vmatmul.mubr.msk.bf16.gmra.mxu0 %vm437_vm0, %v6927_v21 }
  0x63   : > { %5277 = vmatprep.mubr.msk.bf16.mxu0 %vm437_vm0, %v6930_v22 }
  0x6a   : > { %5278 = vmatmul.mubr.msk.bf16.gmra.mxu0 %vm437_vm0, %v6937_v23 }
  0x84   : > { %v6986_v32 = vpop.permute.xlu0 %910 }
  0x85   : > { %5769 = vmatprep.subr.msk.bf16.mxu1 %vm437_vm0, %v6986_v32  ;;  %v909_v12 = vpop.permute.xlu1 %908 }
  0x88   : > { %v907_v14 = vpop.permute.xlu0 %906 }
 0x112   : > { %v5267_v37 = vpop.f32.mrf.mxu0 }
 0x113   : > { %v6994_v38 = vadd.f32 %v5267_v37, %v6991_v36 }
 0x114   : > { %v520_v39 = vpop.f32.mrf.mxu0 }
 0x115   : > { %v6997_v40 = vadd.f32 %v520_v39, %v6991_v36  ;;  %587 = vmax.xlane.f32.xlu1 %v6994_v38 }
 0x116   : > { %v5268_v41 = vpop.f32.mrf.mxu0 }
 0x117   : > { %v7001_v42 = vadd.f32 %v5268_v41, %v6991_v36  ;;  %583 = vmax.xlane.f32.xlu0 %v6997_v40 }
 0x118   : > { %v523_v43 = vpop.f32.mrf.mxu0 }
 0x119   : > { %589 = vmax.xlane.f32.xlu1 %v7001_v42  ;;  %v7006_v44 = vadd.f32 %v523_v43, %v6991_v36 }
 0x11a   : > { %v5271_v45 = vpop.f32.mrf.mxu0 }
 0x11b   : > { %v7009_v46 = vadd.f32 %v5271_v45, %v6991_v36  ;;  %585 = vmax.xlane.f32.xlu0 %v7006_v44 }
 0x11c   : > { %v536_v47 = vpop.f32.mrf.mxu0 }
 0x11d   : > { %595 = vmax.xlane.f32.xlu1 %v7009_v46  ;;  %v7014_v48 = vadd.f32 %v536_v47, %v6991_v36 }
 0x11e   : > { %v5272_v49 = vpop.f32.mrf.mxu0 }
 0x11f   : > { %v7017_v51 = vadd.f32 %v5272_v49, %v6991_v36 }
 0x120   : > { %v539_v50 = vpop.f32.mrf.mxu0 }
 0x121   : > { %591 = vmax.xlane.f32.xlu1 %v7014_v48  ;;  %v7022_v54 = vadd.f32 %v539_v50, %v6991_v36 }
 0x122   : > { %v5275_v52 = vpop.f32.mrf.mxu0 }
 0x123   : > { %v7048_v6 = vadd.f32 %v5275_v52, %v6991_v36 }
 0x124   : > { %v552_v53 = vpop.f32.mrf.mxu0 }
 0x125   : > { %597 = vmax.xlane.f32.xlu1 %v7017_v51  ;;  %v7054_v8 = vadd.f32 %v552_v53, %v6991_v36 }
 0x126   : > { %v5276_v55 = vpop.f32.mrf.mxu0 }
 0x127   : > { %v7060_v10 = vadd.f32 %v5276_v55, %v6991_v36 }
 0x128   : > { %v555_v56 = vpop.f32.mrf.mxu0 }
 0x129   : > { %593 = vmax.xlane.f32.xlu1 %v7022_v54  ;;  %v7026_v57 = vadd.f32 %v555_v56, %v6991_v36 }
 0x12a   : > { %v5279_v58 = vpop.f32.mrf.mxu0 }
 0x12b   : > { %v7030_v59 = vadd.f32 %v5279_v58, %v6991_v36 }
 0x12c   : > { %v568_v60 = vpop.f32.mrf.mxu0 }
 0x12d   : > { %601 = vmax.xlane.f32.xlu1 %v7026_v57  ;;  %v7036_v61 = vadd.f32 %v568_v60, %v6991_v36 }
 0x12e   : > { %v5280_v62 = vpop.f32.mrf.mxu0 }
 0x12f   : > { %v7040_v63 = vadd.f32 %v5280_v62, %v6991_v36 }
 0x130   : > { %v571_v2 = vpop.f32.mrf.mxu0 }
 0x131   : > { %611 = vmax.xlane.f32.xlu1 %v7030_v59  ;;  %904 = vrot.lane.b32.xlu0 %v6872_v7, %s6772_s20  ;;  %v7044_v4 = vadd.f32 %v571_v2, %v6991_v36 }
 0x135   : > { %607 = vmax.xlane.f32.xlu1 %v7036_v61 }
 0x139   : > { %613 = vmax.xlane.f32.xlu1 %v7040_v63 }
 0x13d   : > { %609 = vmax.xlane.f32.xlu1 %v7044_v4 }
 0x14e   : > { %902 = vrot.lane.b32.xlu1 %v6879_v9, %s6772_s20 }
 0x150   : > { %603 = vmax.xlane.f32.xlu0 %v7048_v6 }
 0x152   : > { %882 = vrot.lane.b32.xlu1 %v6907_v17, %s6772_s20 }
 0x154   : > { %599 = vmax.xlane.f32.xlu0 %v7054_v8 }
 0x156   : > { %886 = vrot.lane.b32.xlu1 %v6917_v19, %s6772_s20 }
 0x158   : > { %605 = vmax.xlane.f32.xlu0 %v7060_v10 }
 0x15a   : > { %890 = vrot.lane.b32.xlu1 %v6927_v21, %s6772_s20 }
 0x15e   : > { %894 = vrot.lane.b32.xlu1 %v6937_v23, %s6772_s20 }
 0x162   : > { %1189 = vrot.lane.b32.xlu1 %v6951_v25, %s6772_s20 }
 0x166   : > { %1181 = vrot.lane.b32.xlu1 %v6971_v29, %s6772_s20 }
 0x16a   : > { %1177 = vrot.lane.b32.xlu1 %v6982_v31, %s6772_s20 }
 0x16e   : > { %900 = vrot.lane.b32.xlu0 %v6886_v11, %s6772_s20  ;;  %1358 = vrot.lane.b32.xlu1 %v6837_v1, %s6774_s27 }
 0x172   : > { %898 = vrot.lane.b32.xlu0 %v6893_v13, %s6772_s20 }
 0x176   : > { %896 = vrot.lane.b32.xlu0 %v6900_v15, %s6772_s20 }
 0x17a   : > { %880 = vrot.lane.b32.xlu0 %v6863_v5, %s6772_s20 }
 0x17e   : > { %884 = vrot.lane.b32.xlu0 %v6910_v18, %s6772_s20 }
 0x182   : > { %888 = vrot.lane.b32.xlu0 %v6920_v20, %s6772_s20 }
 0x186   : > { %892 = vrot.lane.b32.xlu0 %v6930_v22, %s6772_s20 }
 0x18a   : > { %1191 = vrot.lane.b32.xlu0 %v6948_v24, %s6772_s20 }
 0x18e   : > { %1187 = vrot.lane.b32.xlu0 %v6958_v26, %s6772_s20 }
 0x192   : > { %1185 = vrot.lane.b32.xlu0 %v6963_v27, %s6772_s20 }
 0x196   : > { %1183 = vrot.lane.b32.xlu0 %v6968_v28, %s6772_s20 }
 0x19a   : > { %1179 = vrot.lane.b32.xlu0 %v6977_v30, %s6772_s20 }
 0x19e   : > { %v588_v16 = vpop.xlane.xlu1 %587  ;;  %1360 = vrot.lane.b32.xlu0 %v6834_v0, %s6774_s27 }
 0x19f   : > { %v617_v35 = vsub.f32 %v6994_v38, %v588_v16 }
 0x1a0   : > { %v584_v33 = vpop.xlane.xlu0 %583 }
 0x1a1   : > { %v615_v34 = vsub.f32 %v6997_v40, %v584_v33  ;;  %v635_v49 = vmul.f32 1.442695, %v617_v35 }
 0x1a2   : > { %v590_v37 = vpop.xlane.xlu1 %589 }
 0x1a3   : > { %v631_v39 = vmul.f32 1.442695, %v615_v34  ;;  %v618_v41 = vsub.f32 %v7001_v42, %v590_v37 }
 0x1a4   : > { %v586_v43 = vpop.xlane.xlu0 %585 }
 0x1a5   : > { %v637_v45 = vmul.f32 1.442695, %v618_v41  ;;  %v616_v47 = vsub.f32 %v7006_v44, %v586_v43  ;;  %6168 = vpow2.f32 %v631_v39  ;;  %v955_v43 = vsel %vm437_vm0, %v909_v12, 0 }
 0x1a6   : > { %v596_v50 = vpop.xlane.xlu1 %595 }
 0x1a7   : > { %v633_v52 = vmul.f32 1.442695, %v616_v47  ;;  %6170 = vpow2.f32 %v637_v45  ;;  %v621_v56 = vsub.f32 %v7009_v46, %v596_v50 }
 0x1a9   : > { %6172 = vpow2.f32 %v633_v52  ;;  %v643_v2 = vmul.f32 1.442695, %v621_v56 }
 0x1aa   : > { %6174 = vpow2.f32 %v635_v49  ;;  %v592_v53 = vpop.xlane.xlu1 %591 }
 0x1ab   : > { %v619_v40 = vsub.f32 %v7014_v48, %v592_v53  ;;  %v905_v53 = vpop.permute.xlu0 %904 }
 0x1ad   : > { %v639_v42 = vmul.f32 1.442695, %v619_v40 }
 0x1ae   : > { %v598_v55 = vpop.xlane.xlu1 %597 }
 0x1af   : > { %v622_v38 = vsub.f32 %v7017_v51, %v598_v55  ;;  %6176 = vpow2.f32 %v639_v42 }
 0x1b1   : > { %v645_v58 = vmul.f32 1.442695, %v622_v38  ;;  %v949_v38 = vsel %vm437_vm0, %v905_v53, 0 }
 0x1b2   : > { %v594_v60 = vpop.xlane.xlu1 %593  ;;  %v7107_v62 = vpop.eup %6168 }
 0x1b3   : > { %v620_v44 = vsub.f32 %v7022_v54, %v594_v60  ;;  %10179 = vst [vmem:[#allocation3_spill] sm:$0xff] %v7107_v62  ;;  %6178 = vpow2.f32 %v645_v58  ;;  %v958_v54 = vsel %vm437_vm0, %v6986_v32, 0 }
 0x1b4   : > { %v7109_v16 = vpop.eup %6170 }
 0x1b5   : > { %10180 = vst [vmem:[#allocation4_spill] sm:$0xff] %v7109_v16  ;;  %v641_v33 = vmul.f32 1.442695, %v620_v44 }
 0x1b6   : > { %v7111_v34 = vpop.eup %6172  ;;  %v602_v48 = vpop.xlane.xlu1 %601 }
 0x1b7   : > { %10181 = vst [vmem:[#allocation5_spill] sm:$0xff] %v7111_v34  ;;  %v7113_v35 = vpop.eup %6174  ;;  %6180 = vpow2.f32 %v641_v33  ;;  %v695_v46 = vpack.c.bf16 %v7111_v34, %v7107_v62  ;;  %v624_v42 = vsub.f32 %v7026_v57, %v602_v48 }
 0x1b8   : > { %10182 = vst [vmem:[#allocation6_spill] sm:$0xff] %v7113_v35  ;;  %6182 = vpow2.f32 %v643_v2  ;;  %v696_v51 = vpack.c.bf16 %v7109_v16, %v7113_v35  ;;  %v7643_v16 = vld [vmem:[%s6945_s26 + $0x108] sm:$0xff]  }
 0x1b9   : > { %5297 = vmatprep.mubr.bf16.mxu1 %v695_v46 }
 0x1ba   : > { %5298 = vmatmul.mubr.bf16.vlgmr.msra.gmra.mxu1 %v696_v51  ;;  %v612_v37 = vpop.xlane.xlu1 %611 }
 0x1bb   : > { %5314 = vmatpush3.bf16.xpose.msra.mxu1 %v958_v54 }
 0x1bc   : > { %5770 = vmatprep.subr.msk.bf16.mxu1 %vm437_vm0, %v909_v12  ;;  %v7122_v41 = vpop.eup %6176  ;;  %v952_v12 = vsel %vm437_vm0, %v907_v14, 0 }
 0x1bd   : > { %10183 = vst [vmem:[#allocation7_spill] sm:$0xff] %v7122_v41 }
 0x1be   : > { %v608_v39 = vpop.xlane.xlu1 %607 }
 0x1bf   : > { %v627_v46 = vsub.f32 %v7036_v61, %v608_v39 }
 0x1c0   : > { %v7125_v45 = vpop.eup %6178 }
 0x1c1   : > { %10184 = vst [vmem:[#allocation8_spill] sm:$0xff] %v7125_v45  ;;  %v655_v48 = vmul.f32 1.442695, %v627_v46 }
 0x1c2   : > { %v614_v52 = vpop.xlane.xlu1 %613 }
 0x1c3   : > { %5316 = vmatpush3.bf16.xpose.msra.mxu1 %v955_v43 }
 0x1c4   : > { %v7127_v47 = vpop.eup %6180  ;;  %5771 = vmatprep.subr.msk.bf16.mxu1 %vm437_vm0, %v907_v14  ;;  %v649_v14 = vmul.f32 1.442695, %v624_v42 }
 0x1c5   : > { %10185 = vst [vmem:[#allocation9_spill] sm:$0xff] %v7127_v47  ;;  %v7130_v49 = vpop.eup %6182  ;;  %v697_v32 = vpack.c.bf16 %v7127_v47, %v7122_v41  ;;  %v7636_v47 = vld [vmem:[%s6945_s26 + $0x100] sm:$0xff]  }
 0x1c6   : > { %10186 = vst [vmem:[#allocation10_spill] sm:$0xff] %v7130_v49  ;;  %v698_v50 = vpack.c.bf16 %v7125_v45, %v7130_v49  ;;  %v610_v40 = vpop.xlane.xlu1 %609  ;;  %6184 = vpow2.f32 %v649_v14 }
 0x1c7   : > { %5301 = vmatprep.mubr.bf16.mxu1 %v697_v32  ;;  %v628_v60 = vsub.f32 %v7044_v4, %v610_v40 }
 0x1c8   : > { %5302 = vmatmul.mubr.bf16.gmra.mxu1 %v698_v50  ;;  %v630_v50 = vsub.f32 %v7040_v63, %v614_v52 }
 0x1c9   : > { %v657_v51 = vmul.f32 1.442695, %v628_v60 }
 0x1ca   : > { %v903_v55 = vpop.permute.xlu1 %902 }
 0x1cb   : > { %5318 = vmatpush3.bf16.xpose.msra.mxu1 %v952_v12  ;;  %v946_v56 = vsel %vm437_vm0, %v903_v55, 0  ;;  %v629_v12 = vsub.f32 %v7030_v59, %v612_v37 }
 0x1cc   : > { %5772 = vmatprep.subr.msk.bf16.mxu1 %vm437_vm0, %v905_v53 }
 0x1cd   : > { %v659_v53 = vmul.f32 1.442695, %v629_v12 }
 0x1ce   : > { %v883_v46 = vpop.permute.xlu1 %882 }
 0x1d3   : > { %5320 = vmatpush3.bf16.xpose.msra.mxu1 %v949_v38  ;;  %v7153_v52 = vpop.eup %6184 }
 0x1d4   : > { %5773 = vmatprep.subr.msk.bf16.mxu1 %vm437_vm0, %v903_v55  ;;  %10187 = vst [vmem:[#allocation11_spill] sm:$0xff] %v7153_v52 }
 0x1d9   : > { %v604_v58 = vpop.xlane.xlu0 %603 }
 0x1da   : > { %v625_v44 = vsub.f32 %v7048_v6, %v604_v58 }
 0x1db   : > { %5322 = vmatpush3.bf16.xpose.msra.mxu1 %v946_v56 }
 0x1dc   : > { %v651_v43 = vmul.f32 1.442695, %v625_v44 }
 0x1dd   : > { %v600_v2 = vpop.xlane.xlu0 %599 }
 0x1de   : > { %v623_v33 = vsub.f32 %v7054_v8, %v600_v2  ;;  %v661_v8 = vmul.f32 1.442695, %v630_v50 }
 0x1e0   : > { %v647_v54 = vmul.f32 1.442695, %v623_v33 }
 0x1e1   : > { %v606_v32 = vpop.xlane.xlu0 %605 }
 0x1e2   : > { %6186 = vpow2.f32 %v647_v54  ;;  %v626_v57 = vsub.f32 %v7060_v10, %v606_v32  ;;  %v887_v54 = vpop.permute.xlu1 %886 }
 0x1e3   : > { %6188 = vpow2.f32 %v657_v51 }
 0x1e4   : > { %v653_v4 = vmul.f32 1.442695, %v626_v57  ;;  %6190 = vpow2.f32 %v651_v43 }
 0x1e5   : > { %v901_v6 = vpop.permute.xlu0 %900 }
 0x1e6   : > { %6192 = vpow2.f32 %v653_v4  ;;  %5774 = vmatprep.subr.msk.bf16.mxu1 %vm437_vm0, %v901_v6  ;;  %v943_v61 = vsel %vm437_vm0, %v901_v6, 0  ;;  %v891_v32 = vpop.permute.xlu1 %890 }
 0x1e7   : > { %6194 = vpow2.f32 %v655_v48  ;;  %5324 = vmatpush3.bf16.xpose.msra.mxu1 %v943_v61 }
 0x1e8   : > { %6196 = vpow2.f32 %v661_v8 }
 0x1e9   : > { %v899_v39 = vpop.permute.xlu0 %898  ;;  %6198 = vpow2.f32 %v659_v53 }
 0x1ea   : > { %5775 = vmatprep.subr.msk.bf16.mxu1 %vm437_vm0, %v899_v39  ;;  %v940_v63 = vsel %vm437_vm0, %v899_v39, 0  ;;  %v895_v48 = vpop.permute.xlu1 %894 }
 0x1ed   : > { %v897_v10 = vpop.permute.xlu0 %896 }
 0x1ee   : > { %v937_v58 = vsel %vm437_vm0, %v897_v10, 0  ;;  %v1190_v4 = vpop.permute.xlu1 %1189 }
 0x1ef   : > { %v7155_v59 = vpop.eup %6186  ;;  %5326 = vmatpush3.bf16.xpose.msra.mxu1 %v940_v63 }
 0x1f0   : > { %10188 = vst [vmem:[#allocation12_spill] sm:$0xff] %v7155_v59  ;;  %v699_v37 = vpack.c.bf16 %v7153_v52, %v7155_v59  ;;  %5776 = vmatprep.subr.msk.bf16.mxu1 %vm437_vm0, %v897_v10  ;;  %v7160_v40 = vpop.eup %6188  ;;  %v7619_v52 = vld [vmem:[%s6945_s26 + $0x120] sm:$0xff]   ;;  %v7631_v59 = vld [vmem:[%s6945_s26 + $0x118] sm:$0xff]  }
 0x1f1   : > { %10189 = vst [vmem:[#allocation13_spill] sm:$0xff] %v7160_v40  ;;  %v7162_v55 = vpop.eup %6190  ;;  %v881_v33 = vpop.permute.xlu0 %880 }
 0x1f2   : > { %10190 = vst [vmem:[#allocation14_spill] sm:$0xff] %v7162_v55  ;;  %5305 = vmatprep.mubr.bf16.mxu1 %v699_v37  ;;  %v1182_v12 = vpop.permute.xlu1 %1181 }
 0x1f3   : > { %v7164_v38 = vpop.eup %6192 }
 0x1f4   : > { %10191 = vst [vmem:[#allocation15_spill] sm:$0xff] %v7164_v38  ;;  %v7166_v56 = vpop.eup %6194  ;;  %v700_v42 = vpack.c.bf16 %v7164_v38, %v7162_v55  ;;  %v7609_v38 = vld [vmem:[%s6945_s26 + $0x128] sm:$0xff]   ;;  %v7624_v55 = vld [vmem:[%s6945_s26 + $0x110] sm:$0xff]  }
 0x1f5   : > { %10192 = vst [vmem:[#allocation16_spill] sm:$0xff] %v7166_v56  ;;  %v701_v60 = vpack.c.bf16 %v7160_v40, %v7166_v56  ;;  %v7173_v14 = vpop.eup %6196  ;;  %v885_v51 = vpop.permute.xlu0 %884  ;;  %v7599_v40 = vld [vmem:[%s6945_s26 + $0x138] sm:$0xff]   ;;  %v7614_v56 = vld [vmem:[%s6945_s26 + $0x130] sm:$0xff]  }
 0x1f6   : > { %5306 = vmatmul.mubr.bf16.gmra.mxu1 %v700_v42  ;;  %10193 = vst [vmem:[#allocation17_spill] sm:$0xff] %v7173_v14  ;;  %v7175_v44 = vpop.eup %6198  ;;  %v1178_v8 = vpop.permute.xlu1 %1177 }
 0x1f7   : > { %5309 = vmatprep.mubr.bf16.mxu1 %v701_v60  ;;  %5328 = vmatpush3.bf16.xpose.msra.mxu1 %v937_v58  ;;  %10194 = vst [vmem:[#allocation18_spill] sm:$0xff] %v7175_v44  ;;  %v702_v2 = vpack.c.bf16 %v7173_v14, %v7175_v44  ;;  %v7594_v14 = vld [vmem:[%s6856_s23 + $0x28] sm:$0xff]   ;;  %v7604_v44 = vld [vmem:[%s6856_s23 + $0x38] sm:$0xff]  }
 0x1f9   : > { %v889_v43 = vpop.permute.xlu0 %888 }
 0x1fd   : > { %v893_v57 = vpop.permute.xlu0 %892 }
 0x1fe   : > { %5310 = vmatmul.mubr.bf16.gmra.mxu1 %v702_v2 }
 0x1ff   : > { %5329 = vmatprep.mubr.msk.bf16.mxu1 %vm437_vm0, %v881_v33 }
 0x201   : > { %v1192_v50 = vpop.permute.xlu0 %1191 }
 0x202   : > { %5345 = vmatprep.subr.bf16.mxu0 %v1192_v50 }
 0x203   : > { %5346 = vmatpush3.bf16.msra.mxu0 %v1192_v50 }
 0x204   : > { %5347 = vmatprep.subr.bf16.mxu0 %v1190_v4 }
 0x205   : > { %v1188_v6 = vpop.permute.xlu0 %1187 }
 0x206   : > { %5330 = vmatmul.mubr.msk.bf16.vlgmr.msra.gmra.mxu1 %vm437_vm0, %v883_v46 }
 0x207   : > { %5333 = vmatprep.mubr.msk.bf16.mxu1 %vm437_vm0, %v885_v51  ;;  %5348 = vmatpush3.bf16.msra.mxu0 %v1190_v4 }
 0x208   : > { %5349 = vmatprep.subr.bf16.mxu0 %v1188_v6 }
 0x209   : > { %v1186_v1 = vpop.permute.xlu0 %1185 }
 0x20b   : > { %5350 = vmatpush3.bf16.msra.mxu0 %v1188_v6 }
 0x20c   : > { %5351 = vmatprep.subr.bf16.mxu0 %v1186_v1 }
 0x20d   : > { %v1184_v0 = vpop.permute.xlu0 %1183 }
 0x20e   : > { %5334 = vmatmul.mubr.msk.bf16.gmra.mxu1 %vm437_vm0, %v887_v54 }
 0x20f   : > { %5337 = vmatprep.mubr.msk.bf16.mxu1 %vm437_vm0, %v889_v43  ;;  %5352 = vmatpush3.bf16.msra.mxu0 %v1186_v1 }
 0x210   : > { %5353 = vmatprep.subr.bf16.mxu0 %v1184_v0 }
 0x211   : > { %v1180_v61 = vpop.permute.xlu0 %1179 }
 0x213   : > { %5354 = vmatpush3.bf16.msra.mxu0 %v1184_v0 }
 0x214   : > { %5355 = vmatprep.subr.bf16.mxu0 %v1182_v12 }
 0x215   : > { %v7193_v53 = vpop.permute.xlu0 %1360 }
 0x216   : > { %5338 = vmatmul.mubr.msk.bf16.gmra.mxu1 %vm437_vm0, %v891_v32 }
 0x217   : > { %5341 = vmatprep.mubr.msk.bf16.mxu1 %vm437_vm0, %v893_v57  ;;  %5356 = vmatpush3.bf16.msra.mxu0 %v1182_v12 }
 0x218   : > { %5357 = vmatprep.subr.bf16.mxu0 %v1180_v61 }
 0x21b   : > { %5358 = vmatpush3.bf16.msra.mxu0 %v1180_v61 }
 0x21c   : > { %5359 = vmatprep.subr.bf16.mxu0 %v1178_v8 }
 0x21e   : > { %5342 = vmatmul.mubr.msk.bf16.gmra.mxu1 %vm437_vm0, %v895_v48 }
 0x21f   : > { %5360 = vmatpush3.bf16.msra.mxu0 %v1178_v8 }
 0x220   : > { %5777 = vmatprep.subr.msk.bf16.mxu0 %vm437_vm0, %v7193_v53 }
 0x27a   : > { %v7191_v39 = vpop.f32.mrf.mxu1 }
 0x27b   : > { %10195 = vst [vmem:[#allocation19_spill] sm:$0xff] %v7191_v39 }
 0x27c   : > { %v7195_v63 = vpop.f32.mrf.mxu1 }
 0x27d   : > { %10196 = vst [vmem:[#allocation20_spill] sm:$0xff] %v7195_v63 }
 0x27e   : > { %v7199_v10 = vpop.f32.mrf.mxu1 }
 0x27f   : > { %10197 = vst [vmem:[#allocation21_spill] sm:$0xff] %v7199_v10 }
 0x280   : > { %v7201_v37 = vpop.f32.mrf.mxu1 }
 0x281   : > { %10198 = vst [vmem:[#allocation22_spill] sm:$0xff] %v7201_v37 }
 0x288   : > { %v7203_v42 = vpop.f32.mrf.mxu1 }
 0x289   : > { %10199 = vst [vmem:[#allocation23_spill] sm:$0xff] %v7203_v42 }
 0x28a   : > { %v7205_v58 = vpop.f32.mrf.mxu1 }
 0x28b   : > { %10200 = vst [vmem:[#allocation24_spill] sm:$0xff] %v7205_v58 }
 0x28c   : > { %v7207_v60 = vpop.f32.mrf.mxu1 }
 0x28d   : > { %10201 = vst [vmem:[#allocation25_spill] sm:$0xff] %v7207_v60 }
 0x28e   : > { %v7209_v2 = vpop.f32.mrf.mxu1 }
 0x28f   : > { %10202 = vst [vmem:[#allocation26_spill] sm:$0xff] %v7209_v2 }
 0x2b6   : > { %v7211_v33 = vpop.f32.mrf.mxu1 }
 0x2b7   : > { %10203 = vst [vmem:[#allocation27_spill] sm:$0xff] %v7211_v33 }
 0x2b8   : > { %v7213_v46 = vpop.f32.mrf.mxu1 }
 0x2b9   : > { %10204 = vst [vmem:[#allocation28_spill] sm:$0xff] %v7213_v46 }
 0x2ba   : > { %v7215_v51 = vpop.f32.mrf.mxu1 }
 0x2bb   : > { %10205 = vst [vmem:[#allocation29_spill] sm:$0xff] %v7215_v51 }
 0x2bc   : > { %v7217_v54 = vpop.f32.mrf.mxu1 }
 0x2bd   : > { %10206 = vst [vmem:[#allocation30_spill] sm:$0xff] %v7217_v54 }
 0x2be   : > { %v7219_v43 = vpop.f32.mrf.mxu1 }
 0x2bf   : > { %10207 = vst [vmem:[#allocation31_spill] sm:$0xff] %v7219_v43 }
 0x2c0   : > { %v7221_v32 = vpop.f32.mrf.mxu1 }
 0x2c1   : > { %10208 = vst [vmem:[#allocation32_spill] sm:$0xff] %v7221_v32 }
 0x2c2   : > { %v7223_v57 = vpop.f32.mrf.mxu1 }
 0x2c3   : > { %10209 = vst [vmem:[#allocation33_spill] sm:$0xff] %v7223_v57 }
 0x2c4   : > { %v7225_v48 = vpop.f32.mrf.mxu1 }
 0x2c5   : > { %10210 = vst [vmem:[#allocation34_spill] sm:$0xff] %v7225_v48 }
 0x2c6   : > { %v5331_v50 = vpop.f32.mrf.mxu1 }
 0x2c7   : > { %v7228_v4 = vadd.f32 %v5331_v50, %v6991_v36 }
 0x2c8   : > { %v994_v6 = vpop.f32.mrf.mxu1 }
 0x2c9   : > { %v7231_v1 = vadd.f32 %v994_v6, %v6991_v36  ;;  %1061 = vmax.xlane.f32.xlu1 %v7228_v4 }
 0x2ca   : > { %v5332_v0 = vpop.f32.mrf.mxu1 }
 0x2cb   : > { %v7235_v12 = vadd.f32 %v5332_v0, %v6991_v36  ;;  %1057 = vmax.xlane.f32.xlu0 %v7231_v1 }
 0x2cc   : > { %v997_v61 = vpop.f32.mrf.mxu1 }
 0x2cd   : > { %1063 = vmax.xlane.f32.xlu1 %v7235_v12  ;;  %v7240_v8 = vadd.f32 %v997_v61, %v6991_v36 }
 0x2ce   : > { %v5335_v50 = vpop.f32.mrf.mxu1 }
 0x2cf   : > { %v7250_v46 = vadd.f32 %v5335_v50, %v6991_v36 }
 0x2d0   : > { %v1010_v57 = vpop.f32.mrf.mxu1 }
 0x2d1   : > { %1059 = vmax.xlane.f32.xlu1 %v7240_v8 }
 0x2d2   : > { %v5336_v6 = vpop.f32.mrf.mxu1 }
 0x2d4   : > { %v1013_v0 = vpop.f32.mrf.mxu1 }
 0x2d5   : > { %v7265_v42 = vadd.f32 %v1013_v0, %v6991_v36 }
 0x2d6   : > { %v5339_v43 = vpop.f32.mrf.mxu1 }
 0x2d8   : > { %v1026_v48 = vpop.f32.mrf.mxu1 }
 0x2d9   : > { %v7274_v50 = vadd.f32 %v1026_v48, %v6991_v36 }
 0x2da   : > { %v5340_v32 = vpop.f32.mrf.mxu1 }
 0x2dc   : > { %v1029_v61 = vpop.f32.mrf.mxu1 }
 0x2de   : > { %v5343_v51 = vpop.f32.mrf.mxu1 }
 0x2e0   : > { %v1042_v33 = vpop.f32.mrf.mxu1 }
 0x2e1   : > { %1354 = vrot.lane.b32.xlu0 %v6872_v7, %s6774_s27  ;;  %v7253_v7 = vadd.f32 %v1010_v57, %v6991_v36  ;;  %v7269_v57 = vadd.f32 %v5339_v43, %v6991_v36  ;;  %v7287_v43 = vadd.f32 %v5343_v51, %v6991_v36 }
 0x2e2   : > { %1356 = vrot.lane.b32.xlu1 %v6850_v3, %s6774_s27  ;;  %v5344_v54 = vpop.f32.mrf.mxu1  ;;  %v7257_v3 = vadd.f32 %v5336_v6, %v6991_v36  ;;  %v7282_v6 = vadd.f32 %v1029_v61, %v6991_v36 }
 0x2e4   : > { %v1045_v60 = vpop.f32.mrf.mxu1 }
 0x2e5   : > { %1352 = vrot.lane.b32.xlu0 %v6879_v9, %s6774_s27  ;;  %v7261_v9 = vadd.f32 %v1045_v60, %v6991_v36  ;;  %v7278_v60 = vadd.f32 %v5340_v32, %v6991_v36  ;;  %v7294_v32 = vadd.f32 %v1042_v33, %v6991_v36 }
 0x304   : > { %1069 = vmax.xlane.f32.xlu0 %v7250_v46 }
 0x306   : > { %1065 = vmax.xlane.f32.xlu1 %v7253_v7 }
 0x308   : > { %1071 = vmax.xlane.f32.xlu0 %v7257_v3 }
 0x30a   : > { %1083 = vmax.xlane.f32.xlu1 %v7261_v9 }
 0x30c   : > { %1067 = vmax.xlane.f32.xlu0 %v7265_v42 }
 0x310   : > { %1077 = vmax.xlane.f32.xlu0 %v7269_v57 }
 0x314   : > { %1073 = vmax.xlane.f32.xlu0 %v7274_v50 }
 0x318   : > { %1079 = vmax.xlane.f32.xlu0 %v7278_v60 }
 0x31b   : > { %1350 = vrot.lane.b32.xlu1 %v6886_v11, %s6774_s27  ;;  %v7300_v11 = vadd.f32 %v5344_v54, %v6991_v36 }
 0x31c   : > { %1075 = vmax.xlane.f32.xlu0 %v7282_v6 }
 0x31f   : > { %1336 = vrot.lane.b32.xlu1 %v6917_v19, %s6774_s27  ;;  %v1359_v19 = vpop.permute.xlu1 %1358 }
 0x320   : > { %1085 = vmax.xlane.f32.xlu0 %v7287_v43 }
 0x323   : > { %1340 = vrot.lane.b32.xlu1 %v6927_v21, %s6774_s27 }
 0x324   : > { %1081 = vmax.xlane.f32.xlu0 %v7294_v32 }
 0x327   : > { %1344 = vrot.lane.b32.xlu1 %v6937_v23, %s6774_s27 }
 0x328   : > { %1087 = vmax.xlane.f32.xlu0 %v7300_v11 }
 0x32b   : > { %1639 = vrot.lane.b32.xlu1 %v6951_v25, %s6774_s27 }
 0x32f   : > { %1631 = vrot.lane.b32.xlu1 %v6971_v29, %s6774_s27 }
 0x333   : > { %1627 = vrot.lane.b32.xlu1 %v6982_v31, %s6774_s27 }
 0x33e   : > { %1348 = vrot.lane.b32.xlu0 %v6893_v13, %s6774_s27 }
 0x342   : > { %1346 = vrot.lane.b32.xlu0 %v6900_v15, %s6774_s27 }
 0x346   : > { %1330 = vrot.lane.b32.xlu0 %v6863_v5, %s6774_s27 }
 0x34a   : > { %1332 = vrot.lane.b32.xlu0 %v6907_v17, %s6774_s27 }
 0x34e   : > { %1334 = vrot.lane.b32.xlu0 %v6910_v18, %s6774_s27 }
 0x352   : > { %v1062_v21 = vpop.xlane.xlu1 %1061  ;;  %1338 = vrot.lane.b32.xlu0 %v6920_v20, %s6774_s27 }
 0x353   : > { %v1091_v15 = vsub.f32 %v7228_v4, %v1062_v21 }
 0x354   : > { %v1058_v23 = vpop.xlane.xlu0 %1057 }
 0x355   : > { %v1089_v13 = vsub.f32 %v7231_v1, %v1058_v23  ;;  %v1109_v20 = vmul.f32 1.442695, %v1091_v15 }
 0x356   : > { %v1064_v25 = vpop.xlane.xlu1 %1063  ;;  %1342 = vrot.lane.b32.xlu0 %v6930_v22, %s6774_s27 }
 0x357   : > { %v1092_v5 = vsub.f32 %v7235_v12, %v1064_v25  ;;  %v1105_v17 = vmul.f32 1.442695, %v1089_v13 }
 0x358   : > { %v1355_v1 = vpop.permute.xlu0 %1354 }
 0x359   : > { %v1111_v29 = vmul.f32 1.442695, %v1092_v5  ;;  %6200 = vpow2.f32 %v1105_v17  ;;  %v1399_v12 = vsel %vm437_vm0, %v1355_v1, 0 }
 0x35a   : > { %v1060_v31 = vpop.xlane.xlu1 %1059  ;;  %1641 = vrot.lane.b32.xlu0 %v6948_v24, %s6774_s27 }
 0x35b   : > { %v1090_v18 = vsub.f32 %v7240_v8, %v1060_v31  ;;  %6202 = vpow2.f32 %v1111_v29 }
 0x35c   : > { %v1353_v8 = vpop.permute.xlu0 %1352 }
 0x35d   : > { %v1107_v33 = vmul.f32 1.442695, %v1090_v18 }
 0x35e   : > { %1637 = vrot.lane.b32.xlu0 %v6958_v26, %s6774_s27  ;;  %v1357_v48 = vpop.permute.xlu1 %1356 }
 0x35f   : > { %6204 = vpow2.f32 %v1107_v33  ;;  %v1402_v4 = vsel %vm437_vm0, %v1357_v48, 0 }
 0x360   : > { %6206 = vpow2.f32 %v1109_v20 }
 0x362   : > { %1635 = vrot.lane.b32.xlu0 %v6963_v27, %s6774_s27 }
 0x366   : > { %1633 = vrot.lane.b32.xlu0 %v6968_v28, %s6774_s27  ;;  %v7337_v22 = vpop.eup %6200  ;;  %v1408_v28 = vsel %vm437_vm0, %v7193_v53, 0 }
 0x368   : > { %v7341_v24 = vpop.eup %6202 }
 0x36a   : > { %1629 = vrot.lane.b32.xlu0 %v6977_v30, %s6774_s27  ;;  %v1405_v30 = vsel %vm437_vm0, %v1359_v19, 0 }
 0x36c   : > { %v7343_v51 = vpop.eup %6204 }
 0x36d   : > { %v7345_v54 = vpop.eup %6206  ;;  %v1169_v26 = vpack.c.bf16 %v7343_v51, %v7337_v22 }
 0x36e   : > { %10211 = vst [vmem:[#allocation35_spill] sm:$0xff] %v7345_v54  ;;  %v1170_v27 = vpack.c.bf16 %v7341_v24, %v7345_v54 }
 0x36f   : > { %5361 = vmatprep.mubr.bf16.mxu0 %v1169_v26 }
 0x370   : > { %5362 = vmatmul.mubr.bf16.vlgmr.msra.gmra.mxu0 %v1170_v27 }
 0x371   : > { %5378 = vmatpush3.bf16.xpose.msra.mxu0 %v1408_v28 }
 0x372   : > { %5778 = vmatprep.subr.msk.bf16.mxu0 %vm437_vm0, %v1359_v19  ;;  %v1396_v19 = vsel %vm437_vm0, %v1353_v8, 0 }
 0x379   : > { %5380 = vmatpush3.bf16.xpose.msra.mxu0 %v1405_v30 }
 0x37a   : > { %5779 = vmatprep.subr.msk.bf16.mxu0 %vm437_vm0, %v1357_v48 }
 0x381   : > { %5382 = vmatpush3.bf16.xpose.msra.mxu0 %v1402_v4 }
 0x382   : > { %5780 = vmatprep.subr.msk.bf16.mxu0 %vm437_vm0, %v1355_v1 }
 0x389   : > { %5384 = vmatpush3.bf16.xpose.msra.mxu0 %v1399_v12 }
 0x38a   : > { %5781 = vmatprep.subr.msk.bf16.mxu0 %vm437_vm0, %v1353_v8 }
 0x38d   : > { %v1070_v53 = vpop.xlane.xlu0 %1069 }
 0x38e   : > { %v1095_v13 = vsub.f32 %v7250_v46, %v1070_v53 }
 0x38f   : > { %v1066_v0 = vpop.xlane.xlu1 %1065 }
 0x390   : > { %v1093_v61 = vsub.f32 %v7253_v7, %v1066_v0  ;;  %v1117_v31 = vmul.f32 1.442695, %v1095_v13 }
 0x391   : > { %5386 = vmatpush3.bf16.xpose.msra.mxu0 %v1396_v19  ;;  %v1072_v21 = vpop.xlane.xlu0 %1071 }
 0x392   : > { %v1096_v23 = vsub.f32 %v7257_v3, %v1072_v21  ;;  %v1113_v5 = vmul.f32 1.442695, %v1093_v61 }
 0x393   : > { %v1084_v25 = vpop.xlane.xlu1 %1083 }
 0x394   : > { %v1119_v15 = vmul.f32 1.442695, %v1096_v23  ;;  %6208 = vpow2.f32 %v1113_v5 }
 0x395   : > { %v1068_v17 = vpop.xlane.xlu0 %1067 }
 0x396   : > { %v1094_v29 = vsub.f32 %v7265_v42, %v1068_v17  ;;  %6210 = vpow2.f32 %v1119_v15 }
 0x397   : > { %v1351_v18 = vpop.permute.xlu1 %1350 }
 0x398   : > { %v1115_v20 = vmul.f32 1.442695, %v1094_v29  ;;  %5782 = vmatprep.subr.msk.bf16.mxu0 %vm437_vm0, %v1351_v18  ;;  %v1393_v7 = vsel %vm437_vm0, %v1351_v18, 0 }
 0x399   : > { %v1078_v33 = vpop.xlane.xlu0 %1077  ;;  %5388 = vmatpush3.bf16.xpose.msra.mxu0 %v1393_v7 }
 0x39a   : > { %6212 = vpow2.f32 %v1115_v20  ;;  %v1099_v42 = vsub.f32 %v7269_v57, %v1078_v33  ;;  %v1102_v57 = vsub.f32 %v7261_v9, %v1084_v25 }
 0x39b   : > { %6214 = vpow2.f32 %v1117_v31 }
 0x39c   : > { %v1125_v53 = vmul.f32 1.442695, %v1099_v42 }
 0x39d   : > { %v1074_v46 = vpop.xlane.xlu0 %1073 }
 0x39e   : > { %v1097_v3 = vsub.f32 %v7274_v50, %v1074_v46 }
 0x3a0   : > { %v1121_v28 = vmul.f32 1.442695, %v1097_v3 }
 0x3a1   : > { %v1080_v26 = vpop.xlane.xlu0 %1079  ;;  %v7370_v30 = vpop.eup %6208 }
 0x3a2   : > { %v1100_v27 = vsub.f32 %v7278_v60, %v1080_v26  ;;  %10212 = vst [vmem:[#allocation36_spill] sm:$0xff] %v7370_v30  ;;  %6216 = vpow2.f32 %v1121_v28 }
 0x3a3   : > { %v7372_v1 = vpop.eup %6210 }
 0x3a4   : > { %v1127_v48 = vmul.f32 1.442695, %v1100_v27  ;;  %10213 = vst [vmem:[#allocation37_spill] sm:$0xff] %v7372_v1 }
 0x3a5   : > { %v1076_v4 = vpop.xlane.xlu0 %1075 }
 0x3a6   : > { %v1098_v12 = vsub.f32 %v7282_v6, %v1076_v4  ;;  %6218 = vpow2.f32 %v1127_v48  ;;  %v1131_v6 = vmul.f32 1.442695, %v1102_v57 }
 0x3a7   : > { %v7375_v8 = vpop.eup %6212 }
 0x3a8   : > { %v7377_v0 = vpop.eup %6214  ;;  %v1123_v50 = vmul.f32 1.442695, %v1098_v12  ;;  %v1171_v60 = vpack.c.bf16 %v7375_v8, %v7370_v30 }
 0x3a9   : > { %10214 = vst [vmem:[#allocation38_spill] sm:$0xff] %v7377_v0  ;;  %v1086_v61 = vpop.xlane.xlu0 %1085  ;;  %v1172_v19 = vpack.c.bf16 %v7372_v1, %v7377_v0 }
 0x3aa   : > { %6220 = vpow2.f32 %v1123_v50  ;;  %5365 = vmatprep.mubr.bf16.mxu0 %v1171_v60  ;;  %v1103_v21 = vsub.f32 %v7287_v43, %v1086_v61  ;;  %v1337_v50 = vpop.permute.xlu1 %1336 }
 0x3ab   : > { %6222 = vpow2.f32 %v1125_v53  ;;  %5366 = vmatmul.mubr.bf16.gmra.mxu0 %v1172_v19 }
 0x3ac   : > { %6224 = vpow2.f32 %v1131_v6  ;;  %v1133_v15 = vmul.f32 1.442695, %v1103_v21  ;;  %v7424_v6 = vld [vmem:[%s6831_s19 + $0xb8] sm:$0xff]   ;;  %v7429_v21 = vld [vmem:[%s6831_s19 + $0xa8] sm:$0xff]  }
 0x3ad   : > { %v1082_v23 = vpop.xlane.xlu0 %1081  ;;  %1810 = vrot.lane.b32.xlu0 %v7424_v6, %s6775_s28  ;;  %1806 = vrot.lane.b32.xlu1 %v7429_v21, %s6775_s28 }
 0x3ae   : > { %v1101_v13 = vsub.f32 %v7294_v32, %v1082_v23  ;;  %v1341_v57 = vpop.permute.xlu1 %1340  ;;  %v7434_v23 = vld [vmem:[%s6831_s19 + $0xb0] sm:$0xff]  }
 0x3af   : > { %v7387_v29 = vpop.eup %6216 }
 0x3b0   : > { %v1129_v5 = vmul.f32 1.442695, %v1101_v13  ;;  %10215 = vst [vmem:[#allocation39_spill] sm:$0xff] %v7387_v29  ;;  %v7439_v13 = vld [vmem:[%s6831_s19 + $0xa0] sm:$0xff]  }
 0x3b1   : > { %v1088_v17 = vpop.xlane.xlu0 %1087  ;;  %1808 = vrot.lane.b32.xlu0 %v7434_v23, %s6775_s28 }
 0x3b2   : > { %6226 = vpow2.f32 %v1129_v5  ;;  %v1104_v9 = vsub.f32 %v7300_v11, %v1088_v17  ;;  %v1345_v19 = vpop.permute.xlu1 %1344 }
 0x3b3   : > { %6228 = vpow2.f32 %v1133_v15  ;;  %v7389_v18 = vpop.eup %6218 }
 0x3b4   : > { %v1135_v25 = vmul.f32 1.442695, %v1104_v9  ;;  %10216 = vst [vmem:[#allocation40_spill] sm:$0xff] %v7389_v18 }
 0x3b5   : > { %v1349_v31 = vpop.permute.xlu0 %1348  ;;  %1804 = vrot.lane.b32.xlu0 %v7439_v13, %s6775_s28 }
 0x3b6   : > { %6230 = vpow2.f32 %v1135_v25  ;;  %5783 = vmatprep.subr.msk.bf16.mxu0 %vm437_vm0, %v1349_v31  ;;  %v1390_v43 = vsel %vm437_vm0, %v1349_v31, 0  ;;  %v1640_v15 = vpop.permute.xlu1 %1639 }
 0x3b7   : > { %v7393_v32 = vpop.eup %6220  ;;  %5390 = vmatpush3.bf16.xpose.msra.mxu0 %v1390_v43 }
 0x3b8   : > { %10217 = vst [vmem:[#allocation41_spill] sm:$0xff] %v7393_v32  ;;  %v7395_v20 = vpop.eup %6222  ;;  %v1173_v11 = vpack.c.bf16 %v7393_v32, %v7387_v29 }
 0x3b9   : > { %10218 = vst [vmem:[#allocation42_spill] sm:$0xff] %v7395_v20  ;;  %v1174_v7 = vpack.c.bf16 %v7389_v18, %v7395_v20  ;;  %v1347_v33 = vpop.permute.xlu0 %1346  ;;  %v7403_v3 = vpop.eup %6224 }
 0x3ba   : > { %5369 = vmatprep.mubr.bf16.mxu0 %v1173_v11  ;;  %5784 = vmatprep.subr.msk.bf16.mxu0 %vm437_vm0, %v1347_v33  ;;  %v1387_v46 = vsel %vm437_vm0, %v1347_v33, 0  ;;  %10219 = vst [vmem:[#allocation43_spill] sm:$0xff] %v7403_v3  ;;  %v1632_v31 = vpop.permute.xlu1 %1631 }
 0x3bb   : > { %5370 = vmatmul.mubr.bf16.gmra.mxu0 %v1174_v7 }
 0x3bd   : > { %v1331_v28 = vpop.permute.xlu0 %1330 }
 0x3be   : > { %v1628_v11 = vpop.permute.xlu1 %1627 }
 0x3bf   : > { %v7405_v26 = vpop.eup %6226  ;;  %5392 = vmatpush3.bf16.xpose.msra.mxu0 %v1387_v46 }
 0x3c0   : > { %10220 = vst [vmem:[#allocation44_spill] sm:$0xff] %v7405_v26  ;;  %v1175_v27 = vpack.c.bf16 %v7403_v3, %v7405_v26  ;;  %v7409_v42 = vpop.eup %6228 }
 0x3c1   : > { %10221 = vst [vmem:[#allocation45_spill] sm:$0xff] %v7409_v42  ;;  %v1333_v12 = vpop.permute.xlu0 %1332 }
 0x3c2   : > { %5373 = vmatprep.mubr.bf16.mxu0 %v1175_v27 }
 0x3c3   : > { %v7411_v48 = vpop.eup %6230 }
 0x3c4   : > { %10222 = vst [vmem:[#allocation46_spill] sm:$0xff] %v7411_v48  ;;  %v1176_v4 = vpack.c.bf16 %v7411_v48, %v7409_v42 }
 0x3c5   : > { %v1335_v53 = vpop.permute.xlu0 %1334 }
 0x3c6   : > { %5374 = vmatmul.mubr.bf16.gmra.mxu0 %v1176_v4 }
 0x3c7   : > { %5393 = vmatprep.mubr.msk.bf16.mxu0 %vm437_vm0, %v1331_v28 }
 0x3c9   : > { %v1339_v60 = vpop.permute.xlu0 %1338 }
 0x3cd   : > { %v1343_v61 = vpop.permute.xlu0 %1342 }
 0x3ce   : > { %5394 = vmatmul.mubr.msk.bf16.vlgmr.msra.gmra.mxu0 %vm437_vm0, %v1333_v12 }
 0x3cf   : > { %5397 = vmatprep.mubr.msk.bf16.mxu0 %vm437_vm0, %v1335_v53 }
 0x3d1   : > { %v1642_v5 = vpop.permute.xlu0 %1641 }
 0x3d2   : > { %5409 = vmatprep.subr.bf16.mxu1 %v1642_v5 }
 0x3d3   : > { %5410 = vmatpush3.bf16.msra.mxu1 %v1642_v5 }
 0x3d4   : > { %5411 = vmatprep.subr.bf16.mxu1 %v1640_v15 }
 0x3d5   : > { %v1638_v17 = vpop.permute.xlu0 %1637 }
 0x3d6   : > { %5398 = vmatmul.mubr.msk.bf16.gmra.mxu0 %vm437_vm0, %v1337_v50 }
 0x3d7   : > { %5401 = vmatprep.mubr.msk.bf16.mxu0 %vm437_vm0, %v1339_v60  ;;  %5412 = vmatpush3.bf16.msra.mxu1 %v1640_v15 }
 0x3d8   : > { %5413 = vmatprep.subr.bf16.mxu1 %v1638_v17 }
 0x3d9   : > { %v1636_v9 = vpop.permute.xlu0 %1635 }
 0x3db   : > { %5414 = vmatpush3.bf16.msra.mxu1 %v1638_v17 }
 0x3dc   : > { %5415 = vmatprep.subr.bf16.mxu1 %v1636_v9 }
 0x3dd   : > { %v1634_v25 = vpop.permute.xlu0 %1633 }
 0x3de   : > { %5402 = vmatmul.mubr.msk.bf16.gmra.mxu0 %vm437_vm0, %v1341_v57 }
 0x3df   : > { %5405 = vmatprep.mubr.msk.bf16.mxu0 %vm437_vm0, %v1343_v61  ;;  %5416 = vmatpush3.bf16.msra.mxu1 %v1636_v9 }
 0x3e0   : > { %5417 = vmatprep.subr.bf16.mxu1 %v1634_v25 }
 0x3e1   : > { %v1630_v43 = vpop.permute.xlu0 %1629 }
 0x3e3   : > { %5418 = vmatpush3.bf16.msra.mxu1 %v1634_v25 }
 0x3e4   : > { %5419 = vmatprep.subr.bf16.mxu1 %v1632_v31 }
 0x3e6   : > { %5406 = vmatmul.mubr.msk.bf16.gmra.mxu0 %vm437_vm0, %v1345_v19 }
 0x3e7   : > { %5420 = vmatpush3.bf16.msra.mxu1 %v1632_v31 }
 0x3e8   : > { %5421 = vmatprep.subr.bf16.mxu1 %v1630_v43 }
 0x3eb   : > { %5422 = vmatpush3.bf16.msra.mxu1 %v1630_v43 }
 0x3ec   : > { %5423 = vmatprep.subr.bf16.mxu1 %v1628_v11 }
 0x3ef   : > { %5424 = vmatpush3.bf16.msra.mxu1 %v1628_v11 }
 0x41f   : > { %v7447_v46 = vpop.permute.xlu0 %1810  ;;  %v7640_v49 = vpop.permute.xlu1 %1806 }
 0x420   : > { %5785 = vmatprep.subr.msk.bf16.mxu1 %vm437_vm0, %v7447_v46 }
 0x423   : > { %v7628_v45 = vpop.permute.xlu0 %1808 }
 0x427   : > { %v7647_v41 = vpop.permute.xlu0 %1804 }
 0x430   : > { %v7443_v7 = vpop.f32.mrf.mxu0 }
 0x431   : > { %10223 = vst [vmem:[#allocation47_spill] sm:$0xff] %v7443_v7 }
 0x432   : > { %v7445_v33 = vpop.f32.mrf.mxu0 }
 0x433   : > { %10224 = vst [vmem:[#allocation48_spill] sm:$0xff] %v7445_v33  ;;  %v7589_v33 = vld [vmem:[%s6856_s23 + $0x30] sm:$0xff]  }
 0x434   : > { %v7449_v27 = vpop.f32.mrf.mxu0 }
 0x435   : > { %10225 = vst [vmem:[#allocation49_spill] sm:$0xff] %v7449_v27 }
 0x436   : > { %v7453_v28 = vpop.f32.mrf.mxu0 }
 0x437   : > { %10226 = vst [vmem:[#allocation50_spill] sm:$0xff] %v7453_v28  ;;  %v7584_v28 = vld [vmem:[%s6856_s23 + $0x18] sm:$0xff]  }
 0x46b   : > { %v7455_v4 = vpop.f32.mrf.mxu0 }
 0x46c   : > { %10227 = vst [vmem:[#allocation51_spill] sm:$0xff] %v7455_v4  ;;  %v7559_v4 = vld [vmem:[%s6856_s23] sm:$0xff]  }
 0x46d   : > { %v7457_v12 = vpop.f32.mrf.mxu0 }
 0x46e   : > { %10228 = vst [vmem:[#allocation52_spill] sm:$0xff] %v7457_v12  ;;  %v7579_v12 = vld [vmem:[%s6856_s23 + $0x20] sm:$0xff]  }
 0x46f   : > { %v7459_v53 = vpop.f32.mrf.mxu0 }
 0x470   : > { %10229 = vst [vmem:[#allocation53_spill] sm:$0xff] %v7459_v53 }
 0x471   : > { %v7461_v50 = vpop.f32.mrf.mxu0 }
 0x472   : > { %10230 = vst [vmem:[#allocation54_spill] sm:$0xff] %v7461_v50  ;;  %v7574_v50 = vld [vmem:[%s6856_s23 + $0x8] sm:$0xff]  }
 0x47b   : > { %v7463_v60 = vpop.f32.mrf.mxu0 }
 0x47c   : > { %10231 = vst [vmem:[#allocation55_spill] sm:$0xff] %v7463_v60 }
 0x47d   : > { %v7465_v57 = vpop.f32.mrf.mxu0 }
 0x47e   : > { %10232 = vst [vmem:[#allocation56_spill] sm:$0xff] %v7465_v57  ;;  %v7528_v57 = vld [vmem:[%s6831_s19 + $0x90] sm:$0xff]  }
 0x47f   : > { %v7467_v61 = vpop.f32.mrf.mxu0 }
 0x480   : > { %10233 = vst [vmem:[#allocation57_spill] sm:$0xff] %v7467_v61 }
 0x481   : > { %v7469_v19 = vpop.f32.mrf.mxu0 }
 0x482   : > { %10234 = vst [vmem:[#allocation58_spill] sm:$0xff] %v7469_v19 }
 0x486   : > { %v7471_v5 = vpop.f32.mrf.mxu0 }
 0x487   : > { %10235 = vst [vmem:[#allocation59_spill] sm:$0xff] %v7471_v5 }
 0x488   : > { %v7473_v15 = vpop.f32.mrf.mxu0 }
 0x489   : > { %10236 = vst [vmem:[#allocation60_spill] sm:$0xff] %v7473_v15 }
 0x48a   : > { %v7475_v17 = vpop.f32.mrf.mxu0 }
 0x48b   : > { %10237 = vst [vmem:[#allocation61_spill] sm:$0xff] %v7475_v17 }
 0x48c   : > { %v7477_v9 = vpop.f32.mrf.mxu0 }
 0x48d   : > { %10238 = vst [vmem:[#allocation62_spill] sm:$0xff] %v7477_v9 }
 0x48e   : > { %v5395_v25 = vpop.f32.mrf.mxu0 }
 0x48f   : > { %v7480_v31 = vadd.f32 %v5395_v25, %v6991_v36 }
 0x490   : > { %v1444_v43 = vpop.f32.mrf.mxu0 }
 0x491   : > { %v7483_v11 = vadd.f32 %v1444_v43, %v6991_v36  ;;  %1511 = vmax.xlane.f32.xlu1 %v7480_v31 }
 0x492   : > { %v5396_v10 = vpop.f32.mrf.mxu0 }
 0x493   : > { %v7487_v39 = vadd.f32 %v5396_v10, %v6991_v36  ;;  %1507 = vmax.xlane.f32.xlu0 %v7483_v11 }
 0x494   : > { %v1447_v2 = vpop.f32.mrf.mxu0 }
 0x495   : > { %1513 = vmax.xlane.f32.xlu1 %v7487_v39  ;;  %v7492_v37 = vadd.f32 %v1447_v2, %v6991_v36 }
 0x496   : > { %v5399_v58 = vpop.f32.mrf.mxu0 }
 0x497   : > { %v7495_v25 = vadd.f32 %v5399_v58, %v6991_v36 }
 0x498   : > { %v1460_v43 = vpop.f32.mrf.mxu0 }
 0x499   : > { %1509 = vmax.xlane.f32.xlu1 %v7492_v37  ;;  %1519 = vmax.xlane.f32.xlu0 %v7495_v25  ;;  %v7500_v10 = vadd.f32 %v1460_v43, %v6991_v36 }
 0x49a   : > { %v5400_v63 = vpop.f32.mrf.mxu0 }
 0x49b   : > { %v7507_v2 = vadd.f32 %v5400_v63, %v6991_v36 }
 0x49c   : > { %v1463_v9 = vpop.f32.mrf.mxu0 }
 0x49d   : > { %v7503_v15 = vadd.f32 %v1463_v9, %v6991_v36  ;;  %1515 = vmax.xlane.f32.xlu1 %v7500_v10 }
 0x49e   : > { %v5403_v58 = vpop.f32.mrf.mxu0 }
 0x49f   : > { %1517 = vmax.xlane.f32.xlu0 %v7503_v15  ;;  %v7511_v17 = vadd.f32 %v5403_v58, %v6991_v36 }
 0x4a0   : > { %v1476_v43 = vpop.f32.mrf.mxu0 }
 0x4a1   : > { %1521 = vmax.xlane.f32.xlu1 %v7507_v2  ;;  %v7516_v9 = vadd.f32 %v1476_v43, %v6991_v36  ;;  %v7533_v43 = vld [vmem:[%s6831_s19 + $0x98] sm:$0xff]  }
 0x4a2   : > { %v5404_v19 = vpop.f32.mrf.mxu0 }
 0x4a3   : > { %v7520_v63 = vadd.f32 %v5404_v19, %v6991_v36 }
 0x4a4   : > { %v1479_v5 = vpop.f32.mrf.mxu0 }
 0x4a5   : > { %1527 = vmax.xlane.f32.xlu1 %v7511_v17  ;;  %v7524_v58 = vadd.f32 %v1479_v5, %v6991_v36 }
 0x4a6   : > { %v5407_v19 = vpop.f32.mrf.mxu0 }
 0x4a7   : > { %v7538_v61 = vadd.f32 %v5407_v19, %v6991_v36 }
 0x4a8   : > { %v1492_v5 = vpop.f32.mrf.mxu0 }
 0x4a9   : > { %1523 = vmax.xlane.f32.xlu1 %v7516_v9  ;;  %v7542_v27 = vadd.f32 %v1492_v5, %v6991_v36  ;;  %v7554_v5 = vld [vmem:[%s6831_s19 + $0x88] sm:$0xff]  }
 0x4aa   : > { %v5408_v60 = vpop.f32.mrf.mxu0 }
 0x4ab   : > { %v7546_v7 = vadd.f32 %v5408_v60, %v6991_v36  ;;  %v7564_v60 = vld [vmem:[%s6831_s19 + $0x80] sm:$0xff]  }
 0x4ac   : > { %v1495_v19 = vpop.f32.mrf.mxu0 }
 0x4ad   : > { %1529 = vmax.xlane.f32.xlu1 %v7520_v63  ;;  %v7550_v53 = vadd.f32 %v1495_v19, %v6991_v36  ;;  %v7569_v19 = vld [vmem:[%s6856_s23 + $0x10] sm:$0xff]  }
 0x4b1   : > { %1525 = vmax.xlane.f32.xlu1 %v7524_v58 }
 0x4b5   : > { %1800 = vrot.lane.b32.xlu0 %v7528_v57, %s6775_s28 }
 0x4c2   : > { %1802 = vrot.lane.b32.xlu1 %v7533_v43, %s6775_s28 }
 0x4d4   : > { %1535 = vmax.xlane.f32.xlu0 %v7538_v61 }
 0x4d8   : > { %1531 = vmax.xlane.f32.xlu0 %v7542_v27 }
 0x4dc   : > { %1537 = vmax.xlane.f32.xlu0 %v7546_v7 }
 0x4e6   : > { %1533 = vmax.xlane.f32.xlu1 %v7550_v53 }
 0x4f2   : > { %1798 = vrot.lane.b32.xlu0 %v7554_v5, %s6775_s28 }
 0x4f6   : > { %1780 = vrot.lane.b32.xlu0 %v7559_v4, %s6775_s28 }
 0x4f7   : > { %1796 = vrot.lane.b32.xlu1 %v7564_v60, %s6775_s28 }
 0x4fa   : > { %1784 = vrot.lane.b32.xlu0 %v7569_v19, %s6775_s28 }
 0x4fb   : > { %1782 = vrot.lane.b32.xlu1 %v7574_v50, %s6775_s28 }
 0x4fe   : > { %1788 = vrot.lane.b32.xlu0 %v7579_v12, %s6775_s28 }
 0x4ff   : > { %1786 = vrot.lane.b32.xlu1 %v7584_v28, %s6775_s28 }
 0x502   : > { %1792 = vrot.lane.b32.xlu0 %v7589_v33, %s6775_s28 }
 0x503   : > { %1790 = vrot.lane.b32.xlu1 %v7594_v14, %s6775_s28 }
 0x506   : > { %2091 = vrot.lane.b32.xlu0 %v7599_v40, %s6775_s28 }
 0x507   : > { %1794 = vrot.lane.b32.xlu1 %v7604_v44, %s6775_s28 }
 0x50a   : > { %2087 = vrot.lane.b32.xlu0 %v7609_v38, %s6775_s28 }
 0x50b   : > { %2089 = vrot.lane.b32.xlu1 %v7614_v56, %s6775_s28 }
 0x50e   : > { %2085 = vrot.lane.b32.xlu0 %v7619_v52, %s6775_s28 }
 0x50f   : > { %2081 = vrot.lane.b32.xlu1 %v7624_v55, %s6775_s28 }
 0x512   : > { %2083 = vrot.lane.b32.xlu0 %v7631_v59, %s6775_s28 }
 0x513   : > { %2077 = vrot.lane.b32.xlu1 %v7636_v47, %s6775_s28 }
 0x516   : > { %2079 = vrot.lane.b32.xlu0 %v7643_v16, %s6775_s28 }
 0x517   : > { %2256 = vrot.lane.b32.xlu1 %v7429_v21, %s6776_s29 }
 0x51a   : > { %v1512_v34 = vpop.xlane.xlu1 %1511  ;;  %2260 = vrot.lane.b32.xlu0 %v7424_v6, %s6776_s29 }
 0x51b   : > { %v1541_v20 = vsub.f32 %v7480_v31, %v1512_v34 }
 0x51c   : > { %v1508_v35 = vpop.xlane.xlu0 %1507 }
 0x51d   : > { %v1539_v62 = vsub.f32 %v7483_v11, %v1508_v35  ;;  %v1559_v30 = vmul.f32 1.442695, %v1541_v20 }
 0x51e   : > { %v1514_v42 = vpop.xlane.xlu1 %1513  ;;  %2258 = vrot.lane.b32.xlu0 %v7434_v23, %s6776_s29 }
 0x51f   : > { %v1542_v26 = vsub.f32 %v7487_v39, %v1514_v42  ;;  %v1555_v48 = vmul.f32 1.442695, %v1539_v62 }
 0x521   : > { %v1561_v29 = vmul.f32 1.442695, %v1542_v26  ;;  %6232 = vpow2.f32 %v1555_v48 }
 0x522   : > { %v1510_v3 = vpop.xlane.xlu1 %1509  ;;  %v1520_v18 = vpop.xlane.xlu0 %1519  ;;  %2254 = vrot.lane.b32.xlu0 %v7439_v13, %s6776_s29 }
 0x523   : > { %v1540_v0 = vsub.f32 %v7492_v37, %v1510_v3  ;;  %6234 = vpow2.f32 %v1561_v29  ;;  %v1545_v54 = vsub.f32 %v7495_v25, %v1520_v18 }
 0x525   : > { %v1557_v32 = vmul.f32 1.442695, %v1540_v0  ;;  %v1567_v34 = vmul.f32 1.442695, %v1545_v54 }
 0x526   : > { %v1516_v1 = vpop.xlane.xlu1 %1515 }
 0x527   : > { %6236 = vpow2.f32 %v1557_v32  ;;  %v1543_v35 = vsub.f32 %v7500_v10, %v1516_v1  ;;  %v1858_v10 = vsel %vm437_vm0, %v7447_v46, 0 }
 0x528   : > { %6238 = vpow2.f32 %v1559_v30  ;;  %v1518_v39 = vpop.xlane.xlu0 %1517 }
 0x529   : > { %v1563_v42 = vmul.f32 1.442695, %v1543_v35  ;;  %v1544_v62 = vsub.f32 %v7503_v15, %v1518_v39 }
 0x52a   : > { %v1522_v26 = vpop.xlane.xlu1 %1521 }
 0x52b   : > { %v1565_v31 = vmul.f32 1.442695, %v1544_v62  ;;  %v1546_v37 = vsub.f32 %v7507_v2, %v1522_v26  ;;  %6240 = vpow2.f32 %v1563_v42 }
 0x52d   : > { %6242 = vpow2.f32 %v1565_v31  ;;  %v1569_v0 = vmul.f32 1.442695, %v1546_v37  ;;  %v1855_v37 = vsel %vm437_vm0, %v7628_v45, 0 }
 0x52e   : > { %6244 = vpow2.f32 %v1567_v34  ;;  %v1528_v29 = vpop.xlane.xlu1 %1527  ;;  %v7657_v18 = vpop.eup %6232 }
 0x52f   : > { %6246 = vpow2.f32 %v1569_v0  ;;  %10239 = vst [vmem:[#allocation63_spill] sm:$0xff] %v7657_v18  ;;  %v1549_v25 = vsub.f32 %v7511_v17, %v1528_v29 }
 0x530   : > { %v7659_v1 = vpop.eup %6234 }
 0x531   : > { %v1575_v46 = vmul.f32 1.442695, %v1549_v25 }
 0x532   : > { %v1524_v32 = vpop.xlane.xlu1 %1523 }
 0x533   : > { %v1547_v54 = vsub.f32 %v7516_v9, %v1524_v32 }
 0x534   : > { %v7661_v30 = vpop.eup %6236 }
 0x535   : > { %v7663_v20 = vpop.eup %6238  ;;  %v1619_v3 = vpack.c.bf16 %v7661_v30, %v7657_v18  ;;  %v1571_v35 = vmul.f32 1.442695, %v1547_v54 }
 0x536   : > { %10240 = vst [vmem:[#allocation64_spill] sm:$0xff] %v7663_v20  ;;  %v1530_v48 = vpop.xlane.xlu1 %1529  ;;  %v1620_v15 = vpack.c.bf16 %v7659_v1, %v7663_v20 }
 0x537   : > { %v1550_v11 = vsub.f32 %v7520_v63, %v1530_v48  ;;  %5425 = vmatprep.mubr.bf16.mxu1 %v1619_v3  ;;  %6248 = vpow2.f32 %v1571_v35 }
 0x538   : > { %5426 = vmatmul.mubr.bf16.vlgmr.msra.gmra.mxu1 %v1620_v15  ;;  %v7674_v2 = vpop.eup %6240 }
 0x539   : > { %10241 = vst [vmem:[#allocation65_spill] sm:$0xff] %v7674_v2  ;;  %5442 = vmatpush3.bf16.xpose.msra.mxu1 %v1858_v10  ;;  %v1577_v39 = vmul.f32 1.442695, %v1550_v11  ;;  %v1801_v11 = vpop.permute.xlu0 %1800 }
 0x53a   : > { %v7676_v9 = vpop.eup %6242  ;;  %5786 = vmatprep.subr.msk.bf16.mxu1 %vm437_vm0, %v7628_v45  ;;  %v1526_v42 = vpop.xlane.xlu1 %1525  ;;  %v1843_v10 = vsel %vm437_vm0, %v1801_v11, 0 }
 0x53b   : > { %v7680_v62 = vpop.eup %6244  ;;  %v1548_v63 = vsub.f32 %v7524_v58, %v1526_v42  ;;  %v1621_v17 = vpack.c.bf16 %v7676_v9, %v7674_v2  ;;  %6250 = vpow2.f32 %v1577_v39  ;;  %v1852_v58 = vsel %vm437_vm0, %v7640_v49, 0 }
 0x53c   : > { %10242 = vst [vmem:[#allocation66_spill] sm:$0xff] %v7680_v62  ;;  %v7685_v34 = vpop.eup %6246 }
 0x53d   : > { %10243 = vst [vmem:[#allocation67_spill] sm:$0xff] %v7685_v34  ;;  %v1573_v26 = vmul.f32 1.442695, %v1548_v63  ;;  %5429 = vmatprep.mubr.bf16.mxu1 %v1621_v17  ;;  %v1622_v31 = vpack.c.bf16 %v7685_v34, %v7680_v62 }
 0x53e   : > { %v1803_v48 = vpop.permute.xlu1 %1802 }
 0x53f   : > { %6252 = vpow2.f32 %v1573_v26  ;;  %v1846_v15 = vsel %vm437_vm0, %v1803_v48, 0 }
 0x540   : > { %6254 = vpow2.f32 %v1575_v46  ;;  %5430 = vmatmul.mubr.bf16.gmra.mxu1 %v1622_v31 }
 0x541   : > { %5444 = vmatpush3.bf16.xpose.msra.mxu1 %v1855_v37 }
 0x542   : > { %5787 = vmatprep.subr.msk.bf16.mxu1 %vm437_vm0, %v7640_v49  ;;  %v1849_v49 = vsel %vm437_vm0, %v7647_v41, 0 }
 0x544   : > { %v7695_v0 = vpop.eup %6248 }
 0x545   : > { %10244 = vst [vmem:[#allocation68_spill] sm:$0xff] %v7695_v0 }
 0x548   : > { %v7699_v29 = vpop.eup %6250 }
 0x549   : > { %5446 = vmatpush3.bf16.xpose.msra.mxu1 %v1852_v58  ;;  %10245 = vst [vmem:[#allocation69_spill] sm:$0xff] %v7699_v29 }
 0x54a   : > { %5788 = vmatprep.subr.msk.bf16.mxu1 %vm437_vm0, %v7647_v41 }
 0x54c   : > { %v7701_v32 = vpop.eup %6252 }
 0x54d   : > { %10246 = vst [vmem:[#allocation70_spill] sm:$0xff] %v7701_v32  ;;  %v7703_v54 = vpop.eup %6254  ;;  %v1623_v45 = vpack.c.bf16 %v7701_v32, %v7695_v0 }
 0x54e   : > { %10247 = vst [vmem:[#allocation71_spill] sm:$0xff] %v7703_v54  ;;  %v1624_v3 = vpack.c.bf16 %v7699_v29, %v7703_v54 }
 0x54f   : > { %5433 = vmatprep.mubr.bf16.mxu1 %v1623_v45 }
 0x550   : > { %5434 = vmatmul.mubr.bf16.gmra.mxu1 %v1624_v3 }
 0x551   : > { %5448 = vmatpush3.bf16.xpose.msra.mxu1 %v1849_v49 }
 0x552   : > { %5789 = vmatprep.subr.msk.bf16.mxu1 %vm437_vm0, %v1803_v48 }
 0x559   : > { %5450 = vmatpush3.bf16.xpose.msra.mxu1 %v1846_v15 }
 0x55a   : > { %5790 = vmatprep.subr.msk.bf16.mxu1 %vm437_vm0, %v1801_v11 }
 0x55d   : > { %v1536_v25 = vpop.xlane.xlu0 %1535 }
 0x55e   : > { %v1553_v46 = vsub.f32 %v7538_v61, %v1536_v25 }
 0x560   : > { %v1583_v45 = vmul.f32 1.442695, %v1553_v46 }
 0x561   : > { %5452 = vmatpush3.bf16.xpose.msra.mxu1 %v1843_v10  ;;  %v1532_v35 = vpop.xlane.xlu0 %1531 }
 0x562   : > { %v1551_v63 = vsub.f32 %v7542_v27, %v1532_v35 }
 0x564   : > { %v1579_v26 = vmul.f32 1.442695, %v1551_v63 }
 0x565   : > { %v1538_v39 = vpop.xlane.xlu0 %1537 }
 0x566   : > { %v1554_v17 = vsub.f32 %v7546_v7, %v1538_v39  ;;  %6256 = vpow2.f32 %v1579_v26 }
 0x568   : > { %v1585_v31 = vmul.f32 1.442695, %v1554_v17 }
 0x569   : > { %v1799_v42 = vpop.permute.xlu0 %1798 }
 0x56a   : > { %5791 = vmatprep.subr.msk.bf16.mxu1 %vm437_vm0, %v1799_v42  ;;  %v1840_v41 = vsel %vm437_vm0, %v1799_v42, 0  ;;  %6258 = vpow2.f32 %v1585_v31 }
 0x56b   : > { %5454 = vmatpush3.bf16.xpose.msra.mxu1 %v1840_v41 }
 0x56d   : > { %v1781_v25 = vpop.permute.xlu0 %1780 }
 0x56f   : > { %v1534_v37 = vpop.xlane.xlu1 %1533 }
 0x570   : > { %v1552_v58 = vsub.f32 %v7550_v53, %v1534_v37 }
 0x571   : > { %v1785_v35 = vpop.permute.xlu0 %1784 }
 0x572   : > { %v1581_v3 = vmul.f32 1.442695, %v1552_v58 }
 0x573   : > { %v1797_v49 = vpop.permute.xlu1 %1796  ;;  %v7723_v7 = vpop.eup %6256 }
 0x574   : > { %6260 = vpow2.f32 %v1581_v3  ;;  %5792 = vmatprep.subr.msk.bf16.mxu1 %vm437_vm0, %v1797_v49  ;;  %v1837_v27 = vsel %vm437_vm0, %v1797_v49, 0  ;;  %10248 = vst [vmem:[#allocation72_spill] sm:$0xff] %v7723_v7 }
 0x575   : > { %6262 = vpow2.f32 %v1583_v45  ;;  %5456 = vmatpush3.bf16.xpose.msra.mxu1 %v1837_v27  ;;  %v1789_v42 = vpop.permute.xlu0 %1788 }
 0x577   : > { %v7725_v61 = vpop.eup %6258  ;;  %v1783_v10 = vpop.permute.xlu1 %1782 }
 0x578   : > { %10249 = vst [vmem:[#allocation73_spill] sm:$0xff] %v7725_v61 }
 0x579   : > { %v1793_v41 = vpop.permute.xlu0 %1792 }
 0x57b   : > { %v1787_v39 = vpop.permute.xlu1 %1786 }
 0x57d   : > { %v2092_v46 = vpop.permute.xlu0 %2091 }
 0x57e   : > { %5473 = vmatprep.subr.bf16.mxu0 %v2092_v46 }
 0x57f   : > { %v1791_v63 = vpop.permute.xlu1 %1790  ;;  %5474 = vmatpush3.bf16.msra.mxu0 %v2092_v46 }
 0x581   : > { %v7727_v48 = vpop.eup %6260  ;;  %v2088_v31 = vpop.permute.xlu0 %2087 }
 0x582   : > { %10250 = vst [vmem:[#allocation74_spill] sm:$0xff] %v7727_v48  ;;  %v7729_v15 = vpop.eup %6262  ;;  %v1625_v53 = vpack.c.bf16 %v7727_v48, %v7723_v7 }
 0x583   : > { %10251 = vst [vmem:[#allocation75_spill] sm:$0xff] %v7729_v15  ;;  %v1626_v11 = vpack.c.bf16 %v7725_v61, %v7729_v15  ;;  %v1795_v17 = vpop.permute.xlu1 %1794 }
 0x584   : > { %5437 = vmatprep.mubr.bf16.mxu1 %v1625_v53 }
 0x585   : > { %5438 = vmatmul.mubr.bf16.gmra.mxu1 %v1626_v11  ;;  %v2086_v37 = vpop.permute.xlu0 %2085 }
 0x586   : > { %5457 = vmatprep.mubr.msk.bf16.mxu1 %vm437_vm0, %v1781_v25 }
 0x587   : > { %v2090_v26 = vpop.permute.xlu1 %2089 }
 0x588   : > { %5475 = vmatprep.subr.bf16.mxu0 %v2090_v26 }
 0x589   : > { %5476 = vmatpush3.bf16.msra.mxu0 %v2090_v26  ;;  %v2084_v58 = vpop.permute.xlu0 %2083 }
 0x58a   : > { %5477 = vmatprep.subr.bf16.mxu0 %v2088_v31 }
 0x58b   : > { %v2082_v45 = vpop.permute.xlu1 %2081 }
 0x58d   : > { %5458 = vmatmul.mubr.msk.bf16.vlgmr.msra.gmra.mxu1 %vm437_vm0, %v1783_v10  ;;  %5478 = vmatpush3.bf16.msra.mxu0 %v2088_v31  ;;  %v2080_v13 = vpop.permute.xlu0 %2079 }
 0x58e   : > { %5461 = vmatprep.mubr.msk.bf16.mxu1 %vm437_vm0, %v1785_v35  ;;  %5479 = vmatprep.subr.bf16.mxu0 %v2086_v37 }
 0x58f   : > { %v2078_v3 = vpop.permute.xlu1 %2077 }
 0x591   : > { %5480 = vmatpush3.bf16.msra.mxu0 %v2086_v37  ;;  %v7759_v25 = vpop.permute.xlu0 %2260 }
 0x592   : > { %5481 = vmatprep.subr.bf16.mxu0 %v2084_v58 }
 0x595   : > { %5462 = vmatmul.mubr.msk.bf16.gmra.mxu1 %vm437_vm0, %v1787_v39  ;;  %5482 = vmatpush3.bf16.msra.mxu0 %v2084_v58 }
 0x596   : > { %5465 = vmatprep.mubr.msk.bf16.mxu1 %vm437_vm0, %v1789_v42  ;;  %5483 = vmatprep.subr.bf16.mxu0 %v2082_v45 }
 0x599   : > { %5484 = vmatpush3.bf16.msra.mxu0 %v2082_v45 }
 0x59a   : > { %5485 = vmatprep.subr.bf16.mxu0 %v2080_v13 }
 0x59d   : > { %5466 = vmatmul.mubr.msk.bf16.gmra.mxu1 %vm437_vm0, %v1791_v63  ;;  %5486 = vmatpush3.bf16.msra.mxu0 %v2080_v13 }
 0x59e   : > { %5469 = vmatprep.mubr.msk.bf16.mxu1 %vm437_vm0, %v1793_v41  ;;  %5487 = vmatprep.subr.bf16.mxu0 %v2078_v3 }
 0x5a1   : > { %5488 = vmatpush3.bf16.msra.mxu0 %v2078_v3 }
 0x5a2   : > { %5793 = vmatprep.subr.msk.bf16.mxu0 %vm437_vm0, %v7759_v25 }
 0x5a5   : > { %5470 = vmatmul.mubr.msk.bf16.gmra.mxu1 %vm437_vm0, %v1795_v17 }
 0x5f8   : > { %v7751_v49 = vpop.f32.mrf.mxu1 }
 0x5f9   : > { %10252 = vst [vmem:[#allocation76_spill] sm:$0xff] %v7751_v49  ;;  %v8143_v49 = vld [vmem:[%s6856_s23 + $0x18] sm:$0xff]  }
 0x5fa   : > { %v7753_v27 = vpop.f32.mrf.mxu1 }
 0x5fb   : > { %10253 = vst [vmem:[#allocation77_spill] sm:$0xff] %v7753_v27 }
 0x5fc   : > { %v7755_v53 = vpop.f32.mrf.mxu1 }
 0x5fd   : > { %10254 = vst [vmem:[#allocation78_spill] sm:$0xff] %v7755_v53 }
 0x5fe   : > { %v7757_v11 = vpop.f32.mrf.mxu1 }
 0x5ff   : > { %10255 = vst [vmem:[#allocation79_spill] sm:$0xff] %v7757_v11 }
 0x600   : > { %v7763_v10 = vpop.f32.mrf.mxu1 }
 0x601   : > { %10256 = vst [vmem:[#allocation80_spill] sm:$0xff] %v7763_v10 }
 0x602   : > { %v7765_v35 = vpop.f32.mrf.mxu1 }
 0x603   : > { %10257 = vst [vmem:[#allocation81_spill] sm:$0xff] %v7765_v35 }
 0x604   : > { %v7767_v39 = vpop.f32.mrf.mxu1 }
 0x605   : > { %10258 = vst [vmem:[#allocation82_spill] sm:$0xff] %v7767_v39 }
 0x606   : > { %v7769_v42 = vpop.f32.mrf.mxu1 }
 0x607   : > { %10259 = vst [vmem:[#allocation83_spill] sm:$0xff] %v7769_v42 }
 0x610   : > { %v7771_v63 = vpop.f32.mrf.mxu1 }
 0x611   : > { %10260 = vst [vmem:[#allocation84_spill] sm:$0xff] %v7771_v63 }
 0x612   : > { %v7773_v41 = vpop.f32.mrf.mxu1 }
 0x613   : > { %10261 = vst [vmem:[#allocation85_spill] sm:$0xff] %v7773_v41 }
 0x614   : > { %v7775_v17 = vpop.f32.mrf.mxu1 }
 0x615   : > { %10262 = vst [vmem:[#allocation86_spill] sm:$0xff] %v7775_v17 }
 0x616   : > { %v7777_v46 = vpop.f32.mrf.mxu1 }
 0x617   : > { %10263 = vst [vmem:[#allocation87_spill] sm:$0xff] %v7777_v46 }
 0x645   : > { %v7779_v26 = vpop.f32.mrf.mxu1 }
 0x646   : > { %10264 = vst [vmem:[#allocation88_spill] sm:$0xff] %v7779_v26 }
 0x647   : > { %v7781_v31 = vpop.f32.mrf.mxu1 }
 0x648   : > { %10265 = vst [vmem:[#allocation89_spill] sm:$0xff] %v7781_v31 }
 0x649   : > { %v7783_v37 = vpop.f32.mrf.mxu1 }
 0x64a   : > { %10266 = vst [vmem:[#allocation90_spill] sm:$0xff] %v7783_v37 }
 0x64b   : > { %v7785_v58 = vpop.f32.mrf.mxu1 }
 0x64c   : > { %10267 = vst [vmem:[#allocation91_spill] sm:$0xff] %v7785_v58 }
 0x64d   : > { %v5459_v45 = vpop.f32.mrf.mxu1 }
 0x64e   : > { %v7788_v13 = vadd.f32 %v5459_v45, %v6991_v36 }
 0x64f   : > { %v1894_v3 = vpop.f32.mrf.mxu1 }
 0x650   : > { %v7791_v42 = vadd.f32 %v1894_v3, %v6991_v36  ;;  %1961 = vmax.xlane.f32.xlu1 %v7788_v13 }
 0x651   : > { %v5460_v41 = vpop.f32.mrf.mxu1 }
 0x652   : > { %v7795_v46 = vadd.f32 %v5460_v41, %v6991_v36  ;;  %1957 = vmax.xlane.f32.xlu0 %v7791_v42 }
 0x653   : > { %v1897_v31 = vpop.f32.mrf.mxu1 }
 0x654   : > { %1963 = vmax.xlane.f32.xlu1 %v7795_v46  ;;  %v7800_v37 = vadd.f32 %v1897_v31, %v6991_v36 }
 0x655   : > { %v5463_v58 = vpop.f32.mrf.mxu1 }
 0x656   : > { %v7803_v45 = vadd.f32 %v5463_v58, %v6991_v36 }
 0x657   : > { %v1910_v3 = vpop.f32.mrf.mxu1 }
 0x658   : > { %1959 = vmax.xlane.f32.xlu1 %v7800_v37  ;;  %1969 = vmax.xlane.f32.xlu0 %v7803_v45  ;;  %v7808_v41 = vadd.f32 %v1910_v3, %v6991_v36 }
 0x659   : > { %v5464_v26 = vpop.f32.mrf.mxu1 }
 0x65a   : > { %v7815_v31 = vadd.f32 %v5464_v26, %v6991_v36 }
 0x65b   : > { %v1913_v17 = vpop.f32.mrf.mxu1 }
 0x65c   : > { %v7811_v63 = vadd.f32 %v1913_v17, %v6991_v36  ;;  %1965 = vmax.xlane.f32.xlu1 %v7808_v41 }
 0x65d   : > { %v5467_v58 = vpop.f32.mrf.mxu1 }
 0x65e   : > { %1967 = vmax.xlane.f32.xlu0 %v7811_v63  ;;  %v7819_v35 = vadd.f32 %v5467_v58, %v6991_v36 }
 0x65f   : > { %v1926_v39 = vpop.f32.mrf.mxu1 }
 0x660   : > { %1971 = vmax.xlane.f32.xlu1 %v7815_v31  ;;  %v7824_v3 = vadd.f32 %v1926_v39, %v6991_v36 }
 0x661   : > { %v5468_v17 = vpop.f32.mrf.mxu1 }
 0x662   : > { %v7828_v26 = vadd.f32 %v5468_v17, %v6991_v36 }
 0x663   : > { %v1929_v10 = vpop.f32.mrf.mxu1 }
 0x664   : > { %1977 = vmax.xlane.f32.xlu1 %v7819_v35  ;;  %v7832_v58 = vadd.f32 %v1929_v10, %v6991_v36 }
 0x665   : > { %v5471_v39 = vpop.f32.mrf.mxu1 }
 0x666   : > { %v7840_v11 = vadd.f32 %v5471_v39, %v6991_v36 }
 0x667   : > { %v1942_v17 = vpop.f32.mrf.mxu1 }
 0x668   : > { %1973 = vmax.xlane.f32.xlu1 %v7824_v3  ;;  %v7844_v27 = vadd.f32 %v1942_v17, %v6991_v36 }
 0x669   : > { %v5472_v10 = vpop.f32.mrf.mxu1 }
 0x66a   : > { %v7848_v53 = vadd.f32 %v5472_v10, %v6991_v36 }
 0x66c   : > { %1979 = vmax.xlane.f32.xlu1 %v7828_v26 }
 0x670   : > { %1975 = vmax.xlane.f32.xlu1 %v7832_v58 }
 0x674   : > { %2250 = vrot.lane.b32.xlu0 %v7528_v57, %s6776_s29  ;;  %v1945_v57 = vpop.f32.mrf.mxu1 }
 0x681   : > { %2252 = vrot.lane.b32.xlu1 %v7533_v43, %s6776_s29  ;;  %v7852_v43 = vadd.f32 %v1945_v57, %v6991_v36 }
 0x693   : > { %1985 = vmax.xlane.f32.xlu0 %v7840_v11 }
 0x697   : > { %1981 = vmax.xlane.f32.xlu0 %v7844_v27 }
 0x69b   : > { %1987 = vmax.xlane.f32.xlu0 %v7848_v53 }
 0x6a5   : > { %1983 = vmax.xlane.f32.xlu1 %v7852_v43 }
 0x6b1   : > { %2248 = vrot.lane.b32.xlu0 %v7554_v5, %s6776_s29 }
 0x6b5   : > { %2230 = vrot.lane.b32.xlu0 %v7559_v4, %s6776_s29 }
 0x6b6   : > { %2246 = vrot.lane.b32.xlu1 %v7564_v60, %s6776_s29 }
 0x6b9   : > { %2234 = vrot.lane.b32.xlu0 %v7569_v19, %s6776_s29 }
 0x6ba   : > { %2232 = vrot.lane.b32.xlu1 %v7574_v50, %s6776_s29 }
 0x6bd   : > { %2238 = vrot.lane.b32.xlu0 %v7579_v12, %s6776_s29 }
 0x6be   : > { %2236 = vrot.lane.b32.xlu1 %v7584_v28, %s6776_s29 }
 0x6c1   : > { %2242 = vrot.lane.b32.xlu0 %v7589_v33, %s6776_s29  ;;  %v7885_v33 = vpop.permute.xlu0 %2258 }
 0x6c2   : > { %2240 = vrot.lane.b32.xlu1 %v7594_v14, %s6776_s29 }
 0x6c5   : > { %2541 = vrot.lane.b32.xlu0 %v7599_v40, %s6776_s29  ;;  %v7891_v40 = vpop.permute.xlu1 %2256 }
 0x6c6   : > { %2244 = vrot.lane.b32.xlu1 %v7604_v44, %s6776_s29 }
 0x6c9   : > { %2537 = vrot.lane.b32.xlu0 %v7609_v38, %s6776_s29  ;;  %v7895_v38 = vpop.permute.xlu0 %2254 }
 0x6ca   : > { %2539 = vrot.lane.b32.xlu1 %v7614_v56, %s6776_s29 }
 0x6cd   : > { %2535 = vrot.lane.b32.xlu0 %v7619_v52, %s6776_s29 }
 0x6ce   : > { %2531 = vrot.lane.b32.xlu1 %v7624_v55, %s6776_s29 }
 0x6d1   : > { %2533 = vrot.lane.b32.xlu0 %v7631_v59, %s6776_s29 }
 0x6d2   : > { %2527 = vrot.lane.b32.xlu1 %v7636_v47, %s6776_s29 }
 0x6d5   : > { %2529 = vrot.lane.b32.xlu0 %v7643_v16, %s6776_s29 }
 0x6d6   : > { %2706 = vrot.lane.b32.xlu1 %v7429_v21, %s6777_s30 }
 0x6d9   : > { %v1962_v56 = vpop.xlane.xlu1 %1961  ;;  %2710 = vrot.lane.b32.xlu0 %v7424_v6, %s6777_s30 }
 0x6da   : > { %v1991_v28 = vsub.f32 %v7788_v13, %v1962_v56 }
 0x6db   : > { %v1958_v52 = vpop.xlane.xlu0 %1957 }
 0x6dc   : > { %v1989_v14 = vsub.f32 %v7791_v42, %v1958_v52  ;;  %v2009_v5 = vmul.f32 1.442695, %v1991_v28 }
 0x6dd   : > { %v1964_v55 = vpop.xlane.xlu1 %1963  ;;  %2708 = vrot.lane.b32.xlu0 %v7434_v23, %s6777_s30 }
 0x6de   : > { %v1992_v44 = vsub.f32 %v7795_v46, %v1964_v55  ;;  %v2005_v59 = vmul.f32 1.442695, %v1989_v14 }
 0x6e0   : > { %v2011_v4 = vmul.f32 1.442695, %v1992_v44  ;;  %6264 = vpow2.f32 %v2005_v59 }
 0x6e1   : > { %v1960_v12 = vpop.xlane.xlu1 %1959  ;;  %v1970_v50 = vpop.xlane.xlu0 %1969 }
 0x6e2   : > { %v1990_v47 = vsub.f32 %v7800_v37, %v1960_v12  ;;  %6266 = vpow2.f32 %v2011_v4  ;;  %v1995_v60 = vsub.f32 %v7803_v45, %v1970_v50 }
 0x6e4   : > { %v2007_v16 = vmul.f32 1.442695, %v1990_v47  ;;  %v2017_v17 = vmul.f32 1.442695, %v1995_v60  ;;  %v2308_v47 = vsel %vm437_vm0, %v7759_v25, 0 }
 0x6e5   : > { %v1966_v19 = vpop.xlane.xlu1 %1965 }
 0x6e6   : > { %6268 = vpow2.f32 %v2007_v16  ;;  %v1993_v42 = vsub.f32 %v7808_v41, %v1966_v19 }
 0x6e7   : > { %6270 = vpow2.f32 %v2009_v5  ;;  %v1968_v46 = vpop.xlane.xlu0 %1967 }
 0x6e8   : > { %v2013_v39 = vmul.f32 1.442695, %v1993_v42  ;;  %v1994_v13 = vsub.f32 %v7811_v63, %v1968_v46 }
 0x6e9   : > { %v1972_v10 = vpop.xlane.xlu1 %1971 }
 0x6ea   : > { %v2015_v57 = vmul.f32 1.442695, %v1994_v13  ;;  %v1996_v37 = vsub.f32 %v7815_v31, %v1972_v10  ;;  %6272 = vpow2.f32 %v2013_v39  ;;  %v2305_v13 = vsel %vm437_vm0, %v7885_v33, 0 }
 0x6ec   : > { %6274 = vpow2.f32 %v2015_v57  ;;  %v2019_v56 = vmul.f32 1.442695, %v1996_v37 }
 0x6ed   : > { %6276 = vpow2.f32 %v2017_v17  ;;  %v1978_v52 = vpop.xlane.xlu1 %1977  ;;  %v7905_v45 = vpop.eup %6264 }
 0x6ee   : > { %6278 = vpow2.f32 %v2019_v56  ;;  %10268 = vst [vmem:[#allocation92_spill] sm:$0xff] %v7905_v45  ;;  %v1999_v12 = vsub.f32 %v7819_v35, %v1978_v52 }
 0x6ef   : > { %v7907_v41 = vpop.eup %6266 }
 0x6f0   : > { %10269 = vst [vmem:[#allocation93_spill] sm:$0xff] %v7907_v41  ;;  %v2025_v25 = vmul.f32 1.442695, %v1999_v12 }
 0x6f1   : > { %v1974_v14 = vpop.xlane.xlu1 %1973 }
 0x6f2   : > { %v1997_v63 = vsub.f32 %v7824_v3, %v1974_v14 }
 0x6f3   : > { %v7909_v55 = vpop.eup %6268 }
 0x6f4   : > { %10270 = vst [vmem:[#allocation94_spill] sm:$0xff] %v7909_v55  ;;  %v7911_v44 = vpop.eup %6270  ;;  %v2069_v31 = vpack.c.bf16 %v7909_v55, %v7905_v45  ;;  %v2021_v5 = vmul.f32 1.442695, %v1997_v63  ;;  %v2251_v63 = vpop.permute.xlu0 %2250  ;;  %v8202_v45 = vld [vmem:[%s6945_s26 + $0x108] sm:$0xff]  }
 0x6f5   : > { %10271 = vst [vmem:[#allocation95_spill] sm:$0xff] %v7911_v44  ;;  %v1980_v28 = vpop.xlane.xlu1 %1979  ;;  %v2070_v59 = vpack.c.bf16 %v7907_v41, %v7911_v44  ;;  %v8195_v44 = vld [vmem:[%s6945_s26 + $0x100] sm:$0xff]  }
 0x6f6   : > { %v2000_v4 = vsub.f32 %v7828_v26, %v1980_v28  ;;  %5489 = vmatprep.mubr.bf16.mxu0 %v2069_v31  ;;  %6280 = vpow2.f32 %v2021_v5  ;;  %v2293_v28 = vsel %vm437_vm0, %v2251_v63, 0 }
 0x6f7   : > { %5490 = vmatmul.mubr.bf16.vlgmr.msra.gmra.mxu0 %v2070_v59  ;;  %v7922_v50 = vpop.eup %6272 }
 0x6f8   : > { %10272 = vst [vmem:[#allocation96_spill] sm:$0xff] %v7922_v50  ;;  %5506 = vmatpush3.bf16.xpose.msra.mxu0 %v2308_v47  ;;  %v2027_v16 = vmul.f32 1.442695, %v2000_v4 }
 0x6f9   : > { %v7924_v3 = vpop.eup %6274  ;;  %5794 = vmatprep.subr.msk.bf16.mxu0 %vm437_vm0, %v7885_v33  ;;  %v1976_v60 = vpop.xlane.xlu1 %1975 }
 0x6fa   : > { %10273 = vst [vmem:[#allocation97_spill] sm:$0xff] %v7924_v3  ;;  %v7928_v19 = vpop.eup %6276  ;;  %v1998_v26 = vsub.f32 %v7832_v58, %v1976_v60  ;;  %v2071_v35 = vpack.c.bf16 %v7924_v3, %v7922_v50  ;;  %6282 = vpow2.f32 %v2027_v16  ;;  %v2302_v58 = vsel %vm437_vm0, %v7891_v40, 0 }
 0x6fb   : > { %10274 = vst [vmem:[#allocation98_spill] sm:$0xff] %v7928_v19  ;;  %v7933_v42 = vpop.eup %6278 }
 0x6fc   : > { %10275 = vst [vmem:[#allocation99_spill] sm:$0xff] %v7933_v42  ;;  %v2023_v46 = vmul.f32 1.442695, %v1998_v26  ;;  %5493 = vmatprep.mubr.bf16.mxu0 %v2071_v35  ;;  %v2072_v39 = vpack.c.bf16 %v7933_v42, %v7928_v19  ;;  %v8178_v19 = vld [vmem:[%s6945_s26 + $0x120] sm:$0xff]  }
 0x6fd   : > { %v2253_v52 = vpop.permute.xlu1 %2252 }
 0x6fe   : > { %6284 = vpow2.f32 %v2023_v46  ;;  %v2296_v14 = vsel %vm437_vm0, %v2253_v52, 0 }
 0x6ff   : > { %6286 = vpow2.f32 %v2025_v25  ;;  %5494 = vmatmul.mubr.bf16.gmra.mxu0 %v2072_v39 }
 0x700   : > { %5508 = vmatpush3.bf16.xpose.msra.mxu0 %v2305_v13 }
 0x701   : > { %5795 = vmatprep.subr.msk.bf16.mxu0 %vm437_vm0, %v7891_v40  ;;  %v2299_v40 = vsel %vm437_vm0, %v7895_v38, 0 }
 0x703   : > { %v7943_v17 = vpop.eup %6280 }
 0x704   : > { %10276 = vst [vmem:[#allocation100_spill] sm:$0xff] %v7943_v17 }
 0x707   : > { %v7947_v10 = vpop.eup %6282 }
 0x708   : > { %5510 = vmatpush3.bf16.xpose.msra.mxu0 %v2302_v58  ;;  %10277 = vst [vmem:[#allocation101_spill] sm:$0xff] %v7947_v10 }
 0x709   : > { %5796 = vmatprep.subr.msk.bf16.mxu0 %vm437_vm0, %v7895_v38 }
 0x70b   : > { %v7949_v57 = vpop.eup %6284 }
 0x70c   : > { %10278 = vst [vmem:[#allocation102_spill] sm:$0xff] %v7949_v57  ;;  %v7951_v37 = vpop.eup %6286  ;;  %v2073_v33 = vpack.c.bf16 %v7949_v57, %v7943_v17  ;;  %v8168_v17 = vld [vmem:[%s6945_s26 + $0x128] sm:$0xff]   ;;  %v8190_v57 = vld [vmem:[%s6945_s26 + $0x118] sm:$0xff]  }
 0x70d   : > { %10279 = vst [vmem:[#allocation103_spill] sm:$0xff] %v7951_v37  ;;  %v2074_v56 = vpack.c.bf16 %v7947_v10, %v7951_v37  ;;  %v8158_v37 = vld [vmem:[%s6945_s26 + $0x138] sm:$0xff]   ;;  %v8183_v10 = vld [vmem:[%s6945_s26 + $0x110] sm:$0xff]  }
 0x70e   : > { %5497 = vmatprep.mubr.bf16.mxu0 %v2073_v33 }
 0x70f   : > { %5498 = vmatmul.mubr.bf16.gmra.mxu0 %v2074_v56 }
 0x710   : > { %5512 = vmatpush3.bf16.xpose.msra.mxu0 %v2299_v40 }
 0x711   : > { %5797 = vmatprep.subr.msk.bf16.mxu0 %vm437_vm0, %v2253_v52 }
 0x718   : > { %5514 = vmatpush3.bf16.xpose.msra.mxu0 %v2296_v14 }
 0x719   : > { %5798 = vmatprep.subr.msk.bf16.mxu0 %vm437_vm0, %v2251_v63 }
 0x71c   : > { %v1986_v31 = vpop.xlane.xlu0 %1985 }
 0x71d   : > { %v2003_v16 = vsub.f32 %v7840_v11, %v1986_v31 }
 0x71f   : > { %v2033_v46 = vmul.f32 1.442695, %v2003_v16 }
 0x720   : > { %5516 = vmatpush3.bf16.xpose.msra.mxu0 %v2293_v28  ;;  %v1982_v59 = vpop.xlane.xlu0 %1981 }
 0x721   : > { %v2001_v47 = vsub.f32 %v7844_v27, %v1982_v59 }
 0x723   : > { %v2029_v60 = vmul.f32 1.442695, %v2001_v47 }
 0x724   : > { %v1988_v4 = vpop.xlane.xlu0 %1987 }
 0x725   : > { %v2004_v5 = vsub.f32 %v7848_v53, %v1988_v4  ;;  %6288 = vpow2.f32 %v2029_v60  ;;  %v7997_v4 = vld [vmem:[%s6831_s19 + $0xa0] sm:$0xff]  }
 0x726   : > { %2704 = vrot.lane.b32.xlu0 %v7997_v4, %s6777_s30 }
 0x727   : > { %v2035_v26 = vmul.f32 1.442695, %v2004_v5 }
 0x728   : > { %v2249_v12 = vpop.permute.xlu0 %2248 }
 0x729   : > { %5799 = vmatprep.subr.msk.bf16.mxu0 %vm437_vm0, %v2249_v12  ;;  %v2290_v38 = vsel %vm437_vm0, %v2249_v12, 0  ;;  %6290 = vpow2.f32 %v2035_v26 }
 0x72a   : > { %5518 = vmatpush3.bf16.xpose.msra.mxu0 %v2290_v38 }
 0x72c   : > { %v2231_v40 = vpop.permute.xlu0 %2230 }
 0x72e   : > { %v1984_v35 = vpop.xlane.xlu1 %1983 }
 0x72f   : > { %v2002_v25 = vsub.f32 %v7852_v43, %v1984_v35 }
 0x730   : > { %v2235_v14 = vpop.permute.xlu0 %2234 }
 0x731   : > { %v2031_v39 = vmul.f32 1.442695, %v2002_v25 }
 0x732   : > { %v2247_v13 = vpop.permute.xlu1 %2246  ;;  %v7971_v53 = vpop.eup %6288 }
 0x733   : > { %6292 = vpow2.f32 %v2031_v39  ;;  %5800 = vmatprep.subr.msk.bf16.mxu0 %vm437_vm0, %v2247_v13  ;;  %v2287_v27 = vsel %vm437_vm0, %v2247_v13, 0  ;;  %10280 = vst [vmem:[#allocation104_spill] sm:$0xff] %v7971_v53 }
 0x734   : > { %6294 = vpow2.f32 %v2033_v46  ;;  %5520 = vmatpush3.bf16.xpose.msra.mxu0 %v2287_v27  ;;  %v2239_v31 = vpop.permute.xlu0 %2238 }
 0x736   : > { %v7973_v11 = vpop.eup %6290  ;;  %v2233_v52 = vpop.permute.xlu1 %2232 }
 0x737   : > { %10281 = vst [vmem:[#allocation105_spill] sm:$0xff] %v7973_v11 }
 0x738   : > { %v2243_v59 = vpop.permute.xlu0 %2242 }
 0x73a   : > { %v2237_v63 = vpop.permute.xlu1 %2236 }
 0x73c   : > { %v2542_v6 = vpop.permute.xlu0 %2541 }
 0x73d   : > { %5537 = vmatprep.subr.bf16.mxu1 %v2542_v6 }
 0x73e   : > { %v2241_v28 = vpop.permute.xlu1 %2240  ;;  %5538 = vmatpush3.bf16.msra.mxu1 %v2542_v6 }
 0x740   : > { %v7975_v58 = vpop.eup %6292  ;;  %v2538_v21 = vpop.permute.xlu0 %2537 }
 0x741   : > { %10282 = vst [vmem:[#allocation106_spill] sm:$0xff] %v7975_v58  ;;  %v7977_v33 = vpop.eup %6294  ;;  %v2075_v43 = vpack.c.bf16 %v7975_v58, %v7971_v53  ;;  %v8153_v53 = vld [vmem:[%s6856_s23 + $0x28] sm:$0xff]   ;;  %v8173_v58 = vld [vmem:[%s6945_s26 + $0x130] sm:$0xff]  }
 0x742   : > { %10283 = vst [vmem:[#allocation107_spill] sm:$0xff] %v7977_v33  ;;  %v2076_v56 = vpack.c.bf16 %v7973_v11, %v7977_v33  ;;  %v2245_v12 = vpop.permute.xlu1 %2244  ;;  %v8148_v33 = vld [vmem:[%s6856_s23 + $0x30] sm:$0xff]   ;;  %v8163_v11 = vld [vmem:[%s6856_s23 + $0x38] sm:$0xff]  }
 0x743   : > { %5501 = vmatprep.mubr.bf16.mxu0 %v2075_v43 }
 0x744   : > { %5502 = vmatmul.mubr.bf16.gmra.mxu0 %v2076_v56  ;;  %v2536_v23 = vpop.permute.xlu0 %2535 }
 0x745   : > { %5521 = vmatprep.mubr.msk.bf16.mxu0 %vm437_vm0, %v2231_v40 }
 0x746   : > { %v2540_v47 = vpop.permute.xlu1 %2539 }
 0x747   : > { %5539 = vmatprep.subr.bf16.mxu1 %v2540_v47 }
 0x748   : > { %5540 = vmatpush3.bf16.msra.mxu1 %v2540_v47  ;;  %v2534_v38 = vpop.permute.xlu0 %2533 }
 0x749   : > { %5541 = vmatprep.subr.bf16.mxu1 %v2538_v21 }
 0x74a   : > { %v2532_v5 = vpop.permute.xlu1 %2531 }
 0x74c   : > { %5522 = vmatmul.mubr.msk.bf16.vlgmr.msra.gmra.mxu0 %vm437_vm0, %v2233_v52  ;;  %5542 = vmatpush3.bf16.msra.mxu1 %v2538_v21  ;;  %v2530_v16 = vpop.permute.xlu0 %2529 }
 0x74d   : > { %5525 = vmatprep.mubr.msk.bf16.mxu0 %vm437_vm0, %v2235_v14  ;;  %5543 = vmatprep.subr.bf16.mxu1 %v2536_v23 }
 0x74e   : > { %v2528_v60 = vpop.permute.xlu1 %2527 }
 0x750   : > { %5544 = vmatpush3.bf16.msra.mxu1 %v2536_v23  ;;  %v8010_v39 = vpop.permute.xlu0 %2710 }
 0x751   : > { %5545 = vmatprep.subr.bf16.mxu1 %v2534_v38 }
 0x752   : > { %v8199_v42 = vpop.permute.xlu1 %2706 }
 0x754   : > { %5526 = vmatmul.mubr.msk.bf16.gmra.mxu0 %vm437_vm0, %v2237_v63  ;;  %5546 = vmatpush3.bf16.msra.mxu1 %v2534_v38  ;;  %v8187_v50 = vpop.permute.xlu0 %2708 }
 0x755   : > { %5529 = vmatprep.mubr.msk.bf16.mxu0 %vm437_vm0, %v2239_v31  ;;  %5547 = vmatprep.subr.bf16.mxu1 %v2532_v5 }
 0x758   : > { %5548 = vmatpush3.bf16.msra.mxu1 %v2532_v5 }
 0x759   : > { %5549 = vmatprep.subr.bf16.mxu1 %v2530_v16 }
 0x75c   : > { %5530 = vmatmul.mubr.msk.bf16.gmra.mxu0 %vm437_vm0, %v2241_v28  ;;  %5550 = vmatpush3.bf16.msra.mxu1 %v2530_v16 }
 0x75d   : > { %5533 = vmatprep.mubr.msk.bf16.mxu0 %vm437_vm0, %v2243_v59  ;;  %5551 = vmatprep.subr.bf16.mxu1 %v2528_v60 }
 0x760   : > { %5552 = vmatpush3.bf16.msra.mxu1 %v2528_v60 }
 0x761   : > { %5801 = vmatprep.subr.msk.bf16.mxu1 %vm437_vm0, %v8010_v39 }
 0x764   : > { %5534 = vmatmul.mubr.msk.bf16.gmra.mxu0 %vm437_vm0, %v2245_v12 }
 0x798   : > { %v8206_v3 = vpop.permute.xlu0 %2704 }
 0x7b7   : > { %v8002_v26 = vpop.f32.mrf.mxu0 }
 0x7b8   : > { %10284 = vst [vmem:[#allocation108_spill] sm:$0xff] %v8002_v26  ;;  %v8138_v26 = vld [vmem:[%s6856_s23 + $0x20] sm:$0xff]  }
 0x7b9   : > { %v8004_v35 = vpop.f32.mrf.mxu0 }
 0x7ba   : > { %10285 = vst [vmem:[#allocation109_spill] sm:$0xff] %v8004_v35  ;;  %v8118_v35 = vld [vmem:[%s6856_s23] sm:$0xff]  }
 0x7bb   : > { %v8006_v25 = vpop.f32.mrf.mxu0 }
 0x7bc   : > { %10286 = vst [vmem:[#allocation110_spill] sm:$0xff] %v8006_v25  ;;  %v8133_v25 = vld [vmem:[%s6856_s23 + $0x8] sm:$0xff]  }
 0x7bd   : > { %v8008_v46 = vpop.f32.mrf.mxu0 }
 0x7be   : > { %10287 = vst [vmem:[#allocation111_spill] sm:$0xff] %v8008_v46 }
 0x7bf   : > { %v8014_v13 = vpop.f32.mrf.mxu0 }
 0x7c0   : > { %10288 = vst [vmem:[#allocation112_spill] sm:$0xff] %v8014_v13 }
 0x7c1   : > { %v8016_v27 = vpop.f32.mrf.mxu0 }
 0x7c2   : > { %10289 = vst [vmem:[#allocation113_spill] sm:$0xff] %v8016_v27 }
 0x7c3   : > { %v8018_v43 = vpop.f32.mrf.mxu0 }
 0x7c4   : > { %10290 = vst [vmem:[#allocation114_spill] sm:$0xff] %v8018_v43 }
 0x7c5   : > { %v8020_v56 = vpop.f32.mrf.mxu0 }
 0x7c6   : > { %10291 = vst [vmem:[#allocation115_spill] sm:$0xff] %v8020_v56 }
 0x7cf   : > { %v8022_v40 = vpop.f32.mrf.mxu0 }
 0x7d0   : > { %10292 = vst [vmem:[#allocation116_spill] sm:$0xff] %v8022_v40  ;;  %v8087_v40 = vld [vmem:[%s6831_s19 + $0x90] sm:$0xff]  }
 0x7d1   : > { %v8024_v52 = vpop.f32.mrf.mxu0 }
 0x7d2   : > { %10293 = vst [vmem:[#allocation117_spill] sm:$0xff] %v8024_v52 }
 0x7d3   : > { %v8026_v14 = vpop.f32.mrf.mxu0 }
 0x7d4   : > { %10294 = vst [vmem:[#allocation118_spill] sm:$0xff] %v8026_v14 }
 0x7d5   : > { %v8028_v63 = vpop.f32.mrf.mxu0 }
 0x7d6   : > { %10295 = vst [vmem:[#allocation119_spill] sm:$0xff] %v8028_v63 }
 0x804   : > { %v8030_v31 = vpop.f32.mrf.mxu0 }
 0x805   : > { %10296 = vst [vmem:[#allocation120_spill] sm:$0xff] %v8030_v31 }
 0x806   : > { %v8032_v28 = vpop.f32.mrf.mxu0 }
 0x807   : > { %10297 = vst [vmem:[#allocation121_spill] sm:$0xff] %v8032_v28 }
 0x808   : > { %v8034_v59 = vpop.f32.mrf.mxu0 }
 0x809   : > { %10298 = vst [vmem:[#allocation122_spill] sm:$0xff] %v8034_v59 }
 0x80a   : > { %v8036_v12 = vpop.f32.mrf.mxu0 }
 0x80b   : > { %10299 = vst [vmem:[#allocation123_spill] sm:$0xff] %v8036_v12 }
 0x80c   : > { %v5523_v6 = vpop.f32.mrf.mxu0 }
 0x80d   : > { %v8039_v47 = vadd.f32 %v5523_v6, %v6991_v36 }
 0x80e   : > { %v2344_v21 = vpop.f32.mrf.mxu0 }
 0x80f   : > { %v8042_v23 = vadd.f32 %v2344_v21, %v6991_v36  ;;  %2411 = vmax.xlane.f32.xlu1 %v8039_v47 }
 0x810   : > { %v5524_v38 = vpop.f32.mrf.mxu0 }
 0x811   : > { %v8046_v5 = vadd.f32 %v5524_v38, %v6991_v36  ;;  %2407 = vmax.xlane.f32.xlu0 %v8042_v23 }
 0x812   : > { %v2347_v16 = vpop.f32.mrf.mxu0 }
 0x813   : > { %2413 = vmax.xlane.f32.xlu1 %v8046_v5  ;;  %v8051_v12 = vadd.f32 %v2347_v16, %v6991_v36 }
 0x814   : > { %v5527_v60 = vpop.f32.mrf.mxu0 }
 0x815   : > { %v8054_v6 = vadd.f32 %v5527_v60, %v6991_v36 }
 0x816   : > { %v2360_v21 = vpop.f32.mrf.mxu0 }
 0x817   : > { %2409 = vmax.xlane.f32.xlu1 %v8051_v12  ;;  %2419 = vmax.xlane.f32.xlu0 %v8054_v6  ;;  %v8059_v38 = vadd.f32 %v2360_v21, %v6991_v36 }
 0x818   : > { %v5528_v28 = vpop.f32.mrf.mxu0 }
 0x819   : > { %v8066_v16 = vadd.f32 %v5528_v28, %v6991_v36 }
 0x81a   : > { %v2363_v59 = vpop.f32.mrf.mxu0 }
 0x81b   : > { %v8062_v63 = vadd.f32 %v2363_v59, %v6991_v36  ;;  %2415 = vmax.xlane.f32.xlu1 %v8059_v38 }
 0x81c   : > { %v5531_v60 = vpop.f32.mrf.mxu0 }
 0x81d   : > { %2417 = vmax.xlane.f32.xlu0 %v8062_v63  ;;  %v8070_v31 = vadd.f32 %v5531_v60, %v6991_v36 }
 0x81e   : > { %v2376_v21 = vpop.f32.mrf.mxu0 }
 0x81f   : > { %2421 = vmax.xlane.f32.xlu1 %v8066_v16  ;;  %v8075_v59 = vadd.f32 %v2376_v21, %v6991_v36  ;;  %v8092_v21 = vld [vmem:[%s6831_s19 + $0x98] sm:$0xff]  }
 0x820   : > { %v5532_v52 = vpop.f32.mrf.mxu0 }
 0x821   : > { %v8079_v28 = vadd.f32 %v5532_v52, %v6991_v36 }
 0x822   : > { %v2379_v14 = vpop.f32.mrf.mxu0 }
 0x823   : > { %2427 = vmax.xlane.f32.xlu1 %v8070_v31  ;;  %v8083_v60 = vadd.f32 %v2379_v14, %v6991_v36 }
 0x824   : > { %v5535_v52 = vpop.f32.mrf.mxu0 }
 0x825   : > { %v8097_v56 = vadd.f32 %v5535_v52, %v6991_v36 }
 0x826   : > { %v2392_v14 = vpop.f32.mrf.mxu0 }
 0x827   : > { %2423 = vmax.xlane.f32.xlu1 %v8075_v59  ;;  %v8101_v27 = vadd.f32 %v2392_v14, %v6991_v36  ;;  %v8113_v14 = vld [vmem:[%s6831_s19 + $0x88] sm:$0xff]  }
 0x828   : > { %v5536_v43 = vpop.f32.mrf.mxu0 }
 0x829   : > { %v8105_v46 = vadd.f32 %v5536_v43, %v6991_v36  ;;  %v8123_v43 = vld [vmem:[%s6831_s19 + $0x80] sm:$0xff]  }
 0x82a   : > { %v2395_v52 = vpop.f32.mrf.mxu0 }
 0x82b   : > { %2429 = vmax.xlane.f32.xlu1 %v8079_v28  ;;  %v8109_v13 = vadd.f32 %v2395_v52, %v6991_v36  ;;  %v8128_v52 = vld [vmem:[%s6856_s23 + $0x10] sm:$0xff]  }
 0x82f   : > { %2425 = vmax.xlane.f32.xlu1 %v8083_v60 }
 0x833   : > { %2700 = vrot.lane.b32.xlu0 %v8087_v40, %s6777_s30 }
 0x840   : > { %2702 = vrot.lane.b32.xlu1 %v8092_v21, %s6777_s30 }
 0x852   : > { %2435 = vmax.xlane.f32.xlu0 %v8097_v56 }
 0x856   : > { %2431 = vmax.xlane.f32.xlu0 %v8101_v27 }
 0x85a   : > { %2437 = vmax.xlane.f32.xlu0 %v8105_v46 }
 0x864   : > { %2433 = vmax.xlane.f32.xlu1 %v8109_v13 }
 0x870   : > { %2698 = vrot.lane.b32.xlu0 %v8113_v14, %s6777_s30 }
 0x874   : > { %2680 = vrot.lane.b32.xlu0 %v8118_v35, %s6777_s30 }
 0x875   : > { %2696 = vrot.lane.b32.xlu1 %v8123_v43, %s6777_s30 }
 0x878   : > { %2684 = vrot.lane.b32.xlu0 %v8128_v52, %s6777_s30 }
 0x879   : > { %2682 = vrot.lane.b32.xlu1 %v8133_v25, %s6777_s30 }
 0x87c   : > { %2688 = vrot.lane.b32.xlu0 %v8138_v26, %s6777_s30 }
 0x87d   : > { %2686 = vrot.lane.b32.xlu1 %v8143_v49, %s6777_s30 }
 0x880   : > { %2692 = vrot.lane.b32.xlu0 %v8148_v33, %s6777_s30 }
 0x881   : > { %2690 = vrot.lane.b32.xlu1 %v8153_v53, %s6777_s30 }
 0x884   : > { %2991 = vrot.lane.b32.xlu0 %v8158_v37, %s6777_s30 }
 0x885   : > { %2694 = vrot.lane.b32.xlu1 %v8163_v11, %s6777_s30 }
 0x888   : > { %2987 = vrot.lane.b32.xlu0 %v8168_v17, %s6777_s30 }
 0x889   : > { %2989 = vrot.lane.b32.xlu1 %v8173_v58, %s6777_s30 }
 0x88c   : > { %2985 = vrot.lane.b32.xlu0 %v8178_v19, %s6777_s30 }
 0x88d   : > { %2981 = vrot.lane.b32.xlu1 %v8183_v10, %s6777_s30 }
 0x890   : > { %2983 = vrot.lane.b32.xlu0 %v8190_v57, %s6777_s30 }
 0x891   : > { %2977 = vrot.lane.b32.xlu1 %v8195_v44, %s6777_s30 }
 0x894   : > { %2979 = vrot.lane.b32.xlu0 %v8202_v45, %s6777_s30 }
 0x898   : > { %v2412_v15 = vpop.xlane.xlu1 %2411 }
 0x899   : > { %v2441_v61 = vsub.f32 %v8039_v47, %v2412_v15 }
 0x89a   : > { %v2408_v41 = vpop.xlane.xlu0 %2407 }
 0x89b   : > { %v2439_v7 = vsub.f32 %v8042_v23, %v2408_v41  ;;  %v2459_v32 = vmul.f32 1.442695, %v2441_v61 }
 0x89c   : > { %v2414_v55 = vpop.xlane.xlu1 %2413 }
 0x89d   : > { %v2442_v54 = vsub.f32 %v8046_v5, %v2414_v55  ;;  %v2455_v0 = vmul.f32 1.442695, %v2439_v7 }
 0x89f   : > { %v2461_v48 = vmul.f32 1.442695, %v2442_v54  ;;  %6296 = vpow2.f32 %v2455_v0 }
 0x8a0   : > { %v2410_v62 = vpop.xlane.xlu1 %2409  ;;  %v2420_v2 = vpop.xlane.xlu0 %2419 }
 0x8a1   : > { %v2440_v29 = vsub.f32 %v8051_v12, %v2410_v62  ;;  %6298 = vpow2.f32 %v2461_v48  ;;  %v2445_v34 = vsub.f32 %v8054_v6, %v2420_v2 }
 0x8a3   : > { %v2457_v20 = vmul.f32 1.442695, %v2440_v29  ;;  %v2467_v54 = vmul.f32 1.442695, %v2445_v34 }
 0x8a4   : > { %v2416_v18 = vpop.xlane.xlu1 %2415 }
 0x8a5   : > { %6300 = vpow2.f32 %v2457_v20  ;;  %v2443_v41 = vsub.f32 %v8059_v38, %v2416_v18  ;;  %v2758_v38 = vsel %vm437_vm0, %v8010_v39, 0 }
 0x8a6   : > { %6302 = vpow2.f32 %v2459_v32  ;;  %v2418_v55 = vpop.xlane.xlu0 %2417 }
 0x8a7   : > { %v2463_v23 = vmul.f32 1.442695, %v2443_v41  ;;  %v2444_v7 = vsub.f32 %v8062_v63, %v2418_v55 }
 0x8a8   : > { %v2422_v15 = vpop.xlane.xlu1 %2421 }
 0x8a9   : > { %v2465_v47 = vmul.f32 1.442695, %v2444_v7  ;;  %v2446_v62 = vsub.f32 %v8066_v16, %v2422_v15  ;;  %6304 = vpow2.f32 %v2463_v23 }
 0x8ab   : > { %6306 = vpow2.f32 %v2465_v47  ;;  %v2469_v0 = vmul.f32 1.442695, %v2446_v62  ;;  %v2755_v62 = vsel %vm437_vm0, %v8187_v50, 0 }
 0x8ac   : > { %6308 = vpow2.f32 %v2467_v54  ;;  %v2428_v29 = vpop.xlane.xlu1 %2427  ;;  %v8216_v2 = vpop.eup %6296 }
 0x8ad   : > { %6310 = vpow2.f32 %v2469_v0  ;;  %v2449_v6 = vsub.f32 %v8070_v31, %v2428_v29 }
 0x8ae   : > { %v8218_v18 = vpop.eup %6298 }
 0x8af   : > { %v2475_v39 = vmul.f32 1.442695, %v2449_v6 }
 0x8b0   : > { %v2424_v20 = vpop.xlane.xlu1 %2423 }
 0x8b1   : > { %v2447_v34 = vsub.f32 %v8075_v59, %v2424_v20 }
 0x8b2   : > { %v8220_v32 = vpop.eup %6300 }
 0x8b3   : > { %v8222_v61 = vpop.eup %6302  ;;  %v2519_v48 = vpack.c.bf16 %v8220_v32, %v8216_v2  ;;  %v2471_v41 = vmul.f32 1.442695, %v2447_v34 }
 0x8b4   : > { %v2430_v63 = vpop.xlane.xlu1 %2429  ;;  %v2520_v12 = vpack.c.bf16 %v8218_v18, %v8222_v61 }
 0x8b5   : > { %v2450_v5 = vsub.f32 %v8079_v28, %v2430_v63  ;;  %5553 = vmatprep.mubr.bf16.mxu1 %v2519_v48  ;;  %6312 = vpow2.f32 %v2471_v41 }
 0x8b6   : > { %5554 = vmatmul.mubr.bf16.vlgmr.msra.gmra.mxu1 %v2520_v12  ;;  %v8233_v16 = vpop.eup %6304 }
 0x8b7   : > { %5570 = vmatpush3.bf16.xpose.msra.mxu1 %v2758_v38  ;;  %v2477_v55 = vmul.f32 1.442695, %v2450_v5  ;;  %v2701_v5 = vpop.permute.xlu0 %2700 }
 0x8b8   : > { %v8235_v59 = vpop.eup %6306  ;;  %5802 = vmatprep.subr.msk.bf16.mxu1 %vm437_vm0, %v8187_v50  ;;  %v2426_v23 = vpop.xlane.xlu1 %2425  ;;  %v2743_v38 = vsel %vm437_vm0, %v2701_v5, 0 }
 0x8b9   : > { %v8239_v7 = vpop.eup %6308  ;;  %v2448_v28 = vsub.f32 %v8083_v60, %v2426_v23  ;;  %v2521_v31 = vpack.c.bf16 %v8235_v59, %v8233_v16  ;;  %6314 = vpow2.f32 %v2477_v55  ;;  %v2752_v60 = vsel %vm437_vm0, %v8199_v42, 0 }
 0x8ba   : > { %v8244_v54 = vpop.eup %6310 }
 0x8bb   : > { %v2473_v15 = vmul.f32 1.442695, %v2448_v28  ;;  %5557 = vmatprep.mubr.bf16.mxu1 %v2521_v31  ;;  %v2522_v47 = vpack.c.bf16 %v8244_v54, %v8239_v7 }
 0x8bc   : > { %v2703_v63 = vpop.permute.xlu1 %2702 }
 0x8bd   : > { %6316 = vpow2.f32 %v2473_v15  ;;  %v2746_v12 = vsel %vm437_vm0, %v2703_v63, 0 }
 0x8be   : > { %6318 = vpow2.f32 %v2475_v39  ;;  %5558 = vmatmul.mubr.bf16.gmra.mxu1 %v2522_v47 }
 0x8bf   : > { %5572 = vmatpush3.bf16.xpose.msra.mxu1 %v2755_v62 }
 0x8c0   : > { %5803 = vmatprep.subr.msk.bf16.mxu1 %vm437_vm0, %v8199_v42  ;;  %v2749_v42 = vsel %vm437_vm0, %v8206_v3, 0 }
 0x8c2   : > { %v8254_v0 = vpop.eup %6312 }
 0x8c6   : > { %v8258_v29 = vpop.eup %6314 }
 0x8c7   : > { %5574 = vmatpush3.bf16.xpose.msra.mxu1 %v2752_v60 }
 0x8c8   : > { %5804 = vmatprep.subr.msk.bf16.mxu1 %vm437_vm0, %v8206_v3 }
 0x8ca   : > { %v8260_v20 = vpop.eup %6316 }
 0x8cb   : > { %v8262_v34 = vpop.eup %6318  ;;  %v2523_v50 = vpack.c.bf16 %v8260_v20, %v8254_v0 }
 0x8cc   : > { %v2524_v48 = vpack.c.bf16 %v8258_v29, %v8262_v34 }
 0x8cd   : > { %5561 = vmatprep.mubr.bf16.mxu1 %v2523_v50 }
 0x8ce   : > { %5562 = vmatmul.mubr.bf16.gmra.mxu1 %v2524_v48 }
 0x8cf   : > { %5576 = vmatpush3.bf16.xpose.msra.mxu1 %v2749_v42 }
 0x8d0   : > { %5805 = vmatprep.subr.msk.bf16.mxu1 %vm437_vm0, %v2703_v63 }
 0x8d7   : > { %5578 = vmatpush3.bf16.xpose.msra.mxu1 %v2746_v12 }
 0x8d8   : > { %5806 = vmatprep.subr.msk.bf16.mxu1 %vm437_vm0, %v2701_v5 }
 0x8db   : > { %v2436_v6 = vpop.xlane.xlu0 %2435 }
 0x8dc   : > { %v2453_v39 = vsub.f32 %v8097_v56, %v2436_v6 }
 0x8de   : > { %v2483_v50 = vmul.f32 1.442695, %v2453_v39 }
 0x8df   : > { %5580 = vmatpush3.bf16.xpose.msra.mxu1 %v2743_v38  ;;  %v2432_v41 = vpop.xlane.xlu0 %2431 }
 0x8e0   : > { %v2451_v28 = vsub.f32 %v8101_v27, %v2432_v41 }
 0x8e2   : > { %v2479_v15 = vmul.f32 1.442695, %v2451_v28  ;;  %v8300_v28 = vld [vmem:[%s6831_s19 + $0xb8] sm:$0xff]  }
 0x8e3   : > { %v2438_v55 = vpop.xlane.xlu0 %2437  ;;  %3160 = vrot.lane.b32.xlu0 %v8300_v28, %s6778_s4 }
 0x8e4   : > { %v2454_v31 = vsub.f32 %v8105_v46, %v2438_v55  ;;  %6320 = vpow2.f32 %v2479_v15  ;;  %v8310_v15 = vld [vmem:[%s6831_s19 + $0xb0] sm:$0xff]  }
 0x8e6   : > { %v2485_v47 = vmul.f32 1.442695, %v2454_v31 }
 0x8e7   : > { %v2699_v23 = vpop.permute.xlu0 %2698  ;;  %3158 = vrot.lane.b32.xlu0 %v8310_v15, %s6778_s4 }
 0x8e8   : > { %5807 = vmatprep.subr.msk.bf16.mxu1 %vm437_vm0, %v2699_v23  ;;  %v2740_v3 = vsel %vm437_vm0, %v2699_v23, 0  ;;  %6322 = vpow2.f32 %v2485_v47 }
 0x8e9   : > { %5582 = vmatpush3.bf16.xpose.msra.mxu1 %v2740_v3  ;;  %v8305_v3 = vld [vmem:[%s6831_s19 + $0xa8] sm:$0xff]  }
 0x8ea   : > { %3156 = vrot.lane.b32.xlu1 %v8305_v3, %s6778_s4 }
 0x8eb   : > { %v2681_v6 = vpop.permute.xlu0 %2680  ;;  %3154 = vrot.lane.b32.xlu0 %v7997_v4, %s6778_s4 }
 0x8ed   : > { %v2434_v62 = vpop.xlane.xlu1 %2433 }
 0x8ee   : > { %v2452_v60 = vsub.f32 %v8109_v13, %v2434_v62 }
 0x8ef   : > { %v2685_v41 = vpop.permute.xlu0 %2684 }
 0x8f0   : > { %v2481_v48 = vmul.f32 1.442695, %v2452_v60 }
 0x8f1   : > { %v2697_v42 = vpop.permute.xlu1 %2696  ;;  %v8282_v46 = vpop.eup %6320 }
 0x8f2   : > { %6324 = vpow2.f32 %v2481_v48  ;;  %5808 = vmatprep.subr.msk.bf16.mxu1 %vm437_vm0, %v2697_v42  ;;  %v2737_v27 = vsel %vm437_vm0, %v2697_v42, 0  ;;  %10300 = vst [vmem:[#allocation124_spill] sm:$0xff] %v8282_v46 }
 0x8f3   : > { %6326 = vpow2.f32 %v2483_v50  ;;  %5584 = vmatpush3.bf16.xpose.msra.mxu1 %v2737_v27  ;;  %v2689_v23 = vpop.permute.xlu0 %2688 }
 0x8f5   : > { %v8284_v56 = vpop.eup %6322  ;;  %v2683_v38 = vpop.permute.xlu1 %2682 }
 0x8f7   : > { %v2693_v39 = vpop.permute.xlu0 %2692 }
 0x8f9   : > { %v2687_v55 = vpop.permute.xlu1 %2686 }
 0x8fb   : > { %v2992_v62 = vpop.permute.xlu0 %2991 }
 0x8fc   : > { %5601 = vmatprep.subr.bf16.mxu0 %v2992_v62 }
 0x8fd   : > { %v2691_v31 = vpop.permute.xlu1 %2690  ;;  %5602 = vmatpush3.bf16.msra.mxu0 %v2992_v62 }
 0x8ff   : > { %v8286_v63 = vpop.eup %6324  ;;  %v2988_v50 = vpop.permute.xlu0 %2987 }
 0x900   : > { %v8288_v13 = vpop.eup %6326  ;;  %v2525_v12 = vpack.c.bf16 %v8286_v63, %v8282_v46 }
 0x901   : > { %10301 = vst [vmem:[#allocation125_spill] sm:$0xff] %v8288_v13  ;;  %v2526_v5 = vpack.c.bf16 %v8284_v56, %v8288_v13  ;;  %v2695_v47 = vpop.permute.xlu1 %2694 }
 0x902   : > { %5565 = vmatprep.mubr.bf16.mxu1 %v2525_v12 }
 0x903   : > { %5566 = vmatmul.mubr.bf16.gmra.mxu1 %v2526_v5  ;;  %v2986_v48 = vpop.permute.xlu0 %2985 }
 0x904   : > { %5585 = vmatprep.mubr.msk.bf16.mxu1 %vm437_vm0, %v2681_v6 }
 0x905   : > { %v2990_v60 = vpop.permute.xlu1 %2989 }
 0x906   : > { %5603 = vmatprep.subr.bf16.mxu0 %v2990_v60 }
 0x907   : > { %5604 = vmatpush3.bf16.msra.mxu0 %v2990_v60  ;;  %v2984_v42 = vpop.permute.xlu0 %2983 }
 0x908   : > { %5605 = vmatprep.subr.bf16.mxu0 %v2988_v50 }
 0x909   : > { %v2982_v27 = vpop.permute.xlu1 %2981 }
 0x90b   : > { %5586 = vmatmul.mubr.msk.bf16.vlgmr.msra.gmra.mxu1 %vm437_vm0, %v2683_v38  ;;  %5606 = vmatpush3.bf16.msra.mxu0 %v2988_v50  ;;  %v2980_v4 = vpop.permute.xlu0 %2979 }
 0x90c   : > { %5589 = vmatprep.mubr.msk.bf16.mxu1 %vm437_vm0, %v2685_v41  ;;  %5607 = vmatprep.subr.bf16.mxu0 %v2986_v48 }
 0x90d   : > { %v2978_v12 = vpop.permute.xlu1 %2977 }
 0x90f   : > { %5608 = vmatpush3.bf16.msra.mxu0 %v2986_v48 }
 0x910   : > { %5609 = vmatprep.subr.bf16.mxu0 %v2984_v42 }
 0x913   : > { %5590 = vmatmul.mubr.msk.bf16.gmra.mxu1 %vm437_vm0, %v2687_v55  ;;  %5610 = vmatpush3.bf16.msra.mxu0 %v2984_v42 }
 0x914   : > { %5593 = vmatprep.mubr.msk.bf16.mxu1 %vm437_vm0, %v2689_v23  ;;  %5611 = vmatprep.subr.bf16.mxu0 %v2982_v27 }
 0x917   : > { %5612 = vmatpush3.bf16.msra.mxu0 %v2982_v27 }
 0x918   : > { %5613 = vmatprep.subr.bf16.mxu0 %v2980_v4 }
 0x91b   : > { %5594 = vmatmul.mubr.msk.bf16.gmra.mxu1 %vm437_vm0, %v2691_v31  ;;  %5614 = vmatpush3.bf16.msra.mxu0 %v2980_v4 }
 0x91c   : > { %5597 = vmatprep.mubr.msk.bf16.mxu1 %vm437_vm0, %v2693_v39  ;;  %5615 = vmatprep.subr.bf16.mxu0 %v2978_v12 }
 0x91f   : > { %5616 = vmatpush3.bf16.msra.mxu0 %v2978_v12 }
 0x923   : > { %5598 = vmatmul.mubr.msk.bf16.gmra.mxu1 %vm437_vm0, %v2695_v47 }
 0x955   : > { %v8327_v55 = vpop.permute.xlu0 %3160 }
 0x956   : > { %5809 = vmatprep.subr.msk.bf16.mxu0 %vm437_vm0, %v8327_v55 }
 0x976   : > { %v8319_v5 = vpop.f32.mrf.mxu1 }
 0x977   : > { %10302 = vst [vmem:[#allocation126_spill] sm:$0xff] %v8319_v5 }
 0x978   : > { %v8321_v6 = vpop.f32.mrf.mxu1 }
 0x979   : > { %10303 = vst [vmem:[#allocation127_spill] sm:$0xff] %v8321_v6 }
 0x97a   : > { %v8323_v38 = vpop.f32.mrf.mxu1 }
 0x97b   : > { %10304 = vst [vmem:[#allocation128_spill] sm:$0xff] %v8323_v38 }
 0x97c   : > { %v8325_v41 = vpop.f32.mrf.mxu1 }
 0x97d   : > { %10305 = vst [vmem:[#allocation129_spill] sm:$0xff] %v8325_v41 }
 0x97e   : > { %v8331_v23 = vpop.f32.mrf.mxu1 }
 0x97f   : > { %10306 = vst [vmem:[#allocation130_spill] sm:$0xff] %v8331_v23 }
 0x980   : > { %v8333_v31 = vpop.f32.mrf.mxu1 }
 0x981   : > { %10307 = vst [vmem:[#allocation131_spill] sm:$0xff] %v8333_v31 }
 0x982   : > { %v8335_v39 = vpop.f32.mrf.mxu1 }
 0x983   : > { %10308 = vst [vmem:[#allocation132_spill] sm:$0xff] %v8335_v39 }
 0x984   : > { %v8337_v47 = vpop.f32.mrf.mxu1 }
 0x985   : > { %10309 = vst [vmem:[#allocation133_spill] sm:$0xff] %v8337_v47 }
 0x98e   : > { %v8339_v62 = vpop.f32.mrf.mxu1 }
 0x98f   : > { %10310 = vst [vmem:[#allocation134_spill] sm:$0xff] %v8339_v62 }
 0x990   : > { %v8341_v60 = vpop.f32.mrf.mxu1 }
 0x991   : > { %10311 = vst [vmem:[#allocation135_spill] sm:$0xff] %v8341_v60 }
 0x992   : > { %v8343_v50 = vpop.f32.mrf.mxu1 }
 0x993   : > { %10312 = vst [vmem:[#allocation136_spill] sm:$0xff] %v8343_v50 }
 0x994   : > { %v8345_v48 = vpop.f32.mrf.mxu1 }
 0x995   : > { %10313 = vst [vmem:[#allocation137_spill] sm:$0xff] %v8345_v48 }
 0x9c3   : > { %v8347_v42 = vpop.f32.mrf.mxu1 }
 0x9c4   : > { %10314 = vst [vmem:[#allocation138_spill] sm:$0xff] %v8347_v42 }
 0x9c5   : > { %v8349_v27 = vpop.f32.mrf.mxu1 }
 0x9c6   : > { %10315 = vst [vmem:[#allocation139_spill] sm:$0xff] %v8349_v27 }
 0x9c7   : > { %v8351_v4 = vpop.f32.mrf.mxu1 }
 0x9c8   : > { %10316 = vst [vmem:[#allocation140_spill] sm:$0xff] %v8351_v4 }
 0x9c9   : > { %v8353_v12 = vpop.f32.mrf.mxu1 }
 0x9ca   : > { %10317 = vst [vmem:[#allocation141_spill] sm:$0xff] %v8353_v12 }
 0x9cb   : > { %v5587_v23 = vpop.f32.mrf.mxu1 }
 0x9cc   : > { %v8356_v39 = vadd.f32 %v5587_v23, %v6991_v36 }
 0x9cd   : > { %v2794_v47 = vpop.f32.mrf.mxu1 }
 0x9ce   : > { %v8359_v62 = vadd.f32 %v2794_v47, %v6991_v36  ;;  %2861 = vmax.xlane.f32.xlu1 %v8356_v39 }
 0x9cf   : > { %v5588_v50 = vpop.f32.mrf.mxu1 }
 0x9d0   : > { %v8363_v48 = vadd.f32 %v5588_v50, %v6991_v36  ;;  %2857 = vmax.xlane.f32.xlu0 %v8359_v62 }
 0x9d1   : > { %v2797_v42 = vpop.f32.mrf.mxu1 }
 0x9d2   : > { %2863 = vmax.xlane.f32.xlu1 %v8363_v48  ;;  %v8368_v12 = vadd.f32 %v2797_v42, %v6991_v36 }
 0x9d3   : > { %v5591_v4 = vpop.f32.mrf.mxu1 }
 0x9d4   : > { %v8371_v23 = vadd.f32 %v5591_v4, %v6991_v36 }
 0x9d5   : > { %v2810_v47 = vpop.f32.mrf.mxu1 }
 0x9d6   : > { %2859 = vmax.xlane.f32.xlu1 %v8368_v12  ;;  %2869 = vmax.xlane.f32.xlu0 %v8371_v23  ;;  %v8376_v50 = vadd.f32 %v2810_v47, %v6991_v36 }
 0x9d7   : > { %v5592_v27 = vpop.f32.mrf.mxu1 }
 0x9d8   : > { %v8383_v42 = vadd.f32 %v5592_v27, %v6991_v36 }
 0x9d9   : > { %v2813_v60 = vpop.f32.mrf.mxu1 }
 0x9da   : > { %v8379_v31 = vadd.f32 %v2813_v60, %v6991_v36  ;;  %2865 = vmax.xlane.f32.xlu1 %v8376_v50 }
 0x9db   : > { %v5595_v4 = vpop.f32.mrf.mxu1 }
 0x9dc   : > { %2867 = vmax.xlane.f32.xlu0 %v8379_v31  ;;  %v8387_v41 = vadd.f32 %v5595_v4, %v6991_v36 }
 0x9dd   : > { %v2826_v6 = vpop.f32.mrf.mxu1 }
 0x9de   : > { %2871 = vmax.xlane.f32.xlu1 %v8383_v42  ;;  %v8392_v47 = vadd.f32 %v2826_v6, %v6991_v36 }
 0x9df   : > { %v5596_v60 = vpop.f32.mrf.mxu1 }
 0x9e0   : > { %v8396_v27 = vadd.f32 %v5596_v60, %v6991_v36 }
 0x9e1   : > { %v2829_v38 = vpop.f32.mrf.mxu1 }
 0x9e2   : > { %2877 = vmax.xlane.f32.xlu1 %v8387_v41  ;;  %v8400_v4 = vadd.f32 %v2829_v38, %v6991_v36 }
 0x9e3   : > { %v5599_v6 = vpop.f32.mrf.mxu1 }
 0x9e4   : > { %v8408_v5 = vadd.f32 %v5599_v6, %v6991_v36 }
 0x9e5   : > { %v2842_v60 = vpop.f32.mrf.mxu1 }
 0x9e6   : > { %2873 = vmax.xlane.f32.xlu1 %v8392_v47  ;;  %v8412_v13 = vadd.f32 %v2842_v60, %v6991_v36 }
 0x9e7   : > { %v5600_v38 = vpop.f32.mrf.mxu1 }
 0x9e8   : > { %v8416_v46 = vadd.f32 %v5600_v38, %v6991_v36 }
 0x9ea   : > { %2879 = vmax.xlane.f32.xlu1 %v8396_v27 }
 0x9ee   : > { %2875 = vmax.xlane.f32.xlu1 %v8400_v4 }
 0x9f2   : > { %3150 = vrot.lane.b32.xlu0 %v8087_v40, %s6778_s4  ;;  %v2845_v40 = vpop.f32.mrf.mxu1 }
 0x9ff   : > { %3152 = vrot.lane.b32.xlu1 %v8092_v21, %s6778_s4  ;;  %v8420_v21 = vadd.f32 %v2845_v40, %v6991_v36 }
 0xa11   : > { %2885 = vmax.xlane.f32.xlu0 %v8408_v5 }
 0xa15   : > { %2881 = vmax.xlane.f32.xlu0 %v8412_v13 }
 0xa19   : > { %2887 = vmax.xlane.f32.xlu0 %v8416_v46 }
 0xa23   : > { %2883 = vmax.xlane.f32.xlu1 %v8420_v21 }
 0xa2f   : > { %3148 = vrot.lane.b32.xlu0 %v8113_v14, %s6778_s4 }
 0xa33   : > { %3130 = vrot.lane.b32.xlu0 %v8118_v35, %s6778_s4 }
 0xa34   : > { %3146 = vrot.lane.b32.xlu1 %v8123_v43, %s6778_s4 }
 0xa37   : > { %3134 = vrot.lane.b32.xlu0 %v8128_v52, %s6778_s4 }
 0xa38   : > { %3132 = vrot.lane.b32.xlu1 %v8133_v25, %s6778_s4 }
 0xa3b   : > { %3138 = vrot.lane.b32.xlu0 %v8138_v26, %s6778_s4 }
 0xa3c   : > { %3136 = vrot.lane.b32.xlu1 %v8143_v49, %s6778_s4  ;;  %v8453_v49 = vpop.permute.xlu0 %3158 }
 0xa3f   : > { %3142 = vrot.lane.b32.xlu0 %v8148_v33, %s6778_s4 }
 0xa40   : > { %3140 = vrot.lane.b32.xlu1 %v8153_v53, %s6778_s4 }
 0xa43   : > { %3441 = vrot.lane.b32.xlu0 %v8158_v37, %s6778_s4  ;;  %v8459_v37 = vpop.permute.xlu1 %3156 }
 0xa44   : > { %3144 = vrot.lane.b32.xlu1 %v8163_v11, %s6778_s4 }
 0xa47   : > { %3437 = vrot.lane.b32.xlu0 %v8168_v17, %s6778_s4  ;;  %v8463_v17 = vpop.permute.xlu0 %3154 }
 0xa48   : > { %3439 = vrot.lane.b32.xlu1 %v8173_v58, %s6778_s4 }
 0xa4b   : > { %3435 = vrot.lane.b32.xlu0 %v8178_v19, %s6778_s4 }
 0xa4c   : > { %3431 = vrot.lane.b32.xlu1 %v8183_v10, %s6778_s4 }
 0xa4f   : > { %3433 = vrot.lane.b32.xlu0 %v8190_v57, %s6778_s4 }
 0xa50   : > { %3427 = vrot.lane.b32.xlu1 %v8195_v44, %s6778_s4 }
 0xa53   : > { %3429 = vrot.lane.b32.xlu0 %v8202_v45, %s6778_s4 }
 0xa54   : > { %3606 = vrot.lane.b32.xlu1 %v8305_v3, %s6779_s5 }
 0xa57   : > { %v2862_v53 = vpop.xlane.xlu1 %2861  ;;  %3610 = vrot.lane.b32.xlu0 %v8300_v28, %s6779_s5 }
 0xa58   : > { %v2891_v26 = vsub.f32 %v8356_v39, %v2862_v53 }
 0xa59   : > { %v2858_v19 = vpop.xlane.xlu0 %2857 }
 0xa5a   : > { %v2889_v11 = vsub.f32 %v8359_v62, %v2858_v19  ;;  %v2909_v43 = vmul.f32 1.442695, %v2891_v26 }
 0xa5b   : > { %v2864_v10 = vpop.xlane.xlu1 %2863  ;;  %3608 = vrot.lane.b32.xlu0 %v8310_v15, %s6779_s5 }
 0xa5c   : > { %v2892_v33 = vsub.f32 %v8363_v48, %v2864_v10  ;;  %v2905_v57 = vmul.f32 1.442695, %v2889_v11 }
 0xa5e   : > { %v2911_v35 = vmul.f32 1.442695, %v2892_v33  ;;  %6328 = vpow2.f32 %v2905_v57 }
 0xa5f   : > { %v2860_v25 = vpop.xlane.xlu1 %2859  ;;  %v2870_v14 = vpop.xlane.xlu0 %2869 }
 0xa60   : > { %v2890_v44 = vsub.f32 %v8368_v12, %v2860_v25  ;;  %6330 = vpow2.f32 %v2911_v35  ;;  %v2895_v52 = vsub.f32 %v8371_v23, %v2870_v14  ;;  %v3208_v14 = vsel %vm437_vm0, %v8327_v55, 0 }
 0xa62   : > { %v2907_v45 = vmul.f32 1.442695, %v2890_v44  ;;  %v2917_v38 = vmul.f32 1.442695, %v2895_v52 }
 0xa63   : > { %v2866_v6 = vpop.xlane.xlu1 %2865 }
 0xa64   : > { %6332 = vpow2.f32 %v2907_v45  ;;  %v2893_v62 = vsub.f32 %v8376_v50, %v2866_v6 }
 0xa65   : > { %6334 = vpow2.f32 %v2909_v43  ;;  %v2868_v48 = vpop.xlane.xlu0 %2867 }
 0xa66   : > { %v2913_v60 = vmul.f32 1.442695, %v2893_v62  ;;  %v2894_v39 = vsub.f32 %v8379_v31, %v2868_v48 }
 0xa67   : > { %v2872_v40 = vpop.xlane.xlu1 %2871 }
 0xa68   : > { %v2915_v53 = vmul.f32 1.442695, %v2894_v39  ;;  %v2896_v12 = vsub.f32 %v8383_v42, %v2872_v40  ;;  %6336 = vpow2.f32 %v2913_v60 }
 0xa6a   : > { %6338 = vpow2.f32 %v2915_v53  ;;  %v2919_v19 = vmul.f32 1.442695, %v2896_v12 }
 0xa6b   : > { %6340 = vpow2.f32 %v2917_v38  ;;  %v2878_v11 = vpop.xlane.xlu1 %2877  ;;  %v8473_v23 = vpop.eup %6328  ;;  %v3205_v38 = vsel %vm437_vm0, %v8453_v49, 0 }
 0xa6c   : > { %6342 = vpow2.f32 %v2919_v19  ;;  %v2899_v44 = vsub.f32 %v8387_v41, %v2878_v11 }
 0xa6d   : > { %v8475_v50 = vpop.eup %6330 }
 0xa6e   : > { %v2925_v55 = vmul.f32 1.442695, %v2899_v44 }
 0xa6f   : > { %v2874_v10 = vpop.xlane.xlu1 %2873 }
 0xa70   : > { %v2897_v31 = vsub.f32 %v8392_v47, %v2874_v10 }
 0xa71   : > { %v8477_v33 = vpop.eup %6332 }
 0xa72   : > { %v8479_v26 = vpop.eup %6334  ;;  %v2969_v42 = vpack.c.bf16 %v8477_v33, %v8473_v23  ;;  %v2921_v45 = vmul.f32 1.442695, %v2897_v31 }
 0xa73   : > { %v2880_v57 = vpop.xlane.xlu1 %2879  ;;  %v2970_v35 = vpack.c.bf16 %v8475_v50, %v8479_v26 }
 0xa74   : > { %v2900_v25 = vsub.f32 %v8396_v27, %v2880_v57  ;;  %5617 = vmatprep.mubr.bf16.mxu0 %v2969_v42  ;;  %6344 = vpow2.f32 %v2921_v45  ;;  %v3151_v42 = vpop.permute.xlu0 %3150 }
 0xa75   : > { %5618 = vmatmul.mubr.bf16.vlgmr.msra.gmra.mxu0 %v2970_v35  ;;  %v8490_v43 = vpop.eup %6336  ;;  %v3193_v35 = vsel %vm437_vm0, %v3151_v42, 0 }
 0xa76   : > { %5634 = vmatpush3.bf16.xpose.msra.mxu0 %v3208_v14  ;;  %v2927_v52 = vmul.f32 1.442695, %v2900_v25 }
 0xa77   : > { %v8492_v47 = vpop.eup %6338  ;;  %5810 = vmatprep.subr.msk.bf16.mxu0 %vm437_vm0, %v8453_v49  ;;  %v2876_v6 = vpop.xlane.xlu1 %2875 }
 0xa78   : > { %v8496_v62 = vpop.eup %6340  ;;  %v2898_v27 = vsub.f32 %v8400_v4, %v2876_v6  ;;  %v2971_v41 = vpack.c.bf16 %v8492_v47, %v8490_v43  ;;  %6346 = vpow2.f32 %v2927_v52  ;;  %v3202_v4 = vsel %vm437_vm0, %v8459_v37, 0 }
 0xa79   : > { %v8501_v48 = vpop.eup %6342 }
 0xa7a   : > { %v2923_v60 = vmul.f32 1.442695, %v2898_v27  ;;  %5621 = vmatprep.mubr.bf16.mxu0 %v2971_v41  ;;  %v2972_v39 = vpack.c.bf16 %v8501_v48, %v8496_v62 }
 0xa7b   : > { %v3153_v10 = vpop.permute.xlu1 %3152 }
 0xa7c   : > { %6348 = vpow2.f32 %v2923_v60  ;;  %v3196_v31 = vsel %vm437_vm0, %v3153_v10, 0 }
 0xa7d   : > { %6350 = vpow2.f32 %v2925_v55  ;;  %5622 = vmatmul.mubr.bf16.gmra.mxu0 %v2972_v39 }
 0xa7e   : > { %5636 = vmatpush3.bf16.xpose.msra.mxu0 %v3205_v38 }
 0xa7f   : > { %5811 = vmatprep.subr.msk.bf16.mxu0 %vm437_vm0, %v8459_v37  ;;  %v3199_v37 = vsel %vm437_vm0, %v8463_v17, 0 }
 0xa81   : > { %v8511_v40 = vpop.eup %6344 }
 0xa82   : > { %10318 = vst [vmem:[#allocation142_spill] sm:$0xff] %v8511_v40 }
 0xa85   : > { %v8515_v53 = vpop.eup %6346 }
 0xa86   : > { %5638 = vmatpush3.bf16.xpose.msra.mxu0 %v3202_v4  ;;  %10319 = vst [vmem:[#allocation143_spill] sm:$0xff] %v8515_v53 }
 0xa87   : > { %5812 = vmatprep.subr.msk.bf16.mxu0 %vm437_vm0, %v8463_v17 }
 0xa89   : > { %v8517_v12 = vpop.eup %6348 }
 0xa8a   : > { %10320 = vst [vmem:[#allocation144_spill] sm:$0xff] %v8517_v12  ;;  %v8519_v19 = vpop.eup %6350  ;;  %v2973_v49 = vpack.c.bf16 %v8517_v12, %v8511_v40 }
 0xa8b   : > { %10321 = vst [vmem:[#allocation145_spill] sm:$0xff] %v8519_v19  ;;  %v2974_v11 = vpack.c.bf16 %v8515_v53, %v8519_v19 }
 0xa8c   : > { %5625 = vmatprep.mubr.bf16.mxu0 %v2973_v49 }
 0xa8d   : > { %5626 = vmatmul.mubr.bf16.gmra.mxu0 %v2974_v11 }
 0xa8e   : > { %5640 = vmatpush3.bf16.xpose.msra.mxu0 %v3199_v37 }
 0xa8f   : > { %5813 = vmatprep.subr.msk.bf16.mxu0 %vm437_vm0, %v3153_v10 }
 0xa96   : > { %5642 = vmatpush3.bf16.xpose.msra.mxu0 %v3196_v31 }
 0xa97   : > { %5814 = vmatprep.subr.msk.bf16.mxu0 %vm437_vm0, %v3151_v42 }
 0xa9a   : > { %v2886_v57 = vpop.xlane.xlu0 %2885 }
 0xa9b   : > { %v2903_v6 = vsub.f32 %v8408_v5, %v2886_v57 }
 0xa9d   : > { %v2933_v39 = vmul.f32 1.442695, %v2903_v6 }
 0xa9e   : > { %5644 = vmatpush3.bf16.xpose.msra.mxu0 %v3193_v35  ;;  %v2882_v25 = vpop.xlane.xlu0 %2881 }
 0xa9f   : > { %v2901_v45 = vsub.f32 %v8412_v13, %v2882_v25 }
 0xaa1   : > { %v2929_v27 = vmul.f32 1.442695, %v2901_v45 }
 0xaa2   : > { %v2888_v44 = vpop.xlane.xlu0 %2887 }
 0xaa3   : > { %v2904_v52 = vsub.f32 %v8416_v46, %v2888_v44  ;;  %6352 = vpow2.f32 %v2929_v27 }
 0xaa5   : > { %v2935_v41 = vmul.f32 1.442695, %v2904_v52 }
 0xaa6   : > { %v3149_v14 = vpop.permute.xlu0 %3148 }
 0xaa7   : > { %5815 = vmatprep.subr.msk.bf16.mxu0 %vm437_vm0, %v3149_v14  ;;  %v3190_v17 = vsel %vm437_vm0, %v3149_v14, 0  ;;  %6354 = vpow2.f32 %v2935_v41  ;;  %v6728_v14 = vld [vmem:[%s6831_s19 + $0xa0] sm:$0xff]  }
 0xaa8   : > { %5646 = vmatpush3.bf16.xpose.msra.mxu0 %v3190_v17  ;;  %3604 = vrot.lane.b32.xlu0 %v6728_v14, %s6779_s5 }
 0xaaa   : > { %v3131_v10 = vpop.permute.xlu0 %3130 }
 0xaac   : > { %v2884_v55 = vpop.xlane.xlu1 %2883 }
 0xaad   : > { %v2902_v60 = vsub.f32 %v8420_v21, %v2884_v55 }
 0xaae   : > { %v3135_v42 = vpop.permute.xlu0 %3134 }
 0xaaf   : > { %v2931_v38 = vmul.f32 1.442695, %v2902_v60 }
 0xab0   : > { %v3147_v4 = vpop.permute.xlu1 %3146  ;;  %v8539_v46 = vpop.eup %6352 }
 0xab1   : > { %6356 = vpow2.f32 %v2931_v38  ;;  %5816 = vmatprep.subr.msk.bf16.mxu0 %vm437_vm0, %v3147_v4  ;;  %v3187_v13 = vsel %vm437_vm0, %v3147_v4, 0  ;;  %10322 = vst [vmem:[#allocation146_spill] sm:$0xff] %v8539_v46 }
 0xab2   : > { %6358 = vpow2.f32 %v2933_v39  ;;  %5648 = vmatpush3.bf16.xpose.msra.mxu0 %v3187_v13  ;;  %v3139_v35 = vpop.permute.xlu0 %3138 }
 0xab4   : > { %v8541_v5 = vpop.eup %6354  ;;  %v3133_v31 = vpop.permute.xlu1 %3132 }
 0xab5   : > { %10323 = vst [vmem:[#allocation147_spill] sm:$0xff] %v8541_v5 }
 0xab6   : > { %v3143_v44 = vpop.permute.xlu0 %3142 }
 0xab8   : > { %v3137_v57 = vpop.permute.xlu1 %3136 }
 0xaba   : > { %v3442_v17 = vpop.permute.xlu0 %3441 }
 0xabb   : > { %5665 = vmatprep.subr.bf16.mxu1 %v3442_v17 }
 0xabc   : > { %v3141_v25 = vpop.permute.xlu1 %3140  ;;  %5666 = vmatpush3.bf16.msra.mxu1 %v3442_v17 }
 0xabe   : > { %v8543_v49 = vpop.eup %6356  ;;  %v3438_v3 = vpop.permute.xlu0 %3437 }
 0xabf   : > { %10324 = vst [vmem:[#allocation148_spill] sm:$0xff] %v8543_v49  ;;  %v8545_v11 = vpop.eup %6358  ;;  %v2975_v21 = vpack.c.bf16 %v8543_v49, %v8539_v46 }
 0xac0   : > { %10325 = vst [vmem:[#allocation149_spill] sm:$0xff] %v8545_v11  ;;  %v2976_v37 = vpack.c.bf16 %v8541_v5, %v8545_v11  ;;  %v3145_v45 = vpop.permute.xlu1 %3144 }
 0xac1   : > { %5629 = vmatprep.mubr.bf16.mxu0 %v2975_v21 }
 0xac2   : > { %5630 = vmatmul.mubr.bf16.gmra.mxu0 %v2976_v37  ;;  %v3436_v15 = vpop.permute.xlu0 %3435 }
 0xac3   : > { %5649 = vmatprep.mubr.msk.bf16.mxu0 %vm437_vm0, %v3131_v10 }
 0xac4   : > { %v3440_v28 = vpop.permute.xlu1 %3439 }
 0xac5   : > { %5667 = vmatprep.subr.bf16.mxu1 %v3440_v28 }
 0xac6   : > { %5668 = vmatpush3.bf16.msra.mxu1 %v3440_v28  ;;  %v3434_v52 = vpop.permute.xlu0 %3433 }
 0xac7   : > { %5669 = vmatprep.subr.bf16.mxu1 %v3438_v3 }
 0xac8   : > { %v3432_v6 = vpop.permute.xlu1 %3431 }
 0xaca   : > { %5650 = vmatmul.mubr.msk.bf16.vlgmr.msra.gmra.mxu0 %vm437_vm0, %v3133_v31  ;;  %5670 = vmatpush3.bf16.msra.mxu1 %v3438_v3  ;;  %v3430_v27 = vpop.permute.xlu0 %3429 }
 0xacb   : > { %5653 = vmatprep.mubr.msk.bf16.mxu0 %vm437_vm0, %v3135_v42  ;;  %5671 = vmatprep.subr.bf16.mxu1 %v3436_v15 }
 0xacc   : > { %v3428_v41 = vpop.permute.xlu1 %3427 }
 0xace   : > { %5672 = vmatpush3.bf16.msra.mxu1 %v3436_v15  ;;  %v8575_v4 = vpop.permute.xlu0 %3610 }
 0xacf   : > { %5673 = vmatprep.subr.bf16.mxu1 %v3434_v52 }
 0xad2   : > { %5654 = vmatmul.mubr.msk.bf16.gmra.mxu0 %vm437_vm0, %v3137_v57  ;;  %5674 = vmatpush3.bf16.msra.mxu1 %v3434_v52 }
 0xad3   : > { %5657 = vmatprep.mubr.msk.bf16.mxu0 %vm437_vm0, %v3139_v35  ;;  %5675 = vmatprep.subr.bf16.mxu1 %v3432_v6 }
 0xad6   : > { %5676 = vmatpush3.bf16.msra.mxu1 %v3432_v6 }
 0xad7   : > { %5677 = vmatprep.subr.bf16.mxu1 %v3430_v27 }
 0xada   : > { %5658 = vmatmul.mubr.msk.bf16.gmra.mxu0 %vm437_vm0, %v3141_v25  ;;  %5678 = vmatpush3.bf16.msra.mxu1 %v3430_v27 }
 0xadb   : > { %5661 = vmatprep.mubr.msk.bf16.mxu0 %vm437_vm0, %v3143_v44  ;;  %5679 = vmatprep.subr.bf16.mxu1 %v3428_v41 }
 0xade   : > { %5680 = vmatpush3.bf16.msra.mxu1 %v3428_v41 }
 0xadf   : > { %5817 = vmatprep.subr.msk.bf16.mxu1 %vm437_vm0, %v8575_v4 }
 0xae2   : > { %5662 = vmatmul.mubr.msk.bf16.gmra.mxu0 %vm437_vm0, %v3145_v45 }
 0xb35   : > { %v8567_v55 = vpop.f32.mrf.mxu0 }
 0xb36   : > { %10326 = vst [vmem:[#allocation150_spill] sm:$0xff] %v8567_v55  ;;  %v6736_v55 = vld [vmem:[%s6856_s23 + $0x20] sm:$0xff]  }
 0xb37   : > { %v8569_v60 = vpop.f32.mrf.mxu0 }
 0xb38   : > { %10327 = vst [vmem:[#allocation151_spill] sm:$0xff] %v8569_v60  ;;  %v6732_v60 = vld [vmem:[%s6856_s23] sm:$0xff]  }
 0xb39   : > { %v8571_v39 = vpop.f32.mrf.mxu0 }
 0xb3a   : > { %10328 = vst [vmem:[#allocation152_spill] sm:$0xff] %v8571_v39  ;;  %v6745_v39 = vld [vmem:[%s6945_s26 + $0x100] sm:$0xff]  }
 0xb3b   : > { %v8573_v38 = vpop.f32.mrf.mxu0 }
 0xb3c   : > { %10329 = vst [vmem:[#allocation153_spill] sm:$0xff] %v8573_v38 }
 0xb3d   : > { %v8579_v13 = vpop.f32.mrf.mxu0 }
 0xb3e   : > { %10330 = vst [vmem:[#allocation154_spill] sm:$0xff] %v8579_v13 }
 0xb3f   : > { %v8581_v21 = vpop.f32.mrf.mxu0 }
 0xb40   : > { %10331 = vst [vmem:[#allocation155_spill] sm:$0xff] %v8581_v21 }
 0xb41   : > { %v8583_v37 = vpop.f32.mrf.mxu0 }
 0xb42   : > { %10332 = vst [vmem:[#allocation156_spill] sm:$0xff] %v8583_v37 }
 0xb43   : > { %v8585_v10 = vpop.f32.mrf.mxu0 }
 0xb44   : > { %10333 = vst [vmem:[#allocation157_spill] sm:$0xff] %v8585_v10  ;;  %v6734_v10 = vld [vmem:[%s6856_s23 + $0x10] sm:$0xff]  }
 0xb4d   : > { %v8587_v31 = vpop.f32.mrf.mxu0 }
 0xb4e   : > { %10334 = vst [vmem:[#allocation158_spill] sm:$0xff] %v8587_v31 }
 0xb4f   : > { %v8589_v42 = vpop.f32.mrf.mxu0 }
 0xb50   : > { %10335 = vst [vmem:[#allocation159_spill] sm:$0xff] %v8589_v42 }
 0xb51   : > { %v8591_v57 = vpop.f32.mrf.mxu0 }
 0xb52   : > { %10336 = vst [vmem:[#allocation160_spill] sm:$0xff] %v8591_v57  ;;  %v6729_v57 = vld [vmem:[%s6831_s19 + $0x90] sm:$0xff]  }
 0xb53   : > { %v8593_v35 = vpop.f32.mrf.mxu0 }
 0xb54   : > { %10337 = vst [vmem:[#allocation161_spill] sm:$0xff] %v8593_v35 }
 0xb82   : > { %v8595_v25 = vpop.f32.mrf.mxu0 }
 0xb83   : > { %10338 = vst [vmem:[#allocation162_spill] sm:$0xff] %v8595_v25 }
 0xb84   : > { %v8597_v44 = vpop.f32.mrf.mxu0 }
 0xb85   : > { %10339 = vst [vmem:[#allocation163_spill] sm:$0xff] %v8597_v44 }
 0xb86   : > { %v8599_v14 = vpop.f32.mrf.mxu0 }
 0xb87   : > { %10340 = vst [vmem:[#allocation164_spill] sm:$0xff] %v8599_v14 }
 0xb88   : > { %v8601_v45 = vpop.f32.mrf.mxu0 }
 0xb89   : > { %10341 = vst [vmem:[#allocation165_spill] sm:$0xff] %v8601_v45 }
 0xb8a   : > { %v5651_v17 = vpop.f32.mrf.mxu0 }
 0xb8b   : > { %v8604_v28 = vadd.f32 %v5651_v17, %v6991_v36 }
 0xb8c   : > { %v3244_v3 = vpop.f32.mrf.mxu0 }
 0xb8d   : > { %v8607_v15 = vadd.f32 %v3244_v3, %v6991_v36  ;;  %3311 = vmax.xlane.f32.xlu1 %v8604_v28 }
 0xb8e   : > { %v5652_v52 = vpop.f32.mrf.mxu0 }
 0xb8f   : > { %v8611_v6 = vadd.f32 %v5652_v52, %v6991_v36  ;;  %3307 = vmax.xlane.f32.xlu0 %v8607_v15 }
 0xb90   : > { %v3247_v27 = vpop.f32.mrf.mxu0 }
 0xb91   : > { %3313 = vmax.xlane.f32.xlu1 %v8611_v6  ;;  %v8616_v44 = vadd.f32 %v3247_v27, %v6991_v36 }
 0xb92   : > { %v5655_v41 = vpop.f32.mrf.mxu0 }
 0xb93   : > { %v8619_v17 = vadd.f32 %v5655_v41, %v6991_v36 }
 0xb94   : > { %v3260_v3 = vpop.f32.mrf.mxu0 }
 0xb95   : > { %3309 = vmax.xlane.f32.xlu1 %v8616_v44  ;;  %3319 = vmax.xlane.f32.xlu0 %v8619_v17  ;;  %v8624_v52 = vadd.f32 %v3260_v3, %v6991_v36 }
 0xb96   : > { %v5656_v45 = vpop.f32.mrf.mxu0 }
 0xb97   : > { %v8631_v27 = vadd.f32 %v5656_v45, %v6991_v36 }
 0xb98   : > { %v3263_v25 = vpop.f32.mrf.mxu0 }
 0xb99   : > { %v8627_v14 = vadd.f32 %v3263_v25, %v6991_v36  ;;  %3315 = vmax.xlane.f32.xlu1 %v8624_v52 }
 0xb9a   : > { %v5659_v41 = vpop.f32.mrf.mxu0 }
 0xb9b   : > { %3317 = vmax.xlane.f32.xlu0 %v8627_v14  ;;  %v8635_v42 = vadd.f32 %v5659_v41, %v6991_v36 }
 0xb9c   : > { %v3276_v3 = vpop.f32.mrf.mxu0 }
 0xb9d   : > { %3321 = vmax.xlane.f32.xlu1 %v8631_v27  ;;  %v8640_v25 = vadd.f32 %v3276_v3, %v6991_v36  ;;  %v6730_v3 = vld [vmem:[%s6831_s19 + $0x98] sm:$0xff]  }
 0xb9e   : > { %v5660_v35 = vpop.f32.mrf.mxu0 }
 0xb9f   : > { %v8644_v45 = vadd.f32 %v5660_v35, %v6991_v36 }
 0xba0   : > { %v3279_v31 = vpop.f32.mrf.mxu0 }
 0xba1   : > { %3327 = vmax.xlane.f32.xlu1 %v8635_v42  ;;  %v8648_v41 = vadd.f32 %v3279_v31, %v6991_v36 }
 0xba2   : > { %v5663_v21 = vpop.f32.mrf.mxu0 }
 0xba3   : > { %v8656_v35 = vadd.f32 %v5663_v21, %v6991_v36 }
 0xba4   : > { %v3292_v37 = vpop.f32.mrf.mxu0 }
 0xba5   : > { %3323 = vmax.xlane.f32.xlu1 %v8640_v25  ;;  %v8660_v31 = vadd.f32 %v3292_v37, %v6991_v36  ;;  %v6731_v37 = vld [vmem:[%s6831_s19 + $0x88] sm:$0xff]  }
 0xba6   : > { %v5664_v13 = vpop.f32.mrf.mxu0 }
 0xba8   : > { %v3295_v21 = vpop.f32.mrf.mxu0 }
 0xba9   : > { %3329 = vmax.xlane.f32.xlu1 %v8644_v45 }
 0xbad   : > { %3325 = vmax.xlane.f32.xlu1 %v8648_v41 }
 0xbb1   : > { %3600 = vrot.lane.b32.xlu0 %v6729_v57, %s6779_s5  ;;  %v8664_v57 = vadd.f32 %v5664_v13, %v6991_v36  ;;  %v6733_v13 = vld [vmem:[%s6831_s19 + $0x80] sm:$0xff]   ;;  %s9956_s19 = scalar_lea.vmem %s10092_s3, %s6825_s16 }
 0xbbe   : > { %3602 = vrot.lane.b32.xlu1 %v6730_v3, %s6779_s5  ;;  %v8668_v3 = vadd.f32 %v3295_v21, %v6991_v36  ;;  %v6735_v21 = vld [vmem:[%s6856_s23 + $0x8] sm:$0xff]  }
 0xbd0   : > { %3335 = vmax.xlane.f32.xlu0 %v8656_v35 }
 0xbd4   : > { %3331 = vmax.xlane.f32.xlu0 %v8660_v31 }
 0xbd8   : > { %3337 = vmax.xlane.f32.xlu0 %v8664_v57 }
 0xbe2   : > { %3333 = vmax.xlane.f32.xlu1 %v8668_v3 }
 0xbee   : > { %3598 = vrot.lane.b32.xlu0 %v6731_v37, %s6779_s5  ;;  %v6737_v37 = vld [vmem:[%s6856_s23 + $0x18] sm:$0xff]  }
 0xbf2   : > { %3580 = vrot.lane.b32.xlu0 %v6732_v60, %s6779_s5  ;;  %v6738_v60 = vld [vmem:[%s6856_s23 + $0x30] sm:$0xff]  }
 0xbf3   : > { %3596 = vrot.lane.b32.xlu1 %v6733_v13, %s6779_s5  ;;  %v6739_v13 = vld [vmem:[%s6856_s23 + $0x28] sm:$0xff]  }
 0xbf6   : > { %3584 = vrot.lane.b32.xlu0 %v6734_v10, %s6779_s5  ;;  %v6740_v10 = vld [vmem:[%s6856_s23 + $0x38] sm:$0xff]  }
 0xbf7   : > { %3582 = vrot.lane.b32.xlu1 %v6735_v21, %s6779_s5  ;;  %v6742_v21 = vld [vmem:[%s6945_s26 + $0x138] sm:$0xff]  }
 0xbfa   : > { %3588 = vrot.lane.b32.xlu0 %v6736_v55, %s6779_s5  ;;  %v6741_v55 = vld [vmem:[%s6945_s26 + $0x120] sm:$0xff]  }
 0xbfb   : > { %3586 = vrot.lane.b32.xlu1 %v6737_v37, %s6779_s5  ;;  %v6743_v37 = vld [vmem:[%s6945_s26 + $0x110] sm:$0xff]  }
 0xbfe   : > { %3592 = vrot.lane.b32.xlu0 %v6738_v60, %s6779_s5  ;;  %v6744_v60 = vld [vmem:[%s6945_s26 + $0x128] sm:$0xff]  }
 0xbff   : > { %3590 = vrot.lane.b32.xlu1 %v6739_v13, %s6779_s5  ;;  %v8701_v13 = vpop.permute.xlu0 %3608 }
 0xc02   : > { %3889 = vrot.lane.b32.xlu0 %v8173_v58, %s6779_s5  ;;  %v6746_v58 = vld [vmem:[%s6945_s26 + $0x118] sm:$0xff]  }
 0xc03   : > { %3594 = vrot.lane.b32.xlu1 %v6740_v10, %s6779_s5  ;;  %v8707_v10 = vpop.permute.xlu1 %3606 }
 0xc06   : > { %3885 = vrot.lane.b32.xlu0 %v6741_v55, %s6779_s5  ;;  %v6747_v55 = vld [vmem:[%s6945_s26 + $0x108] sm:$0xff]  }
 0xc07   : > { %3891 = vrot.lane.b32.xlu1 %v6742_v21, %s6779_s5  ;;  %v8711_v21 = vpop.permute.xlu0 %3604 }
 0xc0a   : > { %3881 = vrot.lane.b32.xlu0 %v6743_v37, %s6779_s5 }
 0xc0b   : > { %3887 = vrot.lane.b32.xlu1 %v6744_v60, %s6779_s5 }
 0xc0e   : > { %3877 = vrot.lane.b32.xlu0 %v6745_v39, %s6779_s5 }
 0xc0f   : > { %3883 = vrot.lane.b32.xlu1 %v6746_v58, %s6779_s5 }
 0xc13   : > { %3879 = vrot.lane.b32.xlu1 %v6747_v55, %s6779_s5 }
 0xc16   : > { %v3312_v38 = vpop.xlane.xlu1 %3311 }
 0xc17   : > { %v3341_v11 = vsub.f32 %v8604_v28, %v3312_v38 }
 0xc18   : > { %v3308_v37 = vpop.xlane.xlu0 %3307 }
 0xc19   : > { %v3339_v5 = vsub.f32 %v8607_v15, %v3308_v37  ;;  %v3359_v19 = vmul.f32 1.442695, %v3341_v11 }
 0xc1a   : > { %v3314_v60 = vpop.xlane.xlu1 %3313 }
 0xc1b   : > { %v3342_v49 = vsub.f32 %v8611_v6, %v3314_v60  ;;  %v3355_v39 = vmul.f32 1.442695, %v3339_v5 }
 0xc1d   : > { %v3361_v53 = vmul.f32 1.442695, %v3342_v49  ;;  %6360 = vpow2.f32 %v3355_v39  ;;  %v3658_v39 = vsel %vm437_vm0, %v8575_v4, 0 }
 0xc1e   : > { %v3310_v46 = vpop.xlane.xlu1 %3309  ;;  %v3320_v12 = vpop.xlane.xlu0 %3319 }
 0xc1f   : > { %v3340_v58 = vsub.f32 %v8616_v44, %v3310_v46  ;;  %6362 = vpow2.f32 %v3361_v53  ;;  %v3345_v36 = vsub.f32 %v8619_v17, %v3320_v12 }
 0xc21   : > { %v3357_v55 = vmul.f32 1.442695, %v3340_v58  ;;  %v3367_v49 = vmul.f32 1.442695, %v3345_v36 }
 0xc22   : > { %v3316_v40 = vpop.xlane.xlu1 %3315 }
 0xc23   : > { %6364 = vpow2.f32 %v3357_v55  ;;  %v3343_v15 = vsub.f32 %v8624_v52, %v3316_v40 }
 0xc24   : > { %6366 = vpow2.f32 %v3359_v19  ;;  %v3318_v6 = vpop.xlane.xlu0 %3317 }
 0xc25   : > { %v3363_v37 = vmul.f32 1.442695, %v3343_v15  ;;  %v3344_v5 = vsub.f32 %v8627_v14, %v3318_v6 }
 0xc26   : > { %v3322_v38 = vpop.xlane.xlu1 %3321 }
 0xc27   : > { %v3365_v28 = vmul.f32 1.442695, %v3344_v5  ;;  %v3346_v46 = vsub.f32 %v8631_v27, %v3322_v38  ;;  %6368 = vpow2.f32 %v3363_v37  ;;  %v10342_v5 = vld [vmem:[#allocation37_spill] sm:$0xff]  ;;  %v10343_v38 = vld [vmem:[#allocation35_spill] sm:$0xff] }
 0xc29   : > { %6370 = vpow2.f32 %v3365_v28  ;;  %v3369_v11 = vmul.f32 1.442695, %v3346_v46  ;;  %v10345_v28 = vld [vmem:[#allocation36_spill] sm:$0xff] }
 0xc2a   : > { %6372 = vpow2.f32 %v3367_v49  ;;  %v3328_v53 = vpop.xlane.xlu1 %3327  ;;  %v8722_v12 = vpop.eup %6360  ;;  %v10346_v46 = vld [vmem:[#allocation40_spill] sm:$0xff] }
 0xc2b   : > { %6374 = vpow2.f32 %v3369_v11  ;;  %v3349_v60 = vsub.f32 %v8635_v42, %v3328_v53  ;;  %v10347_v11 = vld [vmem:[#allocation38_spill] sm:$0xff]  ;;  %v3652_v53 = vsel %vm437_vm0, %v8707_v10, 0 }
 0xc2c   : > { %v8724_v19 = vpop.eup %6362 }
 0xc2d   : > { %1139 = vadd.xlane.f32.xlu0 %v7343_v51  ;;  %v3375_v37 = vmul.f32 1.442695, %v3349_v60 }
 0xc2e   : > { %v3324_v40 = vpop.xlane.xlu1 %3323 }
 0xc2f   : > { %v3347_v14 = vsub.f32 %v8640_v25, %v3324_v40  ;;  %v10348_v40 = vld [vmem:[#allocation43_spill] sm:$0xff] }
 0xc30   : > { %v8726_v44 = vpop.eup %6364 }
 0xc31   : > { %v8728_v36 = vpop.eup %6366  ;;  %1143 = vadd.xlane.f32.xlu0 %v7341_v24  ;;  %v3419_v17 = vpack.c.bf16 %v8726_v44, %v8722_v12  ;;  %v3371_v25 = vmul.f32 1.442695, %v3347_v14 }
 0xc32   : > { %v3330_v52 = vpop.xlane.xlu1 %3329  ;;  %v3420_v51 = vpack.c.bf16 %v8724_v19, %v8728_v36 }
 0xc33   : > { %v3350_v27 = vsub.f32 %v8644_v45, %v3330_v52  ;;  %5681 = vmatprep.mubr.bf16.mxu1 %v3419_v17  ;;  %6376 = vpow2.f32 %v3371_v25  ;;  %v10349_v17 = vld [vmem:[#allocation39_spill] sm:$0xff]  ;;  %v3649_v25 = vsel %vm437_vm0, %v8711_v21, 0 }
 0xc34   : > { %5682 = vmatmul.mubr.bf16.vlgmr.msra.gmra.mxu1 %v3420_v51  ;;  %v8740_v58 = vpop.eup %6368 }
 0xc35   : > { %5698 = vmatpush3.bf16.xpose.msra.mxu1 %v3658_v39  ;;  %1147 = vadd.xlane.f32.xlu0 %v7375_v8  ;;  %v3377_v55 = vmul.f32 1.442695, %v3350_v27  ;;  %v10350_v27 = vld [vmem:[#allocation46_spill] sm:$0xff] }
 0xc36   : > { %v8743_v24 = vpop.eup %6370  ;;  %5818 = vmatprep.subr.msk.bf16.mxu1 %vm437_vm0, %v8701_v13  ;;  %v3326_v45 = vpop.xlane.xlu1 %3325  ;;  %v10351_v39 = vld [vmem:[#allocation42_spill] sm:$0xff] }
 0xc37   : > { %v8747_v15 = vpop.eup %6372  ;;  %v3348_v42 = vsub.f32 %v8648_v41, %v3326_v45  ;;  %1137 = vadd.xlane.f32.xlu1 %v7337_v22  ;;  %v3421_v4 = vpack.c.bf16 %v8743_v24, %v8740_v58  ;;  %6378 = vpow2.f32 %v3377_v55  ;;  %v3655_v22 = vsel %vm437_vm0, %v8701_v13, 0  ;;  %v10344_v41 = vld [vmem:[#allocation41_spill] sm:$0xff]  ;;  %v10352_v45 = vld [vmem:[#allocation44_spill] sm:$0xff] }
 0xc38   : > { %v8753_v6 = vpop.eup %6374 }
 0xc39   : > { %v3373_v8 = vmul.f32 1.442695, %v3348_v42  ;;  %1151 = vadd.xlane.f32.xlu0 %v10342_v5  ;;  %5685 = vmatprep.mubr.bf16.mxu1 %v3421_v4  ;;  %v3422_v49 = vpack.c.bf16 %v8753_v6, %v8747_v15  ;;  %v10353_v42 = vld [vmem:[#allocation45_spill] sm:$0xff]  ;;  %v10356_v5 = vld [vmem:[#allocation64_spill] sm:$0xff] }
 0xc3a   : > { %v3603_v55 = vpop.permute.xlu1 %3602 }
 0xc3b   : > { %6380 = vpow2.f32 %v3373_v8  ;;  %1141 = vadd.xlane.f32.xlu1 %v10343_v38  ;;  %v3646_v4 = vsel %vm437_vm0, %v3603_v55, 0  ;;  %v10355_v8 = vld [vmem:[#allocation67_spill] sm:$0xff] }
 0xc3c   : > { %6382 = vpow2.f32 %v3375_v37  ;;  %5686 = vmatmul.mubr.bf16.gmra.mxu1 %v3422_v49  ;;  %v3601_v37 = vpop.permute.xlu0 %3600 }
 0xc3d   : > { %5700 = vmatpush3.bf16.xpose.msra.mxu1 %v3655_v22  ;;  %1155 = vadd.xlane.f32.xlu0 %v10344_v41  ;;  %v3643_v49 = vsel %vm437_vm0, %v3601_v37, 0  ;;  %v10358_v22 = vld [vmem:[#allocation65_spill] sm:$0xff] }
 0xc3e   : > { %5819 = vmatprep.subr.msk.bf16.mxu1 %vm437_vm0, %v8707_v10  ;;  %v10359_v41 = vld [vmem:[#allocation69_spill] sm:$0xff] }
 0xc3f   : > { %1145 = vadd.xlane.f32.xlu1 %v10345_v28  ;;  %v10360_v28 = vld [vmem:[#allocation66_spill] sm:$0xff] }
 0xc40   : > { %v8770_v14 = vpop.eup %6376 }
 0xc41   : > { %1159 = vadd.xlane.f32.xlu0 %v10346_v46  ;;  %v10361_v46 = vld [vmem:[#allocation74_spill] sm:$0xff] }
 0xc43   : > { %1149 = vadd.xlane.f32.xlu1 %v10347_v11 }
 0xc44   : > { %v8774_v13 = vpop.eup %6378 }
 0xc45   : > { %5702 = vmatpush3.bf16.xpose.msra.mxu1 %v3652_v53  ;;  %1163 = vadd.xlane.f32.xlu0 %v10348_v40 }
 0xc46   : > { %5820 = vmatprep.subr.msk.bf16.mxu1 %vm437_vm0, %v8711_v21  ;;  %v10354_v21 = vld [vmem:[#allocation63_spill] sm:$0xff] }
 0xc47   : > { %1153 = vadd.xlane.f32.xlu1 %v10349_v17 }
 0xc48   : > { %v8777_v52 = vpop.eup %6380 }
 0xc49   : > { %v8779_v51 = vpop.eup %6382  ;;  %1167 = vadd.xlane.f32.xlu0 %v10350_v27  ;;  %v3423_v10 = vpack.c.bf16 %v8777_v52, %v8770_v14  ;;  %v10362_v27 = vld [vmem:[#allocation68_spill] sm:$0xff] }
 0xc4a   : > { %v3424_v60 = vpack.c.bf16 %v8774_v13, %v8779_v51 }
 0xc4b   : > { %1157 = vadd.xlane.f32.xlu1 %v10351_v39  ;;  %5689 = vmatprep.mubr.bf16.mxu1 %v3423_v10 }
 0xc4c   : > { %5690 = vmatmul.mubr.bf16.gmra.mxu1 %v3424_v60  ;;  %v10363_v60 = vld [vmem:[#allocation73_spill] sm:$0xff] }
 0xc4d   : > { %5704 = vmatpush3.bf16.xpose.msra.mxu1 %v3649_v25  ;;  %1589 = vadd.xlane.f32.xlu0 %v7661_v30 }
 0xc4e   : > { %5821 = vmatprep.subr.msk.bf16.mxu1 %vm437_vm0, %v3603_v55  ;;  %v10364_v55 = vld [vmem:[#allocation71_spill] sm:$0xff] }
 0xc4f   : > { %1161 = vadd.xlane.f32.xlu1 %v10352_v45 }
 0xc51   : > { %1593 = vadd.xlane.f32.xlu0 %v7659_v1  ;;  %v10357_v1 = vld [vmem:[#allocation70_spill] sm:$0xff] }
 0xc53   : > { %1165 = vadd.xlane.f32.xlu1 %v10353_v42 }
 0xc55   : > { %5706 = vmatpush3.bf16.xpose.msra.mxu1 %v3646_v4  ;;  %1597 = vadd.xlane.f32.xlu0 %v7676_v9  ;;  %v10365_v4 = vld [vmem:[#allocation94_spill] sm:$0xff] }
 0xc56   : > { %5822 = vmatprep.subr.msk.bf16.mxu1 %vm437_vm0, %v3601_v37 }
 0xc57   : > { %1587 = vadd.xlane.f32.xlu1 %v10354_v21 }
 0xc59   : > { %1601 = vadd.xlane.f32.xlu0 %v10355_v8  ;;  %v3336_v30 = vpop.xlane.xlu0 %3335  ;;  %v10367_v8 = vld [vmem:[#allocation93_spill] sm:$0xff] }
 0xc5a   : > { %v3353_v10 = vsub.f32 %v8656_v35, %v3336_v30  ;;  %v10368_v30 = vld [vmem:[#allocation75_spill] sm:$0xff] }
 0xc5b   : > { %1591 = vadd.xlane.f32.xlu1 %v10356_v5  ;;  %v10369_v5 = vld [vmem:[#allocation97_spill] sm:$0xff] }
 0xc5c   : > { %v3383_v42 = vmul.f32 1.442695, %v3353_v10 }
 0xc5d   : > { %5708 = vmatpush3.bf16.xpose.msra.mxu1 %v3643_v49  ;;  %1605 = vadd.xlane.f32.xlu0 %v10357_v1  ;;  %v3332_v38 = vpop.xlane.xlu0 %3331  ;;  %v10370_v1 = vld [vmem:[#allocation92_spill] sm:$0xff] }
 0xc5e   : > { %v3351_v53 = vsub.f32 %v8660_v31, %v3332_v38 }
 0xc5f   : > { %1595 = vadd.xlane.f32.xlu1 %v10358_v22  ;;  %v10371_v22 = vld [vmem:[#allocation99_spill] sm:$0xff] }
 0xc60   : > { %v3379_v39 = vmul.f32 1.442695, %v3351_v53 }
 0xc61   : > { %1609 = vadd.xlane.f32.xlu0 %v10359_v41  ;;  %v3338_v9 = vpop.xlane.xlu0 %3337 }
 0xc62   : > { %v3354_v17 = vsub.f32 %v8664_v57, %v3338_v9  ;;  %6384 = vpow2.f32 %v3379_v39  ;;  %v10366_v57 = vld [vmem:[#allocation72_spill] sm:$0xff] }
 0xc63   : > { %1599 = vadd.xlane.f32.xlu1 %v10360_v28  ;;  %v10372_v28 = vld [vmem:[#allocation95_spill] sm:$0xff] }
 0xc64   : > { %v3385_v25 = vmul.f32 1.442695, %v3354_v17 }
 0xc65   : > { %1613 = vadd.xlane.f32.xlu0 %v10361_v46  ;;  %v3599_v11 = vpop.permute.xlu0 %3598 }
 0xc66   : > { %5823 = vmatprep.subr.msk.bf16.mxu1 %vm437_vm0, %v3599_v11  ;;  %v3640_v40 = vsel %vm437_vm0, %v3599_v11, 0  ;;  %6386 = vpow2.f32 %v3385_v25 }
 0xc67   : > { %1603 = vadd.xlane.f32.xlu1 %v10362_v27  ;;  %5710 = vmatpush3.bf16.xpose.msra.mxu1 %v3640_v40  ;;  %v10373_v40 = vld [vmem:[#allocation102_spill] sm:$0xff] }
 0xc69   : > { %1617 = vadd.xlane.f32.xlu0 %v10363_v60  ;;  %v3581_v49 = vpop.permute.xlu0 %3580  ;;  %v10374_v60 = vld [vmem:[#allocation96_spill] sm:$0xff] }
 0xc6b   : > { %1607 = vadd.xlane.f32.xlu1 %v10364_v55  ;;  %v3334_v45 = vpop.xlane.xlu1 %3333  ;;  %v10375_v55 = vld [vmem:[#allocation101_spill] sm:$0xff] }
 0xc6c   : > { %v3352_v31 = vsub.f32 %v8668_v3, %v3334_v45 }
 0xc6d   : > { %2039 = vadd.xlane.f32.xlu0 %v10365_v4  ;;  %v3585_v41 = vpop.permute.xlu0 %3584  ;;  %v10377_v4 = vld [vmem:[#allocation106_spill] sm:$0xff] }
 0xc6e   : > { %v3381_v37 = vmul.f32 1.442695, %v3352_v31  ;;  %v10376_v31 = vld [vmem:[#allocation98_spill] sm:$0xff] }
 0xc6f   : > { %1611 = vadd.xlane.f32.xlu1 %v10366_v57  ;;  %v3597_v21 = vpop.permute.xlu1 %3596  ;;  %v8824_v9 = vpop.eup %6384  ;;  %v10378_v57 = vld [vmem:[#allocation100_spill] sm:$0xff] }
 0xc70   : > { %6388 = vpow2.f32 %v3381_v37  ;;  %5824 = vmatprep.subr.msk.bf16.mxu1 %vm437_vm0, %v3597_v21  ;;  %v3637_v35 = vsel %vm437_vm0, %v3597_v21, 0  ;;  %v10379_v21 = vld [vmem:[#allocation105_spill] sm:$0xff] }
 0xc71   : > { %6390 = vpow2.f32 %v3383_v42  ;;  %2043 = vadd.xlane.f32.xlu0 %v10367_v8  ;;  %5712 = vmatpush3.bf16.xpose.msra.mxu1 %v3637_v35  ;;  %v3589_v17 = vpop.permute.xlu0 %3588  ;;  %v10380_v8 = vld [vmem:[#allocation103_spill] sm:$0xff] }
 0xc73   : > { %1615 = vadd.xlane.f32.xlu1 %v10368_v30  ;;  %v3583_v3 = vpop.permute.xlu1 %3582  ;;  %v8827_v11 = vpop.eup %6386 }
 0xc75   : > { %2047 = vadd.xlane.f32.xlu0 %v10369_v5  ;;  %v3593_v45 = vpop.permute.xlu0 %3592  ;;  %v10381_v5 = vld [vmem:[#allocation104_spill] sm:$0xff] }
 0xc77   : > { %2037 = vadd.xlane.f32.xlu1 %v10370_v1  ;;  %v3587_v38 = vpop.permute.xlu1 %3586 }
 0xc79   : > { %2051 = vadd.xlane.f32.xlu0 %v10371_v22  ;;  %v3890_v37 = vpop.permute.xlu0 %3889 }
 0xc7b   : > { %2041 = vadd.xlane.f32.xlu1 %v10372_v28  ;;  %v3591_v46 = vpop.permute.xlu1 %3590 }
 0xc7d   : > { %v8829_v53 = vpop.eup %6388  ;;  %2055 = vadd.xlane.f32.xlu0 %v10373_v40  ;;  %v3886_v30 = vpop.permute.xlu0 %3885 }
 0xc7e   : > { %v8832_v27 = vpop.eup %6390  ;;  %v3425_v10 = vpack.c.bf16 %v8829_v53, %v8824_v9 }
 0xc7f   : > { %2045 = vadd.xlane.f32.xlu1 %v10374_v60  ;;  %v3426_v39 = vpack.c.bf16 %v8827_v11, %v8832_v27  ;;  %v3595_v25 = vpop.permute.xlu1 %3594 }
 0xc80   : > { %5693 = vmatprep.mubr.bf16.mxu1 %v3425_v10 }
 0xc81   : > { %2059 = vadd.xlane.f32.xlu0 %v10375_v55  ;;  %5694 = vmatmul.mubr.bf16.gmra.mxu1 %v3426_v39  ;;  %v3882_v1 = vpop.permute.xlu0 %3881 }
 0xc82   : > { %5713 = vmatprep.mubr.msk.bf16.mxu1 %vm437_vm0, %v3581_v49  ;;  %v10382_v49 = vld [vmem:[#allocation107_spill] sm:$0xff] }
 0xc83   : > { %2049 = vadd.xlane.f32.xlu1 %v10376_v31  ;;  %v3892_v42 = vpop.permute.xlu1 %3891 }
 0xc84   : > { %5729 = vmatprep.subr.bf16.mxu0 %v3892_v42 }
 0xc85   : > { %2063 = vadd.xlane.f32.xlu0 %v10377_v4  ;;  %5730 = vmatpush3.bf16.msra.mxu0 %v3892_v42 }
 0xc86   : > { %5731 = vmatprep.subr.bf16.mxu0 %v3890_v37 }
 0xc87   : > { %2053 = vadd.xlane.f32.xlu1 %v10378_v57  ;;  %v3888_v35 = vpop.permute.xlu1 %3887 }
 0xc89   : > { %2067 = vadd.xlane.f32.xlu0 %v10379_v21  ;;  %5714 = vmatmul.mubr.msk.bf16.vlgmr.msra.gmra.mxu1 %vm437_vm0, %v3583_v3 }
 0xc8a   : > { %5717 = vmatprep.mubr.msk.bf16.mxu1 %vm437_vm0, %v3585_v41  ;;  %5732 = vmatpush3.bf16.msra.mxu0 %v3890_v37 }
 0xc8b   : > { %2057 = vadd.xlane.f32.xlu1 %v10380_v8  ;;  %5733 = vmatprep.subr.bf16.mxu0 %v3888_v35  ;;  %v3884_v3 = vpop.permute.xlu1 %3883 }
 0xc8d   : > { %2489 = vadd.xlane.f32.xlu0 %v8220_v32  ;;  %v3878_v32 = vpop.permute.xlu0 %3877 }
 0xc8e   : > { %5734 = vmatpush3.bf16.msra.mxu0 %v3888_v35 }
 0xc8f   : > { %2061 = vadd.xlane.f32.xlu1 %v10381_v5  ;;  %5735 = vmatprep.subr.bf16.mxu0 %v3886_v30 }
 0xc91   : > { %2493 = vadd.xlane.f32.xlu0 %v8218_v18  ;;  %5718 = vmatmul.mubr.msk.bf16.gmra.mxu1 %vm437_vm0, %v3587_v38  ;;  %v3880_v18 = vpop.permute.xlu1 %3879 }
 0xc92   : > { %5721 = vmatprep.mubr.msk.bf16.mxu1 %vm437_vm0, %v3589_v17  ;;  %5736 = vmatpush3.bf16.msra.mxu0 %v3886_v30 }
 0xc93   : > { %2065 = vadd.xlane.f32.xlu1 %v10382_v49  ;;  %5737 = vmatprep.subr.bf16.mxu0 %v3884_v3 }
 0xc95   : > { %2497 = vadd.xlane.f32.xlu0 %v8235_v59 }
 0xc96   : > { %5738 = vmatpush3.bf16.msra.mxu0 %v3884_v3 }
 0xc97   : > { %2487 = vadd.xlane.f32.xlu1 %v8216_v2  ;;  %5739 = vmatprep.subr.bf16.mxu0 %v3882_v1  ;;  %v10383_v2 = vld [vmem:[#allocation124_spill] sm:$0xff] }
 0xc99   : > { %2501 = vadd.xlane.f32.xlu0 %v8244_v54  ;;  %5722 = vmatmul.mubr.msk.bf16.gmra.mxu1 %vm437_vm0, %v3591_v46 }
 0xc9a   : > { %5725 = vmatprep.mubr.msk.bf16.mxu1 %vm437_vm0, %v3593_v45  ;;  %5740 = vmatpush3.bf16.msra.mxu0 %v3882_v1 }
 0xc9b   : > { %2491 = vadd.xlane.f32.xlu1 %v8222_v61  ;;  %5741 = vmatprep.subr.bf16.mxu0 %v3880_v18  ;;  %v10384_v61 = vld [vmem:[#allocation125_spill] sm:$0xff] }
 0xc9d   : > { %2505 = vadd.xlane.f32.xlu0 %v8260_v20 }
 0xc9e   : > { %5742 = vmatpush3.bf16.msra.mxu0 %v3880_v18  ;;  %v10402_v18 = vld [vmem:[#allocation2_spill] sm:$0xff] }
 0xc9f   : > { %2495 = vadd.xlane.f32.xlu1 %v8233_v16  ;;  %5743 = vmatprep.subr.bf16.mxu0 %v3878_v32  ;;  %v10385_v16 = vld [vmem:[#allocation142_spill] sm:$0xff] }
 0xca1   : > { %2509 = vadd.xlane.f32.xlu0 %v8258_v29  ;;  %5726 = vmatmul.mubr.msk.bf16.gmra.mxu1 %vm437_vm0, %v3595_v25 }
 0xca2   : > { %5744 = vmatpush3.bf16.msra.mxu0 %v3878_v32 }
 0xca3   : > { %2499 = vadd.xlane.f32.xlu1 %v8239_v7 }
 0xca5   : > { %2513 = vadd.xlane.f32.xlu0 %v8286_v63 }
 0xca7   : > { %2503 = vadd.xlane.f32.xlu1 %v8254_v0 }
 0xca9   : > { %2517 = vadd.xlane.f32.xlu0 %v8284_v56 }
 0xcab   : > { %2507 = vadd.xlane.f32.xlu1 %v8262_v34 }
 0xcad   : > { %2939 = vadd.xlane.f32.xlu0 %v8477_v33 }
 0xcaf   : > { %2511 = vadd.xlane.f32.xlu1 %v10383_v2 }
 0xcb1   : > { %2943 = vadd.xlane.f32.xlu0 %v8475_v50 }
 0xcb3   : > { %2515 = vadd.xlane.f32.xlu1 %v10384_v61 }
 0xcb5   : > { %2947 = vadd.xlane.f32.xlu0 %v8492_v47 }
 0xcb6   : > { %v8880_v59 = vpop.xlane.xlu0 %1139 }
 0xcb7   : > { %2937 = vadd.xlane.f32.xlu1 %v8473_v23  ;;  %6392 = vrcp.f32 %v8880_v59  ;;  %v10442_v59 = vld [vmem:[#allocation18_spill] sm:$0xff] }
 0xcb9   : > { %2951 = vadd.xlane.f32.xlu0 %v8501_v48 }
 0xcba   : > { %v8884_v54 = vpop.xlane.xlu0 %1143 }
 0xcbb   : > { %2941 = vadd.xlane.f32.xlu1 %v8479_v26 }
 0xcbe   : > { %v8888_v29 = vpop.xlane.xlu0 %1147 }
 0xcbf   : > { %2945 = vadd.xlane.f32.xlu1 %v8490_v43 }
 0xcc0   : > { %v8882_v7 = vpop.xlane.xlu1 %1137 }
 0xcc1   : > { %6394 = vrcp.f32 %v8882_v7  ;;  %v10443_v7 = vld [vmem:[#allocation13_spill] sm:$0xff] }
 0xcc2   : > { %v8892_v34 = vpop.xlane.xlu0 %1151  ;;  %6396 = vrcp.f32 %v8884_v54 }
 0xcc3   : > { %2949 = vadd.xlane.f32.xlu1 %v8496_v62  ;;  %6398 = vrcp.f32 %v8888_v29 }
 0xcc4   : > { %v8886_v0 = vpop.xlane.xlu1 %1141  ;;  %6400 = vrcp.f32 %v8892_v34 }
 0xcc6   : > { %v8898_v23 = vpop.xlane.xlu0 %1155 }
 0xcc7   : > { %2953 = vadd.xlane.f32.xlu1 %v10385_v16 }
 0xcc8   : > { %v8890_v20 = vpop.xlane.xlu1 %1145 }
 0xcc9   : > { %6402 = vrcp.f32 %v8890_v20  ;;  %v6393_v20 = vpop.eup %6392 }
 0xcca   : > { %v8904_v26 = vpop.xlane.xlu0 %1159  ;;  %6404 = vrcp.f32 %v8886_v0  ;;  %v10444_v0 = vld [vmem:[#allocation17_spill] sm:$0xff] }
 0xccb   : > { %6406 = vrcp.f32 %v8898_v23 }
 0xccc   : > { %v8894_v56 = vpop.xlane.xlu1 %1149  ;;  %6408 = vrcp.f32 %v8904_v26 }
 0xccd   : > { %6410 = vrcp.f32 %v8894_v56 }
 0xcce   : > { %v8912_v48 = vpop.xlane.xlu0 %1163  ;;  %v6395_v34 = vpop.eup %6394 }
 0xccf   : > { %6412 = vrcp.f32 %v8912_v48  ;;  %v6397_v23 = vpop.eup %6396 }
 0xcd0   : > { %v8900_v50 = vpop.xlane.xlu1 %1153  ;;  %v6399_v48 = vpop.eup %6398 }
 0xcd1   : > { %6414 = vrcp.f32 %v8900_v50  ;;  %v6401_v50 = vpop.eup %6400 }
 0xcd2   : > { %v8918_v41 = vpop.xlane.xlu0 %1167 }
 0xcd3   : > { %6416 = vrcp.f32 %v8918_v41  ;;  %v10445_v41 = vld [vmem:[#allocation48_spill] sm:$0xff] }
 0xcd4   : > { %v8906_v43 = vpop.xlane.xlu1 %1157 }
 0xcd5   : > { %6418 = vrcp.f32 %v8906_v43 }
 0xcd6   : > { %v8926_v17 = vpop.xlane.xlu0 %1589 }
 0xcd7   : > { %6420 = vrcp.f32 %v8926_v17  ;;  %v10446_v17 = vld [vmem:[#allocation50_spill] sm:$0xff] }
 0xcd8   : > { %v8914_v38 = vpop.xlane.xlu1 %1161 }
 0xcd9   : > { %6422 = vrcp.f32 %v8914_v38  ;;  %v1315_v38 = vmul.f32 %v6393_v20, %v10446_v17 }
 0xcda   : > { %v8934_v25 = vpop.xlane.xlu0 %1593 }
 0xcdb   : > { %6424 = vrcp.f32 %v8934_v25 }
 0xcdc   : > { %v8920_v28 = vpop.xlane.xlu1 %1165 }
 0xcdd   : > { %6426 = vrcp.f32 %v8920_v28 }
 0xcde   : > { %v8940_v31 = vpop.xlane.xlu0 %1597 }
 0xcdf   : > { %6428 = vrcp.f32 %v8940_v31 }
 0xce0   : > { %v8928_v10 = vpop.xlane.xlu1 %1587 }
 0xce1   : > { %6430 = vrcp.f32 %v8928_v10  ;;  %v10448_v10 = vld [vmem:[#allocation54_spill] sm:$0xff] }
 0xce2   : > { %v8948_v57 = vpop.xlane.xlu0 %1601 }
 0xce3   : > { %6432 = vrcp.f32 %v8948_v57  ;;  %v1319_v57 = vmul.f32 %v6399_v48, %v10448_v10  ;;  %v10450_v48 = vld [vmem:[#allocation53_spill] sm:$0xff] }
 0xce4   : > { %v8936_v55 = vpop.xlane.xlu1 %1591  ;;  %v10453_v10 = vld [vmem:[#allocation49_spill] sm:$0xff] }
 0xce6   : > { %v8958_v5 = vpop.xlane.xlu0 %1605 }
 0xce8   : > { %v8942_v42 = vpop.xlane.xlu1 %1595 }
 0xcea   : > { %v8967_v61 = vpop.xlane.xlu0 %1609 }
 0xcec   : > { %v8950_v21 = vpop.xlane.xlu1 %1599 }
 0xcf0   : > { %v8960_v3 = vpop.xlane.xlu1 %1603 }
 0xcf4   : > { %v8896_v63 = vpop.f32.mrf.mxu1  ;;  %v8970_v16 = vpop.xlane.xlu1 %1607 }
 0xcf5   : > { %10386 = vst [vmem:[#allocation37_spill] sm:$0xff] %v8896_v63 }
 0xcf6   : > { %v8902_v33 = vpop.f32.mrf.mxu1 }
 0xcf7   : > { %10387 = vst [vmem:[#allocation35_spill] sm:$0xff] %v8902_v33 }
 0xcf8   : > { %v8908_v47 = vpop.f32.mrf.mxu1 }
 0xcf9   : > { %10388 = vst [vmem:[#allocation41_spill] sm:$0xff] %v8908_v47 }
 0xcfa   : > { %v8910_v62 = vpop.f32.mrf.mxu1 }
 0xcfb   : > { %10389 = vst [vmem:[#allocation36_spill] sm:$0xff] %v8910_v62 }
 0xcfc   : > { %v8916_v22 = vpop.f32.mrf.mxu1 }
 0xcfd   : > { %10390 = vst [vmem:[#allocation40_spill] sm:$0xff] %v8916_v22 }
 0xcfe   : > { %v8922_v46 = vpop.f32.mrf.mxu1 }
 0xcff   : > { %10391 = vst [vmem:[#allocation38_spill] sm:$0xff] %v8922_v46  ;;  %v8988_v46 = vpop.xlane.xlu1 %1611 }
 0xd00   : > { %v8924_v40 = vpop.f32.mrf.mxu1 }
 0xd01   : > { %10392 = vst [vmem:[#allocation43_spill] sm:$0xff] %v8924_v40 }
 0xd02   : > { %v8930_v60 = vpop.f32.mrf.mxu1 }
 0xd03   : > { %10393 = vst [vmem:[#allocation39_spill] sm:$0xff] %v8930_v60 }
 0xd0c   : > { %v8932_v39 = vpop.f32.mrf.mxu1 }
 0xd0d   : > { %10394 = vst [vmem:[#allocation46_spill] sm:$0xff] %v8932_v39 }
 0xd0e   : > { %v8938_v45 = vpop.f32.mrf.mxu1 }
 0xd0f   : > { %10395 = vst [vmem:[#allocation42_spill] sm:$0xff] %v8938_v45 }
 0xd10   : > { %v8944_v4 = vpop.f32.mrf.mxu1 }
 0xd11   : > { %10396 = vst [vmem:[#allocation44_spill] sm:$0xff] %v8944_v4 }
 0xd12   : > { %v8946_v37 = vpop.f32.mrf.mxu1 }
 0xd13   : > { %10397 = vst [vmem:[#allocation45_spill] sm:$0xff] %v8946_v37 }
 0xd41   : > { %v8952_v35 = vpop.f32.mrf.mxu1 }
 0xd42   : > { %10398 = vst [vmem:[#allocation63_spill] sm:$0xff] %v8952_v35 }
 0xd43   : > { %v8954_v8 = vpop.f32.mrf.mxu1 }
 0xd44   : > { %10399 = vst [vmem:[#allocation67_spill] sm:$0xff] %v8954_v8 }
 0xd45   : > { %v8956_v30 = vpop.f32.mrf.mxu1 }
 0xd46   : > { %10400 = vst [vmem:[#allocation64_spill] sm:$0xff] %v8956_v30 }
 0xd47   : > { %v8962_v49 = vpop.f32.mrf.mxu1 }
 0xd48   : > { %10401 = vst [vmem:[#allocation70_spill] sm:$0xff] %v8962_v49 }
 0xd49   : > { %v5715_v1 = vpop.f32.mrf.mxu1 }
 0xd4a   : > { %v8965_v32 = vadd.f32 %v5715_v1, %v10402_v18  ;;  %v8979_v1 = vpop.xlane.xlu0 %1613 }
 0xd4b   : > { %v3694_v2 = vpop.f32.mrf.mxu1 }
 0xd4c   : > { %10403 = vst [vmem:[#allocation65_spill] sm:$0xff] %v8965_v32  ;;  %3761 = vmax.xlane.f32.xlu0 %v8965_v32  ;;  %v8973_v35 = vadd.f32 %v3694_v2, %v10402_v18 }
 0xd4d   : > { %v5716_v8 = vpop.f32.mrf.mxu1 }
 0xd4e   : > { %10404 = vst [vmem:[#allocation69_spill] sm:$0xff] %v8973_v35  ;;  %v8982_v37 = vadd.f32 %v5716_v8, %v10402_v18  ;;  %v8995_v22 = vpop.xlane.xlu0 %1617 }
 0xd4f   : > { %v3697_v45 = vpop.f32.mrf.mxu1 }
 0xd50   : > { %v8976_v30 = vadd.f32 %v3697_v45, %v10402_v18  ;;  %3757 = vmax.xlane.f32.xlu0 %v8973_v35  ;;  %10406 = vst [vmem:[#allocation74_spill] sm:$0xff] %v8982_v37 }
 0xd51   : > { %v5719_v49 = vpop.f32.mrf.mxu1 }
 0xd52   : > { %10405 = vst [vmem:[#allocation66_spill] sm:$0xff] %v8976_v30  ;;  %v8985_v39 = vadd.f32 %v5719_v49, %v10402_v18  ;;  %3759 = vmax.xlane.f32.xlu1 %v8976_v30  ;;  %v9001_v49 = vpop.xlane.xlu1 %1615  ;;  %v9011_v47 = vpop.xlane.xlu0 %2039 }
 0xd53   : > { %v3710_v2 = vpop.f32.mrf.mxu1 }
 0xd54   : > { %10407 = vst [vmem:[#allocation68_spill] sm:$0xff] %v8985_v39  ;;  %3763 = vmax.xlane.f32.xlu0 %v8982_v37  ;;  %v8998_v8 = vadd.f32 %v3710_v2, %v10402_v18 }
 0xd55   : > { %v5720_v45 = vpop.f32.mrf.mxu1 }
 0xd56   : > { %v8992_v4 = vadd.f32 %v5720_v45, %v10402_v18  ;;  %3769 = vmax.xlane.f32.xlu1 %v8985_v39  ;;  %10409 = vst [vmem:[#allocation71_spill] sm:$0xff] %v8998_v8  ;;  %v9017_v39 = vpop.xlane.xlu1 %2037  ;;  %v9030_v37 = vpop.xlane.xlu0 %2043 }
 0xd57   : > { %v3713_v60 = vpop.f32.mrf.mxu1 }
 0xd58   : > { %10408 = vst [vmem:[#allocation73_spill] sm:$0xff] %v8992_v4  ;;  %3771 = vmax.xlane.f32.xlu0 %v8992_v4  ;;  %v9004_v40 = vadd.f32 %v3713_v60, %v10402_v18 }
 0xd59   : > { %v5723_v33 = vpop.f32.mrf.mxu1 }
 0xd5a   : > { %10410 = vst [vmem:[#allocation94_spill] sm:$0xff] %v9004_v40  ;;  %v9007_v62 = vadd.f32 %v5723_v33, %v10402_v18  ;;  %3765 = vmax.xlane.f32.xlu1 %v8998_v8 }
 0xd5b   : > { %v3726_v45 = vpop.f32.mrf.mxu1 }
 0xd5c   : > { %10411 = vst [vmem:[#allocation72_spill] sm:$0xff] %v9007_v62  ;;  %3767 = vmax.xlane.f32.xlu0 %v9004_v40  ;;  %v9020_v4 = vadd.f32 %v3726_v45, %v10402_v18 }
 0xd5d   : > { %v5724_v63 = vpop.f32.mrf.mxu1 }
 0xd5e   : > { %v9014_v2 = vadd.f32 %v5724_v63, %v10402_v18  ;;  %3777 = vmax.xlane.f32.xlu1 %v9007_v62  ;;  %10413 = vst [vmem:[#allocation75_spill] sm:$0xff] %v9020_v4  ;;  %v9033_v62 = vpop.xlane.xlu1 %2041 }
 0xd5f   : > { %v3729_v60 = vpop.f32.mrf.mxu1 }
 0xd60   : > { %10412 = vst [vmem:[#allocation93_spill] sm:$0xff] %v9014_v2  ;;  %3779 = vmax.xlane.f32.xlu0 %v9014_v2  ;;  %v9024_v8 = vadd.f32 %v3729_v60, %v10402_v18 }
 0xd61   : > { %v5727_v33 = vpop.f32.mrf.mxu1 }
 0xd62   : > { %10414 = vst [vmem:[#allocation97_spill] sm:$0xff] %v9024_v8  ;;  %v9027_v40 = vadd.f32 %v5727_v33, %v10402_v18  ;;  %3773 = vmax.xlane.f32.xlu1 %v9020_v4  ;;  %v9049_v4 = vpop.xlane.xlu1 %2045 }
 0xd63   : > { %v3742_v63 = vpop.f32.mrf.mxu1  ;;  %10419 = vst [vmem:[#allocation96_spill] sm:$0xff] %v9049_v4  ;;  %v10425_v4 = vld [vmem:[#allocation148_spill] sm:$0xff] }
 0xd64   : > { %10415 = vst [vmem:[#allocation92_spill] sm:$0xff] %v9027_v40  ;;  %3775 = vmax.xlane.f32.xlu0 %v9024_v8  ;;  %v9040_v2 = vadd.f32 %v3742_v63, %v10402_v18  ;;  %v9047_v8 = vpop.xlane.xlu0 %2047 }
 0xd65   : > { %v5728_v45 = vpop.f32.mrf.mxu1 }
 0xd66   : > { %v9036_v30 = vadd.f32 %v5728_v45, %v10402_v18  ;;  %3785 = vmax.xlane.f32.xlu1 %v9027_v40  ;;  %10417 = vst [vmem:[#allocation95_spill] sm:$0xff] %v9040_v2  ;;  %v10420_v45 = vld [vmem:[#allocation145_spill] sm:$0xff]  ;;  %v10421_v40 = vld [vmem:[#allocation144_spill] sm:$0xff]  ;;  %v9056_v63 = vpop.xlane.xlu1 %2049 }
 0xd67   : > { %v3745_v60 = vpop.f32.mrf.mxu1 }
 0xd68   : > { %10416 = vst [vmem:[#allocation99_spill] sm:$0xff] %v9036_v30  ;;  %3787 = vmax.xlane.f32.xlu0 %v9036_v30  ;;  %v9044_v33 = vadd.f32 %v3745_v60, %v10402_v18  ;;  %v9054_v35 = vpop.xlane.xlu0 %2051  ;;  %v10422_v30 = vld [vmem:[#allocation146_spill] sm:$0xff]  ;;  %v10423_v18 = vld [vmem:[#allocation143_spill] sm:$0xff]  ;;  %v10424_v60 = vld [vmem:[#allocation149_spill] sm:$0xff] }
 0xd6a   : > { %10418 = vst [vmem:[#allocation102_spill] sm:$0xff] %v9044_v33  ;;  %3781 = vmax.xlane.f32.xlu1 %v9040_v2  ;;  %v9063_v32 = vpop.xlane.xlu1 %2053 }
 0xd6c   : > { %3783 = vmax.xlane.f32.xlu0 %v9044_v33  ;;  %v9061_v2 = vpop.xlane.xlu0 %2055 }
 0xd6e   : > { %2957 = vadd.xlane.f32.xlu1 %v10420_v45  ;;  %v10426_v45 = vld [vmem:[#allocation147_spill] sm:$0xff]  ;;  %v9070_v33 = vpop.xlane.xlu1 %2057 }
 0xd70   : > { %2955 = vadd.xlane.f32.xlu0 %v10421_v40  ;;  %v9068_v40 = vpop.xlane.xlu0 %2059 }
 0xd72   : > { %2961 = vadd.xlane.f32.xlu1 %v10422_v30 }
 0xd74   : > { %2959 = vadd.xlane.f32.xlu0 %v10423_v18  ;;  %v9075_v30 = vpop.xlane.xlu0 %2063  ;;  %v9077_v18 = vpop.xlane.xlu1 %2061 }
 0xd76   : > { %2965 = vadd.xlane.f32.xlu1 %v10424_v60 }
 0xd78   : > { %2963 = vadd.xlane.f32.xlu0 %v10425_v4  ;;  %v9084_v4 = vpop.xlane.xlu1 %2065 }
 0xd7a   : > { %3387 = vadd.xlane.f32.xlu1 %v8722_v12  ;;  %v9082_v12 = vpop.xlane.xlu0 %2067 }
 0xd7c   : > { %2967 = vadd.xlane.f32.xlu0 %v10426_v45 }
 0xd7e   : > { %3391 = vadd.xlane.f32.xlu1 %v8728_v36  ;;  %v9091_v36 = vpop.xlane.xlu1 %2487 }
 0xd80   : > { %3389 = vadd.xlane.f32.xlu0 %v8726_v44  ;;  %v9089_v44 = vpop.xlane.xlu0 %2489 }
 0xd82   : > { %3395 = vadd.xlane.f32.xlu1 %v8740_v58  ;;  %v9098_v58 = vpop.xlane.xlu1 %2491 }
 0xd84   : > { %3393 = vadd.xlane.f32.xlu0 %v8724_v19  ;;  %v9096_v19 = vpop.xlane.xlu0 %2493 }
 0xd86   : > { %3399 = vadd.xlane.f32.xlu1 %v8747_v15 }
 0xd88   : > { %3397 = vadd.xlane.f32.xlu0 %v8743_v24  ;;  %v10427_v24 = vld [vmem:[#allocation3_spill] sm:$0xff]  ;;  %v9103_v15 = vpop.xlane.xlu0 %2497 }
 0xd8a   : > { %3403 = vadd.xlane.f32.xlu1 %v8770_v14  ;;  %v10429_v14 = vld [vmem:[#allocation6_spill] sm:$0xff] }
 0xd8c   : > { %3401 = vadd.xlane.f32.xlu0 %v8753_v6  ;;  %v9105_v6 = vpop.xlane.xlu1 %2495 }
 0xd8d   : > { %10428 = vst [vmem:[#allocation101_spill] sm:$0xff] %v9105_v6 }
 0xd8e   : > { %3407 = vadd.xlane.f32.xlu1 %v8779_v51 }
 0xd90   : > { %3405 = vadd.xlane.f32.xlu0 %v8777_v52  ;;  %v10430_v52 = vld [vmem:[#allocation5_spill] sm:$0xff]  ;;  %v9112_v51 = vpop.xlane.xlu1 %2499 }
 0xd91   : > { %10431 = vst [vmem:[#allocation98_spill] sm:$0xff] %v9112_v51  ;;  %v10438_v51 = vld [vmem:[#allocation14_spill] sm:$0xff] }
 0xd92   : > { %3411 = vadd.xlane.f32.xlu1 %v8824_v9  ;;  %v10432_v9 = vld [vmem:[#allocation7_spill] sm:$0xff] }
 0xd94   : > { %3409 = vadd.xlane.f32.xlu0 %v8774_v13  ;;  %v9110_v13 = vpop.xlane.xlu0 %2501  ;;  %v9119_v45 = vpop.xlane.xlu1 %2503 }
 0xd96   : > { %3415 = vadd.xlane.f32.xlu1 %v8832_v27  ;;  %v10433_v27 = vld [vmem:[#allocation4_spill] sm:$0xff] }
 0xd98   : > { %3413 = vadd.xlane.f32.xlu0 %v8829_v53  ;;  %v10434_v53 = vld [vmem:[#allocation10_spill] sm:$0xff]  ;;  %v9117_v60 = vpop.xlane.xlu0 %2505  ;;  %v9126_v6 = vpop.xlane.xlu1 %2507 }
 0xd9a   : > { %663 = vadd.xlane.f32.xlu1 %v10427_v24  ;;  %v10435_v24 = vld [vmem:[#allocation9_spill] sm:$0xff] }
 0xd9c   : > { %3417 = vadd.xlane.f32.xlu0 %v8827_v11  ;;  %v10436_v11 = vld [vmem:[#allocation12_spill] sm:$0xff] }
 0xd9e   : > { %667 = vadd.xlane.f32.xlu1 %v10429_v14  ;;  %v10437_v14 = vld [vmem:[#allocation8_spill] sm:$0xff] }
 0xda0   : > { %665 = vadd.xlane.f32.xlu0 %v10430_v52  ;;  %v9124_v52 = vpop.xlane.xlu0 %2509 }
 0xda2   : > { %671 = vadd.xlane.f32.xlu1 %v10432_v9  ;;  %v10439_v9 = vld [vmem:[#allocation11_spill] sm:$0xff] }
 0xda4   : > { %669 = vadd.xlane.f32.xlu0 %v10433_v27  ;;  %v10440_v27 = vld [vmem:[#allocation16_spill] sm:$0xff] }
 0xda6   : > { %675 = vadd.xlane.f32.xlu1 %v10434_v53  ;;  %v9135_v53 = vpop.xlane.xlu0 %2513 }
 0xda8   : > { %673 = vadd.xlane.f32.xlu0 %v10435_v24  ;;  %v9137_v24 = vpop.xlane.xlu1 %2511 }
 0xdaa   : > { %679 = vadd.xlane.f32.xlu1 %v10436_v11  ;;  %v10441_v11 = vld [vmem:[#allocation15_spill] sm:$0xff]  ;;  %v9148_v54 = vpop.xlane.xlu0 %2517 }
 0xdac   : > { %677 = vadd.xlane.f32.xlu0 %v10437_v14  ;;  %v9150_v29 = vpop.xlane.xlu1 %2515  ;;  %v6403_v14 = vpop.eup %6402  ;;  %6434 = vrcp.f32 %v8936_v55 }
 0xdad   : > { %v6405_v43 = vpop.eup %6404  ;;  %6436 = vrcp.f32 %v8958_v5 }
 0xdae   : > { %683 = vadd.xlane.f32.xlu1 %v10438_v51  ;;  %v9159_v56 = vpop.xlane.xlu0 %2939  ;;  %v1314_v51 = vmul.f32 %v6395_v34, %v10445_v41  ;;  %v10449_v41 = vld [vmem:[#allocation51_spill] sm:$0xff] }
 0xdb0   : > { %681 = vadd.xlane.f32.xlu0 %v10439_v9  ;;  %v9161_v26 = vpop.xlane.xlu1 %2937  ;;  %v6407_v9 = vpop.eup %6406  ;;  %v5864_v28 = vpack.i.bf16 %v1315_v38, %v1314_v51  ;;  %6438 = vrcp.f32 %v8942_v42 }
 0xdb2   : > { %687 = vadd.xlane.f32.xlu1 %v10440_v27  ;;  %v6409_v27 = vpop.eup %6408  ;;  %v9171_v25 = vpop.xlane.xlu0 %2943  ;;  %6440 = vrcp.f32 %v8967_v61  ;;  %v1321_v61 = vmul.f32 %v6401_v50, %v10450_v48 }
 0xdb4   : > { %685 = vadd.xlane.f32.xlu0 %v10441_v11  ;;  %v9173_v11 = vpop.xlane.xlu1 %2941 }
 0xdb6   : > { %691 = vadd.xlane.f32.xlu1 %v10442_v59  ;;  %v10447_v59 = vld [vmem:[#allocation52_spill] sm:$0xff]  ;;  %v9187_v42 = vpop.xlane.xlu0 %2947 }
 0xdb8   : > { %689 = vadd.xlane.f32.xlu0 %v10443_v7  ;;  %v1318_v7 = vmul.f32 %v6403_v14, %v10447_v59  ;;  %v9189_v17 = vpop.xlane.xlu1 %2945 }
 0xdba   : > { %v5874_v34 = vpack.i.bf16 %v1319_v57, %v1318_v7  ;;  %v10452_v7 = vld [vmem:[#allocation55_spill] sm:$0xff]  ;;  %v1317_v57 = vmul.f32 %v6397_v23, %v10453_v10 }
 0xdbc   : > { %693 = vadd.xlane.f32.xlu0 %v10444_v0  ;;  %v6411_v0 = vpop.eup %6410  ;;  %6442 = vrcp.f32 %v8950_v21  ;;  %v10451_v21 = vld [vmem:[#allocation47_spill] sm:$0xff]  ;;  %v9209_v23 = vpop.xlane.xlu1 %2949 }
 0xdbd   : > { %v9177_v31 = vpop.eup %6412  ;;  %v1320_v51 = vmul.f32 %v6411_v0, %v10449_v41  ;;  %6444 = vrcp.f32 %v8979_v1 }
 0xdbe   : > { %v6415_v55 = vpop.eup %6414  ;;  %6446 = vrcp.f32 %v8960_v3 }
 0xdbf   : > { %v6417_v20 = vpop.eup %6416  ;;  %6448 = vrcp.f32 %v8995_v22  ;;  %v5879_v1 = vpack.i.bf16 %v1321_v61, %v1320_v51  ;;  %v10454_v22 = vld [vmem:[#allocation57_spill] sm:$0xff]  ;;  %v10456_v61 = vld [vmem:[#allocation59_spill] sm:$0xff] }
 0xdc0   : > { %v6419_v14 = vpop.eup %6418  ;;  %6450 = vrcp.f32 %v8970_v16  ;;  %v1325_v50 = vmul.f32 %v6409_v27, %v10454_v22  ;;  %v10457_v27 = vld [vmem:[#allocation58_spill] sm:$0xff] }
 0xdc1   : > { %v6421_v5 = vpop.eup %6420  ;;  %v1324_v0 = vmul.f32 %v6419_v14, %v10452_v7  ;;  %6452 = vrcp.f32 %v9011_v47  ;;  %v9207_v47 = vpop.xlane.xlu0 %2951 }
 0xdc2   : > { %v6423_v38 = vpop.eup %6422  ;;  %6454 = vrcp.f32 %v8988_v46 }
 0xdc3   : > { %v6425_v59 = vpop.eup %6424  ;;  %6456 = vrcp.f32 %v9030_v37  ;;  %v5889_v48 = vpack.i.bf16 %v1325_v50, %v1324_v0  ;;  %v1323_v37 = vmul.f32 %v6407_v9, %v10457_v27  ;;  %v10459_v0 = vld [vmem:[#allocation60_spill] sm:$0xff] }
 0xdc4   : > { %v6427_v3 = vpop.eup %6426  ;;  %6458 = vrcp.f32 %v9001_v49  ;;  %v10458_v49 = vld [vmem:[#allocation61_spill] sm:$0xff]  ;;  %v10460_v9 = vld [vmem:[#allocation76_spill] sm:$0xff] }
 0xdc5   : > { %v9199_v41 = vpop.eup %6428  ;;  %v1328_v46 = vmul.f32 %v6427_v3, %v10456_v61  ;;  %6460 = vrcp.f32 %v9047_v8  ;;  %v1326_v3 = vmul.f32 %v6423_v38, %v10459_v0  ;;  %v9231_v38 = vpop.xlane.xlu1 %2953 }
 0xdc7   : > { %5865 = vrot.lane.b32.xlu1 %v5864_v28, %s6780_s6  ;;  %v1316_v28 = vmul.f32 %v6405_v43, %v10451_v21  ;;  %v6431_v43 = vpop.eup %6430  ;;  %6462 = vrcp.f32 %v9017_v39  ;;  %v10461_v39 = vld [vmem:[#allocation62_spill] sm:$0xff] }
 0xdc8   : > { %v6433_v14 = vpop.eup %6432  ;;  %6464 = vrcp.f32 %v9054_v35  ;;  %v10462_v35 = vld [vmem:[#allocation96_spill] sm:$0xff] }
 0xdc9   : > { %v5869_v16 = vpack.i.bf16 %v1317_v57, %v1316_v28  ;;  %v6435_v21 = vpop.eup %6434  ;;  %6466 = vrcp.f32 %v9033_v62  ;;  %v10463_v62 = vld [vmem:[#allocation78_spill] sm:$0xff] }
 0xdca   : > { %v9215_v28 = vpop.eup %6436  ;;  %v1766_v22 = vmul.f32 %v6435_v21, %v10460_v9  ;;  %6468 = vrcp.f32 %v9061_v2 }
 0xdcb   : > { %5875 = vrot.lane.b32.xlu1 %v5874_v34, %s6780_s6  ;;  %v10455_v34 = vld [vmem:[#allocation56_spill] sm:$0xff] }
 0xdcc   : > { %v1322_v51 = vmul.f32 %v6415_v55, %v10455_v34  ;;  %v1329_v55 = vmul.f32 %v6417_v20, %v10458_v49  ;;  %v1327_v20 = vmul.f32 %v9177_v31, %v10461_v39  ;;  %v1767_v34 = vmul.f32 %v6425_v59, %v10463_v62  ;;  %v10466_v31 = vld [vmem:[#allocation65_spill] sm:$0xff] }
 0xdcd   : > { %v10468_v59 = vld [vmem:[#allocation69_spill] sm:$0xff] }
 0xdce   : > { %v5884_v7 = vpack.i.bf16 %v1323_v37, %v1322_v51  ;;  %v5899_v57 = vpack.i.bf16 %v1329_v55, %v1328_v46  ;;  %v10464_v51 = vld [vmem:[#allocation77_spill] sm:$0xff]  ;;  %v5894_v2 = vpack.i.bf16 %v1327_v20, %v1326_v3  ;;  %v10465_v46 = vld [vmem:[#allocation79_spill] sm:$0xff]  ;;  %v5909_v55 = vpack.i.bf16 %v1767_v34, %v1766_v22  ;;  %v10469_v3 = vld [vmem:[#allocation82_spill] sm:$0xff] }
 0xdcf   : > { %5880 = vrot.lane.b32.xlu1 %v5879_v1, %s6780_s6  ;;  %v6439_v1 = vpop.eup %6438  ;;  %6470 = vrcp.f32 %v10462_v35  ;;  %v1765_v21 = vmul.f32 %v6421_v5, %v10465_v46  ;;  %v10471_v39 = vld [vmem:[#allocation81_spill] sm:$0xff] }
 0xdd0   : > { %v6441_v10 = vpop.eup %6440  ;;  %6472 = vrcp.f32 %v9068_v40  ;;  %v1768_v20 = vmul.f32 %v6439_v1, %v10471_v39 }
 0xdd1   : > { %v6443_v50 = vpop.eup %6442  ;;  %6474 = vrcp.f32 %v9056_v63 }
 0xdd2   : > { %5870 = vrot.lane.b32.xlu0 %v5869_v16, %s6780_s6  ;;  %v9228_v16 = vpop.eup %6444  ;;  %6476 = vrcp.f32 %v9075_v30  ;;  %v10470_v30 = vld [vmem:[#allocation66_spill] sm:$0xff] }
 0xdd3   : > { %5890 = vrot.lane.b32.xlu1 %v5889_v48, %s6780_s6  ;;  %v1764_v48 = vmul.f32 %v6431_v43, %v10464_v51  ;;  %v6447_v61 = vpop.eup %6446  ;;  %6478 = vrcp.f32 %v9063_v32  ;;  %v10472_v51 = vld [vmem:[#allocation84_spill] sm:$0xff] }
 0xdd4   : > { %v6449_v27 = vpop.eup %6448  ;;  %6480 = vrcp.f32 %v9082_v12  ;;  %v10474_v12 = vld [vmem:[#allocation83_spill] sm:$0xff] }
 0xdd5   : > { %v3762_v8 = vpop.xlane.xlu0 %3761  ;;  %v5904_v63 = vpack.i.bf16 %v1765_v21, %v1764_v48  ;;  %v10473_v48 = vld [vmem:[#allocation74_spill] sm:$0xff] }
 0xdd6   : > { %5885 = vrot.lane.b32.xlu0 %v5884_v7, %s6780_s6  ;;  %v3791_v37 = vsub.f32 %v10466_v31, %v3762_v8  ;;  %v10467_v7 = vld [vmem:[#allocation80_spill] sm:$0xff]  ;;  %v1771_v8 = vmul.f32 %v6433_v14, %v10469_v3  ;;  %v1769_v31 = vmul.f32 %v9199_v41, %v10474_v12 }
 0xdd7   : > { %5900 = vrot.lane.b32.xlu1 %v5899_v57, %s6780_s6  ;;  %v1770_v0 = vmul.f32 %v6443_v50, %v10467_v7  ;;  %v6451_v57 = vpop.eup %6450  ;;  %6482 = vrcp.f32 %v9070_v33  ;;  %v10478_v3 = vld [vmem:[#allocation88_spill] sm:$0xff] }
 0xdd8   : > { %v9244_v40 = vpop.eup %6452  ;;  %v3809_v62 = vmul.f32 1.442695, %v3791_v37  ;;  %6484 = vrcp.f32 %v9084_v4  ;;  %v10475_v37 = vld [vmem:[#allocation86_spill] sm:$0xff] }
 0xdd9   : > { %v3758_v49 = vpop.xlane.xlu0 %3757  ;;  %v6455_v9 = vpop.eup %6454  ;;  %v5919_v34 = vpack.i.bf16 %v1771_v8, %v1770_v0 }
 0xdda   : > { %v3789_v43 = vsub.f32 %v10468_v59, %v3758_v49  ;;  %5895 = vrot.lane.b32.xlu0 %v5894_v2, %s6780_s6  ;;  %v6457_v35 = vpop.eup %6456  ;;  %v1774_v2 = vmul.f32 %v6451_v57, %v10472_v51  ;;  %v1775_v49 = vmul.f32 %v6441_v10, %v10475_v37  ;;  %v5914_v57 = vpack.i.bf16 %v1769_v31, %v1768_v20  ;;  %v10484_v31 = vld [vmem:[#allocation108_spill] sm:$0xff] }
 0xddb   : > { %v3760_v5 = vpop.xlane.xlu1 %3759  ;;  %5910 = vrot.lane.b32.xlu1 %v5909_v55, %s6781_s7  ;;  %v6459_v46 = vpop.eup %6458  ;;  %v10476_v55 = vld [vmem:[#allocation85_spill] sm:$0xff] }
 0xddc   : > { %v3805_v22 = vmul.f32 1.442695, %v3789_v43  ;;  %v3790_v50 = vsub.f32 %v10470_v30, %v3760_v5  ;;  %v9259_v1 = vpop.eup %6460  ;;  %v1772_v7 = vmul.f32 %v6447_v61, %v10476_v55  ;;  %v5929_v5 = vpack.i.bf16 %v1775_v49, %v1774_v2  ;;  %v10479_v30 = vld [vmem:[#allocation73_spill] sm:$0xff]  ;;  %v10480_v61 = vld [vmem:[#allocation68_spill] sm:$0xff]  ;;  %v10482_v2 = vld [vmem:[#allocation71_spill] sm:$0xff] }
 0xddd   : > { %v3764_v32 = vpop.xlane.xlu0 %3763  ;;  %v6463_v0 = vpop.eup %6462  ;;  %v1778_v8 = vmul.f32 %v6459_v46, %v10478_v3 }
 0xdde   : > { %v3807_v14 = vmul.f32 1.442695, %v3790_v50  ;;  %v3792_v21 = vsub.f32 %v10473_v48, %v3764_v32  ;;  %5905 = vrot.lane.b32.xlu0 %v5904_v63, %s6781_s7  ;;  %6486 = vpow2.f32 %v3805_v22  ;;  %v6465_v59 = vpop.eup %6464  ;;  %v10477_v63 = vld [vmem:[#allocation87_spill] sm:$0xff]  ;;  %v10481_v32 = vld [vmem:[#allocation90_spill] sm:$0xff] }
 0xddf   : > { %v3770_v33 = vpop.xlane.xlu1 %3769  ;;  %5920 = vrot.lane.b32.xlu1 %v5919_v34, %s6781_s7  ;;  %v1773_v41 = vmul.f32 %v9215_v28, %v10477_v63  ;;  %v6467_v22 = vpop.eup %6466  ;;  %v1779_v28 = vmul.f32 %v6449_v27, %v10481_v32  ;;  %v10485_v27 = vld [vmem:[#allocation94_spill] sm:$0xff]  ;;  %v10492_v32 = vld [vmem:[#allocation72_spill] sm:$0xff] }
 0xde0   : > { %6488 = vpow2.f32 %v3807_v14  ;;  %v3811_v4 = vmul.f32 1.442695, %v3792_v21  ;;  %v9269_v10 = vpop.eup %6468  ;;  %v3795_v39 = vsub.f32 %v10480_v61, %v3770_v33  ;;  %v10483_v14 = vld [vmem:[#allocation89_spill] sm:$0xff]  ;;  %v2216_v33 = vmul.f32 %v6467_v22, %v10484_v31 }
 0xde1   : > { %6490 = vpow2.f32 %v3809_v62  ;;  %v3772_v43 = vpop.xlane.xlu0 %3771  ;;  %v5924_v62 = vpack.i.bf16 %v1773_v41, %v1772_v7  ;;  %v6471_v34 = vpop.eup %6470  ;;  %v1776_v48 = vmul.f32 %v6455_v9, %v10483_v14  ;;  %v5939_v12 = vpack.i.bf16 %v1779_v28, %v1778_v8  ;;  %v10488_v41 = vld [vmem:[#allocation109_spill] sm:$0xff] }
 0xde2   : > { %6492 = vpow2.f32 %v3811_v4  ;;  %v3796_v50 = vsub.f32 %v10479_v30, %v3772_v43  ;;  %5915 = vrot.lane.b32.xlu0 %v5914_v57, %s6781_s7  ;;  %v6473_v21 = vpop.eup %6472  ;;  %v10487_v57 = vld [vmem:[#allocation110_spill] sm:$0xff]  ;;  %v2214_v3 = vmul.f32 %v6463_v0, %v10488_v41  ;;  %v10489_v30 = vld [vmem:[#allocation112_spill] sm:$0xff] }
 0xde3   : > { %6494 = vrcp.f32 %v9077_v18  ;;  %v3766_v20 = vpop.xlane.xlu1 %3765  ;;  %5930 = vrot.lane.b32.xlu1 %v5929_v5, %s6781_s7  ;;  %v6475_v37 = vpop.eup %6474  ;;  %v2217_v43 = vmul.f32 %v6457_v35, %v10487_v57 }
 0xde4   : > { %6496 = vrcp.f32 %v9089_v44  ;;  %v3819_v51 = vmul.f32 1.442695, %v3796_v50  ;;  %v3793_v46 = vsub.f32 %v10482_v2, %v3766_v20  ;;  %v10486_v44 = vld [vmem:[#allocation91_spill] sm:$0xff]  ;;  %v9285_v4 = vpop.eup %6476  ;;  %v2220_v50 = vmul.f32 %v6475_v37, %v10489_v30 }
 0xde5   : > { %6498 = vrcp.f32 %v9098_v58  ;;  %v3768_v18 = vpop.xlane.xlu0 %3767  ;;  %v1777_v7 = vmul.f32 %v9228_v16, %v10486_v44  ;;  %v3817_v58 = vmul.f32 1.442695, %v3795_v39  ;;  %v6479_v5 = vpop.eup %6478  ;;  %v5949_v16 = vpack.i.bf16 %v2217_v43, %v2216_v33  ;;  %v10491_v20 = vld [vmem:[#allocation111_spill] sm:$0xff]  ;;  %v10497_v44 = vld [vmem:[#allocation116_spill] sm:$0xff] }
 0xde6   : > { %6500 = vrcp.f32 %v9096_v19  ;;  %v3813_v49 = vmul.f32 1.442695, %v3793_v46  ;;  %v3794_v55 = vsub.f32 %v10485_v27, %v3768_v18  ;;  %5925 = vrot.lane.b32.xlu0 %v5924_v62, %s6781_s7  ;;  %v6481_v8 = vpop.eup %6480  ;;  %v2215_v35 = vmul.f32 %v9244_v40, %v10491_v20  ;;  %v10494_v46 = vld [vmem:[#allocation113_spill] sm:$0xff]  ;;  %v10496_v27 = vld [vmem:[#allocation115_spill] sm:$0xff] }
 0xde7   : > { %6502 = vrcp.f32 %v9091_v36  ;;  %v3778_v9 = vpop.xlane.xlu1 %3777  ;;  %5940 = vrot.lane.b32.xlu1 %v5939_v12, %s6781_s7  ;;  %v5934_v63 = vpack.i.bf16 %v1777_v7, %v1776_v48  ;;  %v6483_v61 = vpop.eup %6482  ;;  %v10490_v36 = vld [vmem:[#allocation93_spill] sm:$0xff]  ;;  %v2218_v14 = vmul.f32 %v6471_v34, %v10494_v46  ;;  %v10495_v12 = vld [vmem:[#allocation75_spill] sm:$0xff] }
 0xde8   : > { %6504 = vpow2.f32 %v3819_v51  ;;  %v3815_v19 = vmul.f32 1.442695, %v3794_v55  ;;  %v6485_v62 = vpop.eup %6484  ;;  %v3799_v28 = vsub.f32 %v10492_v32, %v3778_v9  ;;  %v10493_v51 = vld [vmem:[#allocation114_spill] sm:$0xff]  ;;  %v5944_v33 = vpack.i.bf16 %v2215_v35, %v2214_v3  ;;  %v10498_v9 = vld [vmem:[#allocation97_spill] sm:$0xff]  ;;  %v10501_v35 = vld [vmem:[#allocation120_spill] sm:$0xff] }
 0xde9   : > { %6506 = vpow2.f32 %v3813_v49  ;;  %v3780_v22 = vpop.xlane.xlu0 %3779  ;;  %v2221_v2 = vmul.f32 %v6465_v59, %v10493_v51  ;;  %v2219_v55 = vmul.f32 %v9259_v1, %v10496_v27  ;;  %v2224_v7 = vmul.f32 %v6483_v61, %v10497_v44  ;;  %v10499_v1 = vld [vmem:[#allocation118_spill] sm:$0xff]  ;;  %v10507_v27 = vld [vmem:[#allocation95_spill] sm:$0xff] }
 0xdea   : > { %6508 = vpow2.f32 %v3815_v19  ;;  %v3800_v39 = vsub.f32 %v10490_v36, %v3780_v22  ;;  %5935 = vrot.lane.b32.xlu0 %v5934_v63, %s6781_s7  ;;  %v3825_v19 = vmul.f32 1.442695, %v3799_v28  ;;  %v2225_v3 = vmul.f32 %v6473_v21, %v10499_v1  ;;  %v10503_v21 = vld [vmem:[#allocation119_spill] sm:$0xff] }
 0xdeb   : > { %6510 = vpow2.f32 %v3817_v58  ;;  %v3774_v0 = vpop.xlane.xlu1 %3773  ;;  %5950 = vrot.lane.b32.xlu1 %v5949_v16, %s6782_s8  ;;  %v9300_v48 = vpop.eup %6486  ;;  %v5959_v49 = vpack.i.bf16 %v2221_v2, %v2220_v50  ;;  %v5954_v41 = vpack.i.bf16 %v2219_v55, %v2218_v14  ;;  %v10500_v50 = vld [vmem:[#allocation117_spill] sm:$0xff]  ;;  %v2228_v32 = vmul.f32 %v6485_v62, %v10501_v35  ;;  %v10504_v14 = vld [vmem:[#allocation92_spill] sm:$0xff]  ;;  %v10512_v35 = vld [vmem:[#allocation127_spill] sm:$0xff] }
 0xdec   : > { %v3827_v18 = vmul.f32 1.442695, %v3800_v39  ;;  %v3797_v31 = vsub.f32 %v10495_v12, %v3774_v0  ;;  %v2222_v61 = vmul.f32 %v6479_v5, %v10500_v50  ;;  %v5969_v20 = vpack.i.bf16 %v2225_v3, %v2224_v7  ;;  %v10502_v0 = vld [vmem:[#allocation99_spill] sm:$0xff]  ;;  %v10505_v12 = vld [vmem:[#allocation122_spill] sm:$0xff]  ;;  %v10506_v62 = vld [vmem:[#allocation121_spill] sm:$0xff] }
 0xded   : > { %v9303_v37 = vpop.eup %6488  ;;  %v3776_v40 = vpop.xlane.xlu0 %3775  ;;  %v2223_v2 = vmul.f32 %v9269_v10, %v10503_v21  ;;  %v10511_v50 = vld [vmem:[#allocation128_spill] sm:$0xff]  ;;  %v10513_v21 = vld [vmem:[#allocation129_spill] sm:$0xff] }
 0xdee   : > { %v9308_v58 = vpop.eup %6490  ;;  %v3821_v59 = vmul.f32 1.442695, %v3797_v31  ;;  %v3798_v34 = vsub.f32 %v10498_v9, %v3776_v40  ;;  %5945 = vrot.lane.b32.xlu0 %v5944_v33, %s6782_s8  ;;  %v3869_v57 = vpack.c.bf16 %v9303_v37, %v9300_v48  ;;  %6512 = vpow2.f32 %v3827_v18  ;;  %v10508_v9 = vld [vmem:[#allocation123_spill] sm:$0xff] }
 0xdef   : > { %v9314_v43 = vpop.eup %6492  ;;  %v3786_v63 = vpop.xlane.xlu1 %3785  ;;  %5960 = vrot.lane.b32.xlu1 %v5959_v49, %s6782_s8  ;;  %v2229_v31 = vmul.f32 %v6481_v8, %v10505_v12  ;;  %v5964_v44 = vpack.i.bf16 %v2223_v2, %v2222_v61  ;;  %v10510_v8 = vld [vmem:[#allocation102_spill] sm:$0xff] }
 0xdf0   : > { %v6495_v22 = vpop.eup %6494  ;;  %v3870_v16 = vpack.c.bf16 %v9314_v43, %v9308_v58  ;;  %v3823_v30 = vmul.f32 1.442695, %v3798_v34  ;;  %5745 = vmatprep.mubr.bf16.mxu0 %v3869_v57  ;;  %6514 = vpow2.f32 %v3821_v59  ;;  %v3803_v5 = vsub.f32 %v10504_v14, %v3786_v63  ;;  %v10509_v57 = vld [vmem:[#allocation126_spill] sm:$0xff] }
 0xdf1   : > { %v6497_v36 = vpop.eup %6496  ;;  %v3788_v39 = vpop.xlane.xlu0 %3787  ;;  %v2226_v33 = vmul.f32 %v6495_v22, %v10506_v62  ;;  %v5979_v10 = vpack.i.bf16 %v2229_v31, %v2228_v32  ;;  %v2227_v34 = vmul.f32 %v9285_v4, %v10508_v9 }
 0xdf2   : > { %v6499_v28 = vpop.eup %6498  ;;  %6516 = vpow2.f32 %v3823_v30  ;;  %v3804_v51 = vsub.f32 %v10502_v0, %v3788_v39  ;;  %5955 = vrot.lane.b32.xlu0 %v5954_v41, %s6782_s8  ;;  %5746 = vmatmul.mubr.bf16.vlgmr.msra.gmra.mxu0 %v3870_v16  ;;  %v3833_v22 = vmul.f32 1.442695, %v3803_v5  ;;  %v2665_v2 = vmul.f32 %v6497_v36, %v10513_v21 }
 0xdf3   : > { %v6501_v46 = vpop.eup %6500  ;;  %6518 = vpow2.f32 %v3825_v19  ;;  %v3782_v18 = vpop.xlane.xlu1 %3781  ;;  %5970 = vrot.lane.b32.xlu1 %v5969_v20, %s6782_s8  ;;  %v2666_v19 = vmul.f32 %v6499_v28, %v10509_v57  ;;  %v5974_v30 = vpack.i.bf16 %v2227_v34, %v2226_v33 }
 0xdf4   : > { %v6503_v40 = vpop.eup %6502  ;;  %v3835_v49 = vmul.f32 1.442695, %v3804_v51  ;;  %v3801_v55 = vsub.f32 %v10507_v27, %v3782_v18  ;;  %v2667_v61 = vmul.f32 %v6501_v46, %v10511_v50 }
 0xdf5   : > { %v9331_v7 = vpop.eup %6504  ;;  %v3784_v59 = vpop.xlane.xlu0 %3783  ;;  %v2664_v32 = vmul.f32 %v6503_v40, %v10512_v35 }
 0xdf6   : > { %v9336_v63 = vpop.eup %6506  ;;  %v3829_v41 = vmul.f32 1.442695, %v3801_v55  ;;  %v3802_v1 = vsub.f32 %v10510_v8, %v3784_v59  ;;  %5965 = vrot.lane.b32.xlu0 %v5964_v44, %s6782_s8  ;;  %6520 = vpow2.f32 %v3835_v49  ;;  %v5989_v0 = vpack.i.bf16 %v2667_v61, %v2666_v19 }
 0xdf7   : > { %v9340_v3 = vpop.eup %6508  ;;  %v9342_v16 = vpop.xlane.xlu1 %2957  ;;  %5980 = vrot.lane.b32.xlu1 %v5979_v10, %s6782_s8  ;;  %v5984_v14 = vpack.i.bf16 %v2665_v2, %v2664_v32  ;;  %v10514_v32 = vld [vmem:[#allocation101_spill] sm:$0xff] }
 0xdf8   : > { %v9346_v4 = vpop.eup %6510  ;;  %v3831_v39 = vmul.f32 1.442695, %v3802_v1  ;;  %v3871_v20 = vpack.c.bf16 %v9340_v3, %v9336_v63  ;;  %6522 = vpow2.f32 %v3829_v41 }
 0xdf9   : > { %v9351_v28 = vpop.xlane.xlu0 %2955  ;;  %v3872_v51 = vpack.c.bf16 %v9331_v7, %v9346_v4 }
 0xdfa   : > { %6524 = vpow2.f32 %v3831_v39  ;;  %5975 = vrot.lane.b32.xlu0 %v5974_v30, %s6782_s8  ;;  %5749 = vmatprep.mubr.bf16.mxu0 %v3871_v20 }
 0xdfb   : > { %6526 = vpow2.f32 %v3833_v22  ;;  %v9357_v46 = vpop.xlane.xlu1 %2961  ;;  %5990 = vrot.lane.b32.xlu1 %v5989_v0, %s6783_s9  ;;  %5750 = vmatmul.mubr.bf16.gmra.mxu0 %v3872_v51  ;;  %v9360_v5 = vpop.eup %6512  ;;  %v10515_v51 = vld [vmem:[#allocation98_spill] sm:$0xff] }
 0xdfc   : > { %6528 = vrcp.f32 %v9103_v15 }
 0xdfd   : > { %v9362_v18 = vpop.xlane.xlu0 %2959  ;;  %v9364_v12 = vpop.eup %6514  ;;  %6530 = vrcp.f32 %v9110_v13 }
 0xdfe   : > { %5985 = vrot.lane.b32.xlu0 %v5984_v14, %s6783_s9  ;;  %6532 = vrcp.f32 %v9117_v60 }
 0xdff   : > { %v9367_v31 = vpop.eup %6516  ;;  %v9369_v62 = vpop.xlane.xlu1 %2965  ;;  %6534 = vrcp.f32 %v10514_v32 }
 0xe00   : > { %v9371_v36 = vpop.eup %6518  ;;  %v3873_v33 = vpack.c.bf16 %v9367_v31, %v9364_v12  ;;  %6536 = vrcp.f32 %v9124_v52 }
 0xe01   : > { %v9375_v40 = vpop.xlane.xlu0 %2963  ;;  %v3874_v49 = vpack.c.bf16 %v9360_v5, %v9371_v36  ;;  %6538 = vrcp.f32 %v10515_v51 }
 0xe02   : > { %5753 = vmatprep.mubr.bf16.mxu0 %v3873_v33  ;;  %6540 = vrcp.f32 %v9135_v53 }
 0xe03   : > { %v9379_v27 = vpop.xlane.xlu1 %3387  ;;  %5754 = vmatmul.mubr.bf16.gmra.mxu0 %v3874_v49  ;;  %v9381_v55 = vpop.eup %6520  ;;  %6542 = vrcp.f32 %v9119_v45  ;;  %v10516_v49 = vld [vmem:[#allocation131_spill] sm:$0xff] }
 0xe04   : > { %6544 = vrcp.f32 %v9148_v54 }
 0xe05   : > { %v9383_v44 = vpop.xlane.xlu0 %2967  ;;  %v9385_v59 = vpop.eup %6522  ;;  %6546 = vrcp.f32 %v9126_v6 }
 0xe06   : > { %6548 = vrcp.f32 %v9159_v56 }
 0xe07   : > { %v9387_v10 = vpop.eup %6524  ;;  %v9389_v9 = vpop.xlane.xlu1 %3391  ;;  %6550 = vrcp.f32 %v9137_v24 }
 0xe08   : > { %v9391_v34 = vpop.eup %6526  ;;  %v3875_v57 = vpack.c.bf16 %v9387_v10, %v9385_v59  ;;  %6552 = vrcp.f32 %v9171_v25 }
 0xe09   : > { %v9395_v19 = vpop.xlane.xlu0 %3389  ;;  %v3876_v41 = vpack.c.bf16 %v9381_v55, %v9391_v34  ;;  %v9443_v45 = vpop.eup %6528  ;;  %6554 = vrcp.f32 %v9150_v29 }
 0xe0a   : > { %5757 = vmatprep.mubr.bf16.mxu0 %v3875_v57  ;;  %v9447_v6 = vpop.eup %6530  ;;  %6556 = vrcp.f32 %v9187_v42 }
 0xe0b   : > { %v9399_v8 = vpop.xlane.xlu1 %3395  ;;  %5758 = vmatmul.mubr.bf16.gmra.mxu0 %v3876_v41  ;;  %v9450_v53 = vpop.eup %6532  ;;  %6558 = vrcp.f32 %v9161_v26 }
 0xe0c   : > { %v6535_v54 = vpop.eup %6534  ;;  %6560 = vrcp.f32 %v9207_v47 }
 0xe0d   : > { %v9401_v1 = vpop.xlane.xlu0 %3393  ;;  %v9455_v56 = vpop.eup %6536  ;;  %6562 = vrcp.f32 %v9173_v11 }
 0xe0e   : > { %v9459_v25 = vpop.eup %6538  ;;  %6564 = vrcp.f32 %v9189_v17 }
 0xe0f   : > { %v9403_v22 = vpop.xlane.xlu1 %3399  ;;  %v9462_v42 = vpop.eup %6540  ;;  %6566 = vrcp.f32 %v9209_v23 }
 0xe10   : > { %6568 = vrcp.f32 %v9231_v38 }
 0xe11   : > { %v9405_v30 = vpop.xlane.xlu0 %3397  ;;  %6570 = vrcp.f32 %v9342_v16 }
 0xe12   : > { %6572 = vrcp.f32 %v9351_v28 }
 0xe13   : > { %v9407_v50 = vpop.xlane.xlu1 %3403 }
 0xe15   : > { %v9409_v61 = vpop.xlane.xlu0 %3401 }
 0xe17   : > { %v9411_v39 = vpop.xlane.xlu1 %3407 }
 0xe19   : > { %v9413_v20 = vpop.xlane.xlu0 %3405 }
 0xe1b   : > { %v9417_v35 = vpop.xlane.xlu1 %3411 }
 0xe1d   : > { %3843 = vadd.xlane.f32.xlu0 %v9314_v43  ;;  %v9422_v0 = vpop.xlane.xlu0 %3409 }
 0xe1f   : > { %v9426_v21 = vpop.xlane.xlu1 %3415  ;;  %3841 = vadd.xlane.f32.xlu1 %v9308_v58 }
 0xe21   : > { %3839 = vadd.xlane.f32.xlu0 %v9303_v37  ;;  %v9432_v15 = vpop.xlane.xlu0 %3413 }
 0xe23   : > { %v664_v13 = vpop.xlane.xlu1 %663  ;;  %3837 = vadd.xlane.f32.xlu1 %v9300_v48  ;;  %v6543_v48 = vpop.eup %6542  ;;  %6574 = vrcp.f32 %v9357_v46 }
 0xe24   : > { %v9467_v47 = vpop.eup %6544  ;;  %6576 = vrcp.f32 %v9362_v18 }
 0xe25   : > { %3851 = vadd.xlane.f32.xlu0 %v9331_v7  ;;  %v9440_v60 = vpop.xlane.xlu0 %3417  ;;  %v9471_v37 = vpop.eup %6546  ;;  %6578 = vrcp.f32 %v664_v13  ;;  %v10518_v13 = vld [vmem:[#allocation130_spill] sm:$0xff] }
 0xe26   : > { %v9474_v17 = vpop.eup %6548 }
 0xe27   : > { %v668_v52 = vpop.xlane.xlu1 %667  ;;  %3849 = vadd.xlane.f32.xlu1 %v9346_v4  ;;  %v6551_v58 = vpop.eup %6550 }
 0xe28   : > { %v9479_v38 = vpop.eup %6552 }
 0xe29   : > { %3847 = vadd.xlane.f32.xlu0 %v9340_v3  ;;  %v666_v24 = vpop.xlane.xlu0 %665  ;;  %v9482_v7 = vpop.eup %6554 }
 0xe2a   : > { %6580 = vrcp.f32 %v666_v24  ;;  %v10519_v24 = vld [vmem:[#allocation135_spill] sm:$0xff] }
 0xe2b   : > { %v672_v29 = vpop.xlane.xlu1 %671  ;;  %3845 = vadd.xlane.f32.xlu1 %v9336_v63  ;;  %v9484_v63 = vpop.eup %6556  ;;  %6582 = vrcp.f32 %v9369_v62 }
 0xe2c   : > { %v9488_v16 = vpop.eup %6558  ;;  %6584 = vrcp.f32 %v668_v52  ;;  %v2670_v52 = vmul.f32 %v9459_v25, %v10518_v13  ;;  %v10522_v25 = vld [vmem:[#allocation134_spill] sm:$0xff] }
 0xe2d   : > { %3859 = vadd.xlane.f32.xlu0 %v9360_v5  ;;  %v670_v26 = vpop.xlane.xlu0 %669  ;;  %v9490_v4 = vpop.eup %6560  ;;  %6586 = vrcp.f32 %v672_v29  ;;  %v10526_v13 = vld [vmem:[#allocation22_spill] sm:$0xff] }
 0xe2e   : > { %v9493_v2 = vpop.eup %6562 }
 0xe2f   : > { %v676_v11 = vpop.xlane.xlu1 %675  ;;  %3857 = vadd.xlane.f32.xlu1 %v9371_v36  ;;  %v9495_v46 = vpop.eup %6564 }
 0xe30   : > { %v9498_v5 = vpop.eup %6566 }
 0xe31   : > { %3855 = vadd.xlane.f32.xlu0 %v9367_v31  ;;  %v674_v23 = vpop.xlane.xlu0 %673  ;;  %v9500_v18 = vpop.eup %6568 }
 0xe32   : > { %6588 = vrcp.f32 %v674_v23  ;;  %v9503_v31 = vpop.eup %6570 }
 0xe33   : > { %v680_v43 = vpop.xlane.xlu1 %679  ;;  %3853 = vadd.xlane.f32.xlu1 %v9364_v12  ;;  %6590 = vrcp.f32 %v670_v26  ;;  %v9505_v62 = vpop.eup %6572  ;;  %v10520_v26 = vld [vmem:[#allocation132_spill] sm:$0xff] }
 0xe34   : > { %6592 = vrcp.f32 %v676_v11  ;;  %v9507_v33 = vpop.eup %6574  ;;  %v2671_v11 = vmul.f32 %v9447_v6, %v10520_v26 }
 0xe35   : > { %3867 = vadd.xlane.f32.xlu0 %v9381_v55  ;;  %v678_v3 = vpop.xlane.xlu0 %677  ;;  %v9510_v55 = vmul.f32 %v6535_v54, %v10516_v49  ;;  %v9522_v54 = vmul.f32 %v6543_v48, %v10519_v24  ;;  %v9536_v48 = vmul.f32 %v9471_v37, %v10522_v25  ;;  %v10525_v49 = vld [vmem:[#allocation20_spill] sm:$0xff] }
 0xe36   : > { %6594 = vrcp.f32 %v678_v3  ;;  %v5999_v37 = vpack.i.bf16 %v2671_v11, %v2670_v52 }
 0xe37   : > { %v684_v28 = vpop.xlane.xlu1 %683  ;;  %3865 = vadd.xlane.f32.xlu1 %v9391_v34  ;;  %6596 = vrcp.f32 %v680_v43 }
 0xe39   : > { %3863 = vadd.xlane.f32.xlu0 %v9387_v10  ;;  %v682_v14 = vpop.xlane.xlu0 %681  ;;  %v9512_v10 = vpop.eup %6576 }
 0xe3a   : > { %6598 = vrcp.f32 %v682_v14  ;;  %v6579_v57 = vpop.eup %6578 }
 0xe3b   : > { %v688_v12 = vpop.xlane.xlu1 %687  ;;  %3861 = vadd.xlane.f32.xlu1 %v9385_v59  ;;  %6600 = vrcp.f32 %v684_v28  ;;  %v10517_v59 = vld [vmem:[#allocation133_spill] sm:$0xff]  ;;  %v6581_v32 = vpop.eup %6580  ;;  %v10523_v28 = vld [vmem:[#allocation136_spill] sm:$0xff] }
 0xe3c   : > { %v9517_v41 = vmul.f32 %v9443_v45, %v10517_v59  ;;  %v9524_v29 = vpop.eup %6582  ;;  %v10521_v45 = vld [vmem:[#allocation137_spill] sm:$0xff]  ;;  %v9540_v14 = vmul.f32 %v9455_v56, %v10523_v28  ;;  %v864_v59 = vmul.f32 %v6579_v57, %v10525_v49  ;;  %v865_v24 = vmul.f32 %v6581_v32, %v10526_v13  ;;  %v10528_v32 = vld [vmem:[#allocation140_spill] sm:$0xff] }
 0xe3d   : > { %v686_v36 = vpop.xlane.xlu0 %685  ;;  %v9532_v23 = vmul.f32 %v9450_v53, %v10521_v45  ;;  %v6585_v43 = vpop.eup %6584  ;;  %v10527_v56 = vld [vmem:[#allocation141_spill] sm:$0xff] }
 0xe3e   : > { %6602 = vrcp.f32 %v686_v36  ;;  %v6587_v36 = vpop.eup %6586  ;;  %v9552_v25 = vmul.f32 %v9462_v42, %v10527_v56  ;;  %v6009_v42 = vpack.i.bf16 %v9540_v14, %v9536_v48  ;;  %v10533_v48 = vld [vmem:[#allocation21_spill] sm:$0xff] }
 0xe3f   : > { %v692_v34 = vpop.xlane.xlu1 %691  ;;  %6604 = vrcp.f32 %v9375_v40 }
 0xe40   : > { %6606 = vrcp.f32 %v688_v12  ;;  %v10524_v12 = vld [vmem:[#allocation139_spill] sm:$0xff] }
 0xe41   : > { %v690_v51 = vpop.xlane.xlu0 %689  ;;  %v9543_v6 = vmul.f32 %v6551_v58, %v10524_v12  ;;  %v10529_v12 = vld [vmem:[#allocation153_spill] sm:$0xff] }
 0xe42   : > { %6608 = vrcp.f32 %v690_v51  ;;  %v9571_v49 = vmul.f32 %v9474_v17, %v10529_v12 }
 0xe43   : > { %6610 = vrcp.f32 %v692_v34  ;;  %v5866_v3 = vpop.permute.xlu1 %5865  ;;  %v6589_v34 = vpop.eup %6588 }
 0xe44   : > { %v5868_v51 = vunpack.i.h.bf16 %v5866_v3  ;;  %v5867_v53 = vunpack.i.l.bf16 %v5866_v3  ;;  %6612 = vrcp.f32 %v9379_v27  ;;  %v6591_v58 = vpop.eup %6590  ;;  %v9562_v27 = vmul.f32 %v9467_v47, %v10528_v32  ;;  %v10534_v3 = vld [vmem:[#allocation138_spill] sm:$0xff] }
 0xe45   : > { %v694_v26 = vpop.xlane.xlu0 %693  ;;  %v6593_v52 = vpop.eup %6592  ;;  %v867_v14 = vmul.f32 %v6591_v58, %v10533_v48  ;;  %v9580_v40 = vmul.f32 %v9482_v7, %v10534_v3  ;;  %v10537_v48 = vld [vmem:[#allocation152_spill] sm:$0xff] }
 0xe46   : > { %v9555_v28 = vsel %vm437_vm0, %v864_v59, %v5867_v53  ;;  %v9558_v57 = vsel %vm437_vm0, %v865_v24, %v5868_v51  ;;  %6614 = vrcp.f32 %v694_v26  ;;  %v6595_v59 = vpop.eup %6594  ;;  %v10530_v51 = vld [vmem:[#allocation24_spill] sm:$0xff]  ;;  %v10531_v24 = vld [vmem:[#allocation26_spill] sm:$0xff]  ;;  %v9593_v7 = vmul.f32 %v9479_v38, %v10537_v48 }
 0xe47   : > { %6616 = vrcp.f32 %v9383_v44  ;;  %v5876_v11 = vpop.permute.xlu1 %5875  ;;  %v868_v53 = vmul.f32 %v6587_v36, %v10530_v51  ;;  %v869_v26 = vmul.f32 %v6589_v34, %v10531_v24  ;;  %v6597_v56 = vpop.eup %6596  ;;  %v10532_v44 = vld [vmem:[#allocation19_spill] sm:$0xff]  ;;  %v10536_v24 = vld [vmem:[#allocation25_spill] sm:$0xff] }
 0xe48   : > { %v5878_v13 = vunpack.i.h.bf16 %v5876_v11  ;;  %v5877_v47 = vunpack.i.l.bf16 %v5876_v11  ;;  %6618 = vrcp.f32 %v9389_v9  ;;  %v866_v32 = vmul.f32 %v6585_v43, %v10532_v44  ;;  %v6599_v17 = vpop.eup %6598  ;;  %v10535_v9 = vld [vmem:[#allocation23_spill] sm:$0xff] }
 0xe49   : > { %v5871_v45 = vpop.permute.xlu0 %5870  ;;  %v6601_v51 = vpop.eup %6600  ;;  %6620 = vrcp.f32 %v9395_v19  ;;  %v870_v43 = vmul.f32 %v6593_v52, %v10535_v9  ;;  %v871_v44 = vmul.f32 %v6595_v59, %v10536_v24  ;;  %v10538_v52 = vld [vmem:[#allocation28_spill] sm:$0xff] }
 0xe4a   : > { %v9583_v12 = vsel %vm437_vm0, %v868_v53, %v5877_v47  ;;  %v9586_v36 = vsel %vm437_vm0, %v869_v26, %v5878_v13  ;;  %v5873_v34 = vunpack.i.h.bf16 %v5871_v45  ;;  %v5872_v11 = vunpack.i.l.bf16 %v5871_v45  ;;  %v10539_v26 = vld [vmem:[#allocation30_spill] sm:$0xff] }
 0xe4b   : > { %v5881_v58 = vpop.permute.xlu1 %5880  ;;  %v6603_v3 = vpop.eup %6602  ;;  %6622 = vrcp.f32 %v9399_v8  ;;  %v872_v59 = vmul.f32 %v6597_v56, %v10538_v52  ;;  %v873_v38 = vmul.f32 %v6599_v17, %v10539_v26  ;;  %v10540_v8 = vld [vmem:[#allocation27_spill] sm:$0xff]  ;;  %v10541_v17 = vld [vmem:[#allocation29_spill] sm:$0xff] }
 0xe4c   : > { %v9596_v53 = vsel %vm437_vm0, %v867_v14, %v5873_v34  ;;  %v9599_v13 = vsel %vm437_vm0, %v866_v32, %v5872_v11  ;;  %v5883_v45 = vunpack.i.h.bf16 %v5881_v58  ;;  %v5882_v47 = vunpack.i.l.bf16 %v5881_v58  ;;  %6000 = vrot.lane.b32.xlu1 %v5999_v37, %s6783_s9  ;;  %v9602_v19 = vpop.eup %6604 }
 0xe4d   : > { %v5886_v9 = vpop.permute.xlu0 %5885  ;;  %v6019_v14 = vpack.i.bf16 %v9562_v27, %v9580_v40  ;;  %v6607_v34 = vpop.eup %6606  ;;  %6624 = vrcp.f32 %v9401_v1  ;;  %v874_v56 = vmul.f32 %v6601_v51, %v10540_v8  ;;  %v875_v52 = vmul.f32 %v6603_v3, %v10541_v17  ;;  %v10543_v27 = vld [vmem:[#allocation150_spill] sm:$0xff]  ;;  %v10544_v3 = vld [vmem:[#allocation32_spill] sm:$0xff]  ;;  %v10546_v8 = vld [vmem:[#allocation157_spill] sm:$0xff] }
 0xe4e   : > { %v9610_v32 = vsel %vm437_vm0, %v870_v43, %v5882_v47  ;;  %v9613_v11 = vsel %vm437_vm0, %v871_v44, %v5883_v45  ;;  %v5888_v37 = vunpack.i.h.bf16 %v5886_v9  ;;  %v5887_v58 = vunpack.i.l.bf16 %v5886_v9 }
 0xe4f   : > { %v6609_v24 = vpop.eup %6608  ;;  %v5891_v48 = vpop.permute.xlu1 %5890  ;;  %v10542_v40 = vpack.i.bf16 %v9517_v41, %v9510_v55  ;;  %v3116_v43 = vmul.f32 %v9493_v2, %v10543_v27  ;;  %6626 = vrcp.f32 %v9403_v22  ;;  %v876_v26 = vmul.f32 %v6607_v34, %v10544_v3  ;;  %v10545_v55 = vld [vmem:[#allocation34_spill] sm:$0xff]  ;;  %v10547_v34 = vld [vmem:[#allocation31_spill] sm:$0xff] }
 0xe50   : > { %v6611_v44 = vpop.eup %6610  ;;  %v9625_v45 = vsel %vm437_vm0, %v873_v38, %v5888_v37  ;;  %v9628_v47 = vsel %vm437_vm0, %v872_v59, %v5887_v58  ;;  %v5893_v1 = vunpack.i.h.bf16 %v5891_v48  ;;  %v5892_v51 = vunpack.i.l.bf16 %v5891_v48  ;;  %6010 = vrot.lane.b32.xlu1 %v6009_v42, %s6783_s9 }
 0xe51   : > { %5995 = vrot.lane.b32.xlu0 %v10542_v40, %s6783_s9  ;;  %v877_v41 = vmul.f32 %v6609_v24, %v10545_v55  ;;  %v5896_v9 = vpop.permute.xlu0 %5895  ;;  %v9636_v2 = vmul.f32 %v9484_v63, %v10546_v8  ;;  %v9638_v38 = vpop.eup %6612  ;;  %6628 = vrcp.f32 %v9405_v30  ;;  %v878_v24 = vmul.f32 %v6611_v44, %v10547_v34 }
 0xe52   : > { %v9641_v59 = vsel %vm437_vm0, %v874_v56, %v5892_v51  ;;  %v9644_v37 = vsel %vm437_vm0, %v875_v52, %v5893_v1  ;;  %v5898_v42 = vunpack.i.h.bf16 %v5896_v9  ;;  %v5897_v58 = vunpack.i.l.bf16 %v5896_v9  ;;  %v10549_v56 = vld [vmem:[#allocation151_spill] sm:$0xff] }
 0xe53   : > { %v6615_v22 = vpop.eup %6614  ;;  %v5901_v48 = vpop.permute.xlu1 %5900  ;;  %v10548_v63 = vpack.i.bf16 %v9532_v23, %v9522_v54  ;;  %v6029_v17 = vpack.i.bf16 %v9593_v7, %v3116_v43  ;;  %v3114_v40 = vmul.f32 %v9488_v16, %v10549_v56  ;;  %6630 = vrcp.f32 %v9409_v61  ;;  %v10550_v54 = vld [vmem:[#allocation33_spill] sm:$0xff]  ;;  %v10551_v43 = vld [vmem:[#allocation154_spill] sm:$0xff] }
 0xe54   : > { %v6617_v52 = vpop.eup %6616  ;;  %v9656_v27 = vsel %vm437_vm0, %v877_v41, %v5898_v42  ;;  %v9659_v1 = vsel %vm437_vm0, %v876_v26, %v5897_v58  ;;  %v5903_v30 = vunpack.i.h.bf16 %v5901_v48  ;;  %v5902_v44 = vunpack.i.l.bf16 %v5901_v48  ;;  %6020 = vrot.lane.b32.xlu1 %v6019_v14, %s6783_s9 }
 0xe55   : > { %6005 = vrot.lane.b32.xlu0 %v10548_v63, %s6783_s9  ;;  %v879_v23 = vmul.f32 %v6615_v22, %v10550_v54  ;;  %v5906_v7 = vpop.permute.xlu0 %5905  ;;  %v3120_v16 = vmul.f32 %v9498_v5, %v10551_v43  ;;  %v9666_v51 = vpop.eup %6618  ;;  %6632 = vrcp.f32 %v9407_v50  ;;  %v10552_v41 = vpack.i.bf16 %v9552_v25, %v9543_v6  ;;  %v10553_v5 = vld [vmem:[#allocation156_spill] sm:$0xff]  ;;  %v10554_v50 = vld [vmem:[#allocation155_spill] sm:$0xff] }
 0xe56   : > { %v9670_v3 = vsel %vm437_vm0, %v878_v24, %v5902_v44  ;;  %v5908_v26 = vunpack.i.h.bf16 %v5906_v7  ;;  %v5907_v55 = vunpack.i.l.bf16 %v5906_v7  ;;  %6634 = vrcp.f32 %v9411_v39  ;;  %v9684_v42 = vpop.eup %6620  ;;  %v10555_v25 = vld [vmem:[#allocation160_spill] sm:$0xff] }
 0xe57   : > { %v9674_v61 = vsel %vm437_vm0, %v879_v23, %v5903_v30  ;;  %v5911_v14 = vpop.permute.xlu1 %5910  ;;  %v3121_v9 = vmul.f32 %v9490_v4, %v10553_v5  ;;  %v3118_v8 = vmul.f32 %v9495_v46, %v10554_v50  ;;  %6636 = vrcp.f32 %v9422_v0  ;;  %v10558_v23 = vld [vmem:[#allocation159_spill] sm:$0xff]  ;;  %v10559_v7 = vld [vmem:[#allocation164_spill] sm:$0xff] }
 0xe58   : > { %v9688_v39 = vsel %vm4494_vm2, %v9558_v57, %v5908_v26  ;;  %v9692_v58 = vsel %vm4494_vm2, %v9555_v28, %v5907_v55  ;;  %v5913_v22 = vunpack.i.h.bf16 %v5911_v14  ;;  %v5912_v34 = vunpack.i.l.bf16 %v5911_v14  ;;  %6030 = vrot.lane.b32.xlu1 %v6029_v17, %s6784_s10  ;;  %v9699_v57 = vpop.eup %6622 }
 0xe59   : > { %6015 = vrot.lane.b32.xlu0 %v10552_v41, %s6783_s9  ;;  %v5916_v4 = vpop.permute.xlu0 %5915  ;;  %v6024_v46 = vpack.i.bf16 %v9571_v49, %v3114_v40  ;;  %v6039_v6 = vpack.i.bf16 %v3121_v9, %v3120_v16  ;;  %v3125_v24 = vmul.f32 %v9512_v10, %v10555_v25  ;;  %6638 = vrcp.f32 %v9413_v20  ;;  %v10556_v10 = vld [vmem:[#allocation158_spill] sm:$0xff]  ;;  %v10557_v40 = vld [vmem:[#allocation161_spill] sm:$0xff] }
 0xe5a   : > { %v9703_v28 = vsel %vm4494_vm2, %v9599_v13, %v5912_v34  ;;  %v9707_v48 = vsel %vm4494_vm2, %v9596_v53, %v5913_v22  ;;  %v5918_v63 = vunpack.i.h.bf16 %v5916_v4  ;;  %v5917_v17 = vunpack.i.l.bf16 %v5916_v4  ;;  %v6625_v30 = vpop.eup %6624  ;;  %v10562_v22 = vld [vmem:[#allocation41_spill] sm:$0xff] }
 0xe5b   : > { %v5921_v0 = vpop.permute.xlu1 %5920  ;;  %v6034_v49 = vpack.i.bf16 %v9636_v2, %v3118_v8  ;;  %v3124_v56 = vmul.f32 %v9503_v31, %v10556_v10  ;;  %v3123_v13 = vmul.f32 %v9505_v62, %v10557_v40  ;;  %6640 = vrcp.f32 %v9440_v60  ;;  %v10561_v8 = vld [vmem:[#allocation165_spill] sm:$0xff] }
 0xe5c   : > { %v9718_v53 = vsel %vm4494_vm2, %v9586_v36, %v5918_v63  ;;  %v9722_v44 = vsel %vm4494_vm2, %v9583_v12, %v5917_v17  ;;  %v5923_v20 = vunpack.i.h.bf16 %v5921_v0  ;;  %v5922_v54 = vunpack.i.l.bf16 %v5921_v0  ;;  %6040 = vrot.lane.b32.xlu1 %v6039_v6, %s6784_s10  ;;  %v6627_v16 = vpop.eup %6626  ;;  %v10564_v63 = vld [vmem:[#allocation37_spill] sm:$0xff] }
 0xe5d   : > { %6025 = vrot.lane.b32.xlu0 %v6024_v46, %s6784_s10  ;;  %v5926_v2 = vpop.permute.xlu0 %5925  ;;  %v6049_v31 = vpack.i.bf16 %v3125_v24, %v3124_v56  ;;  %v3122_v62 = vmul.f32 %v9500_v18, %v10558_v23  ;;  %v3129_v43 = vmul.f32 %v6617_v52, %v10559_v7  ;;  %6642 = vrcp.f32 %v9426_v21  ;;  %v10560_v18 = vld [vmem:[#allocation162_spill] sm:$0xff]  ;;  %v10567_v23 = vld [vmem:[#allocation35_spill] sm:$0xff] }
 0xe5e   : > { %v9731_v36 = vsel %vm4494_vm2, %v9610_v32, %v5922_v54  ;;  %v9735_v12 = vsel %vm4494_vm2, %v9613_v11, %v5923_v20  ;;  %v5928_v26 = vunpack.i.h.bf16 %v5926_v2  ;;  %v5927_v55 = vunpack.i.l.bf16 %v5926_v2  ;;  %v6629_v41 = vpop.eup %6628 }
 0xe5f   : > { %v5931_v60 = vpop.permute.xlu1 %5930  ;;  %v6044_v14 = vpack.i.bf16 %v3123_v13, %v3122_v62  ;;  %v3128_v52 = vmul.f32 %v9524_v29, %v10560_v18  ;;  %6644 = vrcp.f32 %v9432_v15  ;;  %v3127_v29 = vmul.f32 %v9602_v19, %v10561_v8  ;;  %v10563_v19 = vld [vmem:[#allocation163_spill] sm:$0xff] }
 0xe60   : > { %v9743_v32 = vsel %vm4494_vm2, %v9628_v47, %v5927_v55  ;;  %v9747_v11 = vsel %vm4494_vm2, %v9625_v45, %v5928_v26  ;;  %v5933_v5 = vunpack.i.h.bf16 %v5931_v60  ;;  %v5932_v9 = vunpack.i.l.bf16 %v5931_v60  ;;  %6050 = vrot.lane.b32.xlu1 %v6049_v31, %s6784_s10  ;;  %v6631_v4 = vpop.eup %6630 }
 0xe61   : > { %6035 = vrot.lane.b32.xlu0 %v6034_v49, %s6784_s10  ;;  %v5936_v21 = vpop.permute.xlu0 %5935  ;;  %v6059_v50 = vpack.i.bf16 %v3129_v43, %v3128_v52  ;;  %v3567_v34 = vmul.f32 %v6625_v30, %v10562_v22  ;;  %6646 = vrcp.f32 %v9417_v35  ;;  %v3126_v24 = vmul.f32 %v9507_v33, %v10563_v19  ;;  %v10565_v33 = vld [vmem:[#allocation36_spill] sm:$0xff] }
 0xe62   : > { %v9756_v47 = vsel %vm4494_vm2, %v9641_v59, %v5932_v9  ;;  %v9760_v45 = vsel %vm4494_vm2, %v9644_v37, %v5933_v5  ;;  %v5938_v46 = vunpack.i.h.bf16 %v5936_v21  ;;  %v5937_v6 = vunpack.i.l.bf16 %v5936_v21  ;;  %v9762_v25 = vpop.eup %6632 }
 0xe63   : > { %v5941_v15 = vpop.permute.xlu1 %5940  ;;  %v3566_v59 = vmul.f32 %v9666_v51, %v10564_v63  ;;  %v6635_v17 = vpop.eup %6634  ;;  %v6054_v56 = vpack.i.bf16 %v3127_v29, %v3126_v24  ;;  %v3565_v13 = vmul.f32 %v9684_v42, %v10565_v33  ;;  %v10566_v51 = vld [vmem:[#allocation43_spill] sm:$0xff]  ;;  %v3564_v62 = vmul.f32 %v9638_v38, %v10567_v23  ;;  %v10568_v42 = vld [vmem:[#allocation40_spill] sm:$0xff]  ;;  %v10571_v29 = vld [vmem:[#allocation38_spill] sm:$0xff] }
 0xe64   : > { %v9772_v37 = vsel %vm4494_vm2, %v9659_v1, %v5937_v6  ;;  %v9776_v0 = vsel %vm4494_vm2, %v9656_v27, %v5938_v46  ;;  %v5943_v35 = vunpack.i.h.bf16 %v5941_v15  ;;  %v5942_v49 = vunpack.i.l.bf16 %v5941_v15  ;;  %6060 = vrot.lane.b32.xlu1 %v6059_v50, %s6784_s10  ;;  %v6637_v20 = vpop.eup %6636  ;;  %v10569_v38 = vld [vmem:[#allocation39_spill] sm:$0xff]  ;;  %v10573_v63 = vld [vmem:[#allocation45_spill] sm:$0xff] }
 0xe65   : > { %6045 = vrot.lane.b32.xlu0 %v6044_v14, %s6784_s10  ;;  %v5946_v10 = vpop.permute.xlu0 %5945  ;;  %v6069_v40 = vpack.i.bf16 %v3567_v34, %v3566_v59  ;;  %v3571_v30 = vmul.f32 %v6631_v4, %v10566_v51  ;;  %v3570_v7 = vmul.f32 %v6627_v16, %v10568_v42  ;;  %v6064_v14 = vpack.i.bf16 %v3565_v13, %v3564_v62  ;;  %v10570_v16 = vld [vmem:[#allocation44_spill] sm:$0xff]  ;;  %v10576_v13 = vld [vmem:[#allocation63_spill] sm:$0xff]  ;;  %v10577_v62 = vld [vmem:[#allocation70_spill] sm:$0xff] }
 0xe66   : > { %v9784_v1 = vsel %vm4494_vm2, %v9670_v3, %v5942_v49  ;;  %v9788_v27 = vsel %vm4494_vm2, %v9674_v61, %v5943_v35  ;;  %v5948_v54 = vunpack.i.h.bf16 %v5946_v10  ;;  %v5947_v2 = vunpack.i.l.bf16 %v5946_v10  ;;  %v6639_v43 = vpop.eup %6638  ;;  %v10574_v59 = vld [vmem:[#allocation64_spill] sm:$0xff] }
 0xe67   : > { %v5951_v31 = vpop.permute.xlu1 %5950  ;;  %v6079_v18 = vpack.i.bf16 %v3571_v30, %v3570_v7  ;;  %v3569_v52 = vmul.f32 %v6629_v41, %v10569_v38  ;;  %v3575_v5 = vmul.f32 %v6637_v20, %v10570_v16  ;;  %v3568_v22 = vmul.f32 %v9699_v57, %v10571_v29  ;;  %v10572_v41 = vld [vmem:[#allocation46_spill] sm:$0xff] }
 0xe68   : > { %v9796_v26 = vsel %vm4511_vm3, %v9692_v58, %v5947_v2  ;;  %v9800_v3 = vsel %vm4511_vm3, %v9688_v39, %v5948_v54  ;;  %v5953_v61 = vunpack.i.h.bf16 %v5951_v31  ;;  %v5952_v55 = vunpack.i.l.bf16 %v5951_v31  ;;  %6070 = vrot.lane.b32.xlu1 %v6069_v40, %s6785_s11  ;;  %v6641_v9 = vpop.eup %6640  ;;  %v10575_v40 = vld [vmem:[#allocation42_spill] sm:$0xff] }
 0xe69   : > { %6055 = vrot.lane.b32.xlu0 %v6054_v56, %s6784_s10  ;;  %v5956_v60 = vpop.permute.xlu0 %5955  ;;  %v3574_v34 = vmul.f32 %v6635_v17, %v10572_v41  ;;  %v6074_v19 = vpack.i.bf16 %v3569_v52, %v3568_v22  ;;  %v3573_v57 = vmul.f32 %v6639_v43, %v10573_v63  ;;  %v3579_v17 = vmul.f32 %v6641_v9, %v10574_v59 }
 0xe6a   : > { %v9807_v58 = vsel %vm4511_vm3, %v9703_v28, %v5952_v55  ;;  %v9811_v39 = vsel %vm4511_vm3, %v9707_v48, %v5953_v61  ;;  %v5958_v21 = vunpack.i.h.bf16 %v5956_v60  ;;  %v5957_v50 = vunpack.i.l.bf16 %v5956_v60  ;;  %v6643_v4 = vpop.eup %6642  ;;  %v10578_v61 = vld [vmem:[#allocation67_spill] sm:$0xff] }
 0xe6b   : > { %v5961_v8 = vpop.permute.xlu1 %5960  ;;  %v6089_v24 = vpack.i.bf16 %v3575_v5, %v3574_v34  ;;  %v3572_v33 = vmul.f32 %v9762_v25, %v10575_v40  ;;  %v3578_v51 = vmul.f32 %v6643_v4, %v10576_v13 }
 0xe6c   : > { %v9819_v46 = vsel %vm4511_vm3, %v9722_v44, %v5957_v50  ;;  %v9823_v28 = vsel %vm4511_vm3, %v9718_v53, %v5958_v21  ;;  %v5963_v48 = vunpack.i.h.bf16 %v5961_v8  ;;  %v5962_v6 = vunpack.i.l.bf16 %v5961_v8  ;;  %6080 = vrot.lane.b32.xlu1 %v6079_v18, %s6785_s11  ;;  %v6645_v35 = vpop.eup %6644 }
 0xe6d   : > { %6065 = vrot.lane.b32.xlu0 %v6064_v14, %s6785_s11  ;;  %v5966_v15 = vpop.permute.xlu0 %5965  ;;  %v6084_v31 = vpack.i.bf16 %v3573_v57, %v3572_v33  ;;  %v6099_v23 = vpack.i.bf16 %v3579_v17, %v3578_v51  ;;  %v3577_v25 = vmul.f32 %v6645_v35, %v10577_v62 }
 0xe6e   : > { %v9830_v44 = vsel %vm4511_vm3, %v9731_v36, %v5962_v6  ;;  %v9834_v53 = vsel %vm4511_vm3, %v9735_v12, %v5963_v48  ;;  %v5968_v49 = vunpack.i.h.bf16 %v5966_v15  ;;  %v5967_v10 = vunpack.i.l.bf16 %v5966_v15  ;;  %v6647_v30 = vpop.eup %6646 }
 0xe6f   : > { %v5971_v56 = vpop.permute.xlu1 %5970  ;;  %v3576_v55 = vmul.f32 %v6647_v30, %v10578_v61 }
 0xe70   : > { %v9842_v20 = vsel %vm4511_vm3, %v9743_v32, %v5967_v10  ;;  %v9846_v36 = vsel %vm4511_vm3, %v9747_v11, %v5968_v49  ;;  %v5973_v12 = vunpack.i.h.bf16 %v5971_v56  ;;  %v5972_v54 = vunpack.i.l.bf16 %v5971_v56  ;;  %6090 = vrot.lane.b32.xlu1 %v6089_v24, %s6785_s11 }
 0xe71   : > { %6075 = vrot.lane.b32.xlu0 %v6074_v19, %s6785_s11  ;;  %v5976_v2 = vpop.permute.xlu0 %5975  ;;  %v6094_v38 = vpack.i.bf16 %v3577_v25, %v3576_v55 }
 0xe72   : > { %v9852_v42 = vsel %vm4511_vm3, %v9756_v47, %v5972_v54  ;;  %v9856_v32 = vsel %vm4511_vm3, %v9760_v45, %v5973_v12  ;;  %v5978_v7 = vunpack.i.h.bf16 %v5976_v2  ;;  %v5977_v11 = vunpack.i.l.bf16 %v5976_v2 }
 0xe73   : > { %v5981_v43 = vpop.permute.xlu1 %5980 }
 0xe74   : > { %v9862_v60 = vsel %vm4511_vm3, %v9772_v37, %v5977_v11  ;;  %v9866_v14 = vsel %vm4511_vm3, %v9776_v0, %v5978_v7  ;;  %v5983_v47 = vunpack.i.h.bf16 %v5981_v43  ;;  %v5982_v18 = vunpack.i.l.bf16 %v5981_v43  ;;  %6100 = vrot.lane.b32.xlu1 %v6099_v23, %s6785_s11 }
 0xe75   : > { %6085 = vrot.lane.b32.xlu0 %v6084_v31, %s6785_s11  ;;  %v5986_v45 = vpop.permute.xlu0 %5985 }
 0xe76   : > { %v9871_v52 = vsel %vm4511_vm3, %v9784_v1, %v5982_v18  ;;  %v9875_v16 = vsel %vm4511_vm3, %v9788_v27, %v5983_v47  ;;  %v5988_v37 = vunpack.i.h.bf16 %v5986_v45  ;;  %v5987_v5 = vunpack.i.l.bf16 %v5986_v45 }
 0xe77   : > { %v5991_v9 = vpop.permute.xlu1 %5990 }
 0xe78   : > { %v9880_v0 = vsel %vm4528_vm4, %v9796_v26, %v5987_v5  ;;  %v9884_v21 = vsel %vm4528_vm4, %v9800_v3, %v5988_v37  ;;  %v5993_v50 = vunpack.i.h.bf16 %v5991_v9  ;;  %v5992_v1 = vunpack.i.l.bf16 %v5991_v9 }
 0xe79   : > { %6095 = vrot.lane.b32.xlu0 %v6094_v38, %s6785_s11 }
 0xe7a   : > { %v9888_v8 = vsel %vm4528_vm4, %v9807_v58, %v5992_v1  ;;  %v9892_v27 = vsel %vm4528_vm4, %v9811_v39, %v5993_v50 }
 0xea6   : > { %v3844_v29 = vpop.xlane.xlu0 %3843 }
 0xea7   : > { %6648 = vrcp.f32 %v3844_v29 }
 0xea8   : > { %v3842_v22 = vpop.xlane.xlu1 %3841 }
 0xea9   : > { %6650 = vrcp.f32 %v3842_v22 }
 0xeaa   : > { %v3840_v26 = vpop.xlane.xlu0 %3839 }
 0xeab   : > { %6652 = vrcp.f32 %v3840_v26 }
 0xeac   : > { %v3838_v41 = vpop.xlane.xlu1 %3837 }
 0xead   : > { %6654 = vrcp.f32 %v3838_v41 }
 0xeae   : > { %v3852_v3 = vpop.xlane.xlu0 %3851 }
 0xeb0   : > { %v3850_v34 = vpop.xlane.xlu1 %3849 }
 0xeb1   : > { %6656 = vrcp.f32 %v3850_v34 }
 0xeb2   : > { %6658 = vrcp.f32 %v3852_v3  ;;  %v5747_v4 = vpop.f32.mrf.mxu0  ;;  %v3848_v48 = vpop.xlane.xlu0 %3847 }
 0xeb3   : > { %6660 = vrcp.f32 %v3848_v48 }
 0xeb4   : > { %v3846_v58 = vpop.xlane.xlu1 %3845  ;;  %v3935_v6 = vpop.f32.mrf.mxu0 }
 0xeb5   : > { %v6649_v15 = vpop.eup %6648  ;;  %6662 = vrcp.f32 %v3846_v58 }
 0xeb6   : > { %v6651_v39 = vpop.eup %6650  ;;  %v5748_v19 = vpop.f32.mrf.mxu0 }
 0xeb7   : > { %v3860_v24 = vpop.xlane.xlu0 %3859  ;;  %v4016_v63 = vmul.f32 %v6651_v39, %v5747_v4  ;;  %v4017_v57 = vmul.f32 %v6649_v15, %v5748_v19 }
 0xeb8   : > { %v6653_v59 = vpop.eup %6652  ;;  %v3858_v17 = vpop.xlane.xlu1 %3857 }
 0xeb9   : > { %v3938_v35 = vpop.f32.mrf.mxu0  ;;  %v6104_v49 = vpack.i.bf16 %v4017_v57, %v4016_v63  ;;  %6664 = vrcp.f32 %v3858_v17 }
 0xeba   : > { %v6655_v10 = vpop.eup %6654  ;;  %6666 = vrcp.f32 %v3860_v24  ;;  %v4015_v33 = vmul.f32 %v6653_v59, %v3938_v35 }
 0xebb   : > { %v3856_v56 = vpop.xlane.xlu0 %3855  ;;  %v4014_v40 = vmul.f32 %v6655_v10, %v3935_v6  ;;  %v5751_v13 = vpop.f32.mrf.mxu0  ;;  %6105 = vrot.lane.b32.xlu1 %v6104_v49, %s6786_s12 }
 0xebc   : > { %6668 = vrcp.f32 %v3856_v56  ;;  %v3854_v51 = vpop.xlane.xlu1 %3853 }
 0xebd   : > { %v6109_v30 = vpack.i.bf16 %v4015_v33, %v4014_v40  ;;  %6670 = vrcp.f32 %v3854_v51  ;;  %v3951_v12 = vpop.f32.mrf.mxu0 }
 0xebe   : > { %v6657_v54 = vpop.eup %6656 }
 0xebf   : > { %v3868_v2 = vpop.xlane.xlu0 %3867  ;;  %v6659_v31 = vpop.eup %6658  ;;  %v4020_v23 = vmul.f32 %v6657_v54, %v5751_v13  ;;  %6110 = vrot.lane.b32.xlu0 %v6109_v30, %s6786_s12 }
 0xec0   : > { %v5752_v62 = vpop.f32.mrf.mxu0  ;;  %v6661_v25 = vpop.eup %6660 }
 0xec1   : > { %v4021_v7 = vmul.f32 %v6659_v31, %v5752_v62  ;;  %v3866_v11 = vpop.xlane.xlu1 %3865 }
 0xec2   : > { %6672 = vrcp.f32 %v3866_v11  ;;  %v3954_v43 = vpop.f32.mrf.mxu0  ;;  %v6663_v61 = vpop.eup %6662 }
 0xec3   : > { %6674 = vrcp.f32 %v3868_v2  ;;  %v6114_v55 = vpack.i.bf16 %v4021_v7, %v4020_v23  ;;  %v4019_v47 = vmul.f32 %v6661_v25, %v3954_v43  ;;  %v3864_v18 = vpop.xlane.xlu0 %3863  ;;  %v4018_v45 = vmul.f32 %v6663_v61, %v3951_v12 }
 0xec4   : > { %6676 = vrcp.f32 %v3864_v18  ;;  %v5755_v38 = vpop.f32.mrf.mxu0 }
 0xec5   : > { %v3862_v37 = vpop.xlane.xlu1 %3861  ;;  %6115 = vrot.lane.b32.xlu1 %v6114_v55, %s6786_s12  ;;  %v6119_v5 = vpack.i.bf16 %v4019_v47, %v4018_v45 }
 0xec6   : > { %6678 = vrcp.f32 %v3862_v37  ;;  %v3967_v9 = vpop.f32.mrf.mxu0  ;;  %v6665_v50 = vpop.eup %6664 }
 0xec7   : > { %v6667_v1 = vpop.eup %6666  ;;  %v4024_v29 = vmul.f32 %v6665_v50, %v5755_v38  ;;  %6120 = vrot.lane.b32.xlu0 %v6119_v5, %s6786_s12  ;;  %v5996_v51 = vpop.permute.xlu0 %5995 }
 0xec8   : > { %v5756_v22 = vpop.f32.mrf.mxu0  ;;  %v5998_v5 = vunpack.i.h.bf16 %v5996_v51 }
 0xec9   : > { %v6669_v26 = vpop.eup %6668  ;;  %v4025_v41 = vmul.f32 %v6667_v1, %v5756_v22  ;;  %v6001_v13 = vpop.permute.xlu1 %6000 }
 0xeca   : > { %v3970_v3 = vpop.f32.mrf.mxu0  ;;  %v6671_v34 = vpop.eup %6670  ;;  %v6003_v50 = vunpack.i.h.bf16 %v6001_v13  ;;  %v6002_v1 = vunpack.i.l.bf16 %v6001_v13 }
 0xecb   : > { %v6124_v4 = vpack.i.bf16 %v4025_v41, %v4024_v29  ;;  %v4023_v48 = vmul.f32 %v6669_v26, %v3970_v3  ;;  %v4022_v58 = vmul.f32 %v6671_v34, %v3967_v9  ;;  %v9904_v12 = vpop.permute.xlu0 %6005  ;;  %v5997_v9 = vunpack.i.l.bf16 %v5996_v51 }
 0xecc   : > { %v5759_v6 = vpop.f32.mrf.mxu0 }
 0xecd   : > { %6125 = vrot.lane.b32.xlu1 %v6124_v4, %s6786_s12  ;;  %v6129_v15 = vpack.i.bf16 %v4023_v48, %v4022_v58  ;;  %v9902_v30 = vpop.permute.xlu1 %6010  ;;  %v4533_v34 = vsel %vm4528_vm4, %v9819_v46, %v5997_v9  ;;  %v4534_v4 = vsel %vm4528_vm4, %v9823_v28, %v5998_v5  ;;  %v4535_v48 = vsel %vm4528_vm4, %v9830_v44, %v6002_v1 }
 0xece   : > { %v3983_v39 = vpop.f32.mrf.mxu0  ;;  %v4536_v58 = vsel %vm4528_vm4, %v9834_v53, %v6003_v50 }
 0xecf   : > { %v6673_v19 = vpop.eup %6672  ;;  %6130 = vrot.lane.b32.xlu0 %v6129_v15, %s6786_s12  ;;  %v9908_v2 = vpop.permute.xlu0 %6015  ;;  %v6007_v15 = vunpack.i.l.bf16 %v9904_v12 }
 0xed0   : > { %v6675_v24 = vpop.eup %6674  ;;  %v4028_v63 = vmul.f32 %v6673_v19, %v5759_v6  ;;  %v5760_v57 = vpop.f32.mrf.mxu0  ;;  %v6008_v6 = vunpack.i.h.bf16 %v9904_v12 }
 0xed1   : > { %v6677_v59 = vpop.eup %6676  ;;  %v4029_v17 = vmul.f32 %v6675_v24, %v5760_v57  ;;  %v9906_v54 = vpop.permute.xlu1 %6020 }
 0xed2   : > { %v3986_v35 = vpop.f32.mrf.mxu0  ;;  %v4538_v1 = vsel %vm4528_vm4, %v9846_v36, %v6008_v6 }
 0xed3   : > { %v6679_v49 = vpop.eup %6678  ;;  %v6139_v10 = vpack.i.bf16 %v4029_v17, %v4028_v63  ;;  %v4027_v56 = vmul.f32 %v6677_v59, %v3986_v35  ;;  %v6026_v23 = vpop.permute.xlu0 %6025 }
 0xed4   : > { %v4026_v40 = vmul.f32 %v6679_v49, %v3983_v39  ;;  %v6028_v39 = vunpack.i.h.bf16 %v6026_v23  ;;  %v6027_v19 = vunpack.i.l.bf16 %v6026_v23  ;;  %v6013_v49 = vunpack.i.h.bf16 %v9902_v30 }
 0xed5   : > { %6140 = vrot.lane.b32.xlu1 %v6139_v10, %s6786_s12  ;;  %v6031_v31 = vpop.permute.xlu1 %6030  ;;  %v6012_v10 = vunpack.i.l.bf16 %v9902_v30 }
 0xed6   : > { %v6134_v33 = vpack.i.bf16 %v4027_v56, %v4026_v40  ;;  %v6033_v22 = vunpack.i.h.bf16 %v6031_v31  ;;  %v6032_v26 = vunpack.i.l.bf16 %v6031_v31  ;;  %v4546_v56 = vsel %vm4545_vm5, %v9880_v0, %v6027_v19 }
 0xed7   : > { %v9912_v25 = vpop.permute.xlu0 %6035  ;;  %v4547_v40 = vsel %vm4545_vm5, %v9884_v21, %v6028_v39 }
 0xed8   : > { %6135 = vrot.lane.b32.xlu0 %v6134_v33, %s6786_s12  ;;  %v4548_v46 = vsel %vm4545_vm5, %v9888_v8, %v6032_v26  ;;  %v4549_v28 = vsel %vm4545_vm5, %v9892_v27, %v6033_v22 }
 0xed9   : > { %v9910_v62 = vpop.permute.xlu1 %6040 }
 0xeda   : > { %v6043_v30 = vunpack.i.h.bf16 %v9910_v62  ;;  %v6042_v12 = vunpack.i.l.bf16 %v9910_v62 }
 0xedb   : > { %v9916_v11 = vpop.permute.xlu0 %6045 }
 0xedc   : > { %v4553_v39 = vsel %vm4545_vm5, %v4536_v58, %v6043_v30 }
 0xedd   : > { %v9914_v7 = vpop.permute.xlu1 %6050 }
 0xede   : > { %v6053_v58 = vunpack.i.h.bf16 %v9914_v7 }
 0xedf   : > { %v9920_v61 = vpop.permute.xlu0 %6055 }
 0xee1   : > { %v9918_v43 = vpop.permute.xlu1 %6060 }
 0xee3   : > { %v6066_v47 = vpop.permute.xlu0 %6065 }
 0xee4   : > { %v6068_v59 = vunpack.i.h.bf16 %v6066_v47  ;;  %v6067_v53 = vunpack.i.l.bf16 %v6066_v47  ;;  %v6037_v47 = vunpack.i.l.bf16 %v9912_v25 }
 0xee5   : > { %v6071_v55 = vpop.permute.xlu1 %6070 }
 0xee6   : > { %v6073_v41 = vunpack.i.h.bf16 %v6071_v55  ;;  %v6072_v3 = vunpack.i.l.bf16 %v6071_v55  ;;  %v6038_v55 = vunpack.i.h.bf16 %v9912_v25  ;;  %v4563_v5 = vsel %vm4562_vm6, %v4546_v56, %v6067_v53 }
 0xee7   : > { %v9924_v45 = vpop.permute.xlu0 %6075  ;;  %v4564_v0 = vsel %vm4562_vm6, %v4547_v40, %v6068_v59  ;;  %v4537_v25 = vsel %vm4528_vm4, %v9842_v20, %v6007_v15  ;;  %v6017_v56 = vunpack.i.l.bf16 %v9908_v2 }
 0xee8   : > { %v4565_v17 = vsel %vm4562_vm6, %v4548_v46, %v6072_v3  ;;  %v4566_v35 = vsel %vm4562_vm6, %v4549_v28, %v6073_v41  ;;  %v4539_v41 = vsel %vm4528_vm4, %v9852_v42, %v6012_v10  ;;  %v4540_v3 = vsel %vm4528_vm4, %v9856_v32, %v6013_v49 }
 0xee9   : > { %v9922_v18 = vpop.permute.xlu1 %6080  ;;  %v6077_v20 = vunpack.i.l.bf16 %v9924_v45  ;;  %v4550_v42 = vsel %vm4545_vm5, %v4533_v34, %v6037_v47  ;;  %v4551_v15 = vsel %vm4545_vm5, %v4534_v4, %v6038_v55  ;;  %v6048_v4 = vunpack.i.h.bf16 %v9916_v11 }
 0xeea   : > { %v6083_v21 = vunpack.i.h.bf16 %v9922_v18  ;;  %v6082_v62 = vunpack.i.l.bf16 %v9922_v18  ;;  %v4552_v18 = vsel %vm4545_vm5, %v4535_v48, %v6042_v12  ;;  %v4557_v30 = vsel %vm4545_vm5, %v4540_v3, %v6053_v58 }
 0xeeb   : > { %v9928_v37 = vpop.permute.xlu0 %6085 }
 0xeec   : > { %v4569_v32 = vsel %vm4562_vm6, %v4552_v18, %v6082_v62  ;;  %v4570_v48 = vsel %vm4562_vm6, %v4553_v39, %v6083_v21  ;;  %v6063_v21 = vunpack.i.h.bf16 %v9918_v43 }
 0xeed   : > { %v9926_v38 = vpop.permute.xlu1 %6090 }
 0xeee   : > { %v6093_v10 = vunpack.i.h.bf16 %v9926_v38 }
 0xeef   : > { %v9942_v24 = vpop.permute.xlu0 %6095 }
 0xef1   : > { %v9930_v29 = vpop.permute.xlu1 %6100 }
 0xf2d   : > { %v6106_v63 = vpop.permute.xlu1 %6105 }
 0xf2e   : > { %v6108_v44 = vunpack.i.h.bf16 %v6106_v63  ;;  %v6107_v57 = vunpack.i.l.bf16 %v6106_v63  ;;  %v6078_v63 = vunpack.i.h.bf16 %v9924_v45  ;;  %v6052_v45 = vunpack.i.l.bf16 %v9914_v7 }
 0xf2f   : > { %v6092_v7 = vunpack.i.l.bf16 %v9926_v38  ;;  %v6022_v38 = vunpack.i.l.bf16 %v9906_v54 }
 0xf30   : > { %v4582_v8 = vsel %vm4579_vm7, %v4565_v17, %v6107_v57  ;;  %v4583_v27 = vsel %vm4579_vm7, %v4566_v35, %v6108_v44  ;;  %v6047_v17 = vunpack.i.l.bf16 %v9916_v11  ;;  %v4567_v35 = vsel %vm4562_vm6, %v4550_v42, %v6077_v20 }
 0xf31   : > { %v4979_v33 = vpack.c.bf16 %v4582_v8, %v4582_v8  ;;  %v4980_v13 = vpack.c.bf16 %v4583_v27, %v4583_v27  ;;  %v6111_v51 = vpop.permute.xlu0 %6110  ;;  %v4568_v49 = vsel %vm4562_vm6, %v4551_v15, %v6078_v63  ;;  %v6018_v11 = vunpack.i.h.bf16 %v9908_v2 }
 0xf32   : > { %v6113_v31 = vunpack.i.h.bf16 %v6111_v51  ;;  %v6112_v23 = vunpack.i.l.bf16 %v6111_v51  ;;  %v4556_v51 = vsel %vm4545_vm5, %v4539_v41, %v6052_v45  ;;  %v4554_v47 = vsel %vm4545_vm5, %v4537_v25, %v6047_v17 }
 0xf33   : > { %4663 = vst.msk [vmem:[%s9956_s19 + $0x8] sm:$0xf] %vm4660_vm8, %v4979_v33  ;;  %4664 = vst.msk [vmem:[%s9956_s19 + $0xc] sm:$0xf] %vm4660_vm8, %v4980_v13  ;;  %v6023_v13 = vunpack.i.h.bf16 %v9906_v54  ;;  %v4573_v54 = vsel %vm4562_vm6, %v4556_v51, %v6092_v7  ;;  %v6057_v20 = vunpack.i.l.bf16 %v9920_v61 }
 0xf34   : > { %v4580_v9 = vsel %vm4579_vm7, %v4563_v5, %v6112_v23  ;;  %v4581_v50 = vsel %vm4579_vm7, %v4564_v0, %v6113_v31  ;;  %v6088_v31 = vunpack.i.h.bf16 %v9928_v37  ;;  %v6087_v23 = vunpack.i.l.bf16 %v9928_v37 }
 0xf35   : > { %v4977_v22 = vpack.c.bf16 %v4580_v9, %v4580_v9  ;;  %v4978_v26 = vpack.c.bf16 %v4581_v50, %v4581_v50  ;;  %v4555_v5 = vsel %vm4545_vm5, %v4538_v1, %v6048_v4  ;;  %v4574_v0 = vsel %vm4562_vm6, %v4557_v30, %v6093_v10 }
 0xf36   : > { %v6062_v37 = vunpack.i.l.bf16 %v9918_v43  ;;  %v4543_v1 = vsel %vm4528_vm4, %v9871_v52, %v6022_v38  ;;  %v4544_v3 = vsel %vm4528_vm4, %v9875_v16, %v6023_v13  ;;  %v4571_v18 = vsel %vm4562_vm6, %v4554_v47, %v6087_v23 }
 0xf37   : > { %v6116_v19 = vpop.permute.xlu1 %6115  ;;  %4661 = vst.msk [vmem:[%s9956_s19] sm:$0xf] %vm4660_vm8, %v4977_v22  ;;  %4662 = vst.msk [vmem:[%s9956_s19 + $0x4] sm:$0xf] %vm4660_vm8, %v4978_v26  ;;  %v4572_v39 = vsel %vm4562_vm6, %v4555_v5, %v6088_v31  ;;  %v6103_v43 = vunpack.i.h.bf16 %v9930_v29  ;;  %v6058_v16 = vunpack.i.h.bf16 %v9920_v61  ;;  %v4561_v15 = vsel %vm4545_vm5, %v4544_v3, %v6063_v21 }
 0xf38   : > { %v6118_v36 = vunpack.i.h.bf16 %v6116_v19  ;;  %v6117_v6 = vunpack.i.l.bf16 %v6116_v19  ;;  %v6102_v19 = vunpack.i.l.bf16 %v9930_v29  ;;  %v4560_v42 = vsel %vm4545_vm5, %v4543_v1, %v6062_v37 }
 0xf39   : > { %v6121_v44 = vpop.permute.xlu0 %6120  ;;  %v6098_v29 = vunpack.i.h.bf16 %v9942_v24  ;;  %v4541_v61 = vsel %vm4528_vm4, %v9862_v60, %v6017_v56 }
 0xf3a   : > { %v4587_v46 = vsel %vm4579_vm7, %v4570_v48, %v6118_v36  ;;  %v4586_v28 = vsel %vm4579_vm7, %v4569_v32, %v6117_v6  ;;  %v6123_v34 = vunpack.i.h.bf16 %v6121_v44  ;;  %v6122_v53 = vunpack.i.l.bf16 %v6121_v44 }
 0xf3b   : > { %v4984_v57 = vpack.c.bf16 %v4587_v46, %v4587_v46  ;;  %v4983_v59 = vpack.c.bf16 %v4586_v28, %v4586_v28  ;;  %v6097_v48 = vunpack.i.l.bf16 %v9942_v24  ;;  %v4542_v46 = vsel %vm4528_vm4, %v9866_v14, %v6018_v11 }
 0xf3c   : > { %v4584_v8 = vsel %vm4579_vm7, %v4567_v35, %v6122_v53  ;;  %v4585_v27 = vsel %vm4579_vm7, %v4568_v49, %v6123_v34  ;;  %v4577_v28 = vsel %vm4562_vm6, %v4560_v42, %v6102_v19  ;;  %v4578_v44 = vsel %vm4562_vm6, %v4561_v15, %v6103_v43 }
 0xf3d   : > { %4668 = vst.msk [vmem:[%s9956_s19 + $0x1c] sm:$0xf] %vm4660_vm8, %v4984_v57  ;;  %4667 = vst.msk [vmem:[%s9956_s19 + $0x18] sm:$0xf] %vm4660_vm8, %v4983_v59  ;;  %v4981_v40 = vpack.c.bf16 %v4584_v8, %v4584_v8  ;;  %v4982_v33 = vpack.c.bf16 %v4585_v27, %v4585_v27  ;;  %v4558_v24 = vsel %vm4545_vm5, %v4541_v61, %v6057_v20 }
 0xf3e   : > { %v4559_v57 = vsel %vm4545_vm5, %v4542_v46, %v6058_v16  ;;  %v4575_v14 = vsel %vm4562_vm6, %v4558_v24, %v6097_v48 }
 0xf3f   : > { %v6126_v12 = vpop.permute.xlu1 %6125  ;;  %4665 = vst.msk [vmem:[%s9956_s19 + $0x10] sm:$0xf] %vm4660_vm8, %v4981_v40  ;;  %4666 = vst.msk [vmem:[%s9956_s19 + $0x14] sm:$0xf] %vm4660_vm8, %v4982_v33  ;;  %v4576_v49 = vsel %vm4562_vm6, %v4559_v57, %v6098_v29 }
 0xf40   : > { %v6128_v2 = vunpack.i.h.bf16 %v6126_v12  ;;  %v6127_v55 = vunpack.i.l.bf16 %v6126_v12 }
 0xf41   : > { %v6131_v50 = vpop.permute.xlu0 %6130 }
 0xf42   : > { %v4591_v62 = vsel %vm4579_vm7, %v4574_v0, %v6128_v2  ;;  %v4590_v9 = vsel %vm4579_vm7, %v4573_v54, %v6127_v55  ;;  %v6133_v25 = vunpack.i.h.bf16 %v6131_v50  ;;  %v6132_v41 = vunpack.i.l.bf16 %v6131_v50 }
 0xf43   : > { %v4988_v22 = vpack.c.bf16 %v4591_v62, %v4591_v62  ;;  %v4987_v26 = vpack.c.bf16 %v4590_v9, %v4590_v9 }
 0xf44   : > { %v4588_v63 = vsel %vm4579_vm7, %v4571_v18, %v6132_v41  ;;  %v4589_v52 = vsel %vm4579_vm7, %v4572_v39, %v6133_v25 }
 0xf45   : > { %4672 = vst.msk [vmem:[%s9956_s19 + $0x2c] sm:$0xf] %vm4660_vm8, %v4988_v22  ;;  %4671 = vst.msk [vmem:[%s9956_s19 + $0x28] sm:$0xf] %vm4660_vm8, %v4987_v26  ;;  %v4985_v36 = vpack.c.bf16 %v4588_v63, %v4588_v63  ;;  %v4986_v6 = vpack.c.bf16 %v4589_v52, %v4589_v52 }
 0xf47   : > { %v6141_v32 = vpop.permute.xlu1 %6140  ;;  %4669 = vst.msk [vmem:[%s9956_s19 + $0x20] sm:$0xf] %vm4660_vm8, %v4985_v36  ;;  %4670 = vst.msk [vmem:[%s9956_s19 + $0x24] sm:$0xf] %vm4660_vm8, %v4986_v6 }
 0xf48   : > { %v6143_v58 = vunpack.i.h.bf16 %v6141_v32  ;;  %v6142_v45 = vunpack.i.l.bf16 %v6141_v32 }
 0xf4a   : > { %v4595_v59 = vsel %vm4579_vm7, %v4578_v44, %v6143_v58  ;;  %v4594_v34 = vsel %vm4579_vm7, %v4577_v28, %v6142_v45  ;;  %v6136_v53 = vpop.permute.xlu0 %6135 }
 0xf4b   : > { %v4992_v60 = vpack.c.bf16 %v4595_v59, %v4595_v59  ;;  %v4991_v4 = vpack.c.bf16 %v4594_v34, %v4594_v34  ;;  %v6138_v17 = vunpack.i.h.bf16 %v6136_v53  ;;  %v6137_v35 = vunpack.i.l.bf16 %v6136_v53 }
 0xf4d   : > { %4676 = vst.msk [vmem:[%s9956_s19 + $0x3c] sm:$0xf] %vm4660_vm8, %v4992_v60  ;;  %4675 = vst.msk [vmem:[%s9956_s19 + $0x38] sm:$0xf] %vm4660_vm8, %v4991_v4  ;;  %v4592_v10 = vsel %vm4579_vm7, %v4575_v14, %v6137_v35  ;;  %v4593_v7 = vsel %vm4579_vm7, %v4576_v49, %v6138_v17 }
 0xf4e   : > { %v4989_v8 = vpack.c.bf16 %v4592_v10, %v4592_v10  ;;  %v4990_v27 = vpack.c.bf16 %v4593_v7, %v4593_v7 }
 0xf50   : > { %4673 = vst.msk [vmem:[%s9956_s19 + $0x30] sm:$0xf] %vm4660_vm8, %v4989_v8  ;;  %4674 = vst.msk [vmem:[%s9956_s19 + $0x34] sm:$0xf] %vm4660_vm8, %v4990_v27 }
 0xf51 PF: > { %s13_s14 = sadd.s32 1, %s6770_s14   ;;  %s10579_s12 = smov %s6766_s13 }
 0xf52   : > { %p10_p5 = scmp.ge.s32.totalorder %s13_s14, 4   ;;  %s10580_s13 = smov %s10582_s15 }
 0xf54   :  { %12 = sbr.rel (!%p10_p5) target bundleno = 2 (0x2), region = 68 }

</bundles_post_ra>
